<compile_context>
chip_gen: v6e
topology: v6e:2x2x1
jax: 0.10.0
libtpu: 0.0.40
codegen_flags: <defaults>
</compile_context>

<pallas_src>
import functools

import jax
import jax.numpy as jnp
from jax.experimental import pallas as pl
from jax.experimental.pallas import tpu as pltpu


# ------------------------------ device helpers ----------------------------- #

def _device_kind():
    try:
        return jax.devices()[0].device_kind.lower()
    except Exception:
        return ""


def _physical_vmem_bytes():
    # v7x: 64 MiB per TensorCore; v5e / v6e: 128 MiB.
    return (64 << 20) if "v7" in _device_kind() else (128 << 20)


def _tensorcores_per_chip():
    # Only v7x (2 TCs) benefits from sharding the batch across grid axis 0.
    return 2 if "v7" in _device_kind() else 1


# ------------------------------ shape helpers ------------------------------ #

def _round_up(n, m):
    return ((n + m - 1) // m) * m


def _layer_vmem_bytes(b_shard, t_chunk, h_pad, x_bytes, out_bytes):
    """Approximate VMEM footprint of one lstm_layer pallas_call."""
    g = 4 * h_pad
    xblk = 2 * b_shard * t_chunk * h_pad * x_bytes      # double-buffered input chunk
    oblk = 2 * b_shard * t_chunk * h_pad * out_bytes    # double-buffered output chunk
    hcout = 2 * 2 * b_shard * h_pad * 4                 # final h / c output blocks
    wts = 2 * h_pad * g * 2                             # W_ih + W_hh, bf16, single copy
    bias = g * 4
    xg = b_shard * t_chunk * g * 4                      # hoisted projection scratch (f32)
    carries = 2 * b_shard * h_pad * 4                   # h / c carries
    return xblk + oblk + hcout + wts + bias + xg + carries


def _pick_chunk(t_pad, b_shard, h_pad, budget_bytes):
    """Timesteps per grid step: largest of 32/16/8 dividing T_pad that fits VMEM."""
    for tc in (32, 16, 8):
        if t_pad % tc == 0 and _layer_vmem_bytes(b_shard, tc, h_pad, 4, 4) <= budget_bytes:
            return tc
    return 8 if t_pad % 8 == 0 else t_pad


def _pad_gate_weight(w, h, h_pad):
    """(in=h, 4h) with gate blocks [i|f|g|o] -> (h_pad, 4*h_pad), zero elsewhere."""
    out = jnp.zeros((h_pad, 4 * h_pad), w.dtype)
    for g in range(4):
        out = out.at[:h, g * h_pad:g * h_pad + h].set(w[:, g * h:(g + 1) * h])
    return out


def _pad_gate_bias(b, h, h_pad):
    out = jnp.zeros((4 * h_pad,), b.dtype)
    for g in range(4):
        out = out.at[g * h_pad:g * h_pad + h].set(b[g * h:(g + 1) * h])
    return out


# ----------------------------- Pallas kernel ------------------------------ #

def _lstm_layer_kernel(x_ref, wih_ref, whh_ref, b_ref,
                       out_ref, h_out_ref, c_out_ref,
                       xg_scr, h_scr, c_scr, *, t_real, t_pad):
    """One LSTM layer.  Grid = (batch_shards, time_chunks); chunk axis sequential.

    x_ref   : (Bs, Tc, H)  bf16/f32 input chunk (batch-first)
    wih_ref : (H, 4H) bf16 input->gates weights (gate order i, f, g, o), VMEM-resident
    whh_ref : (H, 4H) bf16 hidden->gates weights, VMEM-resident
    b_ref   : (1, 4H) f32  combined bias (b_ih + b_hh), VMEM-resident
    out_ref : (Bs, Tc, H)  per-step hidden outputs for this chunk (bf16 or f32)
    h_out_ref, c_out_ref : (Bs, H) f32 final hidden / cell (resident across chunk axis)
    xg_scr  : (Bs, Tc, 4H) f32 VMEM scratch: hoisted input projection
    h_scr, c_scr : (Bs, H) f32 VMEM carry of the recurrence
    """
    c_idx = pl.program_id(1)
    bs, t_chunk, h_pad = x_ref.shape
    n_chunks = t_pad // t_chunk

    @pl.when(c_idx == 0)
    def _init():
        h_scr[...] = jnp.zeros_like(h_scr)
        c_scr[...] = jnp.zeros_like(c_scr)

    def _sigmoid(v):
        # One EUP tanh per gate instead of exp + divide.
        return 0.5 * (jnp.tanh(0.5 * v) + 1.0)

    h = h_scr[...]
    c = c_scr[...]

    sub = 8 if t_chunk % 8 == 0 else t_chunk
    n_sub = t_chunk // sub

    for p in range(n_sub):
        lo = p * sub

        # ---- Hoisted input projection for this sub-chunk: one MXU matmul whose
        #      result only the sub-chunk's own steps depend on (finer data dep than
        #      projecting the whole chunk up front -> overlaps the serial recurrence).
        xs = x_ref[:, lo:lo + sub, :].reshape(bs * sub, h_pad).astype(jnp.bfloat16)
        xg = jnp.dot(xs, wih_ref[...], preferred_element_type=jnp.float32)
        xg_scr[:, lo:lo + sub, :] = xg.reshape(bs, sub, 4 * h_pad) + b_ref[...]

        # ---- Serial recurrence: only h @ W_hh per step, unrolled over the sub-chunk
        #      (static, lane-aligned slices; 8-step windows bound vreg live ranges).
        for jj in range(sub):
            j = lo + jj
            gates = xg_scr[:, j, :] + jnp.dot(
                h.astype(jnp.bfloat16), whh_ref[...],
                preferred_element_type=jnp.float32)                   # (Bs, 4H) f32

            i_g = _sigmoid(gates[:, 0 * h_pad:1 * h_pad])
            f_g = _sigmoid(gates[:, 1 * h_pad:2 * h_pad])
            g_g = jnp.tanh(gates[:, 2 * h_pad:3 * h_pad])
            o_g = _sigmoid(gates[:, 3 * h_pad:4 * h_pad])

            c_new = f_g * c + i_g * g_g
            h_new = o_g * jnp.tanh(c_new)

            # Time-padding mask only for steps that can actually fall past t_real
            # (the tail of the LAST chunk); all other steps skip the compare/selects.
            if (n_chunks - 1) * t_chunk + j >= t_real:
                valid = c_idx < n_chunks - 1
                h_new = jnp.where(valid, h_new, h)
                c_new = jnp.where(valid, c_new, c)

            out_ref[:, j, :] = h_new.astype(out_ref.dtype)
            h, c = h_new, c_new

    h_scr[...] = h
    c_scr[...] = c

    # Final-state outputs are written only once, on the last chunk.
    @pl.when(c_idx == n_chunks - 1)
    def _final():
        h_out_ref[...] = h
        c_out_ref[...] = c


def lstm_layer(x, w_ih, w_hh, b2d, *, t_real, t_chunk, n_bshards, out_dtype,
               vmem_limit):
    """x: (B_pad, T_pad, H_pad) -> (out (B_pad,T_pad,H_pad), h (B_pad,H_pad), c)."""
    b_pad, t_pad, h_pad = x.shape
    b_shard = b_pad // n_bshards
    n_chunks = t_pad // t_chunk
    g = 4 * h_pad

    kernel = functools.partial(_lstm_layer_kernel, t_real=t_real, t_pad=t_pad)

    out_shapes = (
        jax.ShapeDtypeStruct((b_pad, t_pad, h_pad), out_dtype),
        jax.ShapeDtypeStruct((b_pad, h_pad), jnp.float32),
        jax.ShapeDtypeStruct((b_pad, h_pad), jnp.float32),
    )

    # Whole-array, VMEM-resident, single-copy operands (never re-fetched, not
    # double-buffered by the pipeline).
    resident_vmem = pl.BlockSpec(memory_space=pltpu.MemorySpace.VMEM)

    grid_spec = pltpu.PrefetchScalarGridSpec(
        num_scalar_prefetch=0,
        grid=(n_bshards, n_chunks),
        in_specs=[
            pl.BlockSpec((b_shard, t_chunk, h_pad), lambda s, c: (s, c, 0)),  # x chunk
            resident_vmem,                                                    # W_ih
            resident_vmem,                                                    # W_hh
            resident_vmem,                                                    # bias
        ],
        out_specs=[
            pl.BlockSpec((b_shard, t_chunk, h_pad), lambda s, c: (s, c, 0)),  # outputs
            pl.BlockSpec((b_shard, h_pad), lambda s, c: (s, 0)),              # final h
            pl.BlockSpec((b_shard, h_pad), lambda s, c: (s, 0)),              # final c
        ],
        scratch_shapes=[
            pltpu.VMEM((b_shard, t_chunk, g), jnp.float32),  # hoisted input projection
            pltpu.VMEM((b_shard, h_pad), jnp.float32),       # h carry
            pltpu.VMEM((b_shard, h_pad), jnp.float32),       # c carry
        ],
    )

    return pl.pallas_call(
        kernel,
        out_shape=out_shapes,
        grid_spec=grid_spec,
        compiler_params=pltpu.CompilerParams(
            dimension_semantics=("parallel", "arbitrary"),
            vmem_limit_bytes=int(vmem_limit)),
    )(x, w_ih, w_hh, b2d)


# ------------------------------ Encoder model ----------------------------- #

def init_encoder_params(key, input_size, hidden_size, num_layers):
    """Deterministic init matching PyTorch shapes (uniform(-1/sqrt(H), 1/sqrt(H)))."""
    h = hidden_size
    k = 1.0 / jnp.sqrt(jnp.float32(h))
    keys = jax.random.split(key, 1 + 4 * num_layers)
    params = {
        "embedding": jax.random.normal(keys[0], (input_size, h), jnp.float32),
        "layers": [],
    }
    for layer in range(num_layers):
        k0, k1, k2, k3 = keys[1 + 4 * layer: 1 + 4 * (layer + 1)]
        # Stored already transposed for right-multiplication: (in, 4H), gates i|f|g|o.
        w_ih = jax.random.uniform(k0, (h, 4 * h), jnp.float32, -k, k)
        w_hh = jax.random.uniform(k1, (h, 4 * h), jnp.float32, -k, k)
        b_ih = jax.random.uniform(k2, (4 * h,), jnp.float32, -k, k)
        b_hh = jax.random.uniform(k3, (4 * h,), jnp.float32, -k, k)
        params["layers"].append((w_ih, w_hh, b_ih + b_hh))
    return params


@jax.jit
def encoder_forward(params, x_tokens):
    """x_tokens: (B, T) int32 -> (outputs (B,T,H), hidden (L,B,H), cell (L,B,H))."""
    emb = params["embedding"]
    hdim = emb.shape[1]
    batch, seq = x_tokens.shape
    num_layers = len(params["layers"])

    # Device-aware sizing (all trace-time Python constants).
    phys_vmem = _physical_vmem_bytes()
    cores = _tensorcores_per_chip()

    # Hardware-friendly padded shapes: lanes (H -> x128), sublanes (B -> x8, T -> x8).
    h_pad = _round_up(hdim, 128)
    n_bshards = cores if (cores > 1 and batch >= 16) else 1   # shard only on v7x
    b_shard = _round_up(-(-batch // n_bshards), 8)
    b_pad = n_bshards * b_shard
    t_pad = _round_up(seq, 8)
    t_chunk = _pick_chunk(t_pad, b_shard, h_pad, budget_bytes=int(phys_vmem * 0.6))

    # Explicit scoped-VMEM limit: actual footprint (worst case f32 in/out) + headroom,
    # capped well below the physical per-core VMEM.
    need = _layer_vmem_bytes(b_shard, t_chunk, h_pad, 4, 4)
    vmem_limit = min(int(phys_vmem * 0.85),
                     max(32 << 20, need + need // 2 + (8 << 20)))

    # Embedding lookup (glue, plain-JAX gather) -- stays batch-first, no transposes.
    embedded = jnp.take(emb, x_tokens, axis=0)                        # (B, T, H) f32
    cur = jnp.pad(embedded,
                  ((0, b_pad - batch), (0, t_pad - seq), (0, h_pad - hdim)))
    cur = cur.astype(jnp.bfloat16)        # bf16 inter-layer activations (halves HBM)

    hiddens, cells = [], []
    for li, (w_ih, w_hh, bias) in enumerate(params["layers"]):
        # Per-gate zero padding keeps padded hidden units identically zero.
        w_ih_p = _pad_gate_weight(w_ih, hdim, h_pad).astype(jnp.bfloat16)
        w_hh_p = _pad_gate_weight(w_hh, hdim, h_pad).astype(jnp.bfloat16)
        b_p = _pad_gate_bias(bias, hdim, h_pad).reshape(1, 4 * h_pad)

        # Last layer's per-step outputs are returned to the user: keep them f32.
        out_dtype = jnp.float32 if li == num_layers - 1 else jnp.bfloat16

        cur, h_last, c_last = lstm_layer(
            cur, w_ih_p, w_hh_p, b_p,
            t_real=seq, t_chunk=t_chunk, n_bshards=n_bshards,
            out_dtype=out_dtype, vmem_limit=vmem_limit)

        hiddens.append(h_last[:batch, :hdim])
        cells.append(c_last[:batch, :hdim])

    outputs = cur[:batch, :seq, :hdim]                                 # (B, T, H) f32
    hidden = jnp.stack(hiddens, axis=0)                                # (L, B, H)
    cell = jnp.stack(cells, axis=0)                                    # (L, B, H)
    return outputs, hidden, cell


# --------------------------- Plain-JAX reference --------------------------- #

def encoder_reference(params, x_tokens):
    embedded = jnp.take(params["embedding"], x_tokens, axis=0)         # (B, T, H)
    batch, seq, hdim = embedded.shape
    cur = embedded
    hiddens, cells = [], []
    for (w_ih, w_hh, bias) in params["layers"]:
        h = jnp.zeros((batch, hdim), jnp.float32)
        c = jnp.zeros((batch, hdim), jnp.float32)
        outs = []
        for t in range(seq):
            gates = cur[:, t, :] @ w_ih + h @ w_hh + bias
            i_g = jax.nn.sigmoid(gates[:, 0 * hdim:1 * hdim])
            f_g = jax.nn.sigmoid(gates[:, 1 * hdim:2 * hdim])
            g_g = jnp.tanh(gates[:, 2 * hdim:3 * hdim])
            o_g = jax.nn.sigmoid(gates[:, 3 * hdim:4 * hdim])
            c = f_g * c + i_g * g_g
            h = o_g * jnp.tanh(c)
            outs.append(h)
        cur = jnp.stack(outs, axis=1)
        hiddens.append(h)
        cells.append(c)
    return cur, jnp.stack(hiddens, 0), jnp.stack(cells, 0)


# ---------------------------------- main ----------------------------------- #

if __name__ == "__main__":
    input_size = 16     # vocab size
    hidden_size = 32
    num_layers = 2
    batch = 2
    seq = 8

    key = jax.random.PRNGKey(0)
    pkey, xkey = jax.random.split(key)
    params = init_encoder_params(pkey, input_size, hidden_size, num_layers)
    x = jax.random.randint(xkey, (batch, seq), 0, input_size, dtype=jnp.int32)

    outputs, hidden, cell = encoder_forward(params, x)
    jax.block_until_ready((outputs, hidden, cell))

    assert outputs.shape == (batch, seq, hidden_size)
    assert hidden.shape == (num_layers, batch, hidden_size)
    assert cell.shape == (num_layers, batch, hidden_size)

    # Numerical check against a plain-JAX f32 reference.  The kernel uses bf16 weights
    # and bf16 inter-layer activations on the MXU path (f32 accumulation / gates /
    # carries), so tolerance is a bit looser than pure f32.
    ref_out, ref_h, ref_c = encoder_reference(params, x)
    assert jnp.allclose(outputs, ref_out, atol=3e-2, rtol=3e-2)
    assert jnp.allclose(hidden, ref_h, atol=3e-2, rtol=3e-2)
    assert jnp.allclose(cell, ref_c, atol=3e-2, rtol=3e-2)

    print("KERNEL_OK")
</pallas_src>

<mosaic_0001>
module attributes {stable_mosaic.version = 11 : i64} {
  func.func @_lstm_layer_kernel(%arg0: i32, %arg1: i32, %arg2: memref<8x8x128xbf16, #tpu.memory_space<vmem>>, %arg3: memref<128x512xbf16, #tpu.memory_space<vmem>>, %arg4: memref<128x512xbf16, #tpu.memory_space<vmem>>, %arg5: memref<1x512xf32, #tpu.memory_space<vmem>>, %arg6: memref<8x8x128xbf16, #tpu.memory_space<vmem>>, %arg7: memref<8x128xf32, #tpu.memory_space<vmem>>, %arg8: memref<8x128xf32, #tpu.memory_space<vmem>>, %arg9: memref<8x8x512xf32, #tpu.memory_space<vmem>>, %arg10: memref<8x128xf32, #tpu.memory_space<vmem>>, %arg11: memref<8x128xf32, #tpu.memory_space<vmem>>) attributes {dimension_semantics = [#tpu.dimension_semantics<parallel>, #tpu.dimension_semantics<arbitrary>], iteration_bounds = array<i64: 1, 1>, scalar_prefetch = 0 : i64, scratch_operands = 3 : i64, tpu.core_type = #tpu.core_type<tc>, window_params = [{transform_indices = @transform_0, window_bounds = array<i64: 8, 8, 128>}, {pipeline_mode = #tpu.pipeline_mode<synchronous>, transform_indices = @transform_1, window_bounds = array<i64: 128, 512>}, {pipeline_mode = #tpu.pipeline_mode<synchronous>, transform_indices = @transform_2, window_bounds = array<i64: 128, 512>}, {pipeline_mode = #tpu.pipeline_mode<synchronous>, transform_indices = @transform_3, window_bounds = array<i64: 1, 512>}, {transform_indices = @transform_4, window_bounds = array<i64: 8, 8, 128>}, {transform_indices = @transform_5, window_bounds = array<i64: 8, 128>}, {transform_indices = @transform_6, window_bounds = array<i64: 8, 128>}]} {
    %c0_i32 = arith.constant 0 : i32
    %0 = arith.cmpi eq, %arg1, %c0_i32 : i32
    %1 = arith.extui %0 : i1 to i32
    %c0_i32_0 = arith.constant 0 : i32
    %2 = arith.cmpi ne, %1, %c0_i32_0 : i32
    scf.if %2 {
      %cst_157 = arith.constant 0.000000e+00 : f32
      %348 = vector.broadcast %cst_157 : f32 to vector<8x128xf32>
      %c0_158 = arith.constant 0 : index
      %c0_159 = arith.constant 0 : index
      %349 = vector.load %arg10[%c0_158, %c0_159] : memref<8x128xf32, #tpu.memory_space<vmem>>, vector<8x128xf32>
      tpu.vector_store %arg10[%c0_158, %c0_159], %348 {strides = array<i32>} : memref<8x128xf32, #tpu.memory_space<vmem>>, vector<8x128xf32>,
      %cst_160 = arith.constant 0.000000e+00 : f32
      %350 = vector.broadcast %cst_160 : f32 to vector<8x128xf32>
      %c0_161 = arith.constant 0 : index
      %c0_162 = arith.constant 0 : index
      %351 = vector.load %arg11[%c0_161, %c0_162] : memref<8x128xf32, #tpu.memory_space<vmem>>, vector<8x128xf32>
      tpu.vector_store %arg11[%c0_161, %c0_162], %350 {strides = array<i32>} : memref<8x128xf32, #tpu.memory_space<vmem>>, vector<8x128xf32>,
    } else {
    }
    %c0 = arith.constant 0 : index
    %c0_1 = arith.constant 0 : index
    %3 = vector.load %arg10[%c0, %c0_1] : memref<8x128xf32, #tpu.memory_space<vmem>>, vector<8x128xf32>
    %c0_2 = arith.constant 0 : index
    %c0_3 = arith.constant 0 : index
    %4 = vector.load %arg11[%c0_2, %c0_3] : memref<8x128xf32, #tpu.memory_space<vmem>>, vector<8x128xf32>
    %c0_4 = arith.constant 0 : index
    %c0_5 = arith.constant 0 : index
    %c0_6 = arith.constant 0 : index
    %5 = vector.load %arg2[%c0_4, %c0_5, %c0_6] : memref<8x8x128xbf16, #tpu.memory_space<vmem>>, vector<8x8x128xbf16>
    %6 = vector.shape_cast %5 : vector<8x8x128xbf16> to vector<64x128xbf16>
    %c0_7 = arith.constant 0 : index
    %c0_8 = arith.constant 0 : index
    %7 = vector.load %arg3[%c0_7, %c0_8] : memref<128x512xbf16, #tpu.memory_space<vmem>>, vector<128x512xbf16>
    %cst = arith.constant dense<0.000000e+00> : vector<64x512xf32>
    %8 = tpu.matmul %6, %7, %cst {dimension_numbers = #tpu.dot_dimension_numbers<[1], [0], [0], [1], [0, 0, 1, 1], [], []>} : vector<64x128xbf16>, vector<128x512xbf16>, vector<64x512xf32> -> vector<64x512xf32>
    %9 = vector.shape_cast %8 : vector<64x512xf32> to vector<8x8x512xf32>
    %c0_9 = arith.constant 0 : index
    %c0_10 = arith.constant 0 : index
    %10 = vector.load %arg5[%c0_9, %c0_10] : memref<1x512xf32, #tpu.memory_space<vmem>>, vector<1x512xf32>
    %11 = vector.shape_cast %10 : vector<1x512xf32> to vector<1x1x512xf32>
    %12 = vector.broadcast %11 : vector<1x1x512xf32> to vector<8x8x512xf32>
    %13 = arith.addf %9, %12 : vector<8x8x512xf32>
    %c0_11 = arith.constant 0 : index
    %c0_12 = arith.constant 0 : index
    %c0_13 = arith.constant 0 : index
    %14 = vector.load %arg9[%c0_11, %c0_12, %c0_13] : memref<8x8x512xf32, #tpu.memory_space<vmem>>, vector<8x8x512xf32>
    tpu.vector_store %arg9[%c0_11, %c0_12, %c0_13], %13 {strides = array<i32>} : memref<8x8x512xf32, #tpu.memory_space<vmem>>, vector<8x8x512xf32>,
    %c0_14 = arith.constant 0 : index
    %c0_15 = arith.constant 0 : index
    %c0_16 = arith.constant 0 : index
    %15 = vector.load %arg9[%c0_14, %c0_15, %c0_16] : memref<8x8x512xf32, #tpu.memory_space<vmem>>, vector<8x1x512xf32>
    %16 = vector.shape_cast %15 : vector<8x1x512xf32> to vector<8x512xf32>
    %17 = arith.truncf %3 : vector<8x128xf32> to vector<8x128xbf16>
    %c0_17 = arith.constant 0 : index
    %c0_18 = arith.constant 0 : index
    %18 = vector.load %arg4[%c0_17, %c0_18] : memref<128x512xbf16, #tpu.memory_space<vmem>>, vector<128x512xbf16>
    %cst_19 = arith.constant dense<0.000000e+00> : vector<8x512xf32>
    %19 = tpu.matmul %17, %18, %cst_19 {dimension_numbers = #tpu.dot_dimension_numbers<[1], [0], [0], [1], [0, 0, 1, 1], [], []>} : vector<8x128xbf16>, vector<128x512xbf16>, vector<8x512xf32> -> vector<8x512xf32>
    %20 = arith.addf %16, %19 : vector<8x512xf32>
    %21 = vector.extract_strided_slice %20 {offsets = [0, 0], sizes = [8, 128], strides = [1, 1]} : vector<8x512xf32> to vector<8x128xf32>
    %cst_20 = arith.constant 5.000000e-01 : f32
    %22 = vector.broadcast %cst_20 : f32 to vector<8x128xf32>
    %23 = arith.mulf %22, %21 : vector<8x128xf32>
    %24 = math.tanh %23 : vector<8x128xf32>
    %cst_21 = arith.constant 1.000000e+00 : f32
    %25 = vector.broadcast %cst_21 : f32 to vector<8x128xf32>
    %26 = arith.addf %24, %25 : vector<8x128xf32>
    %cst_22 = arith.constant 5.000000e-01 : f32
    %27 = vector.broadcast %cst_22 : f32 to vector<8x128xf32>
    %28 = arith.mulf %27, %26 : vector<8x128xf32>
    %29 = vector.extract_strided_slice %20 {offsets = [0, 128], sizes = [8, 128], strides = [1, 1]} : vector<8x512xf32> to vector<8x128xf32>
    %cst_23 = arith.constant 5.000000e-01 : f32
    %30 = vector.broadcast %cst_23 : f32 to vector<8x128xf32>
    %31 = arith.mulf %30, %29 : vector<8x128xf32>
    %32 = math.tanh %31 : vector<8x128xf32>
    %cst_24 = arith.constant 1.000000e+00 : f32
    %33 = vector.broadcast %cst_24 : f32 to vector<8x128xf32>
    %34 = arith.addf %32, %33 : vector<8x128xf32>
    %cst_25 = arith.constant 5.000000e-01 : f32
    %35 = vector.broadcast %cst_25 : f32 to vector<8x128xf32>
    %36 = arith.mulf %35, %34 : vector<8x128xf32>
    %37 = vector.extract_strided_slice %20 {offsets = [0, 256], sizes = [8, 128], strides = [1, 1]} : vector<8x512xf32> to vector<8x128xf32>
    %38 = math.tanh %37 : vector<8x128xf32>
    %39 = vector.extract_strided_slice %20 {offsets = [0, 384], sizes = [8, 128], strides = [1, 1]} : vector<8x512xf32> to vector<8x128xf32>
    %cst_26 = arith.constant 5.000000e-01 : f32
    %40 = vector.broadcast %cst_26 : f32 to vector<8x128xf32>
    %41 = arith.mulf %40, %39 : vector<8x128xf32>
    %42 = math.tanh %41 : vector<8x128xf32>
    %cst_27 = arith.constant 1.000000e+00 : f32
    %43 = vector.broadcast %cst_27 : f32 to vector<8x128xf32>
    %44 = arith.addf %42, %43 : vector<8x128xf32>
    %cst_28 = arith.constant 5.000000e-01 : f32
    %45 = vector.broadcast %cst_28 : f32 to vector<8x128xf32>
    %46 = arith.mulf %45, %44 : vector<8x128xf32>
    %47 = arith.mulf %36, %4 : vector<8x128xf32>
    %48 = arith.mulf %28, %38 : vector<8x128xf32>
    %49 = arith.addf %47, %48 : vector<8x128xf32>
    %50 = math.tanh %49 : vector<8x128xf32>
    %51 = arith.mulf %46, %50 : vector<8x128xf32>
    %52 = arith.truncf %51 : vector<8x128xf32> to vector<8x128xbf16>
    %c0_29 = arith.constant 0 : index
    %c0_30 = arith.constant 0 : index
    %c0_31 = arith.constant 0 : index
    %53 = vector.load %arg6[%c0_29, %c0_30, %c0_31] : memref<8x8x128xbf16, #tpu.memory_space<vmem>>, vector<8x1x128xbf16>
    %54 = vector.shape_cast %53 : vector<8x1x128xbf16> to vector<8x128xbf16>
    %55 = vector.shape_cast %52 : vector<8x128xbf16> to vector<8x1x128xbf16>
    tpu.vector_store %arg6[%c0_29, %c0_30, %c0_31], %55 {strides = array<i32>} : memref<8x8x128xbf16, #tpu.memory_space<vmem>>, vector<8x1x128xbf16>,
    %c0_32 = arith.constant 0 : index
    %c1 = arith.constant 1 : index
    %c0_33 = arith.constant 0 : index
    %56 = vector.load %arg9[%c0_32, %c1, %c0_33] : memref<8x8x512xf32, #tpu.memory_space<vmem>>, vector<8x1x512xf32>
    %57 = vector.shape_cast %56 : vector<8x1x512xf32> to vector<8x512xf32>
    %58 = arith.truncf %51 : vector<8x128xf32> to vector<8x128xbf16>
    %c0_34 = arith.constant 0 : index
    %c0_35 = arith.constant 0 : index
    %59 = vector.load %arg4[%c0_34, %c0_35] : memref<128x512xbf16, #tpu.memory_space<vmem>>, vector<128x512xbf16>
    %cst_36 = arith.constant dense<0.000000e+00> : vector<8x512xf32>
    %60 = tpu.matmul %58, %59, %cst_36 {dimension_numbers = #tpu.dot_dimension_numbers<[1], [0], [0], [1], [0, 0, 1, 1], [], []>} : vector<8x128xbf16>, vector<128x512xbf16>, vector<8x512xf32> -> vector<8x512xf32>
    %61 = arith.addf %57, %60 : vector<8x512xf32>
    %62 = vector.extract_strided_slice %61 {offsets = [0, 0], sizes = [8, 128], strides = [1, 1]} : vector<8x512xf32> to vector<8x128xf32>
    %cst_37 = arith.constant 5.000000e-01 : f32
    %63 = vector.broadcast %cst_37 : f32 to vector<8x128xf32>
    %64 = arith.mulf %63, %62 : vector<8x128xf32>
    %65 = math.tanh %64 : vector<8x128xf32>
    %cst_38 = arith.constant 1.000000e+00 : f32
    %66 = vector.broadcast %cst_38 : f32 to vector<8x128xf32>
    %67 = arith.addf %65, %66 : vector<8x128xf32>
    %cst_39 = arith.constant 5.000000e-01 : f32
    %68 = vector.broadcast %cst_39 : f32 to vector<8x128xf32>
    %69 = arith.mulf %68, %67 : vector<8x128xf32>
    %70 = vector.extract_strided_slice %61 {offsets = [0, 128], sizes = [8, 128], strides = [1, 1]} : vector<8x512xf32> to vector<8x128xf32>
    %cst_40 = arith.constant 5.000000e-01 : f32
    %71 = vector.broadcast %cst_40 : f32 to vector<8x128xf32>
    %72 = arith.mulf %71, %70 : vector<8x128xf32>
    %73 = math.tanh %72 : vector<8x128xf32>
    %cst_41 = arith.constant 1.000000e+00 : f32
    %74 = vector.broadcast %cst_41 : f32 to vector<8x128xf32>
    %75 = arith.addf %73, %74 : vector<8x128xf32>
    %cst_42 = arith.constant 5.000000e-01 : f32
    %76 = vector.broadcast %cst_42 : f32 to vector<8x128xf32>
    %77 = arith.mulf %76, %75 : vector<8x128xf32>
    %78 = vector.extract_strided_slice %61 {offsets = [0, 256], sizes = [8, 128], strides = [1, 1]} : vector<8x512xf32> to vector<8x128xf32>
    %79 = math.tanh %78 : vector<8x128xf32>
    %80 = vector.extract_strided_slice %61 {offsets = [0, 384], sizes = [8, 128], strides = [1, 1]} : vector<8x512xf32> to vector<8x128xf32>
    %cst_43 = arith.constant 5.000000e-01 : f32
    %81 = vector.broadcast %cst_43 : f32 to vector<8x128xf32>
    %82 = arith.mulf %81, %80 : vector<8x128xf32>
    %83 = math.tanh %82 : vector<8x128xf32>
    %cst_44 = arith.constant 1.000000e+00 : f32
    %84 = vector.broadcast %cst_44 : f32 to vector<8x128xf32>
    %85 = arith.addf %83, %84 : vector<8x128xf32>
    %cst_45 = arith.constant 5.000000e-01 : f32
    %86 = vector.broadcast %cst_45 : f32 to vector<8x128xf32>
    %87 = arith.mulf %86, %85 : vector<8x128xf32>
    %88 = arith.mulf %77, %49 : vector<8x128xf32>
    %89 = arith.mulf %69, %79 : vector<8x128xf32>
    %90 = arith.addf %88, %89 : vector<8x128xf32>
    %91 = math.tanh %90 : vector<8x128xf32>
    %92 = arith.mulf %87, %91 : vector<8x128xf32>
    %93 = arith.truncf %92 : vector<8x128xf32> to vector<8x128xbf16>
    %c0_46 = arith.constant 0 : index
    %c1_47 = arith.constant 1 : index
    %c0_48 = arith.constant 0 : index
    %94 = vector.load %arg6[%c0_46, %c1_47, %c0_48] : memref<8x8x128xbf16, #tpu.memory_space<vmem>>, vector<8x1x128xbf16>
    %95 = vector.shape_cast %94 : vector<8x1x128xbf16> to vector<8x128xbf16>
    %96 = vector.shape_cast %93 : vector<8x128xbf16> to vector<8x1x128xbf16>
    tpu.vector_store %arg6[%c0_46, %c1_47, %c0_48], %96 {strides = array<i32>} : memref<8x8x128xbf16, #tpu.memory_space<vmem>>, vector<8x1x128xbf16>,
    %c0_49 = arith.constant 0 : index
    %c2 = arith.constant 2 : index
    %c0_50 = arith.constant 0 : index
    %97 = vector.load %arg9[%c0_49, %c2, %c0_50] : memref<8x8x512xf32, #tpu.memory_space<vmem>>, vector<8x1x512xf32>
    %98 = vector.shape_cast %97 : vector<8x1x512xf32> to vector<8x512xf32>
    %99 = arith.truncf %92 : vector<8x128xf32> to vector<8x128xbf16>
    %c0_51 = arith.constant 0 : index
    %c0_52 = arith.constant 0 : index
    %100 = vector.load %arg4[%c0_51, %c0_52] : memref<128x512xbf16, #tpu.memory_space<vmem>>, vector<128x512xbf16>
    %cst_53 = arith.constant dense<0.000000e+00> : vector<8x512xf32>
    %101 = tpu.matmul %99, %100, %cst_53 {dimension_numbers = #tpu.dot_dimension_numbers<[1], [0], [0], [1], [0, 0, 1, 1], [], []>} : vector<8x128xbf16>, vector<128x512xbf16>, vector<8x512xf32> -> vector<8x512xf32>
    %102 = arith.addf %98, %101 : vector<8x512xf32>
    %103 = vector.extract_strided_slice %102 {offsets = [0, 0], sizes = [8, 128], strides = [1, 1]} : vector<8x512xf32> to vector<8x128xf32>
    %cst_54 = arith.constant 5.000000e-01 : f32
    %104 = vector.broadcast %cst_54 : f32 to vector<8x128xf32>
    %105 = arith.mulf %104, %103 : vector<8x128xf32>
    %106 = math.tanh %105 : vector<8x128xf32>
    %cst_55 = arith.constant 1.000000e+00 : f32
    %107 = vector.broadcast %cst_55 : f32 to vector<8x128xf32>
    %108 = arith.addf %106, %107 : vector<8x128xf32>
    %cst_56 = arith.constant 5.000000e-01 : f32
    %109 = vector.broadcast %cst_56 : f32 to vector<8x128xf32>
    %110 = arith.mulf %109, %108 : vector<8x128xf32>
    %111 = vector.extract_strided_slice %102 {offsets = [0, 128], sizes = [8, 128], strides = [1, 1]} : vector<8x512xf32> to vector<8x128xf32>
    %cst_57 = arith.constant 5.000000e-01 : f32
    %112 = vector.broadcast %cst_57 : f32 to vector<8x128xf32>
    %113 = arith.mulf %112, %111 : vector<8x128xf32>
    %114 = math.tanh %113 : vector<8x128xf32>
    %cst_58 = arith.constant 1.000000e+00 : f32
    %115 = vector.broadcast %cst_58 : f32 to vector<8x128xf32>
    %116 = arith.addf %114, %115 : vector<8x128xf32>
    %cst_59 = arith.constant 5.000000e-01 : f32
    %117 = vector.broadcast %cst_59 : f32 to vector<8x128xf32>
    %118 = arith.mulf %117, %116 : vector<8x128xf32>
    %119 = vector.extract_strided_slice %102 {offsets = [0, 256], sizes = [8, 128], strides = [1, 1]} : vector<8x512xf32> to vector<8x128xf32>
    %120 = math.tanh %119 : vector<8x128xf32>
    %121 = vector.extract_strided_slice %102 {offsets = [0, 384], sizes = [8, 128], strides = [1, 1]} : vector<8x512xf32> to vector<8x128xf32>
    %cst_60 = arith.constant 5.000000e-01 : f32
    %122 = vector.broadcast %cst_60 : f32 to vector<8x128xf32>
    %123 = arith.mulf %122, %121 : vector<8x128xf32>
    %124 = math.tanh %123 : vector<8x128xf32>
    %cst_61 = arith.constant 1.000000e+00 : f32
    %125 = vector.broadcast %cst_61 : f32 to vector<8x128xf32>
    %126 = arith.addf %124, %125 : vector<8x128xf32>
    %cst_62 = arith.constant 5.000000e-01 : f32
    %127 = vector.broadcast %cst_62 : f32 to vector<8x128xf32>
    %128 = arith.mulf %127, %126 : vector<8x128xf32>
    %129 = arith.mulf %118, %90 : vector<8x128xf32>
    %130 = arith.mulf %110, %120 : vector<8x128xf32>
    %131 = arith.addf %129, %130 : vector<8x128xf32>
    %132 = math.tanh %131 : vector<8x128xf32>
    %133 = arith.mulf %128, %132 : vector<8x128xf32>
    %134 = arith.truncf %133 : vector<8x128xf32> to vector<8x128xbf16>
    %c0_63 = arith.constant 0 : index
    %c2_64 = arith.constant 2 : index
    %c0_65 = arith.constant 0 : index
    %135 = vector.load %arg6[%c0_63, %c2_64, %c0_65] : memref<8x8x128xbf16, #tpu.memory_space<vmem>>, vector<8x1x128xbf16>
    %136 = vector.shape_cast %135 : vector<8x1x128xbf16> to vector<8x128xbf16>
    %137 = vector.shape_cast %134 : vector<8x128xbf16> to vector<8x1x128xbf16>
    tpu.vector_store %arg6[%c0_63, %c2_64, %c0_65], %137 {strides = array<i32>} : memref<8x8x128xbf16, #tpu.memory_space<vmem>>, vector<8x1x128xbf16>,
    %c0_66 = arith.constant 0 : index
    %c3 = arith.constant 3 : index
    %c0_67 = arith.constant 0 : index
    %138 = vector.load %arg9[%c0_66, %c3, %c0_67] : memref<8x8x512xf32, #tpu.memory_space<vmem>>, vector<8x1x512xf32>
    %139 = vector.shape_cast %138 : vector<8x1x512xf32> to vector<8x512xf32>
    %140 = arith.truncf %133 : vector<8x128xf32> to vector<8x128xbf16>
    %c0_68 = arith.constant 0 : index
    %c0_69 = arith.constant 0 : index
    %141 = vector.load %arg4[%c0_68, %c0_69] : memref<128x512xbf16, #tpu.memory_space<vmem>>, vector<128x512xbf16>
    %cst_70 = arith.constant dense<0.000000e+00> : vector<8x512xf32>
    %142 = tpu.matmul %140, %141, %cst_70 {dimension_numbers = #tpu.dot_dimension_numbers<[1], [0], [0], [1], [0, 0, 1, 1], [], []>} : vector<8x128xbf16>, vector<128x512xbf16>, vector<8x512xf32> -> vector<8x512xf32>
    %143 = arith.addf %139, %142 : vector<8x512xf32>
    %144 = vector.extract_strided_slice %143 {offsets = [0, 0], sizes = [8, 128], strides = [1, 1]} : vector<8x512xf32> to vector<8x128xf32>
    %cst_71 = arith.constant 5.000000e-01 : f32
    %145 = vector.broadcast %cst_71 : f32 to vector<8x128xf32>
    %146 = arith.mulf %145, %144 : vector<8x128xf32>
    %147 = math.tanh %146 : vector<8x128xf32>
    %cst_72 = arith.constant 1.000000e+00 : f32
    %148 = vector.broadcast %cst_72 : f32 to vector<8x128xf32>
    %149 = arith.addf %147, %148 : vector<8x128xf32>
    %cst_73 = arith.constant 5.000000e-01 : f32
    %150 = vector.broadcast %cst_73 : f32 to vector<8x128xf32>
    %151 = arith.mulf %150, %149 : vector<8x128xf32>
    %152 = vector.extract_strided_slice %143 {offsets = [0, 128], sizes = [8, 128], strides = [1, 1]} : vector<8x512xf32> to vector<8x128xf32>
    %cst_74 = arith.constant 5.000000e-01 : f32
    %153 = vector.broadcast %cst_74 : f32 to vector<8x128xf32>
    %154 = arith.mulf %153, %152 : vector<8x128xf32>
    %155 = math.tanh %154 : vector<8x128xf32>
    %cst_75 = arith.constant 1.000000e+00 : f32
    %156 = vector.broadcast %cst_75 : f32 to vector<8x128xf32>
    %157 = arith.addf %155, %156 : vector<8x128xf32>
    %cst_76 = arith.constant 5.000000e-01 : f32
    %158 = vector.broadcast %cst_76 : f32 to vector<8x128xf32>
    %159 = arith.mulf %158, %157 : vector<8x128xf32>
    %160 = vector.extract_strided_slice %143 {offsets = [0, 256], sizes = [8, 128], strides = [1, 1]} : vector<8x512xf32> to vector<8x128xf32>
    %161 = math.tanh %160 : vector<8x128xf32>
    %162 = vector.extract_strided_slice %143 {offsets = [0, 384], sizes = [8, 128], strides = [1, 1]} : vector<8x512xf32> to vector<8x128xf32>
    %cst_77 = arith.constant 5.000000e-01 : f32
    %163 = vector.broadcast %cst_77 : f32 to vector<8x128xf32>
    %164 = arith.mulf %163, %162 : vector<8x128xf32>
    %165 = math.tanh %164 : vector<8x128xf32>
    %cst_78 = arith.constant 1.000000e+00 : f32
    %166 = vector.broadcast %cst_78 : f32 to vector<8x128xf32>
    %167 = arith.addf %165, %166 : vector<8x128xf32>
    %cst_79 = arith.constant 5.000000e-01 : f32
    %168 = vector.broadcast %cst_79 : f32 to vector<8x128xf32>
    %169 = arith.mulf %168, %167 : vector<8x128xf32>
    %170 = arith.mulf %159, %131 : vector<8x128xf32>
    %171 = arith.mulf %151, %161 : vector<8x128xf32>
    %172 = arith.addf %170, %171 : vector<8x128xf32>
    %173 = math.tanh %172 : vector<8x128xf32>
    %174 = arith.mulf %169, %173 : vector<8x128xf32>
    %175 = arith.truncf %174 : vector<8x128xf32> to vector<8x128xbf16>
    %c0_80 = arith.constant 0 : index
    %c3_81 = arith.constant 3 : index
    %c0_82 = arith.constant 0 : index
    %176 = vector.load %arg6[%c0_80, %c3_81, %c0_82] : memref<8x8x128xbf16, #tpu.memory_space<vmem>>, vector<8x1x128xbf16>
    %177 = vector.shape_cast %176 : vector<8x1x128xbf16> to vector<8x128xbf16>
    %178 = vector.shape_cast %175 : vector<8x128xbf16> to vector<8x1x128xbf16>
    tpu.vector_store %arg6[%c0_80, %c3_81, %c0_82], %178 {strides = array<i32>} : memref<8x8x128xbf16, #tpu.memory_space<vmem>>, vector<8x1x128xbf16>,
    %c0_83 = arith.constant 0 : index
    %c4 = arith.constant 4 : index
    %c0_84 = arith.constant 0 : index
    %179 = vector.load %arg9[%c0_83, %c4, %c0_84] : memref<8x8x512xf32, #tpu.memory_space<vmem>>, vector<8x1x512xf32>
    %180 = vector.shape_cast %179 : vector<8x1x512xf32> to vector<8x512xf32>
    %181 = arith.truncf %174 : vector<8x128xf32> to vector<8x128xbf16>
    %c0_85 = arith.constant 0 : index
    %c0_86 = arith.constant 0 : index
    %182 = vector.load %arg4[%c0_85, %c0_86] : memref<128x512xbf16, #tpu.memory_space<vmem>>, vector<128x512xbf16>
    %cst_87 = arith.constant dense<0.000000e+00> : vector<8x512xf32>
    %183 = tpu.matmul %181, %182, %cst_87 {dimension_numbers = #tpu.dot_dimension_numbers<[1], [0], [0], [1], [0, 0, 1, 1], [], []>} : vector<8x128xbf16>, vector<128x512xbf16>, vector<8x512xf32> -> vector<8x512xf32>
    %184 = arith.addf %180, %183 : vector<8x512xf32>
    %185 = vector.extract_strided_slice %184 {offsets = [0, 0], sizes = [8, 128], strides = [1, 1]} : vector<8x512xf32> to vector<8x128xf32>
    %cst_88 = arith.constant 5.000000e-01 : f32
    %186 = vector.broadcast %cst_88 : f32 to vector<8x128xf32>
    %187 = arith.mulf %186, %185 : vector<8x128xf32>
    %188 = math.tanh %187 : vector<8x128xf32>
    %cst_89 = arith.constant 1.000000e+00 : f32
    %189 = vector.broadcast %cst_89 : f32 to vector<8x128xf32>
    %190 = arith.addf %188, %189 : vector<8x128xf32>
    %cst_90 = arith.constant 5.000000e-01 : f32
    %191 = vector.broadcast %cst_90 : f32 to vector<8x128xf32>
    %192 = arith.mulf %191, %190 : vector<8x128xf32>
    %193 = vector.extract_strided_slice %184 {offsets = [0, 128], sizes = [8, 128], strides = [1, 1]} : vector<8x512xf32> to vector<8x128xf32>
    %cst_91 = arith.constant 5.000000e-01 : f32
    %194 = vector.broadcast %cst_91 : f32 to vector<8x128xf32>
    %195 = arith.mulf %194, %193 : vector<8x128xf32>
    %196 = math.tanh %195 : vector<8x128xf32>
    %cst_92 = arith.constant 1.000000e+00 : f32
    %197 = vector.broadcast %cst_92 : f32 to vector<8x128xf32>
    %198 = arith.addf %196, %197 : vector<8x128xf32>
    %cst_93 = arith.constant 5.000000e-01 : f32
    %199 = vector.broadcast %cst_93 : f32 to vector<8x128xf32>
    %200 = arith.mulf %199, %198 : vector<8x128xf32>
    %201 = vector.extract_strided_slice %184 {offsets = [0, 256], sizes = [8, 128], strides = [1, 1]} : vector<8x512xf32> to vector<8x128xf32>
    %202 = math.tanh %201 : vector<8x128xf32>
    %203 = vector.extract_strided_slice %184 {offsets = [0, 384], sizes = [8, 128], strides = [1, 1]} : vector<8x512xf32> to vector<8x128xf32>
    %cst_94 = arith.constant 5.000000e-01 : f32
    %204 = vector.broadcast %cst_94 : f32 to vector<8x128xf32>
    %205 = arith.mulf %204, %203 : vector<8x128xf32>
    %206 = math.tanh %205 : vector<8x128xf32>
    %cst_95 = arith.constant 1.000000e+00 : f32
    %207 = vector.broadcast %cst_95 : f32 to vector<8x128xf32>
    %208 = arith.addf %206, %207 : vector<8x128xf32>
    %cst_96 = arith.constant 5.000000e-01 : f32
    %209 = vector.broadcast %cst_96 : f32 to vector<8x128xf32>
    %210 = arith.mulf %209, %208 : vector<8x128xf32>
    %211 = arith.mulf %200, %172 : vector<8x128xf32>
    %212 = arith.mulf %192, %202 : vector<8x128xf32>
    %213 = arith.addf %211, %212 : vector<8x128xf32>
    %214 = math.tanh %213 : vector<8x128xf32>
    %215 = arith.mulf %210, %214 : vector<8x128xf32>
    %216 = arith.truncf %215 : vector<8x128xf32> to vector<8x128xbf16>
    %c0_97 = arith.constant 0 : index
    %c4_98 = arith.constant 4 : index
    %c0_99 = arith.constant 0 : index
    %217 = vector.load %arg6[%c0_97, %c4_98, %c0_99] : memref<8x8x128xbf16, #tpu.memory_space<vmem>>, vector<8x1x128xbf16>
    %218 = vector.shape_cast %217 : vector<8x1x128xbf16> to vector<8x128xbf16>
    %219 = vector.shape_cast %216 : vector<8x128xbf16> to vector<8x1x128xbf16>
    tpu.vector_store %arg6[%c0_97, %c4_98, %c0_99], %219 {strides = array<i32>} : memref<8x8x128xbf16, #tpu.memory_space<vmem>>, vector<8x1x128xbf16>,
    %c0_100 = arith.constant 0 : index
    %c5 = arith.constant 5 : index
    %c0_101 = arith.constant 0 : index
    %220 = vector.load %arg9[%c0_100, %c5, %c0_101] : memref<8x8x512xf32, #tpu.memory_space<vmem>>, vector<8x1x512xf32>
    %221 = vector.shape_cast %220 : vector<8x1x512xf32> to vector<8x512xf32>
    %222 = arith.truncf %215 : vector<8x128xf32> to vector<8x128xbf16>
    %c0_102 = arith.constant 0 : index
    %c0_103 = arith.constant 0 : index
    %223 = vector.load %arg4[%c0_102, %c0_103] : memref<128x512xbf16, #tpu.memory_space<vmem>>, vector<128x512xbf16>
    %cst_104 = arith.constant dense<0.000000e+00> : vector<8x512xf32>
    %224 = tpu.matmul %222, %223, %cst_104 {dimension_numbers = #tpu.dot_dimension_numbers<[1], [0], [0], [1], [0, 0, 1, 1], [], []>} : vector<8x128xbf16>, vector<128x512xbf16>, vector<8x512xf32> -> vector<8x512xf32>
    %225 = arith.addf %221, %224 : vector<8x512xf32>
    %226 = vector.extract_strided_slice %225 {offsets = [0, 0], sizes = [8, 128], strides = [1, 1]} : vector<8x512xf32> to vector<8x128xf32>
    %cst_105 = arith.constant 5.000000e-01 : f32
    %227 = vector.broadcast %cst_105 : f32 to vector<8x128xf32>
    %228 = arith.mulf %227, %226 : vector<8x128xf32>
    %229 = math.tanh %228 : vector<8x128xf32>
    %cst_106 = arith.constant 1.000000e+00 : f32
    %230 = vector.broadcast %cst_106 : f32 to vector<8x128xf32>
    %231 = arith.addf %229, %230 : vector<8x128xf32>
    %cst_107 = arith.constant 5.000000e-01 : f32
    %232 = vector.broadcast %cst_107 : f32 to vector<8x128xf32>
    %233 = arith.mulf %232, %231 : vector<8x128xf32>
    %234 = vector.extract_strided_slice %225 {offsets = [0, 128], sizes = [8, 128], strides = [1, 1]} : vector<8x512xf32> to vector<8x128xf32>
    %cst_108 = arith.constant 5.000000e-01 : f32
    %235 = vector.broadcast %cst_108 : f32 to vector<8x128xf32>
    %236 = arith.mulf %235, %234 : vector<8x128xf32>
    %237 = math.tanh %236 : vector<8x128xf32>
    %cst_109 = arith.constant 1.000000e+00 : f32
    %238 = vector.broadcast %cst_109 : f32 to vector<8x128xf32>
    %239 = arith.addf %237, %238 : vector<8x128xf32>
    %cst_110 = arith.constant 5.000000e-01 : f32
    %240 = vector.broadcast %cst_110 : f32 to vector<8x128xf32>
    %241 = arith.mulf %240, %239 : vector<8x128xf32>
    %242 = vector.extract_strided_slice %225 {offsets = [0, 256], sizes = [8, 128], strides = [1, 1]} : vector<8x512xf32> to vector<8x128xf32>
    %243 = math.tanh %242 : vector<8x128xf32>
    %244 = vector.extract_strided_slice %225 {offsets = [0, 384], sizes = [8, 128], strides = [1, 1]} : vector<8x512xf32> to vector<8x128xf32>
    %cst_111 = arith.constant 5.000000e-01 : f32
    %245 = vector.broadcast %cst_111 : f32 to vector<8x128xf32>
    %246 = arith.mulf %245, %244 : vector<8x128xf32>
    %247 = math.tanh %246 : vector<8x128xf32>
    %cst_112 = arith.constant 1.000000e+00 : f32
    %248 = vector.broadcast %cst_112 : f32 to vector<8x128xf32>
    %249 = arith.addf %247, %248 : vector<8x128xf32>
    %cst_113 = arith.constant 5.000000e-01 : f32
    %250 = vector.broadcast %cst_113 : f32 to vector<8x128xf32>
    %251 = arith.mulf %250, %249 : vector<8x128xf32>
    %252 = arith.mulf %241, %213 : vector<8x128xf32>
    %253 = arith.mulf %233, %243 : vector<8x128xf32>
    %254 = arith.addf %252, %253 : vector<8x128xf32>
    %255 = math.tanh %254 : vector<8x128xf32>
    %256 = arith.mulf %251, %255 : vector<8x128xf32>
    %257 = arith.truncf %256 : vector<8x128xf32> to vector<8x128xbf16>
    %c0_114 = arith.constant 0 : index
    %c5_115 = arith.constant 5 : index
    %c0_116 = arith.constant 0 : index
    %258 = vector.load %arg6[%c0_114, %c5_115, %c0_116] : memref<8x8x128xbf16, #tpu.memory_space<vmem>>, vector<8x1x128xbf16>
    %259 = vector.shape_cast %258 : vector<8x1x128xbf16> to vector<8x128xbf16>
    %260 = vector.shape_cast %257 : vector<8x128xbf16> to vector<8x1x128xbf16>
    tpu.vector_store %arg6[%c0_114, %c5_115, %c0_116], %260 {strides = array<i32>} : memref<8x8x128xbf16, #tpu.memory_space<vmem>>, vector<8x1x128xbf16>,
    %c0_117 = arith.constant 0 : index
    %c6 = arith.constant 6 : index
    %c0_118 = arith.constant 0 : index
    %261 = vector.load %arg9[%c0_117, %c6, %c0_118] : memref<8x8x512xf32, #tpu.memory_space<vmem>>, vector<8x1x512xf32>
    %262 = vector.shape_cast %261 : vector<8x1x512xf32> to vector<8x512xf32>
    %263 = arith.truncf %256 : vector<8x128xf32> to vector<8x128xbf16>
    %c0_119 = arith.constant 0 : index
    %c0_120 = arith.constant 0 : index
    %264 = vector.load %arg4[%c0_119, %c0_120] : memref<128x512xbf16, #tpu.memory_space<vmem>>, vector<128x512xbf16>
    %cst_121 = arith.constant dense<0.000000e+00> : vector<8x512xf32>
    %265 = tpu.matmul %263, %264, %cst_121 {dimension_numbers = #tpu.dot_dimension_numbers<[1], [0], [0], [1], [0, 0, 1, 1], [], []>} : vector<8x128xbf16>, vector<128x512xbf16>, vector<8x512xf32> -> vector<8x512xf32>
    %266 = arith.addf %262, %265 : vector<8x512xf32>
    %267 = vector.extract_strided_slice %266 {offsets = [0, 0], sizes = [8, 128], strides = [1, 1]} : vector<8x512xf32> to vector<8x128xf32>
    %cst_122 = arith.constant 5.000000e-01 : f32
    %268 = vector.broadcast %cst_122 : f32 to vector<8x128xf32>
    %269 = arith.mulf %268, %267 : vector<8x128xf32>
    %270 = math.tanh %269 : vector<8x128xf32>
    %cst_123 = arith.constant 1.000000e+00 : f32
    %271 = vector.broadcast %cst_123 : f32 to vector<8x128xf32>
    %272 = arith.addf %270, %271 : vector<8x128xf32>
    %cst_124 = arith.constant 5.000000e-01 : f32
    %273 = vector.broadcast %cst_124 : f32 to vector<8x128xf32>
    %274 = arith.mulf %273, %272 : vector<8x128xf32>
    %275 = vector.extract_strided_slice %266 {offsets = [0, 128], sizes = [8, 128], strides = [1, 1]} : vector<8x512xf32> to vector<8x128xf32>
    %cst_125 = arith.constant 5.000000e-01 : f32
    %276 = vector.broadcast %cst_125 : f32 to vector<8x128xf32>
    %277 = arith.mulf %276, %275 : vector<8x128xf32>
    %278 = math.tanh %277 : vector<8x128xf32>
    %cst_126 = arith.constant 1.000000e+00 : f32
    %279 = vector.broadcast %cst_126 : f32 to vector<8x128xf32>
    %280 = arith.addf %278, %279 : vector<8x128xf32>
    %cst_127 = arith.constant 5.000000e-01 : f32
    %281 = vector.broadcast %cst_127 : f32 to vector<8x128xf32>
    %282 = arith.mulf %281, %280 : vector<8x128xf32>
    %283 = vector.extract_strided_slice %266 {offsets = [0, 256], sizes = [8, 128], strides = [1, 1]} : vector<8x512xf32> to vector<8x128xf32>
    %284 = math.tanh %283 : vector<8x128xf32>
    %285 = vector.extract_strided_slice %266 {offsets = [0, 384], sizes = [8, 128], strides = [1, 1]} : vector<8x512xf32> to vector<8x128xf32>
    %cst_128 = arith.constant 5.000000e-01 : f32
    %286 = vector.broadcast %cst_128 : f32 to vector<8x128xf32>
    %287 = arith.mulf %286, %285 : vector<8x128xf32>
    %288 = math.tanh %287 : vector<8x128xf32>
    %cst_129 = arith.constant 1.000000e+00 : f32
    %289 = vector.broadcast %cst_129 : f32 to vector<8x128xf32>
    %290 = arith.addf %288, %289 : vector<8x128xf32>
    %cst_130 = arith.constant 5.000000e-01 : f32
    %291 = vector.broadcast %cst_130 : f32 to vector<8x128xf32>
    %292 = arith.mulf %291, %290 : vector<8x128xf32>
    %293 = arith.mulf %282, %254 : vector<8x128xf32>
    %294 = arith.mulf %274, %284 : vector<8x128xf32>
    %295 = arith.addf %293, %294 : vector<8x128xf32>
    %296 = math.tanh %295 : vector<8x128xf32>
    %297 = arith.mulf %292, %296 : vector<8x128xf32>
    %298 = arith.truncf %297 : vector<8x128xf32> to vector<8x128xbf16>
    %c0_131 = arith.constant 0 : index
    %c6_132 = arith.constant 6 : index
    %c0_133 = arith.constant 0 : index
    %299 = vector.load %arg6[%c0_131, %c6_132, %c0_133] : memref<8x8x128xbf16, #tpu.memory_space<vmem>>, vector<8x1x128xbf16>
    %300 = vector.shape_cast %299 : vector<8x1x128xbf16> to vector<8x128xbf16>
    %301 = vector.shape_cast %298 : vector<8x128xbf16> to vector<8x1x128xbf16>
    tpu.vector_store %arg6[%c0_131, %c6_132, %c0_133], %301 {strides = array<i32>} : memref<8x8x128xbf16, #tpu.memory_space<vmem>>, vector<8x1x128xbf16>,
    %c0_134 = arith.constant 0 : index
    %c7 = arith.constant 7 : index
    %c0_135 = arith.constant 0 : index
    %302 = vector.load %arg9[%c0_134, %c7, %c0_135] : memref<8x8x512xf32, #tpu.memory_space<vmem>>, vector<8x1x512xf32>
    %303 = vector.shape_cast %302 : vector<8x1x512xf32> to vector<8x512xf32>
    %304 = arith.truncf %297 : vector<8x128xf32> to vector<8x128xbf16>
    %c0_136 = arith.constant 0 : index
    %c0_137 = arith.constant 0 : index
    %305 = vector.load %arg4[%c0_136, %c0_137] : memref<128x512xbf16, #tpu.memory_space<vmem>>, vector<128x512xbf16>
    %cst_138 = arith.constant dense<0.000000e+00> : vector<8x512xf32>
    %306 = tpu.matmul %304, %305, %cst_138 {dimension_numbers = #tpu.dot_dimension_numbers<[1], [0], [0], [1], [0, 0, 1, 1], [], []>} : vector<8x128xbf16>, vector<128x512xbf16>, vector<8x512xf32> -> vector<8x512xf32>
    %307 = arith.addf %303, %306 : vector<8x512xf32>
    %308 = vector.extract_strided_slice %307 {offsets = [0, 0], sizes = [8, 128], strides = [1, 1]} : vector<8x512xf32> to vector<8x128xf32>
    %cst_139 = arith.constant 5.000000e-01 : f32
    %309 = vector.broadcast %cst_139 : f32 to vector<8x128xf32>
    %310 = arith.mulf %309, %308 : vector<8x128xf32>
    %311 = math.tanh %310 : vector<8x128xf32>
    %cst_140 = arith.constant 1.000000e+00 : f32
    %312 = vector.broadcast %cst_140 : f32 to vector<8x128xf32>
    %313 = arith.addf %311, %312 : vector<8x128xf32>
    %cst_141 = arith.constant 5.000000e-01 : f32
    %314 = vector.broadcast %cst_141 : f32 to vector<8x128xf32>
    %315 = arith.mulf %314, %313 : vector<8x128xf32>
    %316 = vector.extract_strided_slice %307 {offsets = [0, 128], sizes = [8, 128], strides = [1, 1]} : vector<8x512xf32> to vector<8x128xf32>
    %cst_142 = arith.constant 5.000000e-01 : f32
    %317 = vector.broadcast %cst_142 : f32 to vector<8x128xf32>
    %318 = arith.mulf %317, %316 : vector<8x128xf32>
    %319 = math.tanh %318 : vector<8x128xf32>
    %cst_143 = arith.constant 1.000000e+00 : f32
    %320 = vector.broadcast %cst_143 : f32 to vector<8x128xf32>
    %321 = arith.addf %319, %320 : vector<8x128xf32>
    %cst_144 = arith.constant 5.000000e-01 : f32
    %322 = vector.broadcast %cst_144 : f32 to vector<8x128xf32>
    %323 = arith.mulf %322, %321 : vector<8x128xf32>
    %324 = vector.extract_strided_slice %307 {offsets = [0, 256], sizes = [8, 128], strides = [1, 1]} : vector<8x512xf32> to vector<8x128xf32>
    %325 = math.tanh %324 : vector<8x128xf32>
    %326 = vector.extract_strided_slice %307 {offsets = [0, 384], sizes = [8, 128], strides = [1, 1]} : vector<8x512xf32> to vector<8x128xf32>
    %cst_145 = arith.constant 5.000000e-01 : f32
    %327 = vector.broadcast %cst_145 : f32 to vector<8x128xf32>
    %328 = arith.mulf %327, %326 : vector<8x128xf32>
    %329 = math.tanh %328 : vector<8x128xf32>
    %cst_146 = arith.constant 1.000000e+00 : f32
    %330 = vector.broadcast %cst_146 : f32 to vector<8x128xf32>
    %331 = arith.addf %329, %330 : vector<8x128xf32>
    %cst_147 = arith.constant 5.000000e-01 : f32
    %332 = vector.broadcast %cst_147 : f32 to vector<8x128xf32>
    %333 = arith.mulf %332, %331 : vector<8x128xf32>
    %334 = arith.mulf %323, %295 : vector<8x128xf32>
    %335 = arith.mulf %315, %325 : vector<8x128xf32>
    %336 = arith.addf %334, %335 : vector<8x128xf32>
    %337 = math.tanh %336 : vector<8x128xf32>
    %338 = arith.mulf %333, %337 : vector<8x128xf32>
    %339 = arith.truncf %338 : vector<8x128xf32> to vector<8x128xbf16>
    %c0_148 = arith.constant 0 : index
    %c7_149 = arith.constant 7 : index
    %c0_150 = arith.constant 0 : index
    %340 = vector.load %arg6[%c0_148, %c7_149, %c0_150] : memref<8x8x128xbf16, #tpu.memory_space<vmem>>, vector<8x1x128xbf16>
    %341 = vector.shape_cast %340 : vector<8x1x128xbf16> to vector<8x128xbf16>
    %342 = vector.shape_cast %339 : vector<8x128xbf16> to vector<8x1x128xbf16>
    tpu.vector_store %arg6[%c0_148, %c7_149, %c0_150], %342 {strides = array<i32>} : memref<8x8x128xbf16, #tpu.memory_space<vmem>>, vector<8x1x128xbf16>,
    %c0_151 = arith.constant 0 : index
    %c0_152 = arith.constant 0 : index
    %343 = vector.load %arg10[%c0_151, %c0_152] : memref<8x128xf32, #tpu.memory_space<vmem>>, vector<8x128xf32>
    tpu.vector_store %arg10[%c0_151, %c0_152], %338 {strides = array<i32>} : memref<8x128xf32, #tpu.memory_space<vmem>>, vector<8x128xf32>,
    %c0_153 = arith.constant 0 : index
    %c0_154 = arith.constant 0 : index
    %344 = vector.load %arg11[%c0_153, %c0_154] : memref<8x128xf32, #tpu.memory_space<vmem>>, vector<8x128xf32>
    tpu.vector_store %arg11[%c0_153, %c0_154], %336 {strides = array<i32>} : memref<8x128xf32, #tpu.memory_space<vmem>>, vector<8x128xf32>,
    %c0_i32_155 = arith.constant 0 : i32
    %345 = arith.cmpi eq, %arg1, %c0_i32_155 : i32
    %346 = arith.extui %345 : i1 to i32
    %c0_i32_156 = arith.constant 0 : i32
    %347 = arith.cmpi ne, %346, %c0_i32_156 : i32
    scf.if %347 {
      %c0_157 = arith.constant 0 : index
      %c0_158 = arith.constant 0 : index
      %348 = vector.load %arg7[%c0_157, %c0_158] : memref<8x128xf32, #tpu.memory_space<vmem>>, vector<8x128xf32>
      tpu.vector_store %arg7[%c0_157, %c0_158], %338 {strides = array<i32>} : memref<8x128xf32, #tpu.memory_space<vmem>>, vector<8x128xf32>,
      %c0_159 = arith.constant 0 : index
      %c0_160 = arith.constant 0 : index
      %349 = vector.load %arg8[%c0_159, %c0_160] : memref<8x128xf32, #tpu.memory_space<vmem>>, vector<8x128xf32>
      tpu.vector_store %arg8[%c0_159, %c0_160], %336 {strides = array<i32>} : memref<8x128xf32, #tpu.memory_space<vmem>>, vector<8x128xf32>,
    } else {
    }
    return
  }
  func.func @transform_0(%arg0: i32, %arg1: i32) -> (i32, i32, i32) {
    %c0_i32 = arith.constant 0 : i32
    %c0_i32_0 = arith.constant 0 : i32
    return %arg0, %arg1, %c0_i32 : i32, i32, i32
  }
  func.func @transform_1(%arg0: i32, %arg1: i32) -> (i32, i32) {
    %c0_i32 = arith.constant 0 : i32
    %c0_i32_0 = arith.constant 0 : i32
    %c0_i32_1 = arith.constant 0 : i32
    return %c0_i32, %c0_i32_0 : i32, i32
  }
  func.func @transform_2(%arg0: i32, %arg1: i32) -> (i32, i32) {
    %c0_i32 = arith.constant 0 : i32
    %c0_i32_0 = arith.constant 0 : i32
    %c0_i32_1 = arith.constant 0 : i32
    return %c0_i32, %c0_i32_0 : i32, i32
  }
  func.func @transform_3(%arg0: i32, %arg1: i32) -> (i32, i32) {
    %c0_i32 = arith.constant 0 : i32
    %c0_i32_0 = arith.constant 0 : i32
    %c0_i32_1 = arith.constant 0 : i32
    return %c0_i32, %c0_i32_0 : i32, i32
  }
  func.func @transform_4(%arg0: i32, %arg1: i32) -> (i32, i32, i32) {
    %c0_i32 = arith.constant 0 : i32
    %c0_i32_0 = arith.constant 0 : i32
    return %arg0, %arg1, %c0_i32 : i32, i32, i32
  }
  func.func @transform_5(%arg0: i32, %arg1: i32) -> (i32, i32) {
    %c0_i32 = arith.constant 0 : i32
    %c0_i32_0 = arith.constant 0 : i32
    return %arg0, %c0_i32 : i32, i32
  }
  func.func @transform_6(%arg0: i32, %arg1: i32) -> (i32, i32) {
    %c0_i32 = arith.constant 0 : i32
    %c0_i32_0 = arith.constant 0 : i32
    return %arg0, %c0_i32 : i32, i32
  }
}

module attributes {stable_mosaic.version = 11 : i64} {
  func.func @_lstm_layer_kernel(%arg0: i32, %arg1: i32, %arg2: memref<8x8x128xbf16, #tpu.memory_space<vmem>>, %arg3: memref<128x512xbf16, #tpu.memory_space<vmem>>, %arg4: memref<128x512xbf16, #tpu.memory_space<vmem>>, %arg5: memref<1x512xf32, #tpu.memory_space<vmem>>, %arg6: memref<8x8x128xf32, #tpu.memory_space<vmem>>, %arg7: memref<8x128xf32, #tpu.memory_space<vmem>>, %arg8: memref<8x128xf32, #tpu.memory_space<vmem>>, %arg9: memref<8x8x512xf32, #tpu.memory_space<vmem>>, %arg10: memref<8x128xf32, #tpu.memory_space<vmem>>, %arg11: memref<8x128xf32, #tpu.memory_space<vmem>>) attributes {dimension_semantics = [#tpu.dimension_semantics<parallel>, #tpu.dimension_semantics<arbitrary>], iteration_bounds = array<i64: 1, 1>, scalar_prefetch = 0 : i64, scratch_operands = 3 : i64, tpu.core_type = #tpu.core_type<tc>, window_params = [{transform_indices = @transform_0, window_bounds = array<i64: 8, 8, 128>}, {pipeline_mode = #tpu.pipeline_mode<synchronous>, transform_indices = @transform_1, window_bounds = array<i64: 128, 512>}, {pipeline_mode = #tpu.pipeline_mode<synchronous>, transform_indices = @transform_2, window_bounds = array<i64: 128, 512>}, {pipeline_mode = #tpu.pipeline_mode<synchronous>, transform_indices = @transform_3, window_bounds = array<i64: 1, 512>}, {transform_indices = @transform_4, window_bounds = array<i64: 8, 8, 128>}, {transform_indices = @transform_5, window_bounds = array<i64: 8, 128>}, {transform_indices = @transform_6, window_bounds = array<i64: 8, 128>}]} {
    %c0_i32 = arith.constant 0 : i32
    %0 = arith.cmpi eq, %arg1, %c0_i32 : i32
    %1 = arith.extui %0 : i1 to i32
    %c0_i32_0 = arith.constant 0 : i32
    %2 = arith.cmpi ne, %1, %c0_i32_0 : i32
    scf.if %2 {
      %cst_157 = arith.constant 0.000000e+00 : f32
      %340 = vector.broadcast %cst_157 : f32 to vector<8x128xf32>
      %c0_158 = arith.constant 0 : index
      %c0_159 = arith.constant 0 : index
      %341 = vector.load %arg10[%c0_158, %c0_159] : memref<8x128xf32, #tpu.memory_space<vmem>>, vector<8x128xf32>
      tpu.vector_store %arg10[%c0_158, %c0_159], %340 {strides = array<i32>} : memref<8x128xf32, #tpu.memory_space<vmem>>, vector<8x128xf32>,
      %cst_160 = arith.constant 0.000000e+00 : f32
      %342 = vector.broadcast %cst_160 : f32 to vector<8x128xf32>
      %c0_161 = arith.constant 0 : index
      %c0_162 = arith.constant 0 : index
      %343 = vector.load %arg11[%c0_161, %c0_162] : memref<8x128xf32, #tpu.memory_space<vmem>>, vector<8x128xf32>
      tpu.vector_store %arg11[%c0_161, %c0_162], %342 {strides = array<i32>} : memref<8x128xf32, #tpu.memory_space<vmem>>, vector<8x128xf32>,
    } else {
    }
    %c0 = arith.constant 0 : index
    %c0_1 = arith.constant 0 : index
    %3 = vector.load %arg10[%c0, %c0_1] : memref<8x128xf32, #tpu.memory_space<vmem>>, vector<8x128xf32>
    %c0_2 = arith.constant 0 : index
    %c0_3 = arith.constant 0 : index
    %4 = vector.load %arg11[%c0_2, %c0_3] : memref<8x128xf32, #tpu.memory_space<vmem>>, vector<8x128xf32>
    %c0_4 = arith.constant 0 : index
    %c0_5 = arith.constant 0 : index
    %c0_6 = arith.constant 0 : index
    %5 = vector.load %arg2[%c0_4, %c0_5, %c0_6] : memref<8x8x128xbf16, #tpu.memory_space<vmem>>, vector<8x8x128xbf16>
    %6 = vector.shape_cast %5 : vector<8x8x128xbf16> to vector<64x128xbf16>
    %c0_7 = arith.constant 0 : index
    %c0_8 = arith.constant 0 : index
    %7 = vector.load %arg3[%c0_7, %c0_8] : memref<128x512xbf16, #tpu.memory_space<vmem>>, vector<128x512xbf16>
    %cst = arith.constant dense<0.000000e+00> : vector<64x512xf32>
    %8 = tpu.matmul %6, %7, %cst {dimension_numbers = #tpu.dot_dimension_numbers<[1], [0], [0], [1], [0, 0, 1, 1], [], []>} : vector<64x128xbf16>, vector<128x512xbf16>, vector<64x512xf32> -> vector<64x512xf32>
    %9 = vector.shape_cast %8 : vector<64x512xf32> to vector<8x8x512xf32>
    %c0_9 = arith.constant 0 : index
    %c0_10 = arith.constant 0 : index
    %10 = vector.load %arg5[%c0_9, %c0_10] : memref<1x512xf32, #tpu.memory_space<vmem>>, vector<1x512xf32>
    %11 = vector.shape_cast %10 : vector<1x512xf32> to vector<1x1x512xf32>
    %12 = vector.broadcast %11 : vector<1x1x512xf32> to vector<8x8x512xf32>
    %13 = arith.addf %9, %12 : vector<8x8x512xf32>
    %c0_11 = arith.constant 0 : index
    %c0_12 = arith.constant 0 : index
    %c0_13 = arith.constant 0 : index
    %14 = vector.load %arg9[%c0_11, %c0_12, %c0_13] : memref<8x8x512xf32, #tpu.memory_space<vmem>>, vector<8x8x512xf32>
    tpu.vector_store %arg9[%c0_11, %c0_12, %c0_13], %13 {strides = array<i32>} : memref<8x8x512xf32, #tpu.memory_space<vmem>>, vector<8x8x512xf32>,
    %c0_14 = arith.constant 0 : index
    %c0_15 = arith.constant 0 : index
    %c0_16 = arith.constant 0 : index
    %15 = vector.load %arg9[%c0_14, %c0_15, %c0_16] : memref<8x8x512xf32, #tpu.memory_space<vmem>>, vector<8x1x512xf32>
    %16 = vector.shape_cast %15 : vector<8x1x512xf32> to vector<8x512xf32>
    %17 = arith.truncf %3 : vector<8x128xf32> to vector<8x128xbf16>
    %c0_17 = arith.constant 0 : index
    %c0_18 = arith.constant 0 : index
    %18 = vector.load %arg4[%c0_17, %c0_18] : memref<128x512xbf16, #tpu.memory_space<vmem>>, vector<128x512xbf16>
    %cst_19 = arith.constant dense<0.000000e+00> : vector<8x512xf32>
    %19 = tpu.matmul %17, %18, %cst_19 {dimension_numbers = #tpu.dot_dimension_numbers<[1], [0], [0], [1], [0, 0, 1, 1], [], []>} : vector<8x128xbf16>, vector<128x512xbf16>, vector<8x512xf32> -> vector<8x512xf32>
    %20 = arith.addf %16, %19 : vector<8x512xf32>
    %21 = vector.extract_strided_slice %20 {offsets = [0, 0], sizes = [8, 128], strides = [1, 1]} : vector<8x512xf32> to vector<8x128xf32>
    %cst_20 = arith.constant 5.000000e-01 : f32
    %22 = vector.broadcast %cst_20 : f32 to vector<8x128xf32>
    %23 = arith.mulf %22, %21 : vector<8x128xf32>
    %24 = math.tanh %23 : vector<8x128xf32>
    %cst_21 = arith.constant 1.000000e+00 : f32
    %25 = vector.broadcast %cst_21 : f32 to vector<8x128xf32>
    %26 = arith.addf %24, %25 : vector<8x128xf32>
    %cst_22 = arith.constant 5.000000e-01 : f32
    %27 = vector.broadcast %cst_22 : f32 to vector<8x128xf32>
    %28 = arith.mulf %27, %26 : vector<8x128xf32>
    %29 = vector.extract_strided_slice %20 {offsets = [0, 128], sizes = [8, 128], strides = [1, 1]} : vector<8x512xf32> to vector<8x128xf32>
    %cst_23 = arith.constant 5.000000e-01 : f32
    %30 = vector.broadcast %cst_23 : f32 to vector<8x128xf32>
    %31 = arith.mulf %30, %29 : vector<8x128xf32>
    %32 = math.tanh %31 : vector<8x128xf32>
    %cst_24 = arith.constant 1.000000e+00 : f32
    %33 = vector.broadcast %cst_24 : f32 to vector<8x128xf32>
    %34 = arith.addf %32, %33 : vector<8x128xf32>
    %cst_25 = arith.constant 5.000000e-01 : f32
    %35 = vector.broadcast %cst_25 : f32 to vector<8x128xf32>
    %36 = arith.mulf %35, %34 : vector<8x128xf32>
    %37 = vector.extract_strided_slice %20 {offsets = [0, 256], sizes = [8, 128], strides = [1, 1]} : vector<8x512xf32> to vector<8x128xf32>
    %38 = math.tanh %37 : vector<8x128xf32>
    %39 = vector.extract_strided_slice %20 {offsets = [0, 384], sizes = [8, 128], strides = [1, 1]} : vector<8x512xf32> to vector<8x128xf32>
    %cst_26 = arith.constant 5.000000e-01 : f32
    %40 = vector.broadcast %cst_26 : f32 to vector<8x128xf32>
    %41 = arith.mulf %40, %39 : vector<8x128xf32>
    %42 = math.tanh %41 : vector<8x128xf32>
    %cst_27 = arith.constant 1.000000e+00 : f32
    %43 = vector.broadcast %cst_27 : f32 to vector<8x128xf32>
    %44 = arith.addf %42, %43 : vector<8x128xf32>
    %cst_28 = arith.constant 5.000000e-01 : f32
    %45 = vector.broadcast %cst_28 : f32 to vector<8x128xf32>
    %46 = arith.mulf %45, %44 : vector<8x128xf32>
    %47 = arith.mulf %36, %4 : vector<8x128xf32>
    %48 = arith.mulf %28, %38 : vector<8x128xf32>
    %49 = arith.addf %47, %48 : vector<8x128xf32>
    %50 = math.tanh %49 : vector<8x128xf32>
    %51 = arith.mulf %46, %50 : vector<8x128xf32>
    %c0_29 = arith.constant 0 : index
    %c0_30 = arith.constant 0 : index
    %c0_31 = arith.constant 0 : index
    %52 = vector.load %arg6[%c0_29, %c0_30, %c0_31] : memref<8x8x128xf32, #tpu.memory_space<vmem>>, vector<8x1x128xf32>
    %53 = vector.shape_cast %52 : vector<8x1x128xf32> to vector<8x128xf32>
    %54 = vector.shape_cast %51 : vector<8x128xf32> to vector<8x1x128xf32>
    tpu.vector_store %arg6[%c0_29, %c0_30, %c0_31], %54 {strides = array<i32>} : memref<8x8x128xf32, #tpu.memory_space<vmem>>, vector<8x1x128xf32>,
    %c0_32 = arith.constant 0 : index
    %c1 = arith.constant 1 : index
    %c0_33 = arith.constant 0 : index
    %55 = vector.load %arg9[%c0_32, %c1, %c0_33] : memref<8x8x512xf32, #tpu.memory_space<vmem>>, vector<8x1x512xf32>
    %56 = vector.shape_cast %55 : vector<8x1x512xf32> to vector<8x512xf32>
    %57 = arith.truncf %51 : vector<8x128xf32> to vector<8x128xbf16>
    %c0_34 = arith.constant 0 : index
    %c0_35 = arith.constant 0 : index
    %58 = vector.load %arg4[%c0_34, %c0_35] : memref<128x512xbf16, #tpu.memory_space<vmem>>, vector<128x512xbf16>
    %cst_36 = arith.constant dense<0.000000e+00> : vector<8x512xf32>
    %59 = tpu.matmul %57, %58, %cst_36 {dimension_numbers = #tpu.dot_dimension_numbers<[1], [0], [0], [1], [0, 0, 1, 1], [], []>} : vector<8x128xbf16>, vector<128x512xbf16>, vector<8x512xf32> -> vector<8x512xf32>
    %60 = arith.addf %56, %59 : vector<8x512xf32>
    %61 = vector.extract_strided_slice %60 {offsets = [0, 0], sizes = [8, 128], strides = [1, 1]} : vector<8x512xf32> to vector<8x128xf32>
    %cst_37 = arith.constant 5.000000e-01 : f32
    %62 = vector.broadcast %cst_37 : f32 to vector<8x128xf32>
    %63 = arith.mulf %62, %61 : vector<8x128xf32>
    %64 = math.tanh %63 : vector<8x128xf32>
    %cst_38 = arith.constant 1.000000e+00 : f32
    %65 = vector.broadcast %cst_38 : f32 to vector<8x128xf32>
    %66 = arith.addf %64, %65 : vector<8x128xf32>
    %cst_39 = arith.constant 5.000000e-01 : f32
    %67 = vector.broadcast %cst_39 : f32 to vector<8x128xf32>
    %68 = arith.mulf %67, %66 : vector<8x128xf32>
    %69 = vector.extract_strided_slice %60 {offsets = [0, 128], sizes = [8, 128], strides = [1, 1]} : vector<8x512xf32> to vector<8x128xf32>
    %cst_40 = arith.constant 5.000000e-01 : f32
    %70 = vector.broadcast %cst_40 : f32 to vector<8x128xf32>
    %71 = arith.mulf %70, %69 : vector<8x128xf32>
    %72 = math.tanh %71 : vector<8x128xf32>
    %cst_41 = arith.constant 1.000000e+00 : f32
    %73 = vector.broadcast %cst_41 : f32 to vector<8x128xf32>
    %74 = arith.addf %72, %73 : vector<8x128xf32>
    %cst_42 = arith.constant 5.000000e-01 : f32
    %75 = vector.broadcast %cst_42 : f32 to vector<8x128xf32>
    %76 = arith.mulf %75, %74 : vector<8x128xf32>
    %77 = vector.extract_strided_slice %60 {offsets = [0, 256], sizes = [8, 128], strides = [1, 1]} : vector<8x512xf32> to vector<8x128xf32>
    %78 = math.tanh %77 : vector<8x128xf32>
    %79 = vector.extract_strided_slice %60 {offsets = [0, 384], sizes = [8, 128], strides = [1, 1]} : vector<8x512xf32> to vector<8x128xf32>
    %cst_43 = arith.constant 5.000000e-01 : f32
    %80 = vector.broadcast %cst_43 : f32 to vector<8x128xf32>
    %81 = arith.mulf %80, %79 : vector<8x128xf32>
    %82 = math.tanh %81 : vector<8x128xf32>
    %cst_44 = arith.constant 1.000000e+00 : f32
    %83 = vector.broadcast %cst_44 : f32 to vector<8x128xf32>
    %84 = arith.addf %82, %83 : vector<8x128xf32>
    %cst_45 = arith.constant 5.000000e-01 : f32
    %85 = vector.broadcast %cst_45 : f32 to vector<8x128xf32>
    %86 = arith.mulf %85, %84 : vector<8x128xf32>
    %87 = arith.mulf %76, %49 : vector<8x128xf32>
    %88 = arith.mulf %68, %78 : vector<8x128xf32>
    %89 = arith.addf %87, %88 : vector<8x128xf32>
    %90 = math.tanh %89 : vector<8x128xf32>
    %91 = arith.mulf %86, %90 : vector<8x128xf32>
    %c0_46 = arith.constant 0 : index
    %c1_47 = arith.constant 1 : index
    %c0_48 = arith.constant 0 : index
    %92 = vector.load %arg6[%c0_46, %c1_47, %c0_48] : memref<8x8x128xf32, #tpu.memory_space<vmem>>, vector<8x1x128xf32>
    %93 = vector.shape_cast %92 : vector<8x1x128xf32> to vector<8x128xf32>
    %94 = vector.shape_cast %91 : vector<8x128xf32> to vector<8x1x128xf32>
    tpu.vector_store %arg6[%c0_46, %c1_47, %c0_48], %94 {strides = array<i32>} : memref<8x8x128xf32, #tpu.memory_space<vmem>>, vector<8x1x128xf32>,
    %c0_49 = arith.constant 0 : index
    %c2 = arith.constant 2 : index
    %c0_50 = arith.constant 0 : index
    %95 = vector.load %arg9[%c0_49, %c2, %c0_50] : memref<8x8x512xf32, #tpu.memory_space<vmem>>, vector<8x1x512xf32>
    %96 = vector.shape_cast %95 : vector<8x1x512xf32> to vector<8x512xf32>
    %97 = arith.truncf %91 : vector<8x128xf32> to vector<8x128xbf16>
    %c0_51 = arith.constant 0 : index
    %c0_52 = arith.constant 0 : index
    %98 = vector.load %arg4[%c0_51, %c0_52] : memref<128x512xbf16, #tpu.memory_space<vmem>>, vector<128x512xbf16>
    %cst_53 = arith.constant dense<0.000000e+00> : vector<8x512xf32>
    %99 = tpu.matmul %97, %98, %cst_53 {dimension_numbers = #tpu.dot_dimension_numbers<[1], [0], [0], [1], [0, 0, 1, 1], [], []>} : vector<8x128xbf16>, vector<128x512xbf16>, vector<8x512xf32> -> vector<8x512xf32>
    %100 = arith.addf %96, %99 : vector<8x512xf32>
    %101 = vector.extract_strided_slice %100 {offsets = [0, 0], sizes = [8, 128], strides = [1, 1]} : vector<8x512xf32> to vector<8x128xf32>
    %cst_54 = arith.constant 5.000000e-01 : f32
    %102 = vector.broadcast %cst_54 : f32 to vector<8x128xf32>
    %103 = arith.mulf %102, %101 : vector<8x128xf32>
    %104 = math.tanh %103 : vector<8x128xf32>
    %cst_55 = arith.constant 1.000000e+00 : f32
    %105 = vector.broadcast %cst_55 : f32 to vector<8x128xf32>
    %106 = arith.addf %104, %105 : vector<8x128xf32>
    %cst_56 = arith.constant 5.000000e-01 : f32
    %107 = vector.broadcast %cst_56 : f32 to vector<8x128xf32>
    %108 = arith.mulf %107, %106 : vector<8x128xf32>
    %109 = vector.extract_strided_slice %100 {offsets = [0, 128], sizes = [8, 128], strides = [1, 1]} : vector<8x512xf32> to vector<8x128xf32>
    %cst_57 = arith.constant 5.000000e-01 : f32
    %110 = vector.broadcast %cst_57 : f32 to vector<8x128xf32>
    %111 = arith.mulf %110, %109 : vector<8x128xf32>
    %112 = math.tanh %111 : vector<8x128xf32>
    %cst_58 = arith.constant 1.000000e+00 : f32
    %113 = vector.broadcast %cst_58 : f32 to vector<8x128xf32>
    %114 = arith.addf %112, %113 : vector<8x128xf32>
    %cst_59 = arith.constant 5.000000e-01 : f32
    %115 = vector.broadcast %cst_59 : f32 to vector<8x128xf32>
    %116 = arith.mulf %115, %114 : vector<8x128xf32>
    %117 = vector.extract_strided_slice %100 {offsets = [0, 256], sizes = [8, 128], strides = [1, 1]} : vector<8x512xf32> to vector<8x128xf32>
    %118 = math.tanh %117 : vector<8x128xf32>
    %119 = vector.extract_strided_slice %100 {offsets = [0, 384], sizes = [8, 128], strides = [1, 1]} : vector<8x512xf32> to vector<8x128xf32>
    %cst_60 = arith.constant 5.000000e-01 : f32
    %120 = vector.broadcast %cst_60 : f32 to vector<8x128xf32>
    %121 = arith.mulf %120, %119 : vector<8x128xf32>
    %122 = math.tanh %121 : vector<8x128xf32>
    %cst_61 = arith.constant 1.000000e+00 : f32
    %123 = vector.broadcast %cst_61 : f32 to vector<8x128xf32>
    %124 = arith.addf %122, %123 : vector<8x128xf32>
    %cst_62 = arith.constant 5.000000e-01 : f32
    %125 = vector.broadcast %cst_62 : f32 to vector<8x128xf32>
    %126 = arith.mulf %125, %124 : vector<8x128xf32>
    %127 = arith.mulf %116, %89 : vector<8x128xf32>
    %128 = arith.mulf %108, %118 : vector<8x128xf32>
    %129 = arith.addf %127, %128 : vector<8x128xf32>
    %130 = math.tanh %129 : vector<8x128xf32>
    %131 = arith.mulf %126, %130 : vector<8x128xf32>
    %c0_63 = arith.constant 0 : index
    %c2_64 = arith.constant 2 : index
    %c0_65 = arith.constant 0 : index
    %132 = vector.load %arg6[%c0_63, %c2_64, %c0_65] : memref<8x8x128xf32, #tpu.memory_space<vmem>>, vector<8x1x128xf32>
    %133 = vector.shape_cast %132 : vector<8x1x128xf32> to vector<8x128xf32>
    %134 = vector.shape_cast %131 : vector<8x128xf32> to vector<8x1x128xf32>
    tpu.vector_store %arg6[%c0_63, %c2_64, %c0_65], %134 {strides = array<i32>} : memref<8x8x128xf32, #tpu.memory_space<vmem>>, vector<8x1x128xf32>,
    %c0_66 = arith.constant 0 : index
    %c3 = arith.constant 3 : index
    %c0_67 = arith.constant 0 : index
    %135 = vector.load %arg9[%c0_66, %c3, %c0_67] : memref<8x8x512xf32, #tpu.memory_space<vmem>>, vector<8x1x512xf32>
    %136 = vector.shape_cast %135 : vector<8x1x512xf32> to vector<8x512xf32>
    %137 = arith.truncf %131 : vector<8x128xf32> to vector<8x128xbf16>
    %c0_68 = arith.constant 0 : index
    %c0_69 = arith.constant 0 : index
    %138 = vector.load %arg4[%c0_68, %c0_69] : memref<128x512xbf16, #tpu.memory_space<vmem>>, vector<128x512xbf16>
    %cst_70 = arith.constant dense<0.000000e+00> : vector<8x512xf32>
    %139 = tpu.matmul %137, %138, %cst_70 {dimension_numbers = #tpu.dot_dimension_numbers<[1], [0], [0], [1], [0, 0, 1, 1], [], []>} : vector<8x128xbf16>, vector<128x512xbf16>, vector<8x512xf32> -> vector<8x512xf32>
    %140 = arith.addf %136, %139 : vector<8x512xf32>
    %141 = vector.extract_strided_slice %140 {offsets = [0, 0], sizes = [8, 128], strides = [1, 1]} : vector<8x512xf32> to vector<8x128xf32>
    %cst_71 = arith.constant 5.000000e-01 : f32
    %142 = vector.broadcast %cst_71 : f32 to vector<8x128xf32>
    %143 = arith.mulf %142, %141 : vector<8x128xf32>
    %144 = math.tanh %143 : vector<8x128xf32>
    %cst_72 = arith.constant 1.000000e+00 : f32
    %145 = vector.broadcast %cst_72 : f32 to vector<8x128xf32>
    %146 = arith.addf %144, %145 : vector<8x128xf32>
    %cst_73 = arith.constant 5.000000e-01 : f32
    %147 = vector.broadcast %cst_73 : f32 to vector<8x128xf32>
    %148 = arith.mulf %147, %146 : vector<8x128xf32>
    %149 = vector.extract_strided_slice %140 {offsets = [0, 128], sizes = [8, 128], strides = [1, 1]} : vector<8x512xf32> to vector<8x128xf32>
    %cst_74 = arith.constant 5.000000e-01 : f32
    %150 = vector.broadcast %cst_74 : f32 to vector<8x128xf32>
    %151 = arith.mulf %150, %149 : vector<8x128xf32>
    %152 = math.tanh %151 : vector<8x128xf32>
    %cst_75 = arith.constant 1.000000e+00 : f32
    %153 = vector.broadcast %cst_75 : f32 to vector<8x128xf32>
    %154 = arith.addf %152, %153 : vector<8x128xf32>
    %cst_76 = arith.constant 5.000000e-01 : f32
    %155 = vector.broadcast %cst_76 : f32 to vector<8x128xf32>
    %156 = arith.mulf %155, %154 : vector<8x128xf32>
    %157 = vector.extract_strided_slice %140 {offsets = [0, 256], sizes = [8, 128], strides = [1, 1]} : vector<8x512xf32> to vector<8x128xf32>
    %158 = math.tanh %157 : vector<8x128xf32>
    %159 = vector.extract_strided_slice %140 {offsets = [0, 384], sizes = [8, 128], strides = [1, 1]} : vector<8x512xf32> to vector<8x128xf32>
    %cst_77 = arith.constant 5.000000e-01 : f32
    %160 = vector.broadcast %cst_77 : f32 to vector<8x128xf32>
    %161 = arith.mulf %160, %159 : vector<8x128xf32>
    %162 = math.tanh %161 : vector<8x128xf32>
    %cst_78 = arith.constant 1.000000e+00 : f32
    %163 = vector.broadcast %cst_78 : f32 to vector<8x128xf32>
    %164 = arith.addf %162, %163 : vector<8x128xf32>
    %cst_79 = arith.constant 5.000000e-01 : f32
    %165 = vector.broadcast %cst_79 : f32 to vector<8x128xf32>
    %166 = arith.mulf %165, %164 : vector<8x128xf32>
    %167 = arith.mulf %156, %129 : vector<8x128xf32>
    %168 = arith.mulf %148, %158 : vector<8x128xf32>
    %169 = arith.addf %167, %168 : vector<8x128xf32>
    %170 = math.tanh %169 : vector<8x128xf32>
    %171 = arith.mulf %166, %170 : vector<8x128xf32>
    %c0_80 = arith.constant 0 : index
    %c3_81 = arith.constant 3 : index
    %c0_82 = arith.constant 0 : index
    %172 = vector.load %arg6[%c0_80, %c3_81, %c0_82] : memref<8x8x128xf32, #tpu.memory_space<vmem>>, vector<8x1x128xf32>
    %173 = vector.shape_cast %172 : vector<8x1x128xf32> to vector<8x128xf32>
    %174 = vector.shape_cast %171 : vector<8x128xf32> to vector<8x1x128xf32>
    tpu.vector_store %arg6[%c0_80, %c3_81, %c0_82], %174 {strides = array<i32>} : memref<8x8x128xf32, #tpu.memory_space<vmem>>, vector<8x1x128xf32>,
    %c0_83 = arith.constant 0 : index
    %c4 = arith.constant 4 : index
    %c0_84 = arith.constant 0 : index
    %175 = vector.load %arg9[%c0_83, %c4, %c0_84] : memref<8x8x512xf32, #tpu.memory_space<vmem>>, vector<8x1x512xf32>
    %176 = vector.shape_cast %175 : vector<8x1x512xf32> to vector<8x512xf32>
    %177 = arith.truncf %171 : vector<8x128xf32> to vector<8x128xbf16>
    %c0_85 = arith.constant 0 : index
    %c0_86 = arith.constant 0 : index
    %178 = vector.load %arg4[%c0_85, %c0_86] : memref<128x512xbf16, #tpu.memory_space<vmem>>, vector<128x512xbf16>
    %cst_87 = arith.constant dense<0.000000e+00> : vector<8x512xf32>
    %179 = tpu.matmul %177, %178, %cst_87 {dimension_numbers = #tpu.dot_dimension_numbers<[1], [0], [0], [1], [0, 0, 1, 1], [], []>} : vector<8x128xbf16>, vector<128x512xbf16>, vector<8x512xf32> -> vector<8x512xf32>
    %180 = arith.addf %176, %179 : vector<8x512xf32>
    %181 = vector.extract_strided_slice %180 {offsets = [0, 0], sizes = [8, 128], strides = [1, 1]} : vector<8x512xf32> to vector<8x128xf32>
    %cst_88 = arith.constant 5.000000e-01 : f32
    %182 = vector.broadcast %cst_88 : f32 to vector<8x128xf32>
    %183 = arith.mulf %182, %181 : vector<8x128xf32>
    %184 = math.tanh %183 : vector<8x128xf32>
    %cst_89 = arith.constant 1.000000e+00 : f32
    %185 = vector.broadcast %cst_89 : f32 to vector<8x128xf32>
    %186 = arith.addf %184, %185 : vector<8x128xf32>
    %cst_90 = arith.constant 5.000000e-01 : f32
    %187 = vector.broadcast %cst_90 : f32 to vector<8x128xf32>
    %188 = arith.mulf %187, %186 : vector<8x128xf32>
    %189 = vector.extract_strided_slice %180 {offsets = [0, 128], sizes = [8, 128], strides = [1, 1]} : vector<8x512xf32> to vector<8x128xf32>
    %cst_91 = arith.constant 5.000000e-01 : f32
    %190 = vector.broadcast %cst_91 : f32 to vector<8x128xf32>
    %191 = arith.mulf %190, %189 : vector<8x128xf32>
    %192 = math.tanh %191 : vector<8x128xf32>
    %cst_92 = arith.constant 1.000000e+00 : f32
    %193 = vector.broadcast %cst_92 : f32 to vector<8x128xf32>
    %194 = arith.addf %192, %193 : vector<8x128xf32>
    %cst_93 = arith.constant 5.000000e-01 : f32
    %195 = vector.broadcast %cst_93 : f32 to vector<8x128xf32>
    %196 = arith.mulf %195, %194 : vector<8x128xf32>
    %197 = vector.extract_strided_slice %180 {offsets = [0, 256], sizes = [8, 128], strides = [1, 1]} : vector<8x512xf32> to vector<8x128xf32>
    %198 = math.tanh %197 : vector<8x128xf32>
    %199 = vector.extract_strided_slice %180 {offsets = [0, 384], sizes = [8, 128], strides = [1, 1]} : vector<8x512xf32> to vector<8x128xf32>
    %cst_94 = arith.constant 5.000000e-01 : f32
    %200 = vector.broadcast %cst_94 : f32 to vector<8x128xf32>
    %201 = arith.mulf %200, %199 : vector<8x128xf32>
    %202 = math.tanh %201 : vector<8x128xf32>
    %cst_95 = arith.constant 1.000000e+00 : f32
    %203 = vector.broadcast %cst_95 : f32 to vector<8x128xf32>
    %204 = arith.addf %202, %203 : vector<8x128xf32>
    %cst_96 = arith.constant 5.000000e-01 : f32
    %205 = vector.broadcast %cst_96 : f32 to vector<8x128xf32>
    %206 = arith.mulf %205, %204 : vector<8x128xf32>
    %207 = arith.mulf %196, %169 : vector<8x128xf32>
    %208 = arith.mulf %188, %198 : vector<8x128xf32>
    %209 = arith.addf %207, %208 : vector<8x128xf32>
    %210 = math.tanh %209 : vector<8x128xf32>
    %211 = arith.mulf %206, %210 : vector<8x128xf32>
    %c0_97 = arith.constant 0 : index
    %c4_98 = arith.constant 4 : index
    %c0_99 = arith.constant 0 : index
    %212 = vector.load %arg6[%c0_97, %c4_98, %c0_99] : memref<8x8x128xf32, #tpu.memory_space<vmem>>, vector<8x1x128xf32>
    %213 = vector.shape_cast %212 : vector<8x1x128xf32> to vector<8x128xf32>
    %214 = vector.shape_cast %211 : vector<8x128xf32> to vector<8x1x128xf32>
    tpu.vector_store %arg6[%c0_97, %c4_98, %c0_99], %214 {strides = array<i32>} : memref<8x8x128xf32, #tpu.memory_space<vmem>>, vector<8x1x128xf32>,
    %c0_100 = arith.constant 0 : index
    %c5 = arith.constant 5 : index
    %c0_101 = arith.constant 0 : index
    %215 = vector.load %arg9[%c0_100, %c5, %c0_101] : memref<8x8x512xf32, #tpu.memory_space<vmem>>, vector<8x1x512xf32>
    %216 = vector.shape_cast %215 : vector<8x1x512xf32> to vector<8x512xf32>
    %217 = arith.truncf %211 : vector<8x128xf32> to vector<8x128xbf16>
    %c0_102 = arith.constant 0 : index
    %c0_103 = arith.constant 0 : index
    %218 = vector.load %arg4[%c0_102, %c0_103] : memref<128x512xbf16, #tpu.memory_space<vmem>>, vector<128x512xbf16>
    %cst_104 = arith.constant dense<0.000000e+00> : vector<8x512xf32>
    %219 = tpu.matmul %217, %218, %cst_104 {dimension_numbers = #tpu.dot_dimension_numbers<[1], [0], [0], [1], [0, 0, 1, 1], [], []>} : vector<8x128xbf16>, vector<128x512xbf16>, vector<8x512xf32> -> vector<8x512xf32>
    %220 = arith.addf %216, %219 : vector<8x512xf32>
    %221 = vector.extract_strided_slice %220 {offsets = [0, 0], sizes = [8, 128], strides = [1, 1]} : vector<8x512xf32> to vector<8x128xf32>
    %cst_105 = arith.constant 5.000000e-01 : f32
    %222 = vector.broadcast %cst_105 : f32 to vector<8x128xf32>
    %223 = arith.mulf %222, %221 : vector<8x128xf32>
    %224 = math.tanh %223 : vector<8x128xf32>
    %cst_106 = arith.constant 1.000000e+00 : f32
    %225 = vector.broadcast %cst_106 : f32 to vector<8x128xf32>
    %226 = arith.addf %224, %225 : vector<8x128xf32>
    %cst_107 = arith.constant 5.000000e-01 : f32
    %227 = vector.broadcast %cst_107 : f32 to vector<8x128xf32>
    %228 = arith.mulf %227, %226 : vector<8x128xf32>
    %229 = vector.extract_strided_slice %220 {offsets = [0, 128], sizes = [8, 128], strides = [1, 1]} : vector<8x512xf32> to vector<8x128xf32>
    %cst_108 = arith.constant 5.000000e-01 : f32
    %230 = vector.broadcast %cst_108 : f32 to vector<8x128xf32>
    %231 = arith.mulf %230, %229 : vector<8x128xf32>
    %232 = math.tanh %231 : vector<8x128xf32>
    %cst_109 = arith.constant 1.000000e+00 : f32
    %233 = vector.broadcast %cst_109 : f32 to vector<8x128xf32>
    %234 = arith.addf %232, %233 : vector<8x128xf32>
    %cst_110 = arith.constant 5.000000e-01 : f32
    %235 = vector.broadcast %cst_110 : f32 to vector<8x128xf32>
    %236 = arith.mulf %235, %234 : vector<8x128xf32>
    %237 = vector.extract_strided_slice %220 {offsets = [0, 256], sizes = [8, 128], strides = [1, 1]} : vector<8x512xf32> to vector<8x128xf32>
    %238 = math.tanh %237 : vector<8x128xf32>
    %239 = vector.extract_strided_slice %220 {offsets = [0, 384], sizes = [8, 128], strides = [1, 1]} : vector<8x512xf32> to vector<8x128xf32>
    %cst_111 = arith.constant 5.000000e-01 : f32
    %240 = vector.broadcast %cst_111 : f32 to vector<8x128xf32>
    %241 = arith.mulf %240, %239 : vector<8x128xf32>
    %242 = math.tanh %241 : vector<8x128xf32>
    %cst_112 = arith.constant 1.000000e+00 : f32
    %243 = vector.broadcast %cst_112 : f32 to vector<8x128xf32>
    %244 = arith.addf %242, %243 : vector<8x128xf32>
    %cst_113 = arith.constant 5.000000e-01 : f32
    %245 = vector.broadcast %cst_113 : f32 to vector<8x128xf32>
    %246 = arith.mulf %245, %244 : vector<8x128xf32>
    %247 = arith.mulf %236, %209 : vector<8x128xf32>
    %248 = arith.mulf %228, %238 : vector<8x128xf32>
    %249 = arith.addf %247, %248 : vector<8x128xf32>
    %250 = math.tanh %249 : vector<8x128xf32>
    %251 = arith.mulf %246, %250 : vector<8x128xf32>
    %c0_114 = arith.constant 0 : index
    %c5_115 = arith.constant 5 : index
    %c0_116 = arith.constant 0 : index
    %252 = vector.load %arg6[%c0_114, %c5_115, %c0_116] : memref<8x8x128xf32, #tpu.memory_space<vmem>>, vector<8x1x128xf32>
    %253 = vector.shape_cast %252 : vector<8x1x128xf32> to vector<8x128xf32>
    %254 = vector.shape_cast %251 : vector<8x128xf32> to vector<8x1x128xf32>
    tpu.vector_store %arg6[%c0_114, %c5_115, %c0_116], %254 {strides = array<i32>} : memref<8x8x128xf32, #tpu.memory_space<vmem>>, vector<8x1x128xf32>,
    %c0_117 = arith.constant 0 : index
    %c6 = arith.constant 6 : index
    %c0_118 = arith.constant 0 : index
    %255 = vector.load %arg9[%c0_117, %c6, %c0_118] : memref<8x8x512xf32, #tpu.memory_space<vmem>>, vector<8x1x512xf32>
    %256 = vector.shape_cast %255 : vector<8x1x512xf32> to vector<8x512xf32>
    %257 = arith.truncf %251 : vector<8x128xf32> to vector<8x128xbf16>
    %c0_119 = arith.constant 0 : index
    %c0_120 = arith.constant 0 : index
    %258 = vector.load %arg4[%c0_119, %c0_120] : memref<128x512xbf16, #tpu.memory_space<vmem>>, vector<128x512xbf16>
    %cst_121 = arith.constant dense<0.000000e+00> : vector<8x512xf32>
    %259 = tpu.matmul %257, %258, %cst_121 {dimension_numbers = #tpu.dot_dimension_numbers<[1], [0], [0], [1], [0, 0, 1, 1], [], []>} : vector<8x128xbf16>, vector<128x512xbf16>, vector<8x512xf32> -> vector<8x512xf32>
    %260 = arith.addf %256, %259 : vector<8x512xf32>
    %261 = vector.extract_strided_slice %260 {offsets = [0, 0], sizes = [8, 128], strides = [1, 1]} : vector<8x512xf32> to vector<8x128xf32>
    %cst_122 = arith.constant 5.000000e-01 : f32
    %262 = vector.broadcast %cst_122 : f32 to vector<8x128xf32>
    %263 = arith.mulf %262, %261 : vector<8x128xf32>
    %264 = math.tanh %263 : vector<8x128xf32>
    %cst_123 = arith.constant 1.000000e+00 : f32
    %265 = vector.broadcast %cst_123 : f32 to vector<8x128xf32>
    %266 = arith.addf %264, %265 : vector<8x128xf32>
    %cst_124 = arith.constant 5.000000e-01 : f32
    %267 = vector.broadcast %cst_124 : f32 to vector<8x128xf32>
    %268 = arith.mulf %267, %266 : vector<8x128xf32>
    %269 = vector.extract_strided_slice %260 {offsets = [0, 128], sizes = [8, 128], strides = [1, 1]} : vector<8x512xf32> to vector<8x128xf32>
    %cst_125 = arith.constant 5.000000e-01 : f32
    %270 = vector.broadcast %cst_125 : f32 to vector<8x128xf32>
    %271 = arith.mulf %270, %269 : vector<8x128xf32>
    %272 = math.tanh %271 : vector<8x128xf32>
    %cst_126 = arith.constant 1.000000e+00 : f32
    %273 = vector.broadcast %cst_126 : f32 to vector<8x128xf32>
    %274 = arith.addf %272, %273 : vector<8x128xf32>
    %cst_127 = arith.constant 5.000000e-01 : f32
    %275 = vector.broadcast %cst_127 : f32 to vector<8x128xf32>
    %276 = arith.mulf %275, %274 : vector<8x128xf32>
    %277 = vector.extract_strided_slice %260 {offsets = [0, 256], sizes = [8, 128], strides = [1, 1]} : vector<8x512xf32> to vector<8x128xf32>
    %278 = math.tanh %277 : vector<8x128xf32>
    %279 = vector.extract_strided_slice %260 {offsets = [0, 384], sizes = [8, 128], strides = [1, 1]} : vector<8x512xf32> to vector<8x128xf32>
    %cst_128 = arith.constant 5.000000e-01 : f32
    %280 = vector.broadcast %cst_128 : f32 to vector<8x128xf32>
    %281 = arith.mulf %280, %279 : vector<8x128xf32>
    %282 = math.tanh %281 : vector<8x128xf32>
    %cst_129 = arith.constant 1.000000e+00 : f32
    %283 = vector.broadcast %cst_129 : f32 to vector<8x128xf32>
    %284 = arith.addf %282, %283 : vector<8x128xf32>
    %cst_130 = arith.constant 5.000000e-01 : f32
    %285 = vector.broadcast %cst_130 : f32 to vector<8x128xf32>
    %286 = arith.mulf %285, %284 : vector<8x128xf32>
    %287 = arith.mulf %276, %249 : vector<8x128xf32>
    %288 = arith.mulf %268, %278 : vector<8x128xf32>
    %289 = arith.addf %287, %288 : vector<8x128xf32>
    %290 = math.tanh %289 : vector<8x128xf32>
    %291 = arith.mulf %286, %290 : vector<8x128xf32>
    %c0_131 = arith.constant 0 : index
    %c6_132 = arith.constant 6 : index
    %c0_133 = arith.constant 0 : index
    %292 = vector.load %arg6[%c0_131, %c6_132, %c0_133] : memref<8x8x128xf32, #tpu.memory_space<vmem>>, vector<8x1x128xf32>
    %293 = vector.shape_cast %292 : vector<8x1x128xf32> to vector<8x128xf32>
    %294 = vector.shape_cast %291 : vector<8x128xf32> to vector<8x1x128xf32>
    tpu.vector_store %arg6[%c0_131, %c6_132, %c0_133], %294 {strides = array<i32>} : memref<8x8x128xf32, #tpu.memory_space<vmem>>, vector<8x1x128xf32>,
    %c0_134 = arith.constant 0 : index
    %c7 = arith.constant 7 : index
    %c0_135 = arith.constant 0 : index
    %295 = vector.load %arg9[%c0_134, %c7, %c0_135] : memref<8x8x512xf32, #tpu.memory_space<vmem>>, vector<8x1x512xf32>
    %296 = vector.shape_cast %295 : vector<8x1x512xf32> to vector<8x512xf32>
    %297 = arith.truncf %291 : vector<8x128xf32> to vector<8x128xbf16>
    %c0_136 = arith.constant 0 : index
    %c0_137 = arith.constant 0 : index
    %298 = vector.load %arg4[%c0_136, %c0_137] : memref<128x512xbf16, #tpu.memory_space<vmem>>, vector<128x512xbf16>
    %cst_138 = arith.constant dense<0.000000e+00> : vector<8x512xf32>
    %299 = tpu.matmul %297, %298, %cst_138 {dimension_numbers = #tpu.dot_dimension_numbers<[1], [0], [0], [1], [0, 0, 1, 1], [], []>} : vector<8x128xbf16>, vector<128x512xbf16>, vector<8x512xf32> -> vector<8x512xf32>
    %300 = arith.addf %296, %299 : vector<8x512xf32>
    %301 = vector.extract_strided_slice %300 {offsets = [0, 0], sizes = [8, 128], strides = [1, 1]} : vector<8x512xf32> to vector<8x128xf32>
    %cst_139 = arith.constant 5.000000e-01 : f32
    %302 = vector.broadcast %cst_139 : f32 to vector<8x128xf32>
    %303 = arith.mulf %302, %301 : vector<8x128xf32>
    %304 = math.tanh %303 : vector<8x128xf32>
    %cst_140 = arith.constant 1.000000e+00 : f32
    %305 = vector.broadcast %cst_140 : f32 to vector<8x128xf32>
    %306 = arith.addf %304, %305 : vector<8x128xf32>
    %cst_141 = arith.constant 5.000000e-01 : f32
    %307 = vector.broadcast %cst_141 : f32 to vector<8x128xf32>
    %308 = arith.mulf %307, %306 : vector<8x128xf32>
    %309 = vector.extract_strided_slice %300 {offsets = [0, 128], sizes = [8, 128], strides = [1, 1]} : vector<8x512xf32> to vector<8x128xf32>
    %cst_142 = arith.constant 5.000000e-01 : f32
    %310 = vector.broadcast %cst_142 : f32 to vector<8x128xf32>
    %311 = arith.mulf %310, %309 : vector<8x128xf32>
    %312 = math.tanh %311 : vector<8x128xf32>
    %cst_143 = arith.constant 1.000000e+00 : f32
    %313 = vector.broadcast %cst_143 : f32 to vector<8x128xf32>
    %314 = arith.addf %312, %313 : vector<8x128xf32>
    %cst_144 = arith.constant 5.000000e-01 : f32
    %315 = vector.broadcast %cst_144 : f32 to vector<8x128xf32>
    %316 = arith.mulf %315, %314 : vector<8x128xf32>
    %317 = vector.extract_strided_slice %300 {offsets = [0, 256], sizes = [8, 128], strides = [1, 1]} : vector<8x512xf32> to vector<8x128xf32>
    %318 = math.tanh %317 : vector<8x128xf32>
    %319 = vector.extract_strided_slice %300 {offsets = [0, 384], sizes = [8, 128], strides = [1, 1]} : vector<8x512xf32> to vector<8x128xf32>
    %cst_145 = arith.constant 5.000000e-01 : f32
    %320 = vector.broadcast %cst_145 : f32 to vector<8x128xf32>
    %321 = arith.mulf %320, %319 : vector<8x128xf32>
    %322 = math.tanh %321 : vector<8x128xf32>
    %cst_146 = arith.constant 1.000000e+00 : f32
    %323 = vector.broadcast %cst_146 : f32 to vector<8x128xf32>
    %324 = arith.addf %322, %323 : vector<8x128xf32>
    %cst_147 = arith.constant 5.000000e-01 : f32
    %325 = vector.broadcast %cst_147 : f32 to vector<8x128xf32>
    %326 = arith.mulf %325, %324 : vector<8x128xf32>
    %327 = arith.mulf %316, %289 : vector<8x128xf32>
    %328 = arith.mulf %308, %318 : vector<8x128xf32>
    %329 = arith.addf %327, %328 : vector<8x128xf32>
    %330 = math.tanh %329 : vector<8x128xf32>
    %331 = arith.mulf %326, %330 : vector<8x128xf32>
    %c0_148 = arith.constant 0 : index
    %c7_149 = arith.constant 7 : index
    %c0_150 = arith.constant 0 : index
    %332 = vector.load %arg6[%c0_148, %c7_149, %c0_150] : memref<8x8x128xf32, #tpu.memory_space<vmem>>, vector<8x1x128xf32>
    %333 = vector.shape_cast %332 : vector<8x1x128xf32> to vector<8x128xf32>
    %334 = vector.shape_cast %331 : vector<8x128xf32> to vector<8x1x128xf32>
    tpu.vector_store %arg6[%c0_148, %c7_149, %c0_150], %334 {strides = array<i32>} : memref<8x8x128xf32, #tpu.memory_space<vmem>>, vector<8x1x128xf32>,
    %c0_151 = arith.constant 0 : index
    %c0_152 = arith.constant 0 : index
    %335 = vector.load %arg10[%c0_151, %c0_152] : memref<8x128xf32, #tpu.memory_space<vmem>>, vector<8x128xf32>
    tpu.vector_store %arg10[%c0_151, %c0_152], %331 {strides = array<i32>} : memref<8x128xf32, #tpu.memory_space<vmem>>, vector<8x128xf32>,
    %c0_153 = arith.constant 0 : index
    %c0_154 = arith.constant 0 : index
    %336 = vector.load %arg11[%c0_153, %c0_154] : memref<8x128xf32, #tpu.memory_space<vmem>>, vector<8x128xf32>
    tpu.vector_store %arg11[%c0_153, %c0_154], %329 {strides = array<i32>} : memref<8x128xf32, #tpu.memory_space<vmem>>, vector<8x128xf32>,
    %c0_i32_155 = arith.constant 0 : i32
    %337 = arith.cmpi eq, %arg1, %c0_i32_155 : i32
    %338 = arith.extui %337 : i1 to i32
    %c0_i32_156 = arith.constant 0 : i32
    %339 = arith.cmpi ne, %338, %c0_i32_156 : i32
    scf.if %339 {
      %c0_157 = arith.constant 0 : index
      %c0_158 = arith.constant 0 : index
      %340 = vector.load %arg7[%c0_157, %c0_158] : memref<8x128xf32, #tpu.memory_space<vmem>>, vector<8x128xf32>
      tpu.vector_store %arg7[%c0_157, %c0_158], %331 {strides = array<i32>} : memref<8x128xf32, #tpu.memory_space<vmem>>, vector<8x128xf32>,
      %c0_159 = arith.constant 0 : index
      %c0_160 = arith.constant 0 : index
      %341 = vector.load %arg8[%c0_159, %c0_160] : memref<8x128xf32, #tpu.memory_space<vmem>>, vector<8x128xf32>
      tpu.vector_store %arg8[%c0_159, %c0_160], %329 {strides = array<i32>} : memref<8x128xf32, #tpu.memory_space<vmem>>, vector<8x128xf32>,
    } else {
    }
    return
  }
  func.func @transform_0(%arg0: i32, %arg1: i32) -> (i32, i32, i32) {
    %c0_i32 = arith.constant 0 : i32
    %c0_i32_0 = arith.constant 0 : i32
    return %arg0, %arg1, %c0_i32 : i32, i32, i32
  }
  func.func @transform_1(%arg0: i32, %arg1: i32) -> (i32, i32) {
    %c0_i32 = arith.constant 0 : i32
    %c0_i32_0 = arith.constant 0 : i32
    %c0_i32_1 = arith.constant 0 : i32
    return %c0_i32, %c0_i32_0 : i32, i32
  }
  func.func @transform_2(%arg0: i32, %arg1: i32) -> (i32, i32) {
    %c0_i32 = arith.constant 0 : i32
    %c0_i32_0 = arith.constant 0 : i32
    %c0_i32_1 = arith.constant 0 : i32
    return %c0_i32, %c0_i32_0 : i32, i32
  }
  func.func @transform_3(%arg0: i32, %arg1: i32) -> (i32, i32) {
    %c0_i32 = arith.constant 0 : i32
    %c0_i32_0 = arith.constant 0 : i32
    %c0_i32_1 = arith.constant 0 : i32
    return %c0_i32, %c0_i32_0 : i32, i32
  }
  func.func @transform_4(%arg0: i32, %arg1: i32) -> (i32, i32, i32) {
    %c0_i32 = arith.constant 0 : i32
    %c0_i32_0 = arith.constant 0 : i32
    return %arg0, %arg1, %c0_i32 : i32, i32, i32
  }
  func.func @transform_5(%arg0: i32, %arg1: i32) -> (i32, i32) {
    %c0_i32 = arith.constant 0 : i32
    %c0_i32_0 = arith.constant 0 : i32
    return %arg0, %c0_i32 : i32, i32
  }
  func.func @transform_6(%arg0: i32, %arg1: i32) -> (i32, i32) {
    %c0_i32 = arith.constant 0 : i32
    %c0_i32_0 = arith.constant 0 : i32
    return %arg0, %c0_i32 : i32, i32
  }
}

</mosaic_0001>

<bundles_post_ra>
// kernel: encoder_forward.2
= control target key start
LH: loop header
LB: loop body
LE: loop exit
PB: predicated region body
PF: predicated region fallthrough
CT: control target
= control target key end

     0   :  { %v9825_v1 = vmov 0   ;;  %vm1129_vm0 = vcmask 1040384   ;;  %vm1130_vm1 = vsmask.f32 256  ;;  %vm1221_vm2 = vcmask 1041409   ;;  %s9818_s1 = inlined_call_operand.vmem [shape: bf16[128,512], index: 1, kind: input, shape index: {}]   ;;  %s9819_s0 = inlined_call_operand.vmem [shape: bf16[8,8,128], index: 0, kind: input, shape index: {}]   ;;  %s9820_s2 = inlined_call_operand.vmem [shape: bf16[128,512], index: 2, kind: input, shape index: {}]   ;;  %s9821_s3 = inlined_call_operand.vmem [shape: f32[1,512], index: 3, kind: input, shape index: {}]   ;;  %s9822_s4 = inlined_call_operand.vmem [shape: bf16[8,8,128], index: 4, kind: output, shape index: {0}]   ;;  %s9823_s6 = inlined_call_operand.vmem [shape: f32[8,128], index: 6, kind: output, shape index: {2}]   ;;  %s9824_s5 = inlined_call_operand.vmem [shape: f32[8,128], index: 5, kind: output, shape index: {1}]  }
   0x1   :  { %v6489_v0 = vld [vmem:[%s9818_s1 + $0xe4] ss:$16 sps:$4 sm:$0xff]   ;;  %285 = vmatprep.mubr.bf16.mxu0 %v9825_v1  ;;  %358 = vmatprep.mubr.bf16.mxu1 %v9825_v1  ;;  %v6491_v2 = vld [vmem:[%s9818_s1 + $0xec] ss:$16 sps:$4 sm:$0xff]   ;;  %v6493_v3 = vld [vmem:[%s9818_s1 + $0xe0] ss:$16 sps:$4 sm:$0xff]  }
   0x2   :  { %253 = vmatprep.subr.bf16.mxu0 %v6489_v0  ;;  %v6494_v4 = vld [vmem:[%s9818_s1 + $0xe8] ss:$16 sps:$4 sm:$0xff]   ;;  %326 = vmatprep.subr.bf16.mxu1 %v6491_v2  ;;  %v6495_v5 = vld [vmem:[%s9818_s1 + $0xc4] ss:$16 sps:$4 sm:$0xff]   ;;  %v6497_v6 = vld [vmem:[%s9818_s1 + $0xcc] ss:$16 sps:$4 sm:$0xff]  }
   0x3   :  { %254 = vmatpush1.bf16.msra.mxu0 %v6493_v3  ;;  %327 = vmatpush1.bf16.msra.mxu1 %v6494_v4  ;;  %v6499_v7 = vld [vmem:[%s9818_s1 + $0xc0] ss:$16 sps:$4 sm:$0xff]   ;;  %v6500_v8 = vld [vmem:[%s9818_s1 + $0xc8] ss:$16 sps:$4 sm:$0xff]   ;;  %v6501_v9 = vld [vmem:[%s9818_s1 + $0xa4] ss:$16 sps:$4 sm:$0xff]  }
   0x4   :  { %255 = vmatprep.subr.bf16.mxu0 %v6495_v5  ;;  %328 = vmatprep.subr.bf16.mxu1 %v6497_v6  ;;  %v6503_v10 = vld [vmem:[%s9818_s1 + $0xac] ss:$16 sps:$4 sm:$0xff]   ;;  %v6505_v11 = vld [vmem:[%s9818_s1 + $0xa0] ss:$16 sps:$4 sm:$0xff]   ;;  %v6506_v12 = vld [vmem:[%s9818_s1 + $0xa8] ss:$16 sps:$4 sm:$0xff]  }
   0x5   :  { %v6507_v13 = vld [vmem:[%s9818_s1 + $0x84] ss:$16 sps:$4 sm:$0xff]   ;;  %v6509_v14 = vld [vmem:[%s9818_s1 + $0x8c] ss:$16 sps:$4 sm:$0xff]   ;;  %v6511_v15 = vld [vmem:[%s9818_s1 + $0x80] ss:$16 sps:$4 sm:$0xff]  }
   0x6   :  { %v6512_v16 = vld [vmem:[%s9818_s1 + $0x88] ss:$16 sps:$4 sm:$0xff]   ;;  %v6513_v17 = vld [vmem:[%s9818_s1 + $0x64] ss:$16 sps:$4 sm:$0xff]   ;;  %v6515_v18 = vld [vmem:[%s9818_s1 + $0x6c] ss:$16 sps:$4 sm:$0xff]  }
   0x7   :  { %256 = vmatpush1.bf16.msra.mxu0 %v6499_v7  ;;  %329 = vmatpush1.bf16.msra.mxu1 %v6500_v8  ;;  %v6517_v19 = vld [vmem:[%s9818_s1 + $0x60] ss:$16 sps:$4 sm:$0xff]   ;;  %v6518_v20 = vld [vmem:[%s9818_s1 + $0x68] ss:$16 sps:$4 sm:$0xff]   ;;  %v6519_v21 = vld [vmem:[%s9818_s1 + $0x44] ss:$16 sps:$4 sm:$0xff]   ;;  %v401_v7 = vlaneseq }
   0x8   :  { %257 = vmatprep.subr.bf16.mxu0 %v6501_v9  ;;  %330 = vmatprep.subr.bf16.mxu1 %v6503_v10  ;;  %v6521_v22 = vld [vmem:[%s9818_s1 + $0x4c] ss:$16 sps:$4 sm:$0xff]   ;;  %v6523_v23 = vld [vmem:[%s9818_s1 + $0x40] ss:$16 sps:$4 sm:$0xff]   ;;  %v6524_v24 = vld [vmem:[%s9818_s1 + $0x48] ss:$16 sps:$4 sm:$0xff]  }
   0x9   :  { %v6525_v25 = vld [vmem:[%s9818_s1 + $0x24] ss:$16 sps:$4 sm:$0xff]   ;;  %v6527_v26 = vld [vmem:[%s9818_s1 + $0x2c] ss:$16 sps:$4 sm:$0xff]   ;;  %v6529_v27 = vld [vmem:[%s9818_s1 + $0x20] ss:$16 sps:$4 sm:$0xff]  }
   0xa   :  { %v6530_v28 = vld [vmem:[%s9818_s1 + $0x28] ss:$16 sps:$4 sm:$0xff]   ;;  %v6531_v29 = vld [vmem:[%s9818_s1 + $0x4] ss:$16 sps:$4 sm:$0xff]   ;;  %v6533_v30 = vld [vmem:[%s9818_s1 + $0xc] ss:$16 sps:$4 sm:$0xff]  }
   0xb   :  { %258 = vmatpush1.bf16.msra.mxu0 %v6505_v11  ;;  %331 = vmatpush1.bf16.msra.mxu1 %v6506_v12  ;;  %v6535_v31 = vld [vmem:[%s9818_s1] ss:$16 sps:$4 sm:$0xff]   ;;  %v6536_v32 = vld [vmem:[%s9818_s1 + $0x8] ss:$16 sps:$4 sm:$0xff]   ;;  %v7513_v33 = vld [vmem:[%s9820_s2 + $0xe4] ss:$16 sps:$4 sm:$0xff]  }
   0xc   :  { %259 = vmatprep.subr.bf16.mxu0 %v6507_v13  ;;  %332 = vmatprep.subr.bf16.mxu1 %v6509_v14  ;;  %v7518_v34 = vld [vmem:[%s9820_s2 + $0xec] ss:$16 sps:$4 sm:$0xff]   ;;  %v6537_v35 = vld [vmem:[%s9819_s0] sm:$0xff]   ;;  %v7531_v37 = vld [vmem:[%s9820_s2 + $0xe8] ss:$16 sps:$4 sm:$0xff]   ;;  %v7374_v6 = vmov 0.0|0.0  }
   0xd   :  { %v7526_v36 = vld [vmem:[%s9820_s2 + $0xe0] ss:$16 sps:$4 sm:$0xff]   ;;  %v7538_v38 = vld [vmem:[%s9820_s2 + $0xc4] ss:$16 sps:$4 sm:$0xff]   ;;  %v7543_v39 = vld [vmem:[%s9820_s2 + $0xcc] ss:$16 sps:$4 sm:$0xff]  }
   0xe   :  { %v7548_v40 = vld [vmem:[%s9820_s2 + $0xc0] ss:$16 sps:$4 sm:$0xff]   ;;  %v7555_v41 = vld [vmem:[%s9820_s2 + $0xc8] ss:$16 sps:$4 sm:$0xff]   ;;  %v7562_v42 = vld [vmem:[%s9820_s2 + $0xa4] ss:$16 sps:$4 sm:$0xff]  }
   0xf   :  { %260 = vmatpush1.bf16.msra.mxu0 %v6511_v15  ;;  %333 = vmatpush1.bf16.msra.mxu1 %v6512_v16  ;;  %v7567_v43 = vld [vmem:[%s9820_s2 + $0xac] ss:$16 sps:$4 sm:$0xff]   ;;  %v7577_v45 = vld [vmem:[%s9820_s2 + $0xa0] ss:$16 sps:$4 sm:$0xff]   ;;  %v7582_v46 = vld [vmem:[%s9820_s2 + $0xa8] ss:$16 sps:$4 sm:$0xff]  }
  0x10   :  { %261 = vmatprep.subr.bf16.mxu0 %v6513_v17  ;;  %334 = vmatprep.subr.bf16.mxu1 %v6515_v18  ;;  %v6550_v44 = vld [vmem:[%s9819_s0 + $0x8] sm:$0xff]   ;;  %v7589_v47 = vld [vmem:[%s9820_s2 + $0x84] ss:$16 sps:$4 sm:$0xff]   ;;  %v7601_v49 = vld [vmem:[%s9820_s2 + $0x80] ss:$16 sps:$4 sm:$0xff]   ;;  %v7716_v8 = vshrl.u32 %v401_v7, 7 }
  0x11   :  { %v7596_v48 = vld [vmem:[%s9820_s2 + $0x8c] ss:$16 sps:$4 sm:$0xff]   ;;  %v7606_v50 = vld [vmem:[%s9820_s2 + $0x88] ss:$16 sps:$4 sm:$0xff]   ;;  %v7613_v51 = vld [vmem:[%s9820_s2 + $0x64] ss:$16 sps:$4 sm:$0xff]  }
  0x12   :  { %v6563_v52 = vld [vmem:[%s9819_s0 + $0x10] sm:$0xff]   ;;  %v7623_v53 = vld [vmem:[%s9820_s2 + $0x6c] ss:$16 sps:$4 sm:$0xff]   ;;  %v7635_v55 = vld [vmem:[%s9820_s2 + $0x68] ss:$16 sps:$4 sm:$0xff]   ;;  %v403_v9 = vsub.s32 0, %v7716_v8 }
  0x13   :  { %262 = vmatpush1.bf16.msra.mxu0 %v6517_v19  ;;  %335 = vmatpush1.bf16.msra.mxu1 %v6518_v20  ;;  %v7630_v54 = vld [vmem:[%s9820_s2 + $0x60] ss:$16 sps:$4 sm:$0xff]   ;;  %v7640_v56 = vld [vmem:[%s9820_s2 + $0x44] ss:$16 sps:$4 sm:$0xff]   ;;  %v7645_v57 = vld [vmem:[%s9820_s2 + $0x4c] ss:$16 sps:$4 sm:$0xff]  }
  0x14   :  { %263 = vmatprep.subr.bf16.mxu0 %v6519_v21  ;;  %336 = vmatprep.subr.bf16.mxu1 %v6521_v22  ;;  %v6570_v58 = vld [vmem:[%s9820_s2 + $0x40] ss:$16 sps:$4 sm:$0xff]   ;;  %v6573_v59 = vld [vmem:[%s9820_s2 + $0x48] ss:$16 sps:$4 sm:$0xff]   ;;  %v6579_v60 = vld [vmem:[%s9820_s2 + $0x24] ss:$16 sps:$4 sm:$0xff]  }
  0x15   :  { %v6582_v61 = vld [vmem:[%s9820_s2 + $0x2c] ss:$16 sps:$4 sm:$0xff]   ;;  %v6577_v63 = vld [vmem:[%s9820_s2 + $0x20] ss:$16 sps:$4 sm:$0xff]   ;;  %v6580_v0 = vld [vmem:[%s9820_s2 + $0x28] ss:$16 sps:$4 sm:$0xff]  }
  0x16   :  { %v6576_v62 = vld [vmem:[%s9819_s0 + $0x18] sm:$0xff]   ;;  %v6585_v2 = vld [vmem:[%s9820_s2 + $0x4] ss:$16 sps:$4 sm:$0xff]   ;;  %v6583_v4 = vld [vmem:[%s9820_s2] ss:$16 sps:$4 sm:$0xff]   ;;  %v411_v10 = vsub.s32 2, %v7716_v8 }
  0x17   :  { %264 = vmatpush1.bf16.msra.mxu0 %v6523_v23  ;;  %337 = vmatpush1.bf16.msra.mxu1 %v6524_v24  ;;  %v6588_v3 = vld [vmem:[%s9820_s2 + $0xc] ss:$16 sps:$4 sm:$0xff]   ;;  %v6586_v5 = vld [vmem:[%s9820_s2 + $0x8] ss:$16 sps:$4 sm:$0xff]   ;;  %v399_v11 = vld [vmem:[%s9821_s3] sm:$0xf] }
  0x18   :  { %265 = vmatprep.subr.bf16.mxu0 %v6525_v25  ;;  %338 = vmatprep.subr.bf16.mxu1 %v6527_v26  ;;  %v407_v12 = vsub.s32 1, %v7716_v8  ;;  %v415_v13 = vsub.s32 3, %v7716_v8  ;;  %v7725_v14 = vrot.slane %v399_v11, %v403_v9  ;;  %v7727_v15 = vrot.slane %v399_v11, %v411_v10  ;;  %vm7887_vm3 = vmand %vm1129_vm0, %vm1130_vm1 }
  0x19   :  { %v7375_v7 = vmov 1966171168   ;;  %vm1224_vm4 = vcmask 1042434   ;;  %vm1227_vm5 = vcmask 1043459   ;;  %vm1230_vm6 = vcmask 1044484  }
  0x1a   :  { %v7729_v16 = vrot.slane %v399_v11, %v407_v12  ;;  %v7731_v17 = vrot.slane %v399_v11, %v415_v13  ;;  %v784_v9 = vunpack.c.l.s4 %v7375_v7  ;;  %vm1233_vm7 = vcmask 1045509  }
  0x1b   :  { %266 = vmatpush1.bf16.msra.mxu0 %v6529_v27  ;;  %339 = vmatpush1.bf16.msra.mxu1 %v6530_v28  ;;  %vm1236_vm8 = vcmask 1046534   ;;  %vm1239_vm9 = vcmask 1047559   ;;  %vm1837_vm10 = vsmask.f32 7938  ;;  %vm2506_vm12 = vsmask.f32 1280 }
  0x1c   :  { %267 = vmatprep.subr.bf16.mxu0 %v6531_v29  ;;  %340 = vmatprep.subr.bf16.mxu1 %v6533_v30  ;;  %vm8249_vm11 = vmand %vm1129_vm0, %vm1837_vm10  ;;  %vm3198_vm14 = vsmask.f32 7942  ;;  %vm3867_vm0 = vsmask.f32 2304 }
  0x1d   :  { %vm8449_vm13 = vmand %vm1221_vm2, %vm2506_vm12 }
  0x1e   :  { %vm8816_vm15 = vmand %vm1221_vm2, %vm3198_vm14 }
  0x1f   :  { %268 = vmatpush1.bf16.msra.mxu0 %v6535_v31  ;;  %341 = vmatpush1.bf16.msra.mxu1 %v6536_v32  ;;  %vm9014_vm1 = vmand %vm1224_vm4, %vm3867_vm0 }
  0x20   :  { %693 = vmatprep.subr.bf16.mxu0 %v7513_v33  ;;  %734 = vmatprep.subr.bf16.mxu1 %v7518_v34 }
  0x22   :  { %286 = vmatmul.mubr.bf16.vlgmr.msra.gmra.mxu0 %v6537_v35  ;;  %359 = vmatmul.mubr.bf16.vlgmr.msra.gmra.mxu1 %v6537_v35 }
  0x23   :  { %694 = vmatpush1.bf16.msra.mxu0 %v7526_v36  ;;  %735 = vmatpush1.bf16.msra.mxu1 %v7531_v37 }
  0x24   :  { %695 = vmatprep.subr.bf16.mxu0 %v7538_v38  ;;  %736 = vmatprep.subr.bf16.mxu1 %v7543_v39 }
  0x25   :  { %295 = vmatprep.mubr.bf16.mxu0 %v9825_v1  ;;  %368 = vmatprep.mubr.bf16.mxu1 %v9825_v1 }
  0x27   :  { %696 = vmatpush1.bf16.msra.mxu0 %v7548_v40  ;;  %737 = vmatpush1.bf16.msra.mxu1 %v7555_v41 }
  0x28   :  { %697 = vmatprep.subr.bf16.mxu0 %v7562_v42  ;;  %738 = vmatprep.subr.bf16.mxu1 %v7567_v43 }
  0x2a   :  { %296 = vmatmul.mubr.bf16.gmra.mxu0 %v6550_v44  ;;  %369 = vmatmul.mubr.bf16.gmra.mxu1 %v6550_v44 }
  0x2b   :  { %698 = vmatpush1.bf16.msra.mxu0 %v7577_v45  ;;  %739 = vmatpush1.bf16.msra.mxu1 %v7582_v46 }
  0x2c   :  { %699 = vmatprep.subr.bf16.mxu0 %v7589_v47  ;;  %740 = vmatprep.subr.bf16.mxu1 %v7596_v48 }
  0x2d   :  { %305 = vmatprep.mubr.bf16.mxu0 %v9825_v1  ;;  %378 = vmatprep.mubr.bf16.mxu1 %v9825_v1 }
  0x2f   :  { %700 = vmatpush1.bf16.msra.mxu0 %v7601_v49  ;;  %741 = vmatpush1.bf16.msra.mxu1 %v7606_v50 }
  0x30   :  { %701 = vmatprep.subr.bf16.mxu0 %v7613_v51  ;;  %742 = vmatprep.subr.bf16.mxu1 %v7623_v53 }
  0x32   :  { %306 = vmatmul.mubr.bf16.gmra.mxu0 %v6563_v52  ;;  %379 = vmatmul.mubr.bf16.gmra.mxu1 %v6563_v52 }
  0x33   :  { %702 = vmatpush1.bf16.msra.mxu0 %v7630_v54  ;;  %743 = vmatpush1.bf16.msra.mxu1 %v7635_v55 }
  0x34   :  { %703 = vmatprep.subr.bf16.mxu0 %v7640_v56  ;;  %744 = vmatprep.subr.bf16.mxu1 %v7645_v57 }
  0x35   :  { %315 = vmatprep.mubr.bf16.mxu0 %v9825_v1  ;;  %388 = vmatprep.mubr.bf16.mxu1 %v9825_v1 }
  0x37   :  { %704 = vmatpush1.bf16.msra.mxu0 %v6570_v58  ;;  %745 = vmatpush1.bf16.msra.mxu1 %v6573_v59 }
  0x38   :  { %705 = vmatprep.subr.bf16.mxu0 %v6579_v60  ;;  %746 = vmatprep.subr.bf16.mxu1 %v6582_v61 }
  0x3a   :  { %316 = vmatmul.mubr.bf16.gmra.mxu0 %v6576_v62  ;;  %389 = vmatmul.mubr.bf16.gmra.mxu1 %v6576_v62 }
  0x3b   :  { %706 = vmatpush1.bf16.msra.mxu0 %v6577_v63  ;;  %747 = vmatpush1.bf16.msra.mxu1 %v6580_v0 }
  0x3c   :  { %707 = vmatprep.subr.bf16.mxu0 %v6585_v2  ;;  %748 = vmatprep.subr.bf16.mxu1 %v6588_v3 }
  0x3d   :  { %725 = vmatprep.mubr.bf16.mxu0 %v9825_v1  ;;  %766 = vmatprep.mubr.bf16.mxu1 %v9825_v1 }
  0x3f   :  { %708 = vmatpush1.bf16.msra.mxu0 %v6583_v4  ;;  %749 = vmatpush1.bf16.msra.mxu1 %v6586_v5 }
  0x40   :  { %1403 = vmatprep.subr.bf16.mxu0 %v7513_v33  ;;  %1444 = vmatprep.subr.bf16.mxu1 %v7518_v34 }
  0x42   :  { %726 = vmatmul.mubr.bf16.vlgmr.msra.gmra.mxu0 %v7374_v6  ;;  %767 = vmatmul.mubr.bf16.vlgmr.msra.gmra.mxu1 %v7374_v6 }
  0x43   :  { %1404 = vmatpush1.bf16.msra.mxu0 %v7526_v36  ;;  %1445 = vmatpush1.bf16.msra.mxu1 %v7531_v37 }
  0x44   :  { %1405 = vmatprep.subr.bf16.mxu0 %v7538_v38  ;;  %1446 = vmatprep.subr.bf16.mxu1 %v7543_v39 }
  0x45   :  { %1435 = vmatprep.mubr.bf16.mxu0 %v9825_v1  ;;  %1476 = vmatprep.mubr.bf16.mxu1 %v9825_v1 }
  0x47   :  { %1406 = vmatpush1.bf16.msra.mxu0 %v7548_v40  ;;  %1447 = vmatpush1.bf16.msra.mxu1 %v7555_v41 }
  0x48   :  { %1407 = vmatprep.subr.bf16.mxu0 %v7562_v42  ;;  %1448 = vmatprep.subr.bf16.mxu1 %v7567_v43 }
  0x4b   :  { %1408 = vmatpush1.bf16.msra.mxu0 %v7577_v45  ;;  %1449 = vmatpush1.bf16.msra.mxu1 %v7582_v46 }
  0x4c   :  { %1409 = vmatprep.subr.bf16.mxu0 %v7589_v47  ;;  %1450 = vmatprep.subr.bf16.mxu1 %v7596_v48 }
  0x4f   :  { %1410 = vmatpush1.bf16.msra.mxu0 %v7601_v49  ;;  %1451 = vmatpush1.bf16.msra.mxu1 %v7606_v50 }
  0x50   :  { %1411 = vmatprep.subr.bf16.mxu0 %v7613_v51  ;;  %1452 = vmatprep.subr.bf16.mxu1 %v7623_v53 }
  0x53   :  { %1412 = vmatpush1.bf16.msra.mxu0 %v7630_v54  ;;  %1453 = vmatpush1.bf16.msra.mxu1 %v7635_v55 }
  0x54   :  { %1413 = vmatprep.subr.bf16.mxu0 %v7640_v56  ;;  %1454 = vmatprep.subr.bf16.mxu1 %v7645_v57 }
  0x57   :  { %1414 = vmatpush1.bf16.msra.mxu0 %v6570_v58  ;;  %1455 = vmatpush1.bf16.msra.mxu1 %v6573_v59 }
  0x58   :  { %1415 = vmatprep.subr.bf16.mxu0 %v6579_v60  ;;  %1456 = vmatprep.subr.bf16.mxu1 %v6582_v61 }
  0x5b   :  { %1416 = vmatpush1.bf16.msra.mxu0 %v6577_v63  ;;  %1457 = vmatpush1.bf16.msra.mxu1 %v6580_v0 }
  0x5c   :  { %1417 = vmatprep.subr.bf16.mxu0 %v6585_v2  ;;  %1458 = vmatprep.subr.bf16.mxu1 %v6588_v3 }
  0x5f   :  { %1418 = vmatpush1.bf16.msra.mxu0 %v6583_v4  ;;  %1459 = vmatpush1.bf16.msra.mxu1 %v6586_v5 }
  0xe2   :  { %v287_v18 = vpop.f32.mrf.mxu0  ;;  %v360_v19 = vpop.f32.mrf.mxu1 }
  0xe3   :  { %v421_v20 = vadd.f32 %v7725_v14, %v287_v18  ;;  %v423_v21 = vadd.f32 %v7727_v15, %v360_v19 }
  0xe4   :  { %v289_v22 = vpop.f32.mrf.mxu0  ;;  %v362_v23 = vpop.f32.mrf.mxu1 }
  0xe5   :  { %453 = vst [vmem:[#allocation2] sm:$0xff] %v421_v20  ;;  %455 = vst [vmem:[#allocation2 + $0x10] sm:$0xff] %v423_v21  ;;  %v422_v24 = vadd.f32 %v7729_v16, %v289_v22  ;;  %v424_v25 = vadd.f32 %v7731_v17, %v362_v23  ;;  %v785_v22 = vunpack.c.0.s8 %v784_v9 }
  0xe6   :  { %v291_v26 = vpop.f32.mrf.mxu0  ;;  %v364_v27 = vpop.f32.mrf.mxu1 }
  0xe7   :  { %454 = vst [vmem:[#allocation2 + $0x8] sm:$0xff] %v422_v24  ;;  %456 = vst [vmem:[#allocation2 + $0x18] sm:$0xff] %v424_v25  ;;  %v425_v28 = vadd.f32 %v7725_v14, %v291_v26  ;;  %v427_v29 = vadd.f32 %v7727_v15, %v364_v27 }
  0xe8   :  { %v293_v30 = vpop.f32.mrf.mxu0  ;;  %v366_v31 = vpop.f32.mrf.mxu1 }
  0xe9   :  { %457 = vst [vmem:[#allocation2 + $0x20] sm:$0xff] %v425_v28  ;;  %459 = vst [vmem:[#allocation2 + $0x30] sm:$0xff] %v427_v29  ;;  %v426_v32 = vadd.f32 %v7729_v16, %v293_v30  ;;  %v428_v33 = vadd.f32 %v7731_v17, %v366_v31  ;;  %v7766_v29 = vsub.s32 %v785_v22, %v7716_v8 }
  0xea   :  { %v297_v34 = vpop.f32.mrf.mxu0  ;;  %v370_v35 = vpop.f32.mrf.mxu1 }
  0xeb   :  { %458 = vst [vmem:[#allocation2 + $0x28] sm:$0xff] %v426_v32  ;;  %460 = vst [vmem:[#allocation2 + $0x38] sm:$0xff] %v428_v33  ;;  %v429_v36 = vadd.f32 %v7725_v14, %v297_v34  ;;  %v431_v37 = vadd.f32 %v7727_v15, %v370_v35 }
  0xec   :  { %v299_v38 = vpop.f32.mrf.mxu0  ;;  %v372_v39 = vpop.f32.mrf.mxu1  ;;  %9865 = vst [vmem:[#allocation5_spill] sm:$0xff] %v7766_v29 }
  0xed   :  { %461 = vst [vmem:[#allocation2 + $0x40] sm:$0xff] %v429_v36  ;;  %463 = vst [vmem:[#allocation2 + $0x50] sm:$0xff] %v431_v37  ;;  %v430_v40 = vadd.f32 %v7729_v16, %v299_v38  ;;  %v432_v41 = vadd.f32 %v7731_v17, %v372_v39 }
  0xee   :  { %v301_v42 = vpop.f32.mrf.mxu0  ;;  %v374_v43 = vpop.f32.mrf.mxu1 }
  0xef   :  { %462 = vst [vmem:[#allocation2 + $0x48] sm:$0xff] %v430_v40  ;;  %464 = vst [vmem:[#allocation2 + $0x58] sm:$0xff] %v432_v41  ;;  %v433_v44 = vadd.f32 %v7725_v14, %v301_v42  ;;  %v435_v45 = vadd.f32 %v7727_v15, %v374_v43 }
  0xf0   :  { %v303_v46 = vpop.f32.mrf.mxu0  ;;  %v376_v47 = vpop.f32.mrf.mxu1 }
  0xf1   :  { %465 = vst [vmem:[#allocation2 + $0x60] sm:$0xff] %v433_v44  ;;  %467 = vst [vmem:[#allocation2 + $0x70] sm:$0xff] %v435_v45  ;;  %v434_v48 = vadd.f32 %v7729_v16, %v303_v46  ;;  %v436_v49 = vadd.f32 %v7731_v17, %v376_v47  ;;  %v485_v47 = vld [vmem:[#allocation2] ss:$8 sm:$0xf] }
  0xf2   :  { %v307_v50 = vpop.f32.mrf.mxu0  ;;  %v380_v51 = vpop.f32.mrf.mxu1 }
  0xf3   :  { %466 = vst [vmem:[#allocation2 + $0x68] sm:$0xff] %v434_v48  ;;  %468 = vst [vmem:[#allocation2 + $0x78] sm:$0xff] %v436_v49  ;;  %v437_v52 = vadd.f32 %v7725_v14, %v307_v50  ;;  %v439_v53 = vadd.f32 %v7727_v15, %v380_v51  ;;  %v487_v48 = vld [vmem:[#allocation2 + $0x20] ss:$8 sm:$0xf]  ;;  %v7376_v49 = vmov 0.0  }
  0xf4   :  { %v309_v54 = vpop.f32.mrf.mxu0  ;;  %v382_v55 = vpop.f32.mrf.mxu1  ;;  %v1024_v50 = vcombine.high %v7376_v49, %v7376_v49  ;;  %v1031_v7 = vrot.slane %v7376_v49, %v7766_v29 }
  0xf5   :  { %469 = vst [vmem:[#allocation2 + $0x80] sm:$0xff] %v437_v52  ;;  %471 = vst [vmem:[#allocation2 + $0x90] sm:$0xff] %v439_v53  ;;  %v438_v56 = vadd.f32 %v7729_v16, %v309_v54  ;;  %v440_v57 = vadd.f32 %v7731_v17, %v382_v55 }
  0xf6   :  { %v311_v58 = vpop.f32.mrf.mxu0  ;;  %v384_v59 = vpop.f32.mrf.mxu1  ;;  %v489_v51 = vld [vmem:[#allocation2 + $0x40] ss:$8 sm:$0xf] }
  0xf7   :  { %470 = vst [vmem:[#allocation2 + $0x88] sm:$0xff] %v438_v56  ;;  %472 = vst [vmem:[#allocation2 + $0x98] sm:$0xff] %v440_v57  ;;  %v441_v60 = vadd.f32 %v7725_v14, %v311_v58  ;;  %v443_v61 = vadd.f32 %v7727_v15, %v384_v59 }
  0xf8   :  { %v313_v62 = vpop.f32.mrf.mxu0  ;;  %v386_v63 = vpop.f32.mrf.mxu1 }
  0xf9   :  { %473 = vst [vmem:[#allocation2 + $0xa0] sm:$0xff] %v441_v60  ;;  %475 = vst [vmem:[#allocation2 + $0xb0] sm:$0xff] %v443_v61  ;;  %v442_v0 = vadd.f32 %v7729_v16, %v313_v62  ;;  %v444_v2 = vadd.f32 %v7731_v17, %v386_v63 }
  0xfa   :  { %v317_v3 = vpop.f32.mrf.mxu0  ;;  %v390_v4 = vpop.f32.mrf.mxu1  ;;  %v491_v57 = vld [vmem:[#allocation2 + $0x60] ss:$8 sm:$0xf] }
  0xfb   :  { %474 = vst [vmem:[#allocation2 + $0xa8] sm:$0xff] %v442_v0  ;;  %476 = vst [vmem:[#allocation2 + $0xb8] sm:$0xff] %v444_v2  ;;  %v445_v5 = vadd.f32 %v7725_v14, %v317_v3  ;;  %v447_v6 = vadd.f32 %v7727_v15, %v390_v4 }
  0xfc   :  { %v319_v10 = vpop.f32.mrf.mxu0  ;;  %v392_v11 = vpop.f32.mrf.mxu1 }
  0xfd   :  { %477 = vst [vmem:[#allocation2 + $0xc0] sm:$0xff] %v445_v5  ;;  %479 = vst [vmem:[#allocation2 + $0xd0] sm:$0xff] %v447_v6  ;;  %v446_v12 = vadd.f32 %v7729_v16, %v319_v10  ;;  %v448_v13 = vadd.f32 %v7731_v17, %v392_v11 }
  0xfe   :  { %v321_v18 = vpop.f32.mrf.mxu0  ;;  %v394_v19 = vpop.f32.mrf.mxu1  ;;  %v493_v52 = vld [vmem:[#allocation2 + $0x80] ss:$8 sm:$0xf] }
  0xff   :  { %478 = vst [vmem:[#allocation2 + $0xc8] sm:$0xff] %v446_v12  ;;  %480 = vst [vmem:[#allocation2 + $0xd8] sm:$0xff] %v448_v13  ;;  %v449_v20 = vadd.f32 %v7725_v14, %v321_v18  ;;  %v451_v21 = vadd.f32 %v7727_v15, %v394_v19  ;;  %v1038_v12 = vrot.slane %v1024_v50, %v7766_v29 }
 0x100   :  { %v323_v23 = vpop.f32.mrf.mxu0  ;;  %v396_v24 = vpop.f32.mrf.mxu1 }
 0x101   :  { %481 = vst [vmem:[#allocation2 + $0xe0] sm:$0xff] %v449_v20  ;;  %483 = vst [vmem:[#allocation2 + $0xf0] sm:$0xff] %v451_v21  ;;  %v450_v25 = vadd.f32 %v7729_v16, %v323_v23  ;;  %v452_v26 = vadd.f32 %v7731_v17, %v396_v24  ;;  %v1039_v23 = vcombine.high %v1031_v7, %v1031_v7 }
 0x102   :  { %v727_v27 = vpop.f32.mrf.mxu0  ;;  %v768_v28 = vpop.f32.mrf.mxu1  ;;  %v495_v58 = vld [vmem:[#allocation2 + $0xa0] ss:$8 sm:$0xf] }
 0x103   :  { %482 = vst [vmem:[#allocation2 + $0xe8] sm:$0xff] %v450_v25  ;;  %484 = vst [vmem:[#allocation2 + $0xf8] sm:$0xff] %v452_v26  ;;  %v1040_v26 = vcombine.high %v1038_v12, %v1038_v12 }
 0x104   :  { %v729_v30 = vpop.f32.mrf.mxu0  ;;  %v770_v14 = vpop.f32.mrf.mxu1 }
 0x105   :  { %v779_v31 = vcombine.low %v727_v27, %v729_v30  ;;  %v780_v15 = vcombine.high %v727_v27, %v729_v30  ;;  %v781_v32 = vcombine.low %v768_v28, %v770_v14  ;;  %v782_v33 = vcombine.high %v768_v28, %v770_v14 }
 0x106   :  { %v731_v34 = vpop.f32.mrf.mxu0  ;;  %v772_v35 = vpop.f32.mrf.mxu1  ;;  %v497_v62 = vld [vmem:[#allocation2 + $0xc0] ss:$8 sm:$0xf]  ;;  %v7808_v30 = vrot.slane %v1031_v7, %v7766_v29 }
 0x107   :  { %v789_v36 = vrot.slane %v779_v31, %v7766_v29  ;;  %v796_v16 = vrot.slane %v780_v15, %v7766_v29  ;;  %v803_v17 = vrot.slane %v781_v32, %v7766_v29  ;;  %v810_v37 = vrot.slane %v782_v33, %v7766_v29 }
 0x108   :  { %v732_v38 = vpop.f32.mrf.mxu0  ;;  %v773_v39 = vpop.f32.mrf.mxu1  ;;  %v7812_v15 = vrot.slane %v1038_v12, %v7766_v29  ;;  %v7816_v34 = vrot.slane %v1039_v23, %v7766_v29 }
 0x109   :  { %v811_v8 = vcombine.low %v789_v36, %v803_v17  ;;  %v812_v40 = vcombine.high %v789_v36, %v803_v17  ;;  %v813_v41 = vcombine.low %v796_v16, %v810_v37  ;;  %v814_v42 = vcombine.high %v796_v16, %v810_v37 }
 0x10a   :  { %v499_v3 = vld [vmem:[#allocation2 + $0xe0] ss:$8 sm:$0xf]  ;;  %v7820_v16 = vrot.slane %v1040_v26, %v7766_v29  ;;  %v1069_v39 = vcombine.high %v7808_v30, %v7808_v30 }
 0x10b   :  { %v821_v43 = vrot.slane %v811_v8, %v7766_v29  ;;  %v828_v44 = vrot.slane %v813_v41, %v7766_v29  ;;  %v835_v45 = vrot.slane %v812_v40, %v7766_v29  ;;  %v842_v46 = vrot.slane %v814_v42, %v7766_v29 }
 0x10c   :  { %v1070_v8 = vcombine.high %v7812_v15, %v7812_v15  ;;  %v1071_v41 = vcombine.high %v7816_v34, %v7816_v34  ;;  %v1072_v42 = vcombine.high %v7820_v16, %v7820_v16 }
 0x10d   :  { %v843_v53 = vcombine.high %v821_v43, %v821_v43  ;;  %v844_v54 = vcombine.high %v828_v44, %v828_v44  ;;  %v845_v55 = vcombine.high %v835_v45, %v835_v45  ;;  %v846_v56 = vcombine.high %v842_v46, %v842_v46 }
 0x10e   :  { %v7776_v59 = vadd.f32 %v821_v43, %v485_v47  ;;  %v7778_v60 = vadd.f32 %v835_v45, %v487_v48  ;;  %v7780_v61 = vadd.f32 %v828_v44, %v493_v52  ;;  %v7786_v2 = vadd.f32 %v842_v46, %v495_v58 }
 0x10f   :  { %v7782_v63 = vadd.f32 %v843_v53, %v489_v51  ;;  %v7784_v0 = vadd.f32 %v845_v55, %v491_v57  ;;  %v7788_v4 = vadd.f32 %v844_v54, %v497_v62  ;;  %v7793_v9 = vadd.f32 %v846_v56, %v499_v3 }
 0x110   :  { %v863_v5 = vmul.f32 0.5, %v7776_v59  ;;  %v864_v6 = vmul.f32 0.5, %v7778_v60  ;;  %v867_v13 = vmul.f32 0.5, %v7780_v61  ;;  %v903_v18 = vrot.slane %v7776_v59, 1 }
 0x111   :  { %v865_v10 = vmul.f32 0.5, %v7782_v63  ;;  %v866_v11 = vmul.f32 0.5, %v7784_v0  ;;  %v868_v19 = vmul.f32 0.5, %v7786_v2  ;;  %v904_v20 = vrot.slane %v7778_v60, 1 }
 0x112   :  { %6733 = vtanh.f32 %v863_v5  ;;  %v869_v21 = vmul.f32 0.5, %v7788_v4  ;;  %v905_v22 = vrot.slane %v7782_v63, 1  ;;  %v870_v24 = vmul.f32 0.5, %v7793_v9 }
 0x113   :  { %6735 = vtanh.f32 %v864_v6  ;;  %v906_v25 = vrot.slane %v7784_v0, 1  ;;  %v907_v27 = vrot.slane %v7780_v61, 1  ;;  %v919_v28 = vmul.f32 0.5, %v903_v18 }
 0x114   :  { %6737 = vtanh.f32 %v865_v10  ;;  %v908_v14 = vrot.slane %v7786_v2, 1  ;;  %v920_v31 = vmul.f32 0.5, %v904_v20  ;;  %v909_v32 = vrot.slane %v7788_v4, 1 }
 0x115   :  { %6739 = vtanh.f32 %v866_v11  ;;  %v921_v33 = vmul.f32 0.5, %v905_v22  ;;  %v910_v35 = vrot.slane %v7793_v9, 1  ;;  %v922_v36 = vmul.f32 0.5, %v906_v25 }
 0x116   :  { %6741 = vtanh.f32 %v867_v13  ;;  %v923_v17 = vmul.f32 0.5, %v907_v27  ;;  %v924_v37 = vmul.f32 0.5, %v908_v14  ;;  %v925_v38 = vmul.f32 0.5, %v909_v32 }
 0x117   :  { %6743 = vtanh.f32 %v868_v19  ;;  %v926_v40 = vmul.f32 0.5, %v910_v35  ;;  %v951_v43 = vrot.slane %v7776_v59, 2  ;;  %v952_v44 = vrot.slane %v7778_v60, 2 }
 0x118   :  { %6745 = vtanh.f32 %v869_v21  ;;  %v953_v45 = vrot.slane %v7782_v63, 2  ;;  %v954_v47 = vrot.slane %v7784_v0, 2  ;;  %v955_v48 = vrot.slane %v7780_v61, 2 }
 0x119   :  { %6747 = vtanh.f32 %v870_v24  ;;  %v975_v49 = vrot.slane %v7776_v59, 3  ;;  %v956_v51 = vrot.slane %v7786_v2, 2  ;;  %v957_v52 = vrot.slane %v7788_v4, 2 }
 0x11a   :  { %6749 = vtanh.f32 %v919_v28  ;;  %v976_v53 = vrot.slane %v7778_v60, 3  ;;  %v958_v55 = vrot.slane %v7793_v9, 2  ;;  %v977_v56 = vrot.slane %v7782_v63, 3 }
 0x11b   :  { %6751 = vtanh.f32 %v920_v31  ;;  %v978_v57 = vrot.slane %v7784_v0, 3  ;;  %v979_v59 = vrot.slane %v7780_v61, 3  ;;  %v980_v62 = vrot.slane %v7786_v2, 3 }
 0x11c   :  { %6753 = vtanh.f32 %v921_v33  ;;  %v981_v3 = vrot.slane %v7788_v4, 3  ;;  %v982_v60 = vrot.slane %v7793_v9, 3  ;;  %v991_v7 = vmul.f32 0.5, %v975_v49 }
 0x11d   :  { %6755 = vtanh.f32 %v922_v36  ;;  %v992_v63 = vmul.f32 0.5, %v976_v53  ;;  %v993_v18 = vmul.f32 0.5, %v977_v56  ;;  %v994_v61 = vmul.f32 0.5, %v978_v57 }
 0x11e   :  { %6757 = vtanh.f32 %v923_v17  ;;  %v995_v2 = vmul.f32 0.5, %v979_v59  ;;  %v996_v4 = vmul.f32 0.5, %v980_v62  ;;  %v997_v20 = vmul.f32 0.5, %v981_v3 }
 0x11f   :  { %v6734_v46 = vpop.eup %6733  ;;  %6759 = vtanh.f32 %v924_v37  ;;  %v998_v9 = vmul.f32 0.5, %v982_v60 }
 0x120   :  { %v6736_v50 = vpop.eup %6735  ;;  %6761 = vtanh.f32 %v925_v38  ;;  %v879_v6 = vadd.f32 1.0, %v6734_v46 }
 0x121   :  { %v6738_v54 = vpop.eup %6737  ;;  %6763 = vtanh.f32 %v926_v40  ;;  %v880_v11 = vadd.f32 1.0, %v6736_v50 }
 0x122   :  { %v6740_v58 = vpop.eup %6739  ;;  %6765 = vtanh.f32 %v951_v43  ;;  %v881_v12 = vadd.f32 1.0, %v6738_v54  ;;  %v887_v23 = vmul.f32 0.5, %v879_v6 }
 0x123   :  { %v6742_v5 = vpop.eup %6741  ;;  %6767 = vtanh.f32 %v952_v44  ;;  %v882_v13 = vadd.f32 1.0, %v6740_v58  ;;  %v888_v25 = vmul.f32 0.5, %v880_v11 }
 0x124   :  { %v6744_v10 = vpop.eup %6743  ;;  %6769 = vtanh.f32 %v953_v45  ;;  %v883_v22 = vadd.f32 1.0, %v6742_v5  ;;  %v889_v26 = vmul.f32 0.5, %v881_v12 }
 0x125   :  { %v6746_v0 = vpop.eup %6745  ;;  %6771 = vtanh.f32 %v954_v47  ;;  %v884_v14 = vadd.f32 1.0, %v6744_v10  ;;  %v890_v31 = vmul.f32 0.5, %v882_v13 }
 0x126   :  { %v6748_v19 = vpop.eup %6747  ;;  %6773 = vtanh.f32 %v955_v48  ;;  %v885_v35 = vadd.f32 1.0, %v6746_v0  ;;  %v891_v38 = vmul.f32 0.5, %v883_v22 }
 0x127   :  { %v6750_v21 = vpop.eup %6749  ;;  %6775 = vtanh.f32 %v956_v51  ;;  %v886_v45 = vadd.f32 1.0, %v6748_v19  ;;  %v892_v49 = vmul.f32 0.5, %v884_v14 }
 0x128   :  { %v6752_v24 = vpop.eup %6751  ;;  %v935_v27 = vadd.f32 1.0, %v6750_v21  ;;  %6777 = vtanh.f32 %v957_v52 }
 0x129   :  { %v6754_v28 = vpop.eup %6753  ;;  %v936_v32 = vadd.f32 1.0, %v6752_v24  ;;  %6779 = vtanh.f32 %v958_v55  ;;  %v894_v19 = vmul.f32 0.5, %v886_v45 }
 0x12a   :  { %v6756_v33 = vpop.eup %6755  ;;  %v937_v36 = vadd.f32 1.0, %v6754_v28  ;;  %v943_v17 = vmul.f32 0.5, %v935_v27  ;;  %6781 = vtanh.f32 %v991_v7 }
 0x12b   :  { %v6758_v37 = vpop.eup %6757  ;;  %v938_v40 = vadd.f32 1.0, %v6756_v33  ;;  %v944_v43 = vmul.f32 0.5, %v936_v32  ;;  %6783 = vtanh.f32 %v992_v63  ;;  %v893_v63 = vmul.f32 0.5, %v885_v35 }
 0x12c   :  { %v6760_v44 = vpop.eup %6759  ;;  %v939_v46 = vadd.f32 1.0, %v6758_v37  ;;  %v945_v47 = vmul.f32 0.5, %v937_v36  ;;  %6785 = vtanh.f32 %v993_v18  ;;  %v1081_v55 = vmul.f32 %v7808_v30, %v943_v17 }
 0x12d   :  { %v6762_v48 = vpop.eup %6761  ;;  %v940_v50 = vadd.f32 1.0, %v6760_v44  ;;  %v946_v51 = vmul.f32 0.5, %v938_v40  ;;  %6787 = vtanh.f32 %v994_v61  ;;  %v1082_v59 = vmul.f32 %v7816_v34, %v944_v43 }
 0x12e   :  { %v6764_v52 = vpop.eup %6763  ;;  %v941_v53 = vadd.f32 1.0, %v6762_v48  ;;  %v947_v54 = vmul.f32 0.5, %v939_v46  ;;  %6789 = vtanh.f32 %v995_v2  ;;  %v1083_v5 = vmul.f32 %v1069_v39, %v945_v47 }
 0x12f   :  { %v6766_v56 = vpop.eup %6765  ;;  %v942_v57 = vadd.f32 1.0, %v6764_v52  ;;  %v948_v58 = vmul.f32 0.5, %v940_v50  ;;  %6791 = vtanh.f32 %v996_v4  ;;  %v1084_v10 = vmul.f32 %v1071_v41, %v946_v51 }
 0x130   :  { %v6768_v62 = vpop.eup %6767  ;;  %v949_v3 = vmul.f32 0.5, %v941_v53  ;;  %6793 = vtanh.f32 %v997_v20  ;;  %v1089_v6 = vmul.f32 %v6766_v56, %v887_v23  ;;  %v1085_v0 = vmul.f32 %v7812_v15, %v947_v54 }
 0x131   :  { %v6770_v60 = vpop.eup %6769  ;;  %v950_v7 = vmul.f32 0.5, %v942_v57  ;;  %6795 = vtanh.f32 %v998_v9  ;;  %v1090_v11 = vmul.f32 %v6768_v62, %v888_v25  ;;  %v1086_v30 = vmul.f32 %v7820_v16, %v948_v58  ;;  %v1132_v57 = vld [vmem:[%s9822_s4] sm:$0x1] }
 0x132   :  { %v6772_v12 = vpop.eup %6771  ;;  %v1091_v13 = vmul.f32 %v6770_v60, %v889_v26  ;;  %v7855_v18 = vadd.f32 %v1089_v6, %v1081_v55  ;;  %v1087_v34 = vmul.f32 %v1070_v8, %v949_v3  ;;  %v1135_v3 = vld [vmem:[%s9822_s4 + $0x4] sm:$0x1] }
 0x133   :  { %v6774_v61 = vpop.eup %6773  ;;  %v1092_v39 = vmul.f32 %v6772_v12, %v890_v31  ;;  %v7858_v2 = vadd.f32 %v1090_v11, %v1082_v59  ;;  %v1088_v22 = vmul.f32 %v1072_v42, %v950_v7 }
 0x134   :  { %v6776_v4 = vpop.eup %6775  ;;  %v1093_v41 = vmul.f32 %v6774_v61, %v891_v38  ;;  %v7863_v20 = vadd.f32 %v1091_v13, %v1083_v5  ;;  %6797 = vtanh.f32 %v7855_v18 }
 0x135   :  { %v6778_v21 = vpop.eup %6777  ;;  %v1094_v23 = vmul.f32 %v6776_v4, %v892_v49  ;;  %v7869_v9 = vadd.f32 %v1092_v39, %v1084_v10  ;;  %6799 = vtanh.f32 %v7858_v2 }
 0x136   :  { %v6780_v24 = vpop.eup %6779  ;;  %v1095_v25 = vmul.f32 %v6778_v21, %v893_v63  ;;  %v7872_v26 = vadd.f32 %v1093_v41, %v1085_v0  ;;  %6801 = vtanh.f32 %v7863_v20  ;;  %v1138_v63 = vld [vmem:[%s9822_s4 + $0x8] sm:$0x1] }
 0x137   :  { %v6782_v15 = vpop.eup %6781  ;;  %v1096_v8 = vmul.f32 %v6780_v24, %v894_v19  ;;  %v7875_v27 = vadd.f32 %v1094_v23, %v1086_v30  ;;  %6803 = vtanh.f32 %v7869_v9  ;;  %v1141_v30 = vld [vmem:[%s9822_s4 + $0xc] sm:$0x1] }
 0x138   :  { %v6784_v28 = vpop.eup %6783  ;;  %v7878_v16 = vadd.f32 %v1095_v25, %v1087_v34  ;;  %6805 = vtanh.f32 %v7872_v26  ;;  %v1007_v35 = vadd.f32 1.0, %v6782_v15 }
 0x139   :  { %v6786_v42 = vpop.eup %6785  ;;  %v7881_v14 = vadd.f32 %v1096_v8, %v1088_v22  ;;  %6807 = vtanh.f32 %v7875_v27  ;;  %v1008_v17 = vadd.f32 1.0, %v6784_v28  ;;  %v1144_v22 = vld [vmem:[%s9822_s4 + $0x10] sm:$0x1]  ;;  %v1147_v28 = vld [vmem:[%s9822_s4 + $0x14] sm:$0x1] }
 0x13a   :  { %v6788_v31 = vpop.eup %6787  ;;  %6809 = vtanh.f32 %v7878_v16  ;;  %v1009_v38 = vadd.f32 1.0, %v6786_v42  ;;  %v1015_v44 = vmul.f32 0.5, %v1007_v35  ;;  %v1150_v35 = vld [vmem:[%s9822_s4 + $0x18] sm:$0x1] }
 0x13b   :  { %v6790_v32 = vpop.eup %6789  ;;  %6811 = vtanh.f32 %v7881_v14  ;;  %v1010_v40 = vadd.f32 1.0, %v6788_v31  ;;  %v1016_v47 = vmul.f32 0.5, %v1008_v17 }
 0x13c   :  { %v6792_v33 = vpop.eup %6791  ;;  %v1011_v43 = vadd.f32 1.0, %v6790_v32  ;;  %v1017_v51 = vmul.f32 0.5, %v1009_v38  ;;  %v1153_v38 = vld [vmem:[%s9822_s4 + $0x1c] sm:$0x1] }
 0x13d   :  { %v6794_v36 = vpop.eup %6793  ;;  %v1012_v45 = vadd.f32 1.0, %v6792_v33  ;;  %v1018_v54 = vmul.f32 0.5, %v1010_v40 }
 0x13e   :  { %v6796_v37 = vpop.eup %6795  ;;  %v1013_v48 = vadd.f32 1.0, %v6794_v36  ;;  %v1019_v59 = vmul.f32 0.5, %v1011_v43 }
 0x13f   :  { %v1014_v49 = vadd.f32 1.0, %v6796_v37  ;;  %v1020_v5 = vmul.f32 0.5, %v1012_v45 }
 0x140   :  { %v1021_v10 = vmul.f32 0.5, %v1013_v48 }
 0x141   :  { %v6798_v46 = vpop.eup %6797  ;;  %v1022_v11 = vmul.f32 0.5, %v1014_v49 }
 0x142   :  { %v6800_v50 = vpop.eup %6799  ;;  %v1113_v52 = vmul.f32 %v6798_v46, %v1015_v44 }
 0x143   :  { %v6802_v53 = vpop.eup %6801  ;;  %v1114_v55 = vmul.f32 %v6800_v50, %v1016_v47 }
 0x144   :  { %v6804_v58 = vpop.eup %6803  ;;  %v1121_v62 = vpack.c.bf16 %v1113_v52, %v1113_v52  ;;  %v1115_v6 = vmul.f32 %v6802_v53, %v1017_v51 }
 0x145   :  { %v6806_v60 = vpop.eup %6805  ;;  %v1122_v7 = vpack.c.bf16 %v1114_v55, %v1114_v55  ;;  %v1116_v12 = vmul.f32 %v6804_v58, %v1018_v54 }
 0x146   :  { %v6808_v0 = vpop.eup %6807  ;;  %v1133_v13 = vsel %vm7887_vm3, %v1121_v62, %v1132_v57  ;;  %v1117_v61 = vmul.f32 %v6806_v60, %v1019_v59  ;;  %v1123_v19 = vpack.c.bf16 %v1115_v6, %v1115_v6  ;;  %v1212_v39 = vunpack.c.l.b16 %v1121_v62 }
 0x147   :  { %v6810_v4 = vpop.eup %6809  ;;  %1134 = vst [vmem:[%s9822_s4] sm:$0x1] %v1133_v13  ;;  %v1136_v34 = vsel %vm7887_vm3, %v1122_v7, %v1135_v3  ;;  %v1118_v41 = vmul.f32 %v6808_v0, %v1020_v5  ;;  %v1124_v21 = vpack.c.bf16 %v1116_v12, %v1116_v12  ;;  %v1213_v23 = vunpack.c.l.b16 %v1122_v7  ;;  %v7967_v7 = vld [vmem:[%s9820_s2 + $0xe4] ss:$16 sps:$4 sm:$0xff]   ;;  %v7982_v12 = vld [vmem:[%s9820_s2 + $0xe8] ss:$16 sps:$4 sm:$0xff]  }
 0x148   :  { %v6812_v24 = vpop.eup %6811  ;;  %1137 = vst [vmem:[%s9822_s4 + $0x4] sm:$0x1] %v1136_v34  ;;  %v1119_v25 = vmul.f32 %v6810_v4, %v1021_v10  ;;  %v1125_v15 = vpack.c.bf16 %v1117_v61, %v1117_v61  ;;  %v1139_v8 = vsel %vm7887_vm3, %v1123_v19, %v1138_v63  ;;  %v1214_v42 = vunpack.c.l.b16 %v1123_v19  ;;  %v7972_v10 = vld [vmem:[%s9820_s2 + $0xec] ss:$16 sps:$4 sm:$0xff]   ;;  %2087 = vmatprep.subr.bf16.mxu0 %v7967_v7  ;;  %v7991_v63 = vld [vmem:[%s9820_s2 + $0xc4] ss:$16 sps:$4 sm:$0xff]  }
 0x149   :  { %v1120_v31 = vmul.f32 %v6812_v24, %v1022_v11  ;;  %v1126_v32 = vpack.c.bf16 %v1118_v41, %v1118_v41  ;;  %1140 = vst [vmem:[%s9822_s4 + $0x8] sm:$0x1] %v1139_v8  ;;  %v1142_v33 = vsel %vm7887_vm3, %v1124_v21, %v1141_v30  ;;  %v1215_v36 = vunpack.c.l.b16 %v1124_v21  ;;  %v7977_v11 = vld [vmem:[%s9820_s2 + $0xe0] ss:$16 sps:$4 sm:$0xff]   ;;  %2128 = vmatprep.subr.bf16.mxu1 %v7972_v10  ;;  %v7996_v0 = vld [vmem:[%s9820_s2 + $0xcc] ss:$16 sps:$4 sm:$0xff]  }
 0x14a   :  { %v1127_v17 = vpack.c.bf16 %v1119_v25, %v1119_v25  ;;  %1143 = vst [vmem:[%s9822_s4 + $0xc] sm:$0x1] %v1142_v33  ;;  %v1145_v37 = vsel %vm7887_vm3, %v1125_v15, %v1144_v22  ;;  %v1216_v40 = vunpack.c.l.b16 %v1125_v15  ;;  %v1220_v43 = vrot.slane %v1213_v23, 7  ;;  %v8001_v13 = vld [vmem:[%s9820_s2 + $0xc0] ss:$16 sps:$4 sm:$0xff]  }
 0x14b   :  { %v1128_v44 = vpack.c.bf16 %v1120_v31, %v1120_v31  ;;  %1146 = vst [vmem:[%s9822_s4 + $0x10] sm:$0x1] %v1145_v37  ;;  %v1148_v45 = vsel %vm7887_vm3, %v1126_v32, %v1147_v28  ;;  %v1217_v46 = vunpack.c.l.b16 %v1126_v32  ;;  %v1223_v47 = vrot.slane %v1214_v42, 6  ;;  %v8006_v61 = vld [vmem:[%s9820_s2 + $0xc8] ss:$16 sps:$4 sm:$0xff]  }
 0x14c   :  { %1149 = vst [vmem:[%s9822_s4 + $0x14] sm:$0x1] %v1148_v45  ;;  %v1151_v48 = vsel %vm7887_vm3, %v1127_v17, %v1150_v35  ;;  %v1218_v49 = vunpack.c.l.b16 %v1127_v17  ;;  %v1222_v50 = vsel %vm1221_vm2, %v1220_v43, %v1212_v39  ;;  %v1226_v51 = vrot.slane %v1215_v36, 5  ;;  %v8015_v19 = vld [vmem:[%s9820_s2 + $0xa0] ss:$16 sps:$4 sm:$0xff]  }
 0x14d   :  { %1152 = vst [vmem:[%s9822_s4 + $0x18] sm:$0x1] %v1151_v48  ;;  %v1154_v52 = vsel %vm7887_vm3, %v1128_v44, %v1153_v38  ;;  %v1219_v53 = vunpack.c.l.b16 %v1128_v44  ;;  %v1225_v54 = vsel %vm1224_vm4, %v1223_v47, %v1222_v50  ;;  %v1229_v55 = vrot.slane %v1216_v40, 4  ;;  %v8020_v30 = vld [vmem:[%s9820_s2 + $0xa4] ss:$16 sps:$4 sm:$0xff]  }
 0x14e   :  { %1155 = vst [vmem:[%s9822_s4 + $0x1c] sm:$0x1] %v1154_v52  ;;  %v1228_v57 = vsel %vm1227_vm5, %v1226_v51, %v1225_v54  ;;  %v1232_v58 = vrot.slane %v1217_v46, 3  ;;  %v1235_v62 = vrot.slane %v1218_v49, 2  ;;  %v8025_v39 = vld [vmem:[%s9820_s2 + $0xa8] ss:$16 sps:$4 sm:$0xff]  }
 0x14f   :  { %v1231_v59 = vsel %vm1230_vm6, %v1229_v55, %v1228_v57  ;;  %v1238_v56 = vrot.slane %v1219_v53, 1  ;;  %v8030_v4 = vld [vmem:[%s9820_s2 + $0xac] ss:$16 sps:$4 sm:$0xff]   ;;  %v8035_v34 = vld [vmem:[%s9820_s2 + $0x84] ss:$16 sps:$4 sm:$0xff]  }
 0x150   :  { %v1234_v3 = vsel %vm1233_vm7, %v1232_v58, %v1231_v59  ;;  %v8041_v41 = vld [vmem:[%s9820_s2 + $0x8c] ss:$16 sps:$4 sm:$0xff]   ;;  %v8049_v21 = vld [vmem:[%s9820_s2 + $0x80] ss:$16 sps:$4 sm:$0xff]   ;;  %v8054_v22 = vld [vmem:[%s9820_s2 + $0x88] ss:$16 sps:$4 sm:$0xff]  }
 0x151   :  { %v1237_v5 = vsel %vm1236_vm8, %v1235_v62, %v1234_v3  ;;  %v8061_v23 = vld [vmem:[%s9820_s2 + $0x64] ss:$16 sps:$4 sm:$0xff]   ;;  %v8066_v24 = vld [vmem:[%s9820_s2 + $0x6c] ss:$16 sps:$4 sm:$0xff]   ;;  %v8073_v25 = vld [vmem:[%s9820_s2 + $0x60] ss:$16 sps:$4 sm:$0xff]  }
 0x152   :  { %v1240_v6 = vsel %vm1239_vm9, %v1238_v56, %v1237_v5  ;;  %v8078_v15 = vld [vmem:[%s9820_s2 + $0x68] ss:$16 sps:$4 sm:$0xff]   ;;  %v8085_v8 = vld [vmem:[%s9820_s2 + $0x44] ss:$16 sps:$4 sm:$0xff]   ;;  %v8090_v28 = vld [vmem:[%s9820_s2 + $0x4c] ss:$16 sps:$4 sm:$0xff]  }
 0x153   :  { %v1241_v60 = vpack.c.b16 %v1240_v6, %v1240_v6  ;;  %9868 = vst [vmem:[#allocation6_spill] sm:$0xff] %v8085_v8  ;;  %9869 = vst [vmem:[#allocation7_spill] sm:$0xff] %v8090_v28  ;;  %v8097_v42 = vld [vmem:[%s9820_s2 + $0x40] ss:$16 sps:$4 sm:$0xff]   ;;  %v8102_v31 = vld [vmem:[%s9820_s2 + $0x48] ss:$16 sps:$4 sm:$0xff]  }
 0x154   :  { %9870 = vst [vmem:[#allocation8_spill] sm:$0xff] %v8097_v42  ;;  %9871 = vst [vmem:[#allocation9_spill] sm:$0xff] %v8102_v31  ;;  %v8109_v32 = vld [vmem:[%s9820_s2 + $0x24] ss:$16 sps:$4 sm:$0xff]   ;;  %v8114_v33 = vld [vmem:[%s9820_s2 + $0x2c] ss:$16 sps:$4 sm:$0xff]  }
 0x155   :  { %1436 = vmatmul.mubr.bf16.vlgmr.msra.gmra.mxu0 %v1241_v60  ;;  %1477 = vmatmul.mubr.bf16.vlgmr.msra.gmra.mxu1 %v1241_v60  ;;  %9872 = vst [vmem:[#allocation10_spill] sm:$0xff] %v8109_v32  ;;  %9873 = vst [vmem:[#allocation11_spill] sm:$0xff] %v8114_v33  ;;  %v8121_v35 = vld [vmem:[%s9820_s2 + $0x20] ss:$16 sps:$4 sm:$0xff]   ;;  %v8126_v36 = vld [vmem:[%s9820_s2 + $0x28] ss:$16 sps:$4 sm:$0xff]  }
 0x156   :  { %2119 = vmatprep.mubr.bf16.mxu0 %v9825_v1  ;;  %2160 = vmatprep.mubr.bf16.mxu1 %v9825_v1  ;;  %9874 = vst [vmem:[#allocation12_spill] sm:$0xff] %v8121_v35  ;;  %9875 = vst [vmem:[#allocation13_spill] sm:$0xff] %v8126_v36  ;;  %v8133_v17 = vld [vmem:[%s9820_s2 + $0x4] ss:$16 sps:$4 sm:$0xff]   ;;  %v8138_v37 = vld [vmem:[%s9820_s2 + $0xc] ss:$16 sps:$4 sm:$0xff]  }
 0x157   :  { %2088 = vmatpush1.bf16.msra.mxu0 %v7977_v11  ;;  %2129 = vmatpush1.bf16.msra.mxu1 %v7982_v12  ;;  %9876 = vst [vmem:[#allocation14_spill] sm:$0xff] %v8133_v17  ;;  %9877 = vst [vmem:[#allocation15_spill] sm:$0xff] %v8138_v37  ;;  %v8145_v38 = vld [vmem:[%s9820_s2] ss:$16 sps:$4 sm:$0xff]   ;;  %v8150_v40 = vld [vmem:[%s9820_s2 + $0x8] ss:$16 sps:$4 sm:$0xff]  }
 0x158   :  { %2089 = vmatprep.subr.bf16.mxu0 %v7991_v63  ;;  %2130 = vmatprep.subr.bf16.mxu1 %v7996_v0  ;;  %9878 = vst [vmem:[#allocation16_spill] sm:$0xff] %v8145_v38  ;;  %9879 = vst [vmem:[#allocation17_spill] sm:$0xff] %v8150_v40  ;;  %vm4559_vm3 = vsmask.f32 7946 }
 0x159   :  { %vm9381_vm10 = vmand %vm1224_vm4, %vm4559_vm3 }
 0x15b   :  { %2090 = vmatpush1.bf16.msra.mxu0 %v8001_v13  ;;  %2131 = vmatpush1.bf16.msra.mxu1 %v8006_v61 }
 0x15c   :  { %2091 = vmatprep.subr.bf16.mxu0 %v8020_v30  ;;  %2132 = vmatprep.subr.bf16.mxu1 %v8030_v4 }
 0x15f   :  { %2092 = vmatpush1.bf16.msra.mxu0 %v8015_v19  ;;  %2133 = vmatpush1.bf16.msra.mxu1 %v8025_v39 }
 0x160   :  { %2093 = vmatprep.subr.bf16.mxu0 %v8035_v34  ;;  %2134 = vmatprep.subr.bf16.mxu1 %v8041_v41 }
 0x163   :  { %2094 = vmatpush1.bf16.msra.mxu0 %v8049_v21  ;;  %2135 = vmatpush1.bf16.msra.mxu1 %v8054_v22 }
 0x164   :  { %2095 = vmatprep.subr.bf16.mxu0 %v8061_v23  ;;  %2136 = vmatprep.subr.bf16.mxu1 %v8066_v24 }
 0x167   :  { %2096 = vmatpush1.bf16.msra.mxu0 %v8073_v25  ;;  %2137 = vmatpush1.bf16.msra.mxu1 %v8078_v15 }
 0x168   :  { %2097 = vmatprep.subr.bf16.mxu0 %v8085_v8  ;;  %2138 = vmatprep.subr.bf16.mxu1 %v8090_v28 }
 0x16b   :  { %2098 = vmatpush1.bf16.msra.mxu0 %v8097_v42  ;;  %2139 = vmatpush1.bf16.msra.mxu1 %v8102_v31 }
 0x16c   :  { %2099 = vmatprep.subr.bf16.mxu0 %v8109_v32  ;;  %2140 = vmatprep.subr.bf16.mxu1 %v8114_v33 }
 0x16f   :  { %2100 = vmatpush1.bf16.msra.mxu0 %v8121_v35  ;;  %2141 = vmatpush1.bf16.msra.mxu1 %v8126_v36 }
 0x170   :  { %2101 = vmatprep.subr.bf16.mxu0 %v8133_v17  ;;  %2142 = vmatprep.subr.bf16.mxu1 %v8138_v37 }
 0x173   :  { %2102 = vmatpush1.bf16.msra.mxu0 %v8145_v38  ;;  %2143 = vmatpush1.bf16.msra.mxu1 %v8150_v40 }
 0x174   :  { %2756 = vmatprep.subr.bf16.mxu0 %v7967_v7  ;;  %2797 = vmatprep.subr.bf16.mxu1 %v7972_v10 }
 0x215   :  { %v1437_v43 = vpop.f32.mrf.mxu0  ;;  %v1478_v44 = vpop.f32.mrf.mxu1 }
 0x217   :  { %v1439_v45 = vpop.f32.mrf.mxu0  ;;  %v1480_v46 = vpop.f32.mrf.mxu1 }
 0x218   :  { %v1489_v47 = vcombine.low %v1437_v43, %v1439_v45  ;;  %v1490_v48 = vcombine.high %v1437_v43, %v1439_v45  ;;  %v1491_v49 = vcombine.low %v1478_v44, %v1480_v46  ;;  %v1492_v50 = vcombine.high %v1478_v44, %v1480_v46  ;;  %v1157_v43 = vld [vmem:[#allocation2 + $0x1] ss:$8 sm:$0xf] }
 0x219   :  { %v1441_v51 = vpop.f32.mrf.mxu0  ;;  %v1482_v52 = vpop.f32.mrf.mxu1  ;;  %v1159_v44 = vld [vmem:[#allocation2 + $0x21] ss:$8 sm:$0xf] }
 0x21a   :  { %v1499_v53 = vrot.slane %v1489_v47, %v7766_v29  ;;  %v1506_v54 = vrot.slane %v1490_v48, %v7766_v29  ;;  %v1513_v55 = vrot.slane %v1491_v49, %v7766_v29  ;;  %v1520_v57 = vrot.slane %v1492_v50, %v7766_v29  ;;  %v1161_v45 = vld [vmem:[#allocation2 + $0x41] ss:$8 sm:$0xf] }
 0x21b   :  { %v1442_v58 = vpop.f32.mrf.mxu0  ;;  %v1483_v59 = vpop.f32.mrf.mxu1  ;;  %v1165_v46 = vld [vmem:[#allocation2 + $0x81] ss:$8 sm:$0xf] }
 0x21c   :  { %v1521_v62 = vcombine.low %v1499_v53, %v1513_v55  ;;  %v1522_v3 = vcombine.high %v1499_v53, %v1513_v55  ;;  %v1523_v56 = vcombine.low %v1506_v54, %v1520_v57  ;;  %v1524_v5 = vcombine.high %v1506_v54, %v1520_v57  ;;  %v1163_v51 = vld [vmem:[#allocation2 + $0x61] ss:$8 sm:$0xf] }
 0x21d   :  { %v1167_v52 = vld [vmem:[#allocation2 + $0xa1] ss:$8 sm:$0xf] }
 0x21e   :  { %v1531_v6 = vrot.slane %v1521_v62, %v7766_v29  ;;  %v1538_v60 = vrot.slane %v1523_v56, %v7766_v29  ;;  %v1545_v7 = vrot.slane %v1522_v3, %v7766_v29  ;;  %v1552_v10 = vrot.slane %v1524_v5, %v7766_v29  ;;  %v1169_v57 = vld [vmem:[#allocation2 + $0xc1] ss:$8 sm:$0xf] }
 0x21f   :  { %v1171_v3 = vld [vmem:[#allocation2 + $0xe1] ss:$8 sm:$0xf] }
 0x220   :  { %v1553_v47 = vcombine.high %v1531_v6, %v1531_v6  ;;  %v1554_v48 = vcombine.high %v1538_v60, %v1538_v60  ;;  %v1555_v49 = vcombine.high %v1545_v7, %v1545_v7  ;;  %v1556_v50 = vcombine.high %v1552_v10, %v1552_v10 }
 0x221   :  { %v8166_v53 = vadd.f32 %v1531_v6, %v1157_v43  ;;  %v8168_v54 = vadd.f32 %v1545_v7, %v1159_v44  ;;  %v8170_v55 = vadd.f32 %v1538_v60, %v1165_v46  ;;  %v8176_v62 = vadd.f32 %v1552_v10, %v1167_v52 }
 0x222   :  { %v8172_v58 = vadd.f32 %v1553_v47, %v1161_v45  ;;  %v8174_v59 = vadd.f32 %v1555_v49, %v1163_v51  ;;  %v8178_v56 = vadd.f32 %v1554_v48, %v1169_v57  ;;  %v8182_v6 = vadd.f32 %v1556_v50, %v1171_v3 }
 0x223   :  { %v1573_v5 = vmul.f32 0.5, %v8166_v53  ;;  %v1574_v1 = vmul.f32 0.5, %v8168_v54  ;;  %v1577_v43 = vmul.f32 0.5, %v8170_v55  ;;  %v1613_v44 = vrot.slane %v8166_v53, 1 }
 0x224   :  { %v1575_v7 = vmul.f32 0.5, %v8172_v58  ;;  %v1576_v60 = vmul.f32 0.5, %v8174_v59  ;;  %v1578_v10 = vmul.f32 0.5, %v8176_v62  ;;  %v1614_v45 = vrot.slane %v8168_v54, 1 }
 0x225   :  { %6813 = vtanh.f32 %v1573_v5  ;;  %v1579_v46 = vmul.f32 0.5, %v8178_v56  ;;  %v1615_v47 = vrot.slane %v8172_v58, 1  ;;  %v1580_v48 = vmul.f32 0.5, %v8182_v6 }
 0x226   :  { %6815 = vtanh.f32 %v1574_v1  ;;  %v1616_v49 = vrot.slane %v8174_v59, 1  ;;  %v1617_v50 = vrot.slane %v8170_v55, 1  ;;  %v1629_v51 = vmul.f32 0.5, %v1613_v44 }
 0x227   :  { %6817 = vtanh.f32 %v1575_v7  ;;  %v1618_v52 = vrot.slane %v8176_v62, 1  ;;  %v1630_v1 = vmul.f32 0.5, %v1614_v45  ;;  %v1619_v57 = vrot.slane %v8178_v56, 1 }
 0x228   :  { %6819 = vtanh.f32 %v1576_v60  ;;  %v1631_v3 = vmul.f32 0.5, %v1615_v47  ;;  %v1620_v5 = vrot.slane %v8182_v6, 1  ;;  %v1632_v7 = vmul.f32 0.5, %v1616_v49 }
 0x229   :  { %6821 = vtanh.f32 %v1577_v43  ;;  %v1633_v29 = vmul.f32 0.5, %v1617_v50  ;;  %v1634_v60 = vmul.f32 0.5, %v1618_v52  ;;  %v1635_v43 = vmul.f32 0.5, %v1619_v57 }
 0x22a   :  { %6823 = vtanh.f32 %v1578_v10  ;;  %v1636_v40 = vmul.f32 0.5, %v1620_v5  ;;  %v1661_v44 = vrot.slane %v8166_v53, 2  ;;  %v1662_v10 = vrot.slane %v8168_v54, 2 }
 0x22b   :  { %6825 = vtanh.f32 %v1579_v46  ;;  %v1663_v45 = vrot.slane %v8172_v58, 2  ;;  %v1664_v47 = vrot.slane %v8174_v59, 2  ;;  %v1686_v49 = vrot.slane %v8168_v54, 3 }
 0x22c   :  { %6827 = vtanh.f32 %v1580_v48  ;;  %v1685_v48 = vrot.slane %v8166_v53, 3  ;;  %v1688_v52 = vrot.slane %v8174_v59, 3  ;;  %v1666_v57 = vrot.slane %v8176_v62, 2 }
 0x22d   :  { %6829 = vtanh.f32 %v1629_v51  ;;  %v1665_v51 = vrot.slane %v8170_v55, 2  ;;  %v1690_v5 = vrot.slane %v8176_v62, 3  ;;  %v1667_v53 = vrot.slane %v8178_v56, 2 }
 0x22e   :  { %6831 = vtanh.f32 %v1630_v1  ;;  %v1668_v54 = vrot.slane %v8182_v6, 2  ;;  %v1701_v59 = vmul.f32 0.5, %v1685_v48  ;;  %v1704_v17 = vmul.f32 0.5, %v1688_v52 }
 0x22f   :  { %6833 = vtanh.f32 %v1631_v3  ;;  %v1689_v3 = vrot.slane %v8170_v55, 3  ;;  %v1706_v33 = vmul.f32 0.5, %v1690_v5 }
 0x230   :  { %6835 = vtanh.f32 %v1632_v7 }
 0x231   :  { %6837 = vtanh.f32 %v1633_v29  ;;  %v1687_v29 = vrot.slane %v8172_v58, 3  ;;  %v1692_v58 = vrot.slane %v8182_v6, 3  ;;  %v1705_v35 = vmul.f32 0.5, %v1689_v3 }
 0x232   :  { %v6814_v46 = vpop.eup %6813  ;;  %6839 = vtanh.f32 %v1634_v60  ;;  %v1691_v60 = vrot.slane %v8178_v56, 3 }
 0x233   :  { %v6816_v50 = vpop.eup %6815  ;;  %6841 = vtanh.f32 %v1635_v43  ;;  %v1589_v37 = vadd.f32 1.0, %v6814_v46  ;;  %v1703_v55 = vmul.f32 0.5, %v1687_v29  ;;  %v1708_v48 = vmul.f32 0.5, %v1692_v58 }
 0x234   :  { %v6818_v1 = vpop.eup %6817  ;;  %6843 = vtanh.f32 %v1636_v40  ;;  %v1702_v40 = vmul.f32 0.5, %v1686_v49  ;;  %v1590_v36 = vadd.f32 1.0, %v6816_v50  ;;  %v1707_v56 = vmul.f32 0.5, %v1691_v60 }
 0x235   :  { %v6820_v7 = vpop.eup %6819  ;;  %6845 = vtanh.f32 %v1661_v44  ;;  %v1591_v44 = vadd.f32 1.0, %v6818_v1 }
 0x236   :  { %v6822_v43 = vpop.eup %6821  ;;  %6847 = vtanh.f32 %v1662_v10  ;;  %v1592_v31 = vadd.f32 1.0, %v6820_v7 }
 0x237   :  { %v6824_v38 = vpop.eup %6823  ;;  %6849 = vtanh.f32 %v1663_v45  ;;  %v1593_v42 = vadd.f32 1.0, %v6822_v43  ;;  %v1597_v45 = vmul.f32 0.5, %v1589_v37  ;;  %v1599_v1 = vmul.f32 0.5, %v1591_v44 }
 0x238   :  { %v6826_v62 = vpop.eup %6825  ;;  %6851 = vtanh.f32 %v1664_v47  ;;  %v1594_v6 = vadd.f32 1.0, %v6824_v38  ;;  %v1598_v47 = vmul.f32 0.5, %v1590_v36  ;;  %v1600_v7 = vmul.f32 0.5, %v1592_v31 }
 0x239   :  { %v6828_v32 = vpop.eup %6827  ;;  %6853 = vtanh.f32 %v1665_v51  ;;  %v1595_v46 = vadd.f32 1.0, %v6826_v62  ;;  %v1601_v43 = vmul.f32 0.5, %v1593_v42 }
 0x23a   :  { %v6830_v10 = vpop.eup %6829  ;;  %6855 = vtanh.f32 %v1666_v57  ;;  %v1596_v50 = vadd.f32 1.0, %v6828_v32  ;;  %v1602_v38 = vmul.f32 0.5, %v1594_v6 }
 0x23b   :  { %v6832_v49 = vpop.eup %6831  ;;  %v1645_v29 = vadd.f32 1.0, %v6830_v10  ;;  %6857 = vtanh.f32 %v1667_v53  ;;  %v1603_v62 = vmul.f32 0.5, %v1595_v46 }
 0x23c   :  { %v6834_v52 = vpop.eup %6833  ;;  %v1646_v3 = vadd.f32 1.0, %v6832_v49  ;;  %6859 = vtanh.f32 %v1668_v54  ;;  %v1604_v32 = vmul.f32 0.5, %v1596_v50 }
 0x23d   :  { %v6836_v5 = vpop.eup %6835  ;;  %v1647_v51 = vadd.f32 1.0, %v6834_v52  ;;  %v1653_v60 = vmul.f32 0.5, %v1645_v29  ;;  %6861 = vtanh.f32 %v1701_v59 }
 0x23e   :  { %v6838_v28 = vpop.eup %6837  ;;  %v1648_v57 = vadd.f32 1.0, %v6836_v5  ;;  %v1654_v58 = vmul.f32 0.5, %v1646_v3  ;;  %6863 = vtanh.f32 %v1702_v40 }
 0x23f   :  { %v6840_v8 = vpop.eup %6839  ;;  %v1649_v37 = vadd.f32 1.0, %v6838_v28  ;;  %v1655_v10 = vmul.f32 0.5, %v1647_v51  ;;  %6865 = vtanh.f32 %v1703_v55  ;;  %v1733_v29 = vmul.f32 %v1653_v60, %v7855_v18 }
 0x240   :  { %v6842_v53 = vpop.eup %6841  ;;  %v1650_v36 = vadd.f32 1.0, %v6840_v8  ;;  %v1656_v49 = vmul.f32 0.5, %v1648_v57  ;;  %6867 = vtanh.f32 %v1704_v17  ;;  %v1734_v46 = vmul.f32 %v1654_v58, %v7858_v2 }
 0x241   :  { %v6844_v54 = vpop.eup %6843  ;;  %v1651_v44 = vadd.f32 1.0, %v6842_v53  ;;  %v1657_v31 = vmul.f32 0.5, %v1649_v37  ;;  %6869 = vtanh.f32 %v1705_v35  ;;  %v1735_v59 = vmul.f32 %v1655_v10, %v7863_v20 }
 0x242   :  { %v6846_v42 = vpop.eup %6845  ;;  %v1652_v6 = vadd.f32 1.0, %v6844_v54  ;;  %v1658_v52 = vmul.f32 0.5, %v1650_v36  ;;  %6871 = vtanh.f32 %v1706_v33  ;;  %v1736_v5 = vmul.f32 %v1656_v49, %v7869_v9 }
 0x243   :  { %v6848_v28 = vpop.eup %6847  ;;  %v1659_v3 = vmul.f32 0.5, %v1651_v44  ;;  %v1741_v8 = vmul.f32 %v6846_v42, %v1597_v45  ;;  %6873 = vtanh.f32 %v1707_v56  ;;  %v1737_v18 = vmul.f32 %v1657_v31, %v7872_v26 }
 0x244   :  { %v6850_v50 = vpop.eup %6849  ;;  %v1660_v40 = vmul.f32 0.5, %v1652_v6  ;;  %v1742_v55 = vmul.f32 %v6848_v28, %v1598_v47  ;;  %6875 = vtanh.f32 %v1708_v48  ;;  %v1738_v35 = vmul.f32 %v1658_v52, %v7875_v27 }
 0x245   :  { %v6852_v51 = vpop.eup %6851  ;;  %v1743_v60 = vmul.f32 %v6850_v50, %v1599_v1  ;;  %v8219_v17 = vadd.f32 %v1741_v8, %v1733_v29  ;;  %v1739_v33 = vmul.f32 %v1659_v3, %v7878_v16 }
 0x246   :  { %v6854_v2 = vpop.eup %6853  ;;  %v1744_v57 = vmul.f32 %v6852_v51, %v1600_v7  ;;  %v8222_v20 = vadd.f32 %v1742_v55, %v1734_v46  ;;  %v1740_v26 = vmul.f32 %v1660_v40, %v7881_v14 }
 0x247   :  { %v6856_v45 = vpop.eup %6855  ;;  %v1745_v58 = vmul.f32 %v6854_v2, %v1601_v43  ;;  %v8225_v9 = vadd.f32 %v1743_v60, %v1735_v59  ;;  %6877 = vtanh.f32 %v8219_v17 }
 0x248   :  { %v6858_v56 = vpop.eup %6857  ;;  %v1746_v47 = vmul.f32 %v6856_v45, %v1602_v38  ;;  %v8229_v1 = vadd.f32 %v1744_v57, %v1736_v5  ;;  %6879 = vtanh.f32 %v8222_v20 }
 0x249   :  { %v6860_v27 = vpop.eup %6859  ;;  %v1747_v48 = vmul.f32 %v6858_v56, %v1603_v62  ;;  %v8232_v7 = vadd.f32 %v1745_v58, %v1737_v18  ;;  %6881 = vtanh.f32 %v8225_v9 }
 0x24a   :  { %v1748_v16 = vmul.f32 %v6860_v27, %v1604_v32  ;;  %v8235_v43 = vadd.f32 %v1746_v47, %v1738_v35  ;;  %6883 = vtanh.f32 %v8229_v1  ;;  %v6862_v14 = vpop.eup %6861 }
 0x24b   :  { %v8238_v37 = vadd.f32 %v1747_v48, %v1739_v33  ;;  %6885 = vtanh.f32 %v8232_v7  ;;  %v6864_v10 = vpop.eup %6863  ;;  %v1717_v32 = vadd.f32 1.0, %v6862_v14 }
 0x24c   :  { %v8241_v38 = vadd.f32 %v1748_v16, %v1740_v26  ;;  %6887 = vtanh.f32 %v8235_v43  ;;  %v6866_v62 = vpop.eup %6865  ;;  %v1718_v49 = vadd.f32 1.0, %v6864_v10 }
 0x24d   :  { %6889 = vtanh.f32 %v8238_v37  ;;  %v6868_v53 = vpop.eup %6867  ;;  %v1719_v44 = vadd.f32 1.0, %v6866_v62  ;;  %v1725_v52 = vmul.f32 0.5, %v1717_v32 }
 0x24e   :  { %6891 = vtanh.f32 %v8241_v38  ;;  %v6870_v36 = vpop.eup %6869  ;;  %v1720_v29 = vadd.f32 1.0, %v6868_v53  ;;  %v1726_v28 = vmul.f32 0.5, %v1718_v49  ;;  %v1839_v53 = vld [vmem:[%s9822_s4] sm:$0x1] }
 0x24f   :  { %v6872_v54 = vpop.eup %6871  ;;  %v1721_v6 = vadd.f32 1.0, %v6870_v36  ;;  %v1727_v8 = vmul.f32 0.5, %v1719_v44 }
 0x250   :  { %v6874_v31 = vpop.eup %6873  ;;  %v1722_v3 = vadd.f32 1.0, %v6872_v54  ;;  %v1728_v55 = vmul.f32 0.5, %v1720_v29 }
 0x251   :  { %v6876_v42 = vpop.eup %6875  ;;  %v1723_v40 = vadd.f32 1.0, %v6874_v31  ;;  %v1729_v2 = vmul.f32 0.5, %v1721_v6  ;;  %v1842_v31 = vld [vmem:[%s9822_s4 + $0x4] sm:$0x1] }
 0x252   :  { %v1724_v18 = vadd.f32 1.0, %v6876_v42  ;;  %v1730_v56 = vmul.f32 0.5, %v1722_v3 }
 0x253   :  { %v1731_v48 = vmul.f32 0.5, %v1723_v40 }
 0x254   :  { %v6878_v46 = vpop.eup %6877  ;;  %v1732_v32 = vmul.f32 0.5, %v1724_v18 }
 0x255   :  { %v6880_v59 = vpop.eup %6879  ;;  %v1765_v50 = vmul.f32 %v6878_v46, %v1725_v52 }
 0x256   :  { %v6882_v5 = vpop.eup %6881  ;;  %v1766_v51 = vmul.f32 %v6880_v59, %v1726_v28 }
 0x257   :  { %v6884_v60 = vpop.eup %6883  ;;  %v8246_v35 = vpack.c.bf16 %v1765_v50, %v1765_v50  ;;  %v1767_v57 = vmul.f32 %v6882_v5, %v1727_v8 }
 0x258   :  { %v6886_v45 = vpop.eup %6885  ;;  %v1774_v33 = vpack.c.bf16 %v1766_v51, %v1766_v51  ;;  %v1768_v26 = vmul.f32 %v6884_v60, %v1728_v55  ;;  %v1845_v60 = vld [vmem:[%s9822_s4 + $0x8] sm:$0x1] }
 0x259   :  { %v6888_v47 = vpop.eup %6887  ;;  %v1806_v27 = vshll.u32 %v8246_v35, 16  ;;  %v1769_v16 = vmul.f32 %v6886_v45, %v1729_v2  ;;  %v1775_v14 = vpack.c.bf16 %v1767_v57, %v1767_v57  ;;  %v1789_v55 = vunpack.c.l.b16 %v8246_v35  ;;  %v1848_v2 = vld [vmem:[%s9822_s4 + $0xc] sm:$0x1]  ;;  %v1851_v35 = vld [vmem:[%s9822_s4 + $0x10] sm:$0x1] }
 0x25a   :  { %v6890_v10 = vpop.eup %6889  ;;  %v1809_v62 = vshll.u32 %v1774_v33, 16  ;;  %v1770_v36 = vmul.f32 %v6888_v47, %v1730_v56  ;;  %v1776_v49 = vpack.c.bf16 %v1768_v26, %v1768_v26  ;;  %v1790_v6 = vunpack.c.l.b16 %v1774_v33  ;;  %v1854_v26 = vld [vmem:[%s9822_s4 + $0x14] sm:$0x1] }
 0x25b   :  { %v6892_v54 = vpop.eup %6891  ;;  %v1840_v44 = vsel %vm8249_vm11, %v1806_v27, %v1839_v53  ;;  %v1771_v29 = vmul.f32 %v6890_v10, %v1731_v48  ;;  %v1777_v42 = vpack.c.bf16 %v1769_v16, %v1769_v16  ;;  %v1791_v3 = vunpack.c.l.b16 %v1775_v14 }
 0x25c   :  { %1841 = vst [vmem:[%s9822_s4] sm:$0x1] %v1840_v44  ;;  %v1843_v52 = vsel %vm8249_vm11, %v1809_v62, %v1842_v31  ;;  %v1772_v46 = vmul.f32 %v6892_v54, %v1732_v32  ;;  %v1778_v28 = vpack.c.bf16 %v1770_v36, %v1770_v36  ;;  %v1792_v8 = vunpack.c.l.b16 %v1776_v49  ;;  %v1860_v62 = vld [vmem:[%s9822_s4 + $0x1c] sm:$0x1] }
 0x25d   :  { %1844 = vst [vmem:[%s9822_s4 + $0x4] sm:$0x1] %v1843_v52  ;;  %v1779_v59 = vpack.c.bf16 %v1771_v29, %v1771_v29  ;;  %v1812_v50 = vshll.u32 %v1775_v14, 16  ;;  %v1815_v40 = vshll.u32 %v1776_v49, 16  ;;  %v1818_v51 = vshll.u32 %v1777_v42, 16 }
 0x25e   :  { %v1780_v5 = vpack.c.bf16 %v1772_v46, %v1772_v46  ;;  %v1821_v18 = vshll.u32 %v1778_v28, 16  ;;  %v1793_v57 = vunpack.c.l.b16 %v1777_v42  ;;  %v1794_v47 = vunpack.c.l.b16 %v1778_v28  ;;  %v1857_v14 = vld [vmem:[%s9822_s4 + $0x18] sm:$0x1] }
 0x25f   :  { %v1824_v45 = vshll.u32 %v1779_v59, 16  ;;  %v1846_v33 = vsel %vm8249_vm11, %v1812_v50, %v1845_v60  ;;  %v1849_v56 = vsel %vm8249_vm11, %v1815_v40, %v1848_v2  ;;  %v1852_v48 = vsel %vm8249_vm11, %v1818_v51, %v1851_v35  ;;  %v9895_v60 = vld [vmem:[#allocation5_spill] sm:$0xff] }
 0x260   :  { %v1827_v27 = vshll.u32 %v1780_v5, 16  ;;  %1847 = vst [vmem:[%s9822_s4 + $0x8] sm:$0x1] %v1846_v33  ;;  %1850 = vst [vmem:[%s9822_s4 + $0xc] sm:$0x1] %v1849_v56  ;;  %v1855_v16 = vsel %vm8249_vm11, %v1821_v18, %v1854_v26  ;;  %v1911_v53 = vrot.slane %v1790_v6, 7  ;;  %v1795_v49 = vunpack.c.l.b16 %v1779_v59 }
 0x261   :  { %1853 = vst [vmem:[%s9822_s4 + $0x10] sm:$0x1] %v1852_v48  ;;  %1856 = vst [vmem:[%s9822_s4 + $0x14] sm:$0x1] %v1855_v16  ;;  %v1858_v10 = vsel %vm8249_vm11, %v1824_v45, %v1857_v14  ;;  %v1913_v32 = vrot.slane %v1791_v3, 6  ;;  %v1915_v36 = vrot.slane %v1792_v8, 5  ;;  %v1796_v44 = vunpack.c.l.b16 %v1780_v5 }
 0x262   :  { %1859 = vst [vmem:[%s9822_s4 + $0x18] sm:$0x1] %v1858_v10  ;;  %v1861_v54 = vsel %vm8249_vm11, %v1827_v27, %v1860_v62  ;;  %v1912_v31 = vsel %vm1221_vm2, %v1911_v53, %v1789_v55  ;;  %v1917_v42 = vrot.slane %v1793_v57, 4  ;;  %v1919_v52 = vrot.slane %v1794_v47, 3 }
 0x263   :  { %1862 = vst [vmem:[%s9822_s4 + $0x1c] sm:$0x1] %v1861_v54  ;;  %v1914_v29 = vsel %vm1224_vm4, %v1913_v32, %v1912_v31  ;;  %v1921_v28 = vrot.slane %v1795_v49, 2  ;;  %v1923_v58 = vrot.slane %v1796_v44, 1  ;;  %v9882_v40 = vmov 0  }
 0x264   :  { %v1916_v6 = vsel %vm1227_vm5, %v1915_v36, %v1914_v29  ;;  %v1864_v53 = vld [vmem:[#allocation2 + $0x2] ss:$8 sm:$0xf]  ;;  %vm5228_vm11 = vsmask.f32 3328 }
 0x265   :  { %v1918_v46 = vsel %vm1230_vm6, %v1917_v42, %v1916_v6  ;;  %v1866_v32 = vld [vmem:[#allocation2 + $0x22] ss:$8 sm:$0xf]  ;;  %vm9579_vm12 = vmand %vm1227_vm5, %vm5228_vm11 }
 0x266   :  { %v1920_v3 = vsel %vm1233_vm7, %v1919_v52, %v1918_v46  ;;  %v1868_v36 = vld [vmem:[#allocation2 + $0x42] ss:$8 sm:$0xf] }
 0x267   :  { %v1922_v59 = vsel %vm1236_vm8, %v1921_v28, %v1920_v3  ;;  %v1872_v49 = vld [vmem:[#allocation2 + $0x82] ss:$8 sm:$0xf] }
 0x268   :  { %v1924_v8 = vsel %vm1239_vm9, %v1923_v58, %v1922_v59  ;;  %v1870_v42 = vld [vmem:[#allocation2 + $0x62] ss:$8 sm:$0xf] }
 0x269   :  { %v1925_v50 = vpack.c.b16 %v1924_v8, %v1924_v8  ;;  %v1874_v6 = vld [vmem:[#allocation2 + $0xa2] ss:$8 sm:$0xf] }
 0x26a   :  { %v1876_v3 = vld [vmem:[#allocation2 + $0xc2] ss:$8 sm:$0xf] }
 0x26b   :  { %2120 = vmatmul.mubr.bf16.vlgmr.msra.gmra.mxu0 %v1925_v50  ;;  %2161 = vmatmul.mubr.bf16.vlgmr.msra.gmra.mxu1 %v1925_v50  ;;  %v1878_v50 = vld [vmem:[#allocation2 + $0xe2] ss:$8 sm:$0xf] }
 0x26c   :  { %2757 = vmatpush1.bf16.msra.mxu0 %v7977_v11  ;;  %2798 = vmatpush1.bf16.msra.mxu1 %v7982_v12  ;;  %v9883_v11 = vld [vmem:[#allocation6_spill] sm:$0xff]  ;;  %v9884_v12 = vld [vmem:[#allocation7_spill] sm:$0xff] }
 0x26d   :  { %2758 = vmatprep.subr.bf16.mxu0 %v7991_v63  ;;  %2799 = vmatprep.subr.bf16.mxu1 %v7996_v0  ;;  %v9885_v63 = vld [vmem:[#allocation8_spill] sm:$0xff]  ;;  %v9886_v0 = vld [vmem:[#allocation9_spill] sm:$0xff] }
 0x26e   :  { %2788 = vmatprep.mubr.bf16.mxu0 %v9882_v40  ;;  %2829 = vmatprep.mubr.bf16.mxu1 %v9882_v40 }
 0x270   :  { %2759 = vmatpush1.bf16.msra.mxu0 %v8001_v13  ;;  %2800 = vmatpush1.bf16.msra.mxu1 %v8006_v61  ;;  %v9887_v13 = vld [vmem:[#allocation10_spill] sm:$0xff]  ;;  %v9888_v61 = vld [vmem:[#allocation11_spill] sm:$0xff] }
 0x271   :  { %2760 = vmatprep.subr.bf16.mxu0 %v8020_v30  ;;  %2801 = vmatprep.subr.bf16.mxu1 %v8030_v4  ;;  %v9890_v30 = vld [vmem:[#allocation13_spill] sm:$0xff]  ;;  %v9892_v4 = vld [vmem:[#allocation15_spill] sm:$0xff] }
 0x274   :  { %2761 = vmatpush1.bf16.msra.mxu0 %v8015_v19  ;;  %2802 = vmatpush1.bf16.msra.mxu1 %v8025_v39  ;;  %v9889_v19 = vld [vmem:[#allocation12_spill] sm:$0xff]  ;;  %v9891_v39 = vld [vmem:[#allocation14_spill] sm:$0xff] }
 0x275   :  { %2762 = vmatprep.subr.bf16.mxu0 %v8035_v34  ;;  %2803 = vmatprep.subr.bf16.mxu1 %v8041_v41  ;;  %v9893_v34 = vld [vmem:[#allocation16_spill] sm:$0xff]  ;;  %v9894_v41 = vld [vmem:[#allocation17_spill] sm:$0xff] }
 0x278   :  { %2763 = vmatpush1.bf16.msra.mxu0 %v8049_v21  ;;  %2804 = vmatpush1.bf16.msra.mxu1 %v8054_v22 }
 0x279   :  { %2764 = vmatprep.subr.bf16.mxu0 %v8061_v23  ;;  %2805 = vmatprep.subr.bf16.mxu1 %v8066_v24 }
 0x27c   :  { %2765 = vmatpush1.bf16.msra.mxu0 %v8073_v25  ;;  %2806 = vmatpush1.bf16.msra.mxu1 %v8078_v15 }
 0x27d   :  { %2766 = vmatprep.subr.bf16.mxu0 %v9883_v11  ;;  %2807 = vmatprep.subr.bf16.mxu1 %v9884_v12 }
 0x280   :  { %2767 = vmatpush1.bf16.msra.mxu0 %v9885_v63  ;;  %2808 = vmatpush1.bf16.msra.mxu1 %v9886_v0 }
 0x281   :  { %2768 = vmatprep.subr.bf16.mxu0 %v9887_v13  ;;  %2809 = vmatprep.subr.bf16.mxu1 %v9888_v61 }
 0x284   :  { %2769 = vmatpush1.bf16.msra.mxu0 %v9889_v19  ;;  %2810 = vmatpush1.bf16.msra.mxu1 %v9890_v30 }
 0x285   :  { %2770 = vmatprep.subr.bf16.mxu0 %v9891_v39  ;;  %2811 = vmatprep.subr.bf16.mxu1 %v9892_v4 }
 0x288   :  { %2771 = vmatpush1.bf16.msra.mxu0 %v9893_v34  ;;  %2812 = vmatpush1.bf16.msra.mxu1 %v9894_v41 }
 0x32b   :  { %v2121_v21 = vpop.f32.mrf.mxu0  ;;  %v2162_v22 = vpop.f32.mrf.mxu1 }
 0x32d   :  { %v2123_v23 = vpop.f32.mrf.mxu0  ;;  %v2164_v24 = vpop.f32.mrf.mxu1 }
 0x32e   :  { %v2173_v25 = vcombine.low %v2121_v21, %v2123_v23  ;;  %v2174_v15 = vcombine.high %v2121_v21, %v2123_v23  ;;  %v2175_v5 = vcombine.low %v2162_v22, %v2164_v24  ;;  %v2176_v55 = vcombine.high %v2162_v22, %v2164_v24 }
 0x32f   :  { %v2125_v51 = vpop.f32.mrf.mxu0  ;;  %v2166_v18 = vpop.f32.mrf.mxu1 }
 0x330   :  { %v2183_v2 = vrot.slane %v2173_v25, %v9895_v60  ;;  %v2190_v57 = vrot.slane %v2174_v15, %v9895_v60  ;;  %v2197_v45 = vrot.slane %v2175_v5, %v9895_v60  ;;  %v2204_v33 = vrot.slane %v2176_v55, %v9895_v60 }
 0x331   :  { %v2126_v56 = vpop.f32.mrf.mxu0  ;;  %v2167_v35 = vpop.f32.mrf.mxu1 }
 0x332   :  { %v2205_v26 = vcombine.low %v2183_v2, %v2197_v45  ;;  %v2206_v47 = vcombine.high %v2183_v2, %v2197_v45  ;;  %v2207_v27 = vcombine.low %v2190_v57, %v2204_v33  ;;  %v2208_v48 = vcombine.high %v2190_v57, %v2204_v33 }
 0x334   :  { %v2215_v16 = vrot.slane %v2205_v26, %v9895_v60  ;;  %v2222_v14 = vrot.slane %v2207_v27, %v9895_v60  ;;  %v2229_v10 = vrot.slane %v2206_v47, %v9895_v60  ;;  %v2236_v62 = vrot.slane %v2208_v48, %v9895_v60 }
 0x336   :  { %v2237_v54 = vcombine.high %v2215_v16, %v2215_v16  ;;  %v2238_v44 = vcombine.high %v2222_v14, %v2222_v14  ;;  %v2239_v31 = vcombine.high %v2229_v10, %v2229_v10  ;;  %v2240_v29 = vcombine.high %v2236_v62, %v2236_v62 }
 0x337   :  { %v8366_v52 = vadd.f32 %v2215_v16, %v1864_v53  ;;  %v8368_v46 = vadd.f32 %v2229_v10, %v1866_v32  ;;  %v8370_v28 = vadd.f32 %v2222_v14, %v1872_v49  ;;  %v8376_v8 = vadd.f32 %v2236_v62, %v1874_v6 }
 0x338   :  { %v8372_v58 = vadd.f32 %v2237_v54, %v1868_v36  ;;  %v8374_v59 = vadd.f32 %v2239_v31, %v1870_v42  ;;  %v8378_v11 = vadd.f32 %v2238_v44, %v1876_v3  ;;  %v8382_v0 = vadd.f32 %v2240_v29, %v1878_v50 }
 0x339   :  { %v2257_v12 = vmul.f32 0.5, %v8366_v52  ;;  %v2258_v63 = vmul.f32 0.5, %v8368_v46  ;;  %v2261_v19 = vmul.f32 0.5, %v8370_v28  ;;  %v2297_v30 = vrot.slane %v8366_v52, 1 }
 0x33a   :  { %v2259_v13 = vmul.f32 0.5, %v8372_v58  ;;  %v2260_v61 = vmul.f32 0.5, %v8374_v59  ;;  %v2262_v39 = vmul.f32 0.5, %v8376_v8  ;;  %v2298_v4 = vrot.slane %v8368_v46, 1 }
 0x33b   :  { %6893 = vtanh.f32 %v2257_v12  ;;  %v2263_v34 = vmul.f32 0.5, %v8378_v11  ;;  %v2299_v41 = vrot.slane %v8372_v58, 1  ;;  %v2264_v21 = vmul.f32 0.5, %v8382_v0 }
 0x33c   :  { %6895 = vtanh.f32 %v2258_v63  ;;  %v2300_v22 = vrot.slane %v8374_v59, 1  ;;  %v2301_v23 = vrot.slane %v8370_v28, 1  ;;  %v2313_v24 = vmul.f32 0.5, %v2297_v30 }
 0x33d   :  { %6897 = vtanh.f32 %v2259_v13  ;;  %v2302_v25 = vrot.slane %v8376_v8, 1  ;;  %v2314_v15 = vmul.f32 0.5, %v2298_v4  ;;  %v2303_v5 = vrot.slane %v8378_v11, 1 }
 0x33e   :  { %6899 = vtanh.f32 %v2260_v61  ;;  %v2315_v55 = vmul.f32 0.5, %v2299_v41  ;;  %v2304_v51 = vrot.slane %v8382_v0, 1  ;;  %v2316_v18 = vmul.f32 0.5, %v2300_v22 }
 0x33f   :  { %6901 = vtanh.f32 %v2261_v19  ;;  %v2317_v2 = vmul.f32 0.5, %v2301_v23  ;;  %v2318_v57 = vmul.f32 0.5, %v2302_v25  ;;  %v2319_v45 = vmul.f32 0.5, %v2303_v5 }
 0x340   :  { %6903 = vtanh.f32 %v2262_v39  ;;  %v2320_v33 = vmul.f32 0.5, %v2304_v51  ;;  %v2345_v56 = vrot.slane %v8366_v52, 2  ;;  %v2346_v35 = vrot.slane %v8368_v46, 2 }
 0x341   :  { %6905 = vtanh.f32 %v2263_v34  ;;  %v2347_v26 = vrot.slane %v8372_v58, 2  ;;  %v2348_v27 = vrot.slane %v8374_v59, 2  ;;  %v2369_v48 = vrot.slane %v8366_v52, 3 }
 0x342   :  { %6907 = vtanh.f32 %v2264_v21  ;;  %v2370_v16 = vrot.slane %v8368_v46, 3  ;;  %v2349_v10 = vrot.slane %v8370_v28, 2  ;;  %v2371_v62 = vrot.slane %v8372_v58, 3 }
 0x343   :  { %6909 = vtanh.f32 %v2313_v24  ;;  %v2372_v53 = vrot.slane %v8374_v59, 3  ;;  %v2350_v36 = vrot.slane %v8376_v8, 2  ;;  %v2373_v49 = vrot.slane %v8370_v28, 3 }
 0x344   :  { %6911 = vtanh.f32 %v2314_v15  ;;  %v2374_v54 = vrot.slane %v8376_v8, 3  ;;  %v2351_v31 = vrot.slane %v8378_v11, 2  ;;  %v2352_v29 = vrot.slane %v8382_v0, 2 }
 0x345   :  { %6913 = vtanh.f32 %v2315_v55  ;;  %v2375_v42 = vrot.slane %v8378_v11, 3  ;;  %v2376_v52 = vrot.slane %v8382_v0, 3  ;;  %v2385_v46 = vmul.f32 0.5, %v2369_v48 }
 0x346   :  { %6915 = vtanh.f32 %v2316_v18  ;;  %v2386_v3 = vmul.f32 0.5, %v2370_v16  ;;  %v2387_v28 = vmul.f32 0.5, %v2371_v62  ;;  %v2388_v50 = vmul.f32 0.5, %v2372_v53 }
 0x347   :  { %6917 = vtanh.f32 %v2317_v2  ;;  %v2389_v63 = vmul.f32 0.5, %v2373_v49  ;;  %v2390_v13 = vmul.f32 0.5, %v2374_v54  ;;  %v2391_v11 = vmul.f32 0.5, %v2375_v42 }
 0x348   :  { %v6894_v47 = vpop.eup %6893  ;;  %6919 = vtanh.f32 %v2318_v57  ;;  %v2392_v34 = vmul.f32 0.5, %v2376_v52 }
 0x349   :  { %v6896_v14 = vpop.eup %6895  ;;  %6921 = vtanh.f32 %v2319_v45  ;;  %v2273_v59 = vadd.f32 1.0, %v6894_v47 }
 0x34a   :  { %v6898_v32 = vpop.eup %6897  ;;  %6923 = vtanh.f32 %v2320_v33  ;;  %v2274_v12 = vadd.f32 1.0, %v6896_v14 }
 0x34b   :  { %v6900_v44 = vpop.eup %6899  ;;  %6925 = vtanh.f32 %v2345_v56  ;;  %v2275_v19 = vadd.f32 1.0, %v6898_v32  ;;  %v2281_v22 = vmul.f32 0.5, %v2273_v59 }
 0x34c   :  { %v6902_v6 = vpop.eup %6901  ;;  %6927 = vtanh.f32 %v2346_v35  ;;  %v2276_v30 = vadd.f32 1.0, %v6900_v44  ;;  %v2282_v15 = vmul.f32 0.5, %v2274_v12 }
 0x34d   :  { %v6904_v58 = vpop.eup %6903  ;;  %6929 = vtanh.f32 %v2347_v26  ;;  %v2277_v4 = vadd.f32 1.0, %v6902_v6  ;;  %v2283_v51 = vmul.f32 0.5, %v2275_v19 }
 0x34e   :  { %v6906_v8 = vpop.eup %6905  ;;  %6931 = vtanh.f32 %v2348_v27  ;;  %v2278_v0 = vadd.f32 1.0, %v6904_v58  ;;  %v2284_v18 = vmul.f32 0.5, %v2276_v30 }
 0x34f   :  { %v6908_v61 = vpop.eup %6907  ;;  %6933 = vtanh.f32 %v2349_v10  ;;  %v2279_v21 = vadd.f32 1.0, %v6906_v8  ;;  %v2285_v33 = vmul.f32 0.5, %v2277_v4 }
 0x350   :  { %v6910_v39 = vpop.eup %6909  ;;  %6935 = vtanh.f32 %v2350_v36  ;;  %v2280_v25 = vadd.f32 1.0, %v6908_v61  ;;  %v2286_v56 = vmul.f32 0.5, %v2278_v0 }
 0x351   :  { %v6912_v41 = vpop.eup %6911  ;;  %v2329_v23 = vadd.f32 1.0, %v6910_v39  ;;  %6937 = vtanh.f32 %v2351_v31  ;;  %v2287_v27 = vmul.f32 0.5, %v2279_v21 }
 0x352   :  { %v6914_v24 = vpop.eup %6913  ;;  %v2330_v5 = vadd.f32 1.0, %v6912_v41  ;;  %6939 = vtanh.f32 %v2352_v29  ;;  %v2288_v10 = vmul.f32 0.5, %v2280_v25 }
 0x353   :  { %v6916_v55 = vpop.eup %6915  ;;  %v2331_v2 = vadd.f32 1.0, %v6914_v24  ;;  %v2337_v57 = vmul.f32 0.5, %v2329_v23  ;;  %6941 = vtanh.f32 %v2385_v46 }
 0x354   :  { %v6918_v45 = vpop.eup %6917  ;;  %v2332_v35 = vadd.f32 1.0, %v6916_v55  ;;  %v2338_v26 = vmul.f32 0.5, %v2330_v5  ;;  %6943 = vtanh.f32 %v2386_v3 }
 0x355   :  { %v6920_v47 = vpop.eup %6919  ;;  %v2333_v48 = vadd.f32 1.0, %v6918_v45  ;;  %v2339_v16 = vmul.f32 0.5, %v2331_v2  ;;  %6945 = vtanh.f32 %v2387_v28  ;;  %v2417_v54 = vmul.f32 %v2337_v57, %v8219_v17 }
 0x356   :  { %v6922_v14 = vpop.eup %6921  ;;  %v2334_v62 = vadd.f32 1.0, %v6920_v47  ;;  %v2340_v53 = vmul.f32 0.5, %v2332_v35  ;;  %6947 = vtanh.f32 %v2388_v50  ;;  %v2418_v42 = vmul.f32 %v2338_v26, %v8222_v20 }
 0x357   :  { %v6924_v32 = vpop.eup %6923  ;;  %v2335_v36 = vadd.f32 1.0, %v6922_v14  ;;  %v2341_v49 = vmul.f32 0.5, %v2333_v48  ;;  %6949 = vtanh.f32 %v2389_v63  ;;  %v2419_v46 = vmul.f32 %v2339_v16, %v8225_v9 }
 0x358   :  { %v6926_v44 = vpop.eup %6925  ;;  %v2336_v31 = vadd.f32 1.0, %v6924_v32  ;;  %v2342_v29 = vmul.f32 0.5, %v2334_v62  ;;  %6951 = vtanh.f32 %v2390_v13  ;;  %v2420_v8 = vmul.f32 %v2340_v53, %v8229_v1 }
 0x359   :  { %v6928_v6 = vpop.eup %6927  ;;  %v2343_v52 = vmul.f32 0.5, %v2335_v36  ;;  %v2425_v58 = vmul.f32 %v6926_v44, %v2281_v22  ;;  %6953 = vtanh.f32 %v2391_v11  ;;  %v2421_v17 = vmul.f32 %v2341_v49, %v8232_v7 }
 0x35a   :  { %v6930_v59 = vpop.eup %6929  ;;  %v2344_v3 = vmul.f32 0.5, %v2336_v31  ;;  %v2426_v28 = vmul.f32 %v6928_v6, %v2282_v15  ;;  %6955 = vtanh.f32 %v2392_v34  ;;  %v2422_v63 = vmul.f32 %v2342_v29, %v8235_v43 }
 0x35b   :  { %v6932_v12 = vpop.eup %6931  ;;  %v2427_v61 = vmul.f32 %v6930_v59, %v2283_v51  ;;  %v8419_v50 = vadd.f32 %v2425_v58, %v2417_v54  ;;  %v2423_v13 = vmul.f32 %v2343_v52, %v8238_v37  ;;  %v2508_v52 = vld [vmem:[%s9822_s4] sm:$0x2] }
 0x35c   :  { %v6934_v20 = vpop.eup %6933  ;;  %v2428_v19 = vmul.f32 %v6932_v12, %v2284_v18  ;;  %v8422_v9 = vadd.f32 %v2426_v28, %v2418_v42  ;;  %v2424_v7 = vmul.f32 %v2344_v3, %v8241_v38 }
 0x35d   :  { %v6936_v30 = vpop.eup %6935  ;;  %v2429_v39 = vmul.f32 %v6934_v20, %v2285_v33  ;;  %v8425_v1 = vadd.f32 %v2427_v61, %v2419_v46  ;;  %6957 = vtanh.f32 %v8419_v50 }
 0x35e   :  { %v6938_v11 = vpop.eup %6937  ;;  %v2430_v4 = vmul.f32 %v6936_v30, %v2286_v56  ;;  %v8429_v0 = vadd.f32 %v2428_v19, %v2420_v8  ;;  %6959 = vtanh.f32 %v8422_v9  ;;  %v2511_v8 = vld [vmem:[%s9822_s4 + $0x4] sm:$0x2] }
 0x35f   :  { %v6940_v43 = vpop.eup %6939  ;;  %v2431_v34 = vmul.f32 %v6938_v11, %v2287_v27  ;;  %v8432_v41 = vadd.f32 %v2429_v39, %v2421_v17  ;;  %6961 = vtanh.f32 %v8425_v1 }
 0x360   :  { %v2432_v37 = vmul.f32 %v6940_v43, %v2288_v10  ;;  %v8435_v21 = vadd.f32 %v2430_v4, %v2422_v63  ;;  %6963 = vtanh.f32 %v8429_v0  ;;  %v6942_v38 = vpop.eup %6941 }
 0x361   :  { %v8438_v22 = vadd.f32 %v2431_v34, %v2423_v13  ;;  %6965 = vtanh.f32 %v8432_v41  ;;  %v6944_v24 = vpop.eup %6943  ;;  %v2401_v5 = vadd.f32 1.0, %v6942_v38 }
 0x362   :  { %v8441_v23 = vadd.f32 %v2432_v37, %v2424_v7  ;;  %6967 = vtanh.f32 %v8435_v21  ;;  %v6946_v25 = vpop.eup %6945  ;;  %v2402_v51 = vadd.f32 1.0, %v6944_v24  ;;  %v2514_v24 = vld [vmem:[%s9822_s4 + $0x8] sm:$0x2] }
 0x363   :  { %6969 = vtanh.f32 %v8438_v22  ;;  %v6948_v15 = vpop.eup %6947  ;;  %v2403_v2 = vadd.f32 1.0, %v6946_v25  ;;  %v2409_v35 = vmul.f32 0.5, %v2401_v5  ;;  %v2517_v25 = vld [vmem:[%s9822_s4 + $0xc] sm:$0x2] }
 0x364   :  { %6971 = vtanh.f32 %v8441_v23  ;;  %v6950_v55 = vpop.eup %6949  ;;  %v2404_v45 = vadd.f32 1.0, %v6948_v15  ;;  %v2410_v47 = vmul.f32 0.5, %v2402_v51 }
 0x365   :  { %v6952_v18 = vpop.eup %6951  ;;  %v2405_v56 = vadd.f32 1.0, %v6950_v55  ;;  %v2411_v16 = vmul.f32 0.5, %v2403_v2  ;;  %v2523_v2 = vld [vmem:[%s9822_s4 + $0x14] sm:$0x2] }
 0x366   :  { %v6954_v57 = vpop.eup %6953  ;;  %v2406_v27 = vadd.f32 1.0, %v6952_v18  ;;  %v2412_v53 = vmul.f32 0.5, %v2404_v45  ;;  %v2520_v18 = vld [vmem:[%s9822_s4 + $0x10] sm:$0x2] }
 0x367   :  { %v6956_v33 = vpop.eup %6955  ;;  %v2407_v10 = vadd.f32 1.0, %v6954_v57  ;;  %v2413_v54 = vmul.f32 0.5, %v2405_v56 }
 0x368   :  { %v2408_v36 = vadd.f32 1.0, %v6956_v33  ;;  %v2414_v46 = vmul.f32 0.5, %v2406_v27 }
 0x369   :  { %v2415_v28 = vmul.f32 0.5, %v2407_v10 }
 0x36a   :  { %v6958_v26 = vpop.eup %6957  ;;  %v2416_v63 = vmul.f32 0.5, %v2408_v36 }
 0x36b   :  { %v6960_v48 = vpop.eup %6959  ;;  %v2449_v14 = vmul.f32 %v6958_v26, %v2409_v35  ;;  %v2526_v35 = vld [vmem:[%s9822_s4 + $0x18] sm:$0x2] }
 0x36c   :  { %v6962_v62 = vpop.eup %6961  ;;  %v2450_v32 = vmul.f32 %v6960_v48, %v2410_v47 }
 0x36d   :  { %v6964_v49 = vpop.eup %6963  ;;  %v8446_v44 = vpack.c.bf16 %v2449_v14, %v2449_v14  ;;  %v2451_v31 = vmul.f32 %v6962_v62, %v2411_v16  ;;  %v2529_v16 = vld [vmem:[%s9822_s4 + $0x1c] sm:$0x2] }
 0x36e   :  { %v6966_v29 = vpop.eup %6965  ;;  %v2458_v42 = vpack.c.bf16 %v2450_v32, %v2450_v32  ;;  %v2452_v58 = vmul.f32 %v6964_v49, %v2412_v53 }
 0x36f   :  { %v6968_v59 = vpop.eup %6967  ;;  %v2489_v3 = vrot.slane %v8446_v44, 7  ;;  %v2453_v12 = vmul.f32 %v6966_v29, %v2413_v54  ;;  %v2459_v17 = vpack.c.bf16 %v2451_v31, %v2451_v31  ;;  %v2473_v45 = vunpack.c.l.b16 %v8446_v44 }
 0x370   :  { %v6970_v61 = vpop.eup %6969  ;;  %v2490_v20 = vrot.slane %v2458_v42, 7  ;;  %v2454_v19 = vmul.f32 %v6968_v59, %v2414_v46  ;;  %v2460_v30 = vpack.c.bf16 %v2452_v58, %v2452_v58  ;;  %v2474_v4 = vunpack.c.l.b16 %v2458_v42 }
 0x371   :  { %v6972_v13 = vpop.eup %6971  ;;  %v2509_v39 = vsel %vm8449_vm13, %v2489_v3, %v2508_v52  ;;  %v2455_v11 = vmul.f32 %v6970_v61, %v2415_v28  ;;  %v2461_v7 = vpack.c.bf16 %v2453_v12, %v2453_v12  ;;  %v2475_v38 = vunpack.c.l.b16 %v2459_v17 }
 0x372   :  { %2510 = vst [vmem:[%s9822_s4] sm:$0x2] %v2509_v39  ;;  %v2512_v43 = vsel %vm8449_vm13, %v2490_v20, %v2511_v8  ;;  %v2456_v34 = vmul.f32 %v6972_v13, %v2416_v63  ;;  %v2462_v37 = vpack.c.bf16 %v2454_v19, %v2454_v19  ;;  %v2476_v5 = vunpack.c.l.b16 %v2460_v30  ;;  %v8531_v20 = vld [vmem:[%s9820_s2 + $0xe4] ss:$16 sps:$4 sm:$0xff]   ;;  %v8536_v63 = vld [vmem:[%s9820_s2 + $0xec] ss:$16 sps:$4 sm:$0xff]  }
 0x373   :  { %2513 = vst [vmem:[%s9822_s4 + $0x4] sm:$0x2] %v2512_v43  ;;  %v2463_v15 = vpack.c.bf16 %v2455_v11, %v2455_v11  ;;  %v2491_v55 = vrot.slane %v2459_v17, 7  ;;  %v2492_v51 = vrot.slane %v2460_v30, 7  ;;  %v2493_v33 = vrot.slane %v2461_v7, 7  ;;  %3448 = vmatprep.subr.bf16.mxu0 %v8531_v20  ;;  %3489 = vmatprep.subr.bf16.mxu1 %v8536_v63 }
 0x374   :  { %v2464_v57 = vpack.c.bf16 %v2456_v34, %v2456_v34  ;;  %v2494_v56 = vrot.slane %v2462_v37, 7  ;;  %v2477_v26 = vunpack.c.l.b16 %v2461_v7  ;;  %v2478_v14 = vunpack.c.l.b16 %v2462_v37  ;;  %v8541_v19 = vld [vmem:[%s9820_s2 + $0xe0] ss:$16 sps:$4 sm:$0xff]   ;;  %v8546_v30 = vld [vmem:[%s9820_s2 + $0xe8] ss:$16 sps:$4 sm:$0xff]  }
 0x375   :  { %v2495_v47 = vrot.slane %v2463_v15, 7  ;;  %v2515_v27 = vsel %vm8449_vm13, %v2491_v55, %v2514_v24  ;;  %v2518_v48 = vsel %vm8449_vm13, %v2492_v51, %v2517_v25  ;;  %v2521_v62 = vsel %vm8449_vm13, %v2493_v33, %v2520_v18  ;;  %v8555_v13 = vld [vmem:[%s9820_s2 + $0xc4] ss:$16 sps:$4 sm:$0xff]   ;;  %v8560_v39 = vld [vmem:[%s9820_s2 + $0xcc] ss:$16 sps:$4 sm:$0xff]  }
 0x376   :  { %v2496_v10 = vrot.slane %v2464_v57, 7  ;;  %2516 = vst [vmem:[%s9822_s4 + $0x8] sm:$0x2] %v2515_v27  ;;  %2519 = vst [vmem:[%s9822_s4 + $0xc] sm:$0x2] %v2518_v48  ;;  %v2524_v53 = vsel %vm8449_vm13, %v2494_v56, %v2523_v2  ;;  %v2580_v36 = vrot.slane %v2474_v4, 7  ;;  %v2479_v44 = vunpack.c.l.b16 %v2463_v15 }
 0x377   :  { %2522 = vst [vmem:[%s9822_s4 + $0x10] sm:$0x2] %v2521_v62  ;;  %2525 = vst [vmem:[%s9822_s4 + $0x14] sm:$0x2] %v2524_v53  ;;  %v2527_v32 = vsel %vm8449_vm13, %v2495_v47, %v2526_v35  ;;  %v2582_v49 = vrot.slane %v2475_v38, 6  ;;  %v2584_v54 = vrot.slane %v2476_v5, 5  ;;  %v2480_v29 = vunpack.c.l.b16 %v2464_v57 }
 0x378   :  { %2528 = vst [vmem:[%s9822_s4 + $0x18] sm:$0x2] %v2527_v32  ;;  %v2530_v31 = vsel %vm8449_vm13, %v2496_v10, %v2529_v16  ;;  %v2581_v42 = vsel %vm1221_vm2, %v2580_v36, %v2473_v45  ;;  %v2586_v46 = vrot.slane %v2477_v26, 4  ;;  %v2588_v59 = vrot.slane %v2478_v14, 3  ;;  %v8565_v11 = vld [vmem:[%s9820_s2 + $0xc0] ss:$16 sps:$4 sm:$0xff]  }
 0x379   :  { %2531 = vst [vmem:[%s9822_s4 + $0x1c] sm:$0x2] %v2530_v31  ;;  %v2583_v52 = vsel %vm1224_vm4, %v2582_v49, %v2581_v42  ;;  %v2590_v8 = vrot.slane %v2479_v44, 2  ;;  %v2592_v6 = vrot.slane %v2480_v29, 1  ;;  %v8570_v7 = vld [vmem:[%s9820_s2 + $0xc8] ss:$16 sps:$4 sm:$0xff]  }
 0x37a   :  { %v2585_v58 = vsel %vm1227_vm5, %v2584_v54, %v2583_v52  ;;  %v8579_v4 = vld [vmem:[%s9820_s2 + $0xa4] ss:$16 sps:$4 sm:$0xff]   ;;  %v8584_v43 = vld [vmem:[%s9820_s2 + $0xac] ss:$16 sps:$4 sm:$0xff]   ;;  %v8589_v34 = vld [vmem:[%s9820_s2 + $0xa0] ss:$16 sps:$4 sm:$0xff]  }
 0x37b   :  { %v2587_v3 = vsel %vm1230_vm6, %v2586_v46, %v2585_v58  ;;  %v8594_v37 = vld [vmem:[%s9820_s2 + $0xa8] ss:$16 sps:$4 sm:$0xff]   ;;  %v8601_v38 = vld [vmem:[%s9820_s2 + $0x84] ss:$16 sps:$4 sm:$0xff]   ;;  %v8606_v24 = vld [vmem:[%s9820_s2 + $0x8c] ss:$16 sps:$4 sm:$0xff]  }
 0x37c   :  { %v2589_v28 = vsel %vm1233_vm7, %v2588_v59, %v2587_v3  ;;  %v8613_v25 = vld [vmem:[%s9820_s2 + $0x80] ss:$16 sps:$4 sm:$0xff]   ;;  %v8618_v15 = vld [vmem:[%s9820_s2 + $0x88] ss:$16 sps:$4 sm:$0xff]   ;;  %v8625_v5 = vld [vmem:[%s9820_s2 + $0x64] ss:$16 sps:$4 sm:$0xff]  }
 0x37d   :  { %v2591_v12 = vsel %vm1236_vm8, %v2590_v8, %v2589_v28  ;;  %v8630_v55 = vld [vmem:[%s9820_s2 + $0x6c] ss:$16 sps:$4 sm:$0xff]   ;;  %v8637_v51 = vld [vmem:[%s9820_s2 + $0x60] ss:$16 sps:$4 sm:$0xff]   ;;  %v8642_v18 = vld [vmem:[%s9820_s2 + $0x68] ss:$16 sps:$4 sm:$0xff]  }
 0x37e   :  { %v2593_v17 = vsel %vm1239_vm9, %v2592_v6, %v2591_v12  ;;  %v8649_v2 = vld [vmem:[%s9820_s2 + $0x44] ss:$16 sps:$4 sm:$0xff]   ;;  %v8654_v57 = vld [vmem:[%s9820_s2 + $0x4c] ss:$16 sps:$4 sm:$0xff]   ;;  %v8661_v45 = vld [vmem:[%s9820_s2 + $0x40] ss:$16 sps:$4 sm:$0xff]  }
 0x37f   :  { %v2594_v61 = vpack.c.b16 %v2593_v17, %v2593_v17  ;;  %9898 = vst [vmem:[#allocation6_spill] sm:$0xff] %v8654_v57  ;;  %9899 = vst [vmem:[#allocation7_spill] sm:$0xff] %v8661_v45  ;;  %v8666_v33 = vld [vmem:[%s9820_s2 + $0x48] ss:$16 sps:$4 sm:$0xff]   ;;  %v8673_v56 = vld [vmem:[%s9820_s2 + $0x24] ss:$16 sps:$4 sm:$0xff]  }
 0x380   :  { %9900 = vst [vmem:[#allocation8_spill] sm:$0xff] %v8666_v33  ;;  %9901 = vst [vmem:[#allocation9_spill] sm:$0xff] %v8673_v56  ;;  %v8678_v35 = vld [vmem:[%s9820_s2 + $0x2c] ss:$16 sps:$4 sm:$0xff]   ;;  %v8685_v26 = vld [vmem:[%s9820_s2 + $0x20] ss:$16 sps:$4 sm:$0xff]  }
 0x381   :  { %2789 = vmatmul.mubr.bf16.vlgmr.msra.gmra.mxu0 %v2594_v61  ;;  %2830 = vmatmul.mubr.bf16.vlgmr.msra.gmra.mxu1 %v2594_v61  ;;  %9902 = vst [vmem:[#allocation10_spill] sm:$0xff] %v8678_v35  ;;  %9903 = vst [vmem:[#allocation11_spill] sm:$0xff] %v8685_v26  ;;  %v8690_v47 = vld [vmem:[%s9820_s2 + $0x28] ss:$16 sps:$4 sm:$0xff]   ;;  %v8697_v27 = vld [vmem:[%s9820_s2 + $0x4] ss:$16 sps:$4 sm:$0xff]  }
 0x382   :  { %3480 = vmatprep.mubr.bf16.mxu0 %v9882_v40  ;;  %3521 = vmatprep.mubr.bf16.mxu1 %v9882_v40  ;;  %9904 = vst [vmem:[#allocation12_spill] sm:$0xff] %v8690_v47  ;;  %9905 = vst [vmem:[#allocation13_spill] sm:$0xff] %v8697_v27  ;;  %v8702_v48 = vld [vmem:[%s9820_s2 + $0xc] ss:$16 sps:$4 sm:$0xff]   ;;  %v8709_v16 = vld [vmem:[%s9820_s2] ss:$16 sps:$4 sm:$0xff]  }
 0x383   :  { %3449 = vmatpush1.bf16.msra.mxu0 %v8541_v19  ;;  %3490 = vmatpush1.bf16.msra.mxu1 %v8546_v30  ;;  %9906 = vst [vmem:[#allocation14_spill] sm:$0xff] %v8702_v48  ;;  %9907 = vst [vmem:[#allocation15_spill] sm:$0xff] %v8709_v16  ;;  %v8714_v14 = vld [vmem:[%s9820_s2 + $0x8] ss:$16 sps:$4 sm:$0xff]  }
 0x384   :  { %3450 = vmatprep.subr.bf16.mxu0 %v8555_v13  ;;  %3491 = vmatprep.subr.bf16.mxu1 %v8560_v39  ;;  %9908 = vst [vmem:[#allocation16_spill] sm:$0xff] %v8714_v14 }
 0x387   :  { %3451 = vmatpush1.bf16.msra.mxu0 %v8565_v11  ;;  %3492 = vmatpush1.bf16.msra.mxu1 %v8570_v7 }
 0x388   :  { %3452 = vmatprep.subr.bf16.mxu0 %v8579_v4  ;;  %3493 = vmatprep.subr.bf16.mxu1 %v8584_v43 }
 0x38b   :  { %3453 = vmatpush1.bf16.msra.mxu0 %v8589_v34  ;;  %3494 = vmatpush1.bf16.msra.mxu1 %v8594_v37 }
 0x38c   :  { %3454 = vmatprep.subr.bf16.mxu0 %v8601_v38  ;;  %3495 = vmatprep.subr.bf16.mxu1 %v8606_v24 }
 0x38f   :  { %3455 = vmatpush1.bf16.msra.mxu0 %v8613_v25  ;;  %3496 = vmatpush1.bf16.msra.mxu1 %v8618_v15 }
 0x390   :  { %3456 = vmatprep.subr.bf16.mxu0 %v8625_v5  ;;  %3497 = vmatprep.subr.bf16.mxu1 %v8630_v55 }
 0x393   :  { %3457 = vmatpush1.bf16.msra.mxu0 %v8637_v51  ;;  %3498 = vmatpush1.bf16.msra.mxu1 %v8642_v18 }
 0x394   :  { %3458 = vmatprep.subr.bf16.mxu0 %v8649_v2  ;;  %3499 = vmatprep.subr.bf16.mxu1 %v8654_v57 }
 0x397   :  { %3459 = vmatpush1.bf16.msra.mxu0 %v8661_v45  ;;  %3500 = vmatpush1.bf16.msra.mxu1 %v8666_v33 }
 0x398   :  { %3460 = vmatprep.subr.bf16.mxu0 %v8673_v56  ;;  %3501 = vmatprep.subr.bf16.mxu1 %v8678_v35 }
 0x39b   :  { %3461 = vmatpush1.bf16.msra.mxu0 %v8685_v26  ;;  %3502 = vmatpush1.bf16.msra.mxu1 %v8690_v47 }
 0x39c   :  { %3462 = vmatprep.subr.bf16.mxu0 %v8697_v27  ;;  %3503 = vmatprep.subr.bf16.mxu1 %v8702_v48 }
 0x39f   :  { %3463 = vmatpush1.bf16.msra.mxu0 %v8709_v16  ;;  %3504 = vmatpush1.bf16.msra.mxu1 %v8714_v14 }
 0x3a0   :  { %4117 = vmatprep.subr.bf16.mxu0 %v8531_v20  ;;  %4158 = vmatprep.subr.bf16.mxu1 %v8536_v63 }
 0x441   :  { %v2790_v10 = vpop.f32.mrf.mxu0  ;;  %v2831_v62 = vpop.f32.mrf.mxu1 }
 0x443   :  { %v2792_v53 = vpop.f32.mrf.mxu0  ;;  %v2833_v32 = vpop.f32.mrf.mxu1 }
 0x444   :  { %v2842_v36 = vcombine.low %v2790_v10, %v2792_v53  ;;  %v2843_v49 = vcombine.high %v2790_v10, %v2792_v53  ;;  %v2844_v54 = vcombine.low %v2831_v62, %v2833_v32  ;;  %v2845_v44 = vcombine.high %v2831_v62, %v2833_v32  ;;  %v2533_v10 = vld [vmem:[#allocation2 + $0x3] ss:$8 sm:$0xf] }
 0x445   :  { %v2794_v31 = vpop.f32.mrf.mxu0  ;;  %v2835_v29 = vpop.f32.mrf.mxu1  ;;  %v2535_v62 = vld [vmem:[#allocation2 + $0x23] ss:$8 sm:$0xf] }
 0x446   :  { %v2852_v42 = vrot.slane %v2842_v36, %v9895_v60  ;;  %v2859_v52 = vrot.slane %v2843_v49, %v9895_v60  ;;  %v2866_v46 = vrot.slane %v2844_v54, %v9895_v60  ;;  %v2873_v58 = vrot.slane %v2845_v44, %v9895_v60  ;;  %v2537_v53 = vld [vmem:[#allocation2 + $0x43] ss:$8 sm:$0xf] }
 0x447   :  { %v2795_v59 = vpop.f32.mrf.mxu0  ;;  %v2836_v3 = vpop.f32.mrf.mxu1  ;;  %v2541_v32 = vld [vmem:[#allocation2 + $0x83] ss:$8 sm:$0xf] }
 0x448   :  { %v2874_v8 = vcombine.low %v2852_v42, %v2866_v46  ;;  %v2875_v28 = vcombine.high %v2852_v42, %v2866_v46  ;;  %v2876_v6 = vcombine.low %v2859_v52, %v2873_v58  ;;  %v2877_v12 = vcombine.high %v2859_v52, %v2873_v58  ;;  %v2539_v31 = vld [vmem:[#allocation2 + $0x63] ss:$8 sm:$0xf] }
 0x449   :  { %v2543_v29 = vld [vmem:[#allocation2 + $0xa3] ss:$8 sm:$0xf] }
 0x44a   :  { %v2884_v17 = vrot.slane %v2874_v8, %v9895_v60  ;;  %v2891_v61 = vrot.slane %v2876_v6, %v9895_v60  ;;  %v2898_v20 = vrot.slane %v2875_v28, %v9895_v60  ;;  %v2905_v63 = vrot.slane %v2877_v12, %v9895_v60  ;;  %v2545_v58 = vld [vmem:[#allocation2 + $0xc3] ss:$8 sm:$0xf] }
 0x44b   :  { %v2547_v28 = vld [vmem:[#allocation2 + $0xe3] ss:$8 sm:$0xf] }
 0x44c   :  { %v2906_v36 = vcombine.high %v2884_v17, %v2884_v17  ;;  %v2907_v49 = vcombine.high %v2891_v61, %v2891_v61  ;;  %v2908_v54 = vcombine.high %v2898_v20, %v2898_v20  ;;  %v2909_v44 = vcombine.high %v2905_v63, %v2905_v63 }
 0x44d   :  { %v8730_v42 = vadd.f32 %v2884_v17, %v2533_v10  ;;  %v8732_v52 = vadd.f32 %v2898_v20, %v2535_v62  ;;  %v8734_v46 = vadd.f32 %v2891_v61, %v2541_v32  ;;  %v8740_v8 = vadd.f32 %v2905_v63, %v2543_v29 }
 0x44e   :  { %v8736_v59 = vadd.f32 %v2906_v36, %v2537_v53  ;;  %v8738_v3 = vadd.f32 %v2908_v54, %v2539_v31  ;;  %v8742_v6 = vadd.f32 %v2907_v49, %v2545_v58  ;;  %v8746_v17 = vadd.f32 %v2909_v44, %v2547_v28 }
 0x44f   :  { %v2926_v12 = vmul.f32 0.5, %v8730_v42  ;;  %v2927_v60 = vmul.f32 0.5, %v8732_v52  ;;  %v2930_v10 = vmul.f32 0.5, %v8734_v46  ;;  %v2966_v62 = vrot.slane %v8730_v42, 1 }
 0x450   :  { %v2928_v20 = vmul.f32 0.5, %v8736_v59  ;;  %v2929_v61 = vmul.f32 0.5, %v8738_v3  ;;  %v2931_v63 = vmul.f32 0.5, %v8740_v8  ;;  %v2967_v53 = vrot.slane %v8732_v52, 1 }
 0x451   :  { %6973 = vtanh.f32 %v2926_v12  ;;  %v2932_v32 = vmul.f32 0.5, %v8742_v6  ;;  %v2968_v36 = vrot.slane %v8736_v59, 1  ;;  %v2933_v49 = vmul.f32 0.5, %v8746_v17 }
 0x452   :  { %6975 = vtanh.f32 %v2927_v60  ;;  %v2969_v54 = vrot.slane %v8738_v3, 1  ;;  %v2970_v44 = vrot.slane %v8734_v46, 1  ;;  %v2982_v31 = vmul.f32 0.5, %v2966_v62 }
 0x453   :  { %6977 = vtanh.f32 %v2928_v20  ;;  %v2971_v29 = vrot.slane %v8740_v8, 1  ;;  %v2983_v60 = vmul.f32 0.5, %v2967_v53  ;;  %v2972_v58 = vrot.slane %v8742_v6, 1 }
 0x454   :  { %6979 = vtanh.f32 %v2929_v61  ;;  %v2984_v28 = vmul.f32 0.5, %v2968_v36  ;;  %v2973_v12 = vrot.slane %v8746_v17, 1  ;;  %v2985_v20 = vmul.f32 0.5, %v2969_v54 }
 0x455   :  { %6981 = vtanh.f32 %v2930_v10  ;;  %v2986_v14 = vmul.f32 0.5, %v2970_v44  ;;  %v2987_v61 = vmul.f32 0.5, %v2971_v29  ;;  %v2988_v10 = vmul.f32 0.5, %v2972_v58 }
 0x456   :  { %6983 = vtanh.f32 %v2931_v63  ;;  %v2989_v16 = vmul.f32 0.5, %v2973_v12  ;;  %v3014_v62 = vrot.slane %v8730_v42, 2  ;;  %v3015_v63 = vrot.slane %v8732_v52, 2 }
 0x457   :  { %6985 = vtanh.f32 %v2932_v32  ;;  %v3016_v53 = vrot.slane %v8736_v59, 2  ;;  %v3017_v36 = vrot.slane %v8738_v3, 2  ;;  %v3038_v54 = vrot.slane %v8730_v42, 3 }
 0x458   :  { %6987 = vtanh.f32 %v2933_v49  ;;  %v3018_v49 = vrot.slane %v8734_v46, 2  ;;  %v3039_v29 = vrot.slane %v8732_v52, 3  ;;  %v3021_v58 = vrot.slane %v8746_v17, 2 }
 0x459   :  { %6989 = vtanh.f32 %v2982_v31  ;;  %v3019_v31 = vrot.slane %v8740_v8, 2  ;;  %v3041_v12 = vrot.slane %v8738_v3, 3  ;;  %v3042_v42 = vrot.slane %v8734_v46, 3 }
 0x45a   :  { %6991 = vtanh.f32 %v2983_v60  ;;  %v3045_v52 = vrot.slane %v8746_v17, 3 }
 0x45b   :  { %6993 = vtanh.f32 %v2984_v28  ;;  %v3040_v28 = vrot.slane %v8736_v59, 3  ;;  %v3055_v59 = vmul.f32 0.5, %v3039_v29  ;;  %v3057_v46 = vmul.f32 0.5, %v3041_v12 }
 0x45c   :  { %6995 = vtanh.f32 %v2985_v20  ;;  %v3061_v17 = vmul.f32 0.5, %v3045_v52 }
 0x45d   :  { %6997 = vtanh.f32 %v2986_v14  ;;  %v3020_v14 = vrot.slane %v8742_v6, 2 }
 0x45e   :  { %v6974_v32 = vpop.eup %6973  ;;  %6999 = vtanh.f32 %v2987_v61  ;;  %v3043_v61 = vrot.slane %v8740_v8, 3  ;;  %v3058_v8 = vmul.f32 0.5, %v3042_v42 }
 0x45f   :  { %v6976_v44 = vpop.eup %6975  ;;  %7001 = vtanh.f32 %v2988_v10  ;;  %v3044_v10 = vrot.slane %v8742_v6, 3  ;;  %v2942_v27 = vadd.f32 1.0, %v6974_v32 }
 0x460   :  { %v6978_v60 = vpop.eup %6977  ;;  %7003 = vtanh.f32 %v2989_v16  ;;  %v3054_v16 = vmul.f32 0.5, %v3038_v54  ;;  %v2943_v26 = vadd.f32 1.0, %v6976_v44  ;;  %v3059_v6 = vmul.f32 0.5, %v3043_v61 }
 0x461   :  { %v6980_v20 = vpop.eup %6979  ;;  %7005 = vtanh.f32 %v3014_v62  ;;  %v2944_v35 = vadd.f32 1.0, %v6978_v60  ;;  %v3056_v62 = vmul.f32 0.5, %v3040_v28  ;;  %v3060_v45 = vmul.f32 0.5, %v3044_v10 }
 0x462   :  { %v6982_v48 = vpop.eup %6981  ;;  %7007 = vtanh.f32 %v3015_v63  ;;  %v2945_v56 = vadd.f32 1.0, %v6980_v20  ;;  %v2950_v57 = vmul.f32 0.5, %v2942_v27  ;;  %v2951_v44 = vmul.f32 0.5, %v2943_v26 }
 0x463   :  { %v6984_v47 = vpop.eup %6983  ;;  %7009 = vtanh.f32 %v3016_v53  ;;  %v2946_v63 = vadd.f32 1.0, %v6982_v48  ;;  %v2952_v60 = vmul.f32 0.5, %v2944_v35 }
 0x464   :  { %v6986_v3 = vpop.eup %6985  ;;  %7011 = vtanh.f32 %v3017_v36  ;;  %v2947_v20 = vadd.f32 1.0, %v6984_v47  ;;  %v2953_v36 = vmul.f32 0.5, %v2945_v56 }
 0x465   :  { %v6988_v33 = vpop.eup %6987  ;;  %7013 = vtanh.f32 %v3018_v49  ;;  %v2948_v49 = vadd.f32 1.0, %v6986_v3  ;;  %v2954_v48 = vmul.f32 0.5, %v2946_v63 }
 0x466   :  { %v6990_v32 = vpop.eup %6989  ;;  %7015 = vtanh.f32 %v3019_v31  ;;  %v2949_v26 = vadd.f32 1.0, %v6988_v33  ;;  %v2955_v47 = vmul.f32 0.5, %v2947_v20 }
 0x467   :  { %v6992_v54 = vpop.eup %6991  ;;  %v2998_v53 = vadd.f32 1.0, %v6990_v32  ;;  %7017 = vtanh.f32 %v3020_v14 }
 0x468   :  { %v6994_v29 = vpop.eup %6993  ;;  %v2999_v28 = vadd.f32 1.0, %v6992_v54  ;;  %7019 = vtanh.f32 %v3021_v58 }
 0x469   :  { %v6996_v12 = vpop.eup %6995  ;;  %v3000_v42 = vadd.f32 1.0, %v6994_v29  ;;  %v3006_v61 = vmul.f32 0.5, %v2998_v53  ;;  %7021 = vtanh.f32 %v3054_v16 }
 0x46a   :  { %v6998_v10 = vpop.eup %6997  ;;  %v3001_v27 = vadd.f32 1.0, %v6996_v12  ;;  %v3007_v31 = vmul.f32 0.5, %v2999_v28  ;;  %7023 = vtanh.f32 %v3055_v59 }
 0x46b   :  { %v7000_v52 = vpop.eup %6999  ;;  %v3002_v35 = vadd.f32 1.0, %v6998_v10  ;;  %v3008_v32 = vmul.f32 0.5, %v3000_v42  ;;  %7025 = vtanh.f32 %v3056_v62  ;;  %v3086_v16 = vmul.f32 %v3006_v61, %v8419_v50 }
 0x46c   :  { %v7002_v14 = vpop.eup %7001  ;;  %v3003_v56 = vadd.f32 1.0, %v7000_v52  ;;  %v3009_v54 = vmul.f32 0.5, %v3001_v27  ;;  %7027 = vtanh.f32 %v3057_v46  ;;  %v3087_v33 = vmul.f32 %v3007_v31, %v8422_v9 }
 0x46d   :  { %v7004_v58 = vpop.eup %7003  ;;  %v3004_v3 = vadd.f32 1.0, %v7002_v14  ;;  %v3010_v29 = vmul.f32 0.5, %v3002_v35  ;;  %7029 = vtanh.f32 %v3058_v8  ;;  %v3088_v62 = vmul.f32 %v3008_v32, %v8425_v1 }
 0x46e   :  { %v7006_v63 = vpop.eup %7005  ;;  %v3005_v53 = vadd.f32 1.0, %v7004_v58  ;;  %v3011_v28 = vmul.f32 0.5, %v3003_v56  ;;  %7031 = vtanh.f32 %v3059_v6  ;;  %v3089_v10 = vmul.f32 %v3009_v54, %v8429_v0 }
 0x46f   :  { %v7008_v59 = vpop.eup %7007  ;;  %v3012_v12 = vmul.f32 0.5, %v3004_v3  ;;  %7033 = vtanh.f32 %v3060_v45  ;;  %v3094_v20 = vmul.f32 %v7006_v63, %v2950_v57  ;;  %v2956_v50 = vmul.f32 0.5, %v2948_v49 }
 0x470   :  { %v7010_v42 = vpop.eup %7009  ;;  %v3013_v46 = vmul.f32 0.5, %v3005_v53  ;;  %7035 = vtanh.f32 %v3061_v17  ;;  %v3095_v8 = vmul.f32 %v7008_v59, %v2951_v44  ;;  %v3090_v61 = vmul.f32 %v3010_v29, %v8432_v41 }
 0x471   :  { %v7012_v27 = vpop.eup %7011  ;;  %v3096_v52 = vmul.f32 %v7010_v42, %v2952_v60  ;;  %v8783_v6 = vadd.f32 %v3094_v20, %v3086_v16  ;;  %v2957_v31 = vmul.f32 0.5, %v2949_v26  ;;  %v3091_v45 = vmul.f32 %v3011_v28, %v8435_v21 }
 0x472   :  { %v7014_v9 = vpop.eup %7013  ;;  %v3097_v35 = vmul.f32 %v7012_v27, %v2953_v36  ;;  %v8786_v1 = vadd.f32 %v3095_v8, %v3087_v33  ;;  %v3092_v17 = vmul.f32 %v3012_v12, %v8438_v22  ;;  %v3093_v41 = vmul.f32 %v3013_v46, %v8441_v23 }
 0x473   :  { %v7016_v57 = vpop.eup %7015  ;;  %v3098_v32 = vmul.f32 %v7014_v9, %v2954_v48  ;;  %v8789_v0 = vadd.f32 %v3096_v52, %v3088_v62  ;;  %7037 = vtanh.f32 %v8783_v6 }
 0x474   :  { %v7018_v44 = vpop.eup %7017  ;;  %v3099_v60 = vmul.f32 %v7016_v57, %v2955_v47  ;;  %v8793_v49 = vadd.f32 %v3097_v35, %v3089_v10  ;;  %7039 = vtanh.f32 %v8786_v1 }
 0x475   :  { %v7020_v21 = vpop.eup %7019  ;;  %v3100_v36 = vmul.f32 %v7018_v44, %v2956_v50  ;;  %v8796_v26 = vadd.f32 %v3098_v32, %v3090_v61  ;;  %7041 = vtanh.f32 %v8789_v0 }
 0x476   :  { %v7022_v22 = vpop.eup %7021  ;;  %v3101_v48 = vmul.f32 %v7020_v21, %v2957_v31  ;;  %v8799_v14 = vadd.f32 %v3099_v60, %v3091_v45  ;;  %7043 = vtanh.f32 %v8793_v49 }
 0x477   :  { %v7024_v56 = vpop.eup %7023  ;;  %v8802_v54 = vadd.f32 %v3100_v36, %v3092_v17  ;;  %7045 = vtanh.f32 %v8796_v26  ;;  %v3070_v16 = vadd.f32 1.0, %v7022_v22 }
 0x478   :  { %v7026_v23 = vpop.eup %7025  ;;  %v8805_v47 = vadd.f32 %v3101_v48, %v3093_v41  ;;  %7047 = vtanh.f32 %v8799_v14  ;;  %v3071_v53 = vadd.f32 1.0, %v7024_v56 }
 0x479   :  { %v7028_v58 = vpop.eup %7027  ;;  %7049 = vtanh.f32 %v8802_v54  ;;  %v3072_v33 = vadd.f32 1.0, %v7026_v23  ;;  %v3078_v62 = vmul.f32 0.5, %v3070_v16 }
 0x47a   :  { %v7030_v3 = vpop.eup %7029  ;;  %7051 = vtanh.f32 %v8805_v47  ;;  %v3073_v59 = vadd.f32 1.0, %v7028_v58  ;;  %v3079_v46 = vmul.f32 0.5, %v3071_v53 }
 0x47b   :  { %v7032_v29 = vpop.eup %7031  ;;  %v3074_v12 = vadd.f32 1.0, %v7030_v3  ;;  %v3080_v50 = vmul.f32 0.5, %v3072_v33 }
 0x47c   :  { %v7034_v63 = vpop.eup %7033  ;;  %v3075_v20 = vadd.f32 1.0, %v7032_v29  ;;  %v3081_v9 = vmul.f32 0.5, %v3073_v59 }
 0x47d   :  { %v7036_v28 = vpop.eup %7035  ;;  %v3076_v10 = vadd.f32 1.0, %v7034_v63  ;;  %v3082_v35 = vmul.f32 0.5, %v3074_v12 }
 0x47e   :  { %v3077_v8 = vadd.f32 1.0, %v7036_v28  ;;  %v3083_v17 = vmul.f32 0.5, %v3075_v20 }
 0x47f   :  { %v3084_v60 = vmul.f32 0.5, %v3076_v10 }
 0x480   :  { %v7038_v42 = vpop.eup %7037  ;;  %v3085_v21 = vmul.f32 0.5, %v3077_v8 }
 0x481   :  { %v7040_v27 = vpop.eup %7039  ;;  %v3118_v61 = vmul.f32 %v7038_v42, %v3078_v62 }
 0x482   :  { %v7042_v52 = vpop.eup %7041  ;;  %v3119_v31 = vmul.f32 %v7040_v27, %v3079_v46  ;;  %v3200_v46 = vld [vmem:[%s9822_s4] sm:$0x2] }
 0x483   :  { %v7044_v45 = vpop.eup %7043  ;;  %v8810_v57 = vpack.c.bf16 %v3118_v61, %v3118_v61  ;;  %v3120_v32 = vmul.f32 %v7042_v52, %v3080_v50  ;;  %v3203_v61 = vld [vmem:[%s9822_s4 + $0x4] sm:$0x2] }
 0x484   :  { %v7046_v44 = vpop.eup %7045  ;;  %v3127_v41 = vpack.c.bf16 %v3119_v31, %v3119_v31  ;;  %v3121_v36 = vmul.f32 %v7044_v45, %v3081_v9 }
 0x485   :  { %v7048_v22 = vpop.eup %7047  ;;  %v3159_v48 = vshll.u32 %v8810_v57, 16  ;;  %v3122_v56 = vmul.f32 %v7046_v44, %v3082_v35  ;;  %v3128_v23 = vpack.c.bf16 %v3120_v32, %v3120_v32  ;;  %v3142_v58 = vunpack.c.l.b16 %v8810_v57 }
 0x486   :  { %v7050_v3 = vpop.eup %7049  ;;  %v3163_v29 = vshll.u32 %v3127_v41, 16  ;;  %v3123_v63 = vmul.f32 %v7048_v22, %v3083_v17  ;;  %v3129_v53 = vpack.c.bf16 %v3121_v36, %v3121_v36  ;;  %v3143_v28 = vunpack.c.l.b16 %v3127_v41 }
 0x487   :  { %v7052_v33 = vpop.eup %7051  ;;  %v3161_v59 = vrot.slane %v3159_v48, 7  ;;  %v3124_v12 = vmul.f32 %v7050_v3, %v3084_v60  ;;  %v3130_v62 = vpack.c.bf16 %v3122_v56, %v3122_v56  ;;  %v3144_v20 = vunpack.c.l.b16 %v3128_v23 }
 0x488   :  { %v3165_v42 = vrot.slane %v3163_v29, 7  ;;  %v3125_v10 = vmul.f32 %v7052_v33, %v3085_v21  ;;  %v3131_v8 = vpack.c.bf16 %v3123_v63, %v3123_v63  ;;  %v3145_v27 = vunpack.c.l.b16 %v3129_v53  ;;  %v3206_v21 = vld [vmem:[%s9822_s4 + $0x8] sm:$0x2] }
 0x489   :  { %v3201_v50 = vsel %vm8816_vm15, %v3161_v59, %v3200_v46  ;;  %v3132_v52 = vpack.c.bf16 %v3124_v12, %v3124_v12  ;;  %v3146_v9 = vunpack.c.l.b16 %v3130_v62  ;;  %v3167_v31 = vshll.u32 %v3128_v23, 16  ;;  %v3209_v23 = vld [vmem:[%s9822_s4 + $0xc] sm:$0x2] }
 0x48a   :  { %3202 = vst [vmem:[%s9822_s4] sm:$0x2] %v3201_v50  ;;  %v3204_v45 = vsel %vm8816_vm15, %v3165_v42, %v3203_v61  ;;  %v3133_v35 = vpack.c.bf16 %v3125_v10, %v3125_v10  ;;  %v3147_v57 = vunpack.c.l.b16 %v3131_v8  ;;  %v3171_v17 = vshll.u32 %v3129_v53, 16  ;;  %v3212_v53 = vld [vmem:[%s9822_s4 + $0x10] sm:$0x2]  ;;  %v3215_v42 = vld [vmem:[%s9822_s4 + $0x14] sm:$0x2] }
 0x48b   :  { %3205 = vst [vmem:[%s9822_s4 + $0x4] sm:$0x2] %v3204_v45  ;;  %v3148_v32 = vunpack.c.l.b16 %v3132_v52  ;;  %v3169_v44 = vrot.slane %v3167_v31, 7  ;;  %v3175_v41 = vshll.u32 %v3130_v62, 16  ;;  %v3179_v60 = vshll.u32 %v3131_v8, 16 }
 0x48c   :  { %v3149_v36 = vunpack.c.l.b16 %v3133_v35  ;;  %v3173_v22 = vrot.slane %v3171_v17, 7  ;;  %v3183_v48 = vshll.u32 %v3132_v52, 16  ;;  %v3187_v56 = vshll.u32 %v3133_v35, 16  ;;  %v3218_v8 = vld [vmem:[%s9822_s4 + $0x18] sm:$0x2] }
 0x48d   :  { %v3177_v3 = vrot.slane %v3175_v41, 7  ;;  %v3181_v29 = vrot.slane %v3179_v60, 7  ;;  %v3207_v63 = vsel %vm8816_vm15, %v3169_v44, %v3206_v21  ;;  %v3272_v33 = vrot.slane %v3143_v28, 7  ;;  %v3221_v50 = vld [vmem:[%s9822_s4 + $0x1c] sm:$0x2] }
 0x48e   :  { %v3185_v59 = vrot.slane %v3183_v48, 7  ;;  %v3189_v12 = vrot.slane %v3187_v56, 7  ;;  %3208 = vst [vmem:[%s9822_s4 + $0x8] sm:$0x2] %v3207_v63  ;;  %v3210_v62 = vsel %vm8816_vm15, %v3173_v22, %v3209_v23  ;;  %v3274_v46 = vrot.slane %v3144_v20, 6 }
 0x48f   :  { %3211 = vst [vmem:[%s9822_s4 + $0xc] sm:$0x2] %v3210_v62  ;;  %v3213_v28 = vsel %vm8816_vm15, %v3177_v3, %v3212_v53  ;;  %v3216_v10 = vsel %vm8816_vm15, %v3181_v29, %v3215_v42  ;;  %v3273_v20 = vsel %vm1221_vm2, %v3272_v33, %v3142_v58  ;;  %v3276_v61 = vrot.slane %v3145_v27, 5 }
 0x490   :  { %3214 = vst [vmem:[%s9822_s4 + $0x10] sm:$0x2] %v3213_v28  ;;  %3217 = vst [vmem:[%s9822_s4 + $0x14] sm:$0x2] %v3216_v10  ;;  %v3219_v52 = vsel %vm8816_vm15, %v3185_v59, %v3218_v8  ;;  %v3222_v31 = vsel %vm8816_vm15, %v3189_v12, %v3221_v50  ;;  %v3275_v45 = vsel %vm1224_vm4, %v3274_v46, %v3273_v20  ;;  %v3278_v35 = vrot.slane %v3146_v9, 4 }
 0x491   :  { %3220 = vst [vmem:[%s9822_s4 + $0x18] sm:$0x2] %v3219_v52  ;;  %3223 = vst [vmem:[%s9822_s4 + $0x1c] sm:$0x2] %v3222_v31  ;;  %v3277_v58 = vsel %vm1227_vm5, %v3276_v61, %v3275_v45  ;;  %v3280_v27 = vrot.slane %v3147_v57, 3  ;;  %v3282_v44 = vrot.slane %v3148_v32, 2 }
 0x492   :  { %v3279_v17 = vsel %vm1230_vm6, %v3278_v35, %v3277_v58  ;;  %v3284_v41 = vrot.slane %v3149_v36, 1  ;;  %v9922_v36 = vld [vmem:[#allocation5_spill] sm:$0xff] }
 0x493   :  { %v3281_v16 = vsel %vm1233_vm7, %v3280_v27, %v3279_v17  ;;  %v3225_v28 = vld [vmem:[#allocation2 + $0x4] ss:$8 sm:$0xf] }
 0x494   :  { %v3283_v60 = vsel %vm1236_vm8, %v3282_v44, %v3281_v16  ;;  %v3227_v10 = vld [vmem:[#allocation2 + $0x24] ss:$8 sm:$0xf] }
 0x495   :  { %v3285_v9 = vsel %vm1239_vm9, %v3284_v41, %v3283_v60  ;;  %v3229_v8 = vld [vmem:[#allocation2 + $0x44] ss:$8 sm:$0xf] }
 0x496   :  { %v3286_v21 = vpack.c.b16 %v3285_v9, %v3285_v9  ;;  %v3233_v50 = vld [vmem:[#allocation2 + $0x84] ss:$8 sm:$0xf] }
 0x497   :  { %v3231_v45 = vld [vmem:[#allocation2 + $0x64] ss:$8 sm:$0xf] }
 0x498   :  { %3481 = vmatmul.mubr.bf16.vlgmr.msra.gmra.mxu0 %v3286_v21  ;;  %3522 = vmatmul.mubr.bf16.vlgmr.msra.gmra.mxu1 %v3286_v21  ;;  %v3235_v35 = vld [vmem:[#allocation2 + $0xa4] ss:$8 sm:$0xf] }
 0x499   :  { %4118 = vmatpush1.bf16.msra.mxu0 %v8541_v19  ;;  %4159 = vmatpush1.bf16.msra.mxu1 %v8546_v30  ;;  %v9911_v19 = vld [vmem:[#allocation6_spill] sm:$0xff]  ;;  %v9912_v30 = vld [vmem:[#allocation7_spill] sm:$0xff] }
 0x49a   :  { %4119 = vmatprep.subr.bf16.mxu0 %v8555_v13  ;;  %4160 = vmatprep.subr.bf16.mxu1 %v8560_v39  ;;  %v9913_v13 = vld [vmem:[#allocation8_spill] sm:$0xff]  ;;  %v9914_v39 = vld [vmem:[#allocation9_spill] sm:$0xff] }
 0x49b   :  { %4149 = vmatprep.mubr.bf16.mxu0 %v9882_v40  ;;  %4190 = vmatprep.mubr.bf16.mxu1 %v9882_v40  ;;  %v3237_v44 = vld [vmem:[#allocation2 + $0xc4] ss:$8 sm:$0xf] }
 0x49c   :  { %v3239_v9 = vld [vmem:[#allocation2 + $0xe4] ss:$8 sm:$0xf] }
 0x49d   :  { %4120 = vmatpush1.bf16.msra.mxu0 %v8565_v11  ;;  %4161 = vmatpush1.bf16.msra.mxu1 %v8570_v7  ;;  %v9915_v11 = vld [vmem:[#allocation10_spill] sm:$0xff]  ;;  %v9916_v7 = vld [vmem:[#allocation11_spill] sm:$0xff] }
 0x49e   :  { %4121 = vmatprep.subr.bf16.mxu0 %v8579_v4  ;;  %4162 = vmatprep.subr.bf16.mxu1 %v8584_v43  ;;  %v9917_v4 = vld [vmem:[#allocation12_spill] sm:$0xff]  ;;  %v9918_v43 = vld [vmem:[#allocation13_spill] sm:$0xff] }
 0x4a1   :  { %4122 = vmatpush1.bf16.msra.mxu0 %v8589_v34  ;;  %4163 = vmatpush1.bf16.msra.mxu1 %v8594_v37  ;;  %v9919_v34 = vld [vmem:[#allocation14_spill] sm:$0xff]  ;;  %v9920_v37 = vld [vmem:[#allocation15_spill] sm:$0xff] }
 0x4a2   :  { %4123 = vmatprep.subr.bf16.mxu0 %v8601_v38  ;;  %4164 = vmatprep.subr.bf16.mxu1 %v8606_v24  ;;  %v9921_v38 = vld [vmem:[#allocation16_spill] sm:$0xff] }
 0x4a5   :  { %4124 = vmatpush1.bf16.msra.mxu0 %v8613_v25  ;;  %4165 = vmatpush1.bf16.msra.mxu1 %v8618_v15 }
 0x4a6   :  { %4125 = vmatprep.subr.bf16.mxu0 %v8625_v5  ;;  %4166 = vmatprep.subr.bf16.mxu1 %v8630_v55 }
 0x4a9   :  { %4126 = vmatpush1.bf16.msra.mxu0 %v8637_v51  ;;  %4167 = vmatpush1.bf16.msra.mxu1 %v8642_v18 }
 0x4aa   :  { %4127 = vmatprep.subr.bf16.mxu0 %v8649_v2  ;;  %4168 = vmatprep.subr.bf16.mxu1 %v9911_v19 }
 0x4ad   :  { %4128 = vmatpush1.bf16.msra.mxu0 %v9912_v30  ;;  %4169 = vmatpush1.bf16.msra.mxu1 %v9913_v13 }
 0x4ae   :  { %4129 = vmatprep.subr.bf16.mxu0 %v9914_v39  ;;  %4170 = vmatprep.subr.bf16.mxu1 %v9915_v11 }
 0x4b1   :  { %4130 = vmatpush1.bf16.msra.mxu0 %v9916_v7  ;;  %4171 = vmatpush1.bf16.msra.mxu1 %v9917_v4 }
 0x4b2   :  { %4131 = vmatprep.subr.bf16.mxu0 %v9918_v43  ;;  %4172 = vmatprep.subr.bf16.mxu1 %v9919_v34 }
 0x4b5   :  { %4132 = vmatpush1.bf16.msra.mxu0 %v9920_v37  ;;  %4173 = vmatpush1.bf16.msra.mxu1 %v9921_v38 }
 0x558   :  { %v3482_v24 = vpop.f32.mrf.mxu0  ;;  %v3523_v25 = vpop.f32.mrf.mxu1 }
 0x55a   :  { %v3484_v15 = vpop.f32.mrf.mxu0  ;;  %v3525_v5 = vpop.f32.mrf.mxu1 }
 0x55b   :  { %v3534_v55 = vcombine.low %v3482_v24, %v3484_v15  ;;  %v3535_v51 = vcombine.high %v3482_v24, %v3484_v15  ;;  %v3536_v18 = vcombine.low %v3523_v25, %v3525_v5  ;;  %v3537_v2 = vcombine.high %v3523_v25, %v3525_v5 }
 0x55c   :  { %v3486_v57 = vpop.f32.mrf.mxu0  ;;  %v3527_v32 = vpop.f32.mrf.mxu1 }
 0x55d   :  { %v3544_v22 = vrot.slane %v3534_v55, %v9922_v36  ;;  %v3551_v48 = vrot.slane %v3535_v51, %v9922_v36  ;;  %v3558_v56 = vrot.slane %v3536_v18, %v9922_v36  ;;  %v3565_v23 = vrot.slane %v3537_v2, %v9922_v36 }
 0x55e   :  { %v3487_v3 = vpop.f32.mrf.mxu0  ;;  %v3528_v29 = vpop.f32.mrf.mxu1 }
 0x55f   :  { %v3566_v63 = vcombine.low %v3544_v22, %v3558_v56  ;;  %v3567_v53 = vcombine.high %v3544_v22, %v3558_v56  ;;  %v3568_v33 = vcombine.low %v3551_v48, %v3565_v23  ;;  %v3569_v59 = vcombine.high %v3551_v48, %v3565_v23 }
 0x561   :  { %v3576_v12 = vrot.slane %v3566_v63, %v9922_v36  ;;  %v3583_v62 = vrot.slane %v3568_v33, %v9922_v36  ;;  %v3590_v42 = vrot.slane %v3567_v53, %v9922_v36  ;;  %v3597_v46 = vrot.slane %v3569_v59, %v9922_v36 }
 0x563   :  { %v3598_v20 = vcombine.high %v3576_v12, %v3576_v12  ;;  %v3599_v61 = vcombine.high %v3583_v62, %v3583_v62  ;;  %v3600_v52 = vcombine.high %v3590_v42, %v3590_v42  ;;  %v3601_v31 = vcombine.high %v3597_v46, %v3597_v46 }
 0x564   :  { %v8931_v58 = vadd.f32 %v3576_v12, %v3225_v28  ;;  %v8933_v27 = vadd.f32 %v3590_v42, %v3227_v10  ;;  %v8935_v17 = vadd.f32 %v3583_v62, %v3233_v50  ;;  %v8941_v60 = vadd.f32 %v3597_v46, %v3235_v35 }
 0x565   :  { %v8937_v16 = vadd.f32 %v3598_v20, %v3229_v8  ;;  %v8939_v41 = vadd.f32 %v3600_v52, %v3231_v45  ;;  %v8943_v21 = vadd.f32 %v3599_v61, %v3237_v44  ;;  %v8947_v13 = vadd.f32 %v3601_v31, %v3239_v9 }
 0x566   :  { %v3618_v19 = vmul.f32 0.5, %v8931_v58  ;;  %v3619_v30 = vmul.f32 0.5, %v8933_v27  ;;  %v3622_v7 = vmul.f32 0.5, %v8935_v17  ;;  %v3658_v4 = vrot.slane %v8931_v58, 1 }
 0x567   :  { %v3620_v39 = vmul.f32 0.5, %v8937_v16  ;;  %v3621_v11 = vmul.f32 0.5, %v8939_v41  ;;  %v3623_v43 = vmul.f32 0.5, %v8941_v60  ;;  %v3659_v34 = vrot.slane %v8933_v27, 1 }
 0x568   :  { %7053 = vtanh.f32 %v3618_v19  ;;  %v3624_v37 = vmul.f32 0.5, %v8943_v21  ;;  %v3660_v38 = vrot.slane %v8937_v16, 1  ;;  %v3625_v24 = vmul.f32 0.5, %v8947_v13 }
 0x569   :  { %7055 = vtanh.f32 %v3619_v30  ;;  %v3661_v25 = vrot.slane %v8939_v41, 1  ;;  %v3662_v15 = vrot.slane %v8935_v17, 1  ;;  %v3674_v5 = vmul.f32 0.5, %v3658_v4 }
 0x56a   :  { %7057 = vtanh.f32 %v3620_v39  ;;  %v3663_v55 = vrot.slane %v8941_v60, 1  ;;  %v3675_v51 = vmul.f32 0.5, %v3659_v34  ;;  %v3664_v18 = vrot.slane %v8943_v21, 1 }
 0x56b   :  { %7059 = vtanh.f32 %v3621_v11  ;;  %v3676_v2 = vmul.f32 0.5, %v3660_v38  ;;  %v3665_v57 = vrot.slane %v8947_v13, 1  ;;  %v3677_v32 = vmul.f32 0.5, %v3661_v25 }
 0x56c   :  { %7061 = vtanh.f32 %v3622_v7  ;;  %v3678_v22 = vmul.f32 0.5, %v3662_v15  ;;  %v3679_v48 = vmul.f32 0.5, %v3663_v55  ;;  %v3680_v56 = vmul.f32 0.5, %v3664_v18 }
 0x56d   :  { %7063 = vtanh.f32 %v3623_v43  ;;  %v3681_v23 = vmul.f32 0.5, %v3665_v57  ;;  %v3706_v3 = vrot.slane %v8931_v58, 2  ;;  %v3707_v29 = vrot.slane %v8933_v27, 2 }
 0x56e   :  { %7065 = vtanh.f32 %v3624_v37  ;;  %v3708_v63 = vrot.slane %v8937_v16, 2  ;;  %v3709_v33 = vrot.slane %v8939_v41, 2  ;;  %v3730_v59 = vrot.slane %v8931_v58, 3 }
 0x56f   :  { %7067 = vtanh.f32 %v3625_v24  ;;  %v3731_v12 = vrot.slane %v8933_v27, 3  ;;  %v3710_v42 = vrot.slane %v8935_v17, 2  ;;  %v3732_v46 = vrot.slane %v8937_v16, 3 }
 0x570   :  { %7069 = vtanh.f32 %v3674_v5  ;;  %v3733_v28 = vrot.slane %v8939_v41, 3  ;;  %v3711_v8 = vrot.slane %v8941_v60, 2  ;;  %v3734_v50 = vrot.slane %v8935_v17, 3 }
 0x571   :  { %7071 = vtanh.f32 %v3675_v51  ;;  %v3735_v20 = vrot.slane %v8941_v60, 3  ;;  %v3712_v52 = vrot.slane %v8943_v21, 2  ;;  %v3713_v31 = vrot.slane %v8947_v13, 2 }
 0x572   :  { %7073 = vtanh.f32 %v3676_v2  ;;  %v3736_v45 = vrot.slane %v8943_v21, 3  ;;  %v3737_v58 = vrot.slane %v8947_v13, 3  ;;  %v3746_v27 = vmul.f32 0.5, %v3730_v59 }
 0x573   :  { %7075 = vtanh.f32 %v3677_v32  ;;  %v3747_v44 = vmul.f32 0.5, %v3731_v12  ;;  %v3748_v17 = vmul.f32 0.5, %v3732_v46  ;;  %v3749_v9 = vmul.f32 0.5, %v3733_v28 }
 0x574   :  { %7077 = vtanh.f32 %v3678_v22  ;;  %v3750_v30 = vmul.f32 0.5, %v3734_v50  ;;  %v3751_v39 = vmul.f32 0.5, %v3735_v20  ;;  %v3752_v21 = vmul.f32 0.5, %v3736_v45 }
 0x575   :  { %v7054_v53 = vpop.eup %7053  ;;  %7079 = vtanh.f32 %v3679_v48  ;;  %v3753_v37 = vmul.f32 0.5, %v3737_v58 }
 0x576   :  { %v7056_v62 = vpop.eup %7055  ;;  %7081 = vtanh.f32 %v3680_v56  ;;  %v3634_v41 = vadd.f32 1.0, %v7054_v53 }
 0x577   :  { %v7058_v10 = vpop.eup %7057  ;;  %7083 = vtanh.f32 %v3681_v23  ;;  %v3635_v19 = vadd.f32 1.0, %v7056_v62 }
 0x578   :  { %v7060_v61 = vpop.eup %7059  ;;  %7085 = vtanh.f32 %v3706_v3  ;;  %v3636_v7 = vadd.f32 1.0, %v7058_v10  ;;  %v3642_v25 = vmul.f32 0.5, %v3634_v41 }
 0x579   :  { %v7062_v35 = vpop.eup %7061  ;;  %7087 = vtanh.f32 %v3707_v29  ;;  %v3637_v4 = vadd.f32 1.0, %v7060_v61  ;;  %v3643_v51 = vmul.f32 0.5, %v3635_v19 }
 0x57a   :  { %v7064_v16 = vpop.eup %7063  ;;  %7089 = vtanh.f32 %v3708_v63  ;;  %v3638_v34 = vadd.f32 1.0, %v7062_v35  ;;  %v3644_v57 = vmul.f32 0.5, %v3636_v7 }
 0x57b   :  { %v7066_v60 = vpop.eup %7065  ;;  %7091 = vtanh.f32 %v3709_v33  ;;  %v3639_v13 = vadd.f32 1.0, %v7064_v16  ;;  %v3645_v32 = vmul.f32 0.5, %v3637_v4 }
 0x57c   :  { %v7068_v11 = vpop.eup %7067  ;;  %7093 = vtanh.f32 %v3710_v42  ;;  %v3640_v24 = vadd.f32 1.0, %v7066_v60  ;;  %v3646_v23 = vmul.f32 0.5, %v3638_v34 }
 0x57d   :  { %v7070_v43 = vpop.eup %7069  ;;  %7095 = vtanh.f32 %v3711_v8  ;;  %v3641_v55 = vadd.f32 1.0, %v7068_v11  ;;  %v3647_v3 = vmul.f32 0.5, %v3639_v13 }
 0x57e   :  { %v7072_v38 = vpop.eup %7071  ;;  %v3690_v15 = vadd.f32 1.0, %v7070_v43  ;;  %7097 = vtanh.f32 %v3712_v52  ;;  %v3648_v33 = vmul.f32 0.5, %v3640_v24 }
 0x57f   :  { %v7074_v5 = vpop.eup %7073  ;;  %v3691_v18 = vadd.f32 1.0, %v7072_v38  ;;  %7099 = vtanh.f32 %v3713_v31  ;;  %v3649_v42 = vmul.f32 0.5, %v3641_v55 }
 0x580   :  { %v7076_v2 = vpop.eup %7075  ;;  %v3692_v22 = vadd.f32 1.0, %v7074_v5  ;;  %v3698_v48 = vmul.f32 0.5, %v3690_v15  ;;  %7101 = vtanh.f32 %v3746_v27 }
 0x581   :  { %v7078_v56 = vpop.eup %7077  ;;  %v3693_v29 = vadd.f32 1.0, %v7076_v2  ;;  %v3699_v63 = vmul.f32 0.5, %v3691_v18  ;;  %7103 = vtanh.f32 %v3747_v44 }
 0x582   :  { %v7080_v53 = vpop.eup %7079  ;;  %v3694_v59 = vadd.f32 1.0, %v7078_v56  ;;  %v3700_v12 = vmul.f32 0.5, %v3692_v22  ;;  %7105 = vtanh.f32 %v3748_v17  ;;  %v3778_v20 = vmul.f32 %v3698_v48, %v8783_v6 }
 0x583   :  { %v7082_v62 = vpop.eup %7081  ;;  %v3695_v46 = vadd.f32 1.0, %v7080_v53  ;;  %v3701_v28 = vmul.f32 0.5, %v3693_v29  ;;  %7107 = vtanh.f32 %v3749_v9  ;;  %v3779_v45 = vmul.f32 %v3699_v63, %v8786_v1 }
 0x584   :  { %v7084_v10 = vpop.eup %7083  ;;  %v3696_v8 = vadd.f32 1.0, %v7082_v62  ;;  %v3702_v50 = vmul.f32 0.5, %v3694_v59  ;;  %7109 = vtanh.f32 %v3750_v30  ;;  %v3780_v27 = vmul.f32 %v3700_v12, %v8789_v0 }
 0x585   :  { %v7086_v61 = vpop.eup %7085  ;;  %v3697_v52 = vadd.f32 1.0, %v7084_v10  ;;  %v3703_v31 = vmul.f32 0.5, %v3695_v46  ;;  %7111 = vtanh.f32 %v3751_v39  ;;  %v3781_v60 = vmul.f32 %v3701_v28, %v8793_v49 }
 0x586   :  { %v7088_v35 = vpop.eup %7087  ;;  %v3704_v58 = vmul.f32 0.5, %v3696_v8  ;;  %v3786_v16 = vmul.f32 %v7086_v61, %v3642_v25  ;;  %7113 = vtanh.f32 %v3752_v21  ;;  %v3782_v6 = vmul.f32 %v3702_v50, %v8796_v26 }
 0x587   :  { %v7090_v41 = vpop.eup %7089  ;;  %v3705_v44 = vmul.f32 0.5, %v3697_v52  ;;  %v3787_v17 = vmul.f32 %v7088_v35, %v3643_v51  ;;  %7115 = vtanh.f32 %v3753_v37  ;;  %v3783_v30 = vmul.f32 %v3703_v31, %v8799_v14 }
 0x588   :  { %v7092_v19 = vpop.eup %7091  ;;  %v3788_v11 = vmul.f32 %v7090_v41, %v3644_v57  ;;  %v8984_v9 = vadd.f32 %v3786_v16, %v3778_v20  ;;  %v3784_v39 = vmul.f32 %v3704_v58, %v8802_v54  ;;  %v3869_v58 = vld [vmem:[%s9822_s4] sm:$0x4] }
 0x589   :  { %v7094_v1 = vpop.eup %7093  ;;  %v3789_v7 = vmul.f32 %v7092_v19, %v3645_v32  ;;  %v8987_v0 = vadd.f32 %v3787_v17, %v3779_v45  ;;  %v3785_v26 = vmul.f32 %v3705_v44, %v8805_v47 }
 0x58a   :  { %v7096_v4 = vpop.eup %7095  ;;  %v3790_v43 = vmul.f32 %v7094_v1, %v3646_v23  ;;  %v8990_v49 = vadd.f32 %v3788_v11, %v3780_v27  ;;  %7117 = vtanh.f32 %v8984_v9 }
 0x58b   :  { %v7098_v21 = vpop.eup %7097  ;;  %v3791_v34 = vmul.f32 %v7096_v4, %v3647_v3  ;;  %v8994_v13 = vadd.f32 %v3789_v7, %v3781_v60  ;;  %7119 = vtanh.f32 %v8987_v0  ;;  %v3872_v60 = vld [vmem:[%s9822_s4 + $0x4] sm:$0x4] }
 0x58c   :  { %v7100_v14 = vpop.eup %7099  ;;  %v3792_v37 = vmul.f32 %v7098_v21, %v3648_v33  ;;  %v8997_v38 = vadd.f32 %v3790_v43, %v3782_v6  ;;  %7121 = vtanh.f32 %v8990_v49 }
 0x58d   :  { %v3793_v54 = vmul.f32 %v7100_v14, %v3649_v42  ;;  %v9000_v24 = vadd.f32 %v3791_v34, %v3783_v30  ;;  %7123 = vtanh.f32 %v8994_v13  ;;  %v7102_v47 = vpop.eup %7101 }
 0x58e   :  { %v9003_v25 = vadd.f32 %v3792_v37, %v3784_v39  ;;  %7125 = vtanh.f32 %v8997_v38  ;;  %v7104_v5 = vpop.eup %7103  ;;  %v3762_v18 = vadd.f32 1.0, %v7102_v47 }
 0x58f   :  { %v9006_v15 = vadd.f32 %v3793_v54, %v3785_v26  ;;  %7127 = vtanh.f32 %v9000_v24  ;;  %v7106_v55 = vpop.eup %7105  ;;  %v3763_v57 = vadd.f32 1.0, %v7104_v5  ;;  %v3875_v5 = vld [vmem:[%s9822_s4 + $0x8] sm:$0x4] }
 0x590   :  { %7129 = vtanh.f32 %v9003_v25  ;;  %v7108_v51 = vpop.eup %7107  ;;  %v3764_v22 = vadd.f32 1.0, %v7106_v55  ;;  %v3770_v29 = vmul.f32 0.5, %v3762_v18  ;;  %v3878_v55 = vld [vmem:[%s9822_s4 + $0xc] sm:$0x4] }
 0x591   :  { %7131 = vtanh.f32 %v9006_v15  ;;  %v7110_v2 = vpop.eup %7109  ;;  %v3765_v56 = vadd.f32 1.0, %v7108_v51  ;;  %v3771_v53 = vmul.f32 0.5, %v3763_v57 }
 0x592   :  { %v7112_v32 = vpop.eup %7111  ;;  %v3766_v3 = vadd.f32 1.0, %v7110_v2  ;;  %v3772_v12 = vmul.f32 0.5, %v3764_v22  ;;  %v3884_v22 = vld [vmem:[%s9822_s4 + $0x14] sm:$0x4] }
 0x593   :  { %v7114_v48 = vpop.eup %7113  ;;  %v3767_v33 = vadd.f32 1.0, %v7112_v32  ;;  %v3773_v28 = vmul.f32 0.5, %v3765_v56  ;;  %v3881_v32 = vld [vmem:[%s9822_s4 + $0x10] sm:$0x4] }
 0x594   :  { %v7116_v23 = vpop.eup %7115  ;;  %v3768_v42 = vadd.f32 1.0, %v7114_v48  ;;  %v3774_v20 = vmul.f32 0.5, %v3766_v3 }
 0x595   :  { %v3769_v8 = vadd.f32 1.0, %v7116_v23  ;;  %v3775_v27 = vmul.f32 0.5, %v3767_v33 }
 0x596   :  { %v3776_v17 = vmul.f32 0.5, %v3768_v42 }
 0x597   :  { %v7118_v63 = vpop.eup %7117  ;;  %v3777_v30 = vmul.f32 0.5, %v3769_v8 }
 0x598   :  { %v7120_v59 = vpop.eup %7119  ;;  %v3810_v62 = vmul.f32 %v7118_v63, %v3770_v29  ;;  %v3887_v29 = vld [vmem:[%s9822_s4 + $0x18] sm:$0x4] }
 0x599   :  { %v7122_v46 = vpop.eup %7121  ;;  %v3811_v10 = vmul.f32 %v7120_v59, %v3771_v53 }
 0x59a   :  { %v7124_v50 = vpop.eup %7123  ;;  %v9011_v61 = vpack.c.bf16 %v3810_v62, %v3810_v62  ;;  %v3812_v52 = vmul.f32 %v7122_v46, %v3772_v12  ;;  %v3890_v12 = vld [vmem:[%s9822_s4 + $0x1c] sm:$0x4] }
 0x59b   :  { %v7126_v31 = vpop.eup %7125  ;;  %v3819_v45 = vpack.c.bf16 %v3811_v10, %v3811_v10  ;;  %v3813_v16 = vmul.f32 %v7124_v50, %v3773_v28 }
 0x59c   :  { %v7128_v41 = vpop.eup %7127  ;;  %v3850_v44 = vrot.slane %v9011_v61, 6  ;;  %v3814_v19 = vmul.f32 %v7126_v31, %v3774_v20  ;;  %v3820_v6 = vpack.c.bf16 %v3812_v52, %v3812_v52  ;;  %v3834_v56 = vunpack.c.l.b16 %v9011_v61 }
 0x59d   :  { %v7130_v11 = vpop.eup %7129  ;;  %v3851_v1 = vrot.slane %v3819_v45, 6  ;;  %v3815_v7 = vmul.f32 %v7128_v41, %v3775_v27  ;;  %v3821_v4 = vpack.c.bf16 %v3813_v16, %v3813_v16  ;;  %v3835_v34 = vunpack.c.l.b16 %v3819_v45 }
 0x59e   :  { %v7132_v39 = vpop.eup %7131  ;;  %v3870_v43 = vsel %vm9014_vm1, %v3850_v44, %v3869_v58  ;;  %v3816_v21 = vmul.f32 %v7130_v11, %v3776_v17  ;;  %v3822_v26 = vpack.c.bf16 %v3814_v19, %v3814_v19  ;;  %v3836_v47 = vunpack.c.l.b16 %v3820_v6 }
 0x59f   :  { %3871 = vst [vmem:[%s9822_s4] sm:$0x4] %v3870_v43  ;;  %v3873_v14 = vsel %vm9014_vm1, %v3851_v1, %v3872_v60  ;;  %v3817_v37 = vmul.f32 %v7132_v39, %v3777_v30  ;;  %v3823_v54 = vpack.c.bf16 %v3815_v7, %v3815_v7  ;;  %v3837_v18 = vunpack.c.l.b16 %v3821_v4  ;;  %v9096_v1 = vld [vmem:[%s9820_s2 + $0xe4] ss:$16 sps:$4 sm:$0xff]   ;;  %v9101_v30 = vld [vmem:[%s9820_s2 + $0xec] ss:$16 sps:$4 sm:$0xff]  }
 0x5a0   :  { %3874 = vst [vmem:[%s9822_s4 + $0x4] sm:$0x4] %v3873_v14  ;;  %v3824_v51 = vpack.c.bf16 %v3816_v21, %v3816_v21  ;;  %v3852_v2 = vrot.slane %v3820_v6, 6  ;;  %v3853_v57 = vrot.slane %v3821_v4, 6  ;;  %v3854_v23 = vrot.slane %v3822_v26, 6  ;;  %4809 = vmatprep.subr.bf16.mxu0 %v9096_v1  ;;  %4850 = vmatprep.subr.bf16.mxu1 %v9101_v30 }
 0x5a1   :  { %v3825_v48 = vpack.c.bf16 %v3817_v37, %v3817_v37  ;;  %v3855_v3 = vrot.slane %v3823_v54, 6  ;;  %v3838_v63 = vunpack.c.l.b16 %v3822_v26  ;;  %v3839_v62 = vunpack.c.l.b16 %v3823_v54  ;;  %v9106_v7 = vld [vmem:[%s9820_s2 + $0xe0] ss:$16 sps:$4 sm:$0xff]   ;;  %v9111_v4 = vld [vmem:[%s9820_s2 + $0xe8] ss:$16 sps:$4 sm:$0xff]  }
 0x5a2   :  { %v3856_v53 = vrot.slane %v3824_v51, 6  ;;  %v3876_v33 = vsel %vm9014_vm1, %v3852_v2, %v3875_v5  ;;  %v3879_v59 = vsel %vm9014_vm1, %v3853_v57, %v3878_v55  ;;  %v3882_v46 = vsel %vm9014_vm1, %v3854_v23, %v3881_v32  ;;  %v9120_v39 = vld [vmem:[%s9820_s2 + $0xc4] ss:$16 sps:$4 sm:$0xff]   ;;  %v9125_v43 = vld [vmem:[%s9820_s2 + $0xcc] ss:$16 sps:$4 sm:$0xff]  }
 0x5a3   :  { %v3857_v42 = vrot.slane %v3825_v48, 6  ;;  %3877 = vst [vmem:[%s9822_s4 + $0x8] sm:$0x4] %v3876_v33  ;;  %3880 = vst [vmem:[%s9822_s4 + $0xc] sm:$0x4] %v3879_v59  ;;  %v3885_v28 = vsel %vm9014_vm1, %v3855_v3, %v3884_v22  ;;  %v3941_v8 = vrot.slane %v3835_v34, 7  ;;  %v3840_v61 = vunpack.c.l.b16 %v3824_v51 }
 0x5a4   :  { %3883 = vst [vmem:[%s9822_s4 + $0x10] sm:$0x4] %v3882_v46  ;;  %3886 = vst [vmem:[%s9822_s4 + $0x14] sm:$0x4] %v3885_v28  ;;  %v3888_v10 = vsel %vm9014_vm1, %v3856_v53, %v3887_v29  ;;  %v3943_v50 = vrot.slane %v3836_v47, 6  ;;  %v3945_v20 = vrot.slane %v3837_v18, 5  ;;  %v3841_v31 = vunpack.c.l.b16 %v3825_v48 }
 0x5a5   :  { %3889 = vst [vmem:[%s9822_s4 + $0x18] sm:$0x4] %v3888_v10  ;;  %v3891_v52 = vsel %vm9014_vm1, %v3857_v42, %v3890_v12  ;;  %v3942_v45 = vsel %vm1221_vm2, %v3941_v8, %v3834_v56  ;;  %v3947_v27 = vrot.slane %v3838_v63, 4  ;;  %v3949_v41 = vrot.slane %v3839_v62, 3  ;;  %v9130_v21 = vld [vmem:[%s9820_s2 + $0xc0] ss:$16 sps:$4 sm:$0xff]  }
 0x5a6   :  { %3892 = vst [vmem:[%s9822_s4 + $0x1c] sm:$0x4] %v3891_v52  ;;  %v3944_v58 = vsel %vm1224_vm4, %v3943_v50, %v3942_v45  ;;  %v3951_v60 = vrot.slane %v3840_v61, 2  ;;  %v3953_v35 = vrot.slane %v3841_v31, 1  ;;  %v9135_v26 = vld [vmem:[%s9820_s2 + $0xc8] ss:$16 sps:$4 sm:$0xff]  }
 0x5a7   :  { %v3946_v16 = vsel %vm1227_vm5, %v3945_v20, %v3944_v58  ;;  %v9144_v34 = vld [vmem:[%s9820_s2 + $0xa4] ss:$16 sps:$4 sm:$0xff]   ;;  %v9149_v14 = vld [vmem:[%s9820_s2 + $0xac] ss:$16 sps:$4 sm:$0xff]   ;;  %v9154_v37 = vld [vmem:[%s9820_s2 + $0xa0] ss:$16 sps:$4 sm:$0xff]  }
 0x5a8   :  { %v3948_v44 = vsel %vm1230_vm6, %v3947_v27, %v3946_v16  ;;  %v9159_v54 = vld [vmem:[%s9820_s2 + $0xa8] ss:$16 sps:$4 sm:$0xff]   ;;  %v9166_v47 = vld [vmem:[%s9820_s2 + $0x84] ss:$16 sps:$4 sm:$0xff]   ;;  %v9171_v5 = vld [vmem:[%s9820_s2 + $0x8c] ss:$16 sps:$4 sm:$0xff]  }
 0x5a9   :  { %v3950_v17 = vsel %vm1233_vm7, %v3949_v41, %v3948_v44  ;;  %v9178_v55 = vld [vmem:[%s9820_s2 + $0x80] ss:$16 sps:$4 sm:$0xff]   ;;  %v9183_v51 = vld [vmem:[%s9820_s2 + $0x88] ss:$16 sps:$4 sm:$0xff]   ;;  %v9190_v18 = vld [vmem:[%s9820_s2 + $0x64] ss:$16 sps:$4 sm:$0xff]  }
 0x5aa   :  { %v3952_v19 = vsel %vm1236_vm8, %v3951_v60, %v3950_v17  ;;  %v9195_v2 = vld [vmem:[%s9820_s2 + $0x6c] ss:$16 sps:$4 sm:$0xff]   ;;  %v9202_v57 = vld [vmem:[%s9820_s2 + $0x60] ss:$16 sps:$4 sm:$0xff]   ;;  %v9207_v32 = vld [vmem:[%s9820_s2 + $0x68] ss:$16 sps:$4 sm:$0xff]  }
 0x5ab   :  { %v3954_v6 = vsel %vm1239_vm9, %v3953_v35, %v3952_v19  ;;  %v9214_v22 = vld [vmem:[%s9820_s2 + $0x44] ss:$16 sps:$4 sm:$0xff]   ;;  %v9219_v48 = vld [vmem:[%s9820_s2 + $0x4c] ss:$16 sps:$4 sm:$0xff]   ;;  %v9226_v56 = vld [vmem:[%s9820_s2 + $0x40] ss:$16 sps:$4 sm:$0xff]  }
 0x5ac   :  { %v3955_v11 = vpack.c.b16 %v3954_v6, %v3954_v6  ;;  %9925 = vst [vmem:[#allocation17_spill] sm:$0xff] %v9219_v48  ;;  %9926 = vst [vmem:[#allocation6_spill] sm:$0xff] %v9226_v56  ;;  %v9231_v23 = vld [vmem:[%s9820_s2 + $0x48] ss:$16 sps:$4 sm:$0xff]   ;;  %v9238_v3 = vld [vmem:[%s9820_s2 + $0x24] ss:$16 sps:$4 sm:$0xff]  }
 0x5ad   :  { %9927 = vst [vmem:[#allocation7_spill] sm:$0xff] %v9231_v23  ;;  %9928 = vst [vmem:[#allocation8_spill] sm:$0xff] %v9238_v3  ;;  %v9243_v29 = vld [vmem:[%s9820_s2 + $0x2c] ss:$16 sps:$4 sm:$0xff]   ;;  %v9250_v63 = vld [vmem:[%s9820_s2 + $0x20] ss:$16 sps:$4 sm:$0xff]  }
 0x5ae   :  { %4150 = vmatmul.mubr.bf16.vlgmr.msra.gmra.mxu0 %v3955_v11  ;;  %4191 = vmatmul.mubr.bf16.vlgmr.msra.gmra.mxu1 %v3955_v11  ;;  %9929 = vst [vmem:[#allocation9_spill] sm:$0xff] %v9243_v29  ;;  %9930 = vst [vmem:[#allocation10_spill] sm:$0xff] %v9250_v63  ;;  %v9255_v53 = vld [vmem:[%s9820_s2 + $0x28] ss:$16 sps:$4 sm:$0xff]   ;;  %v9262_v33 = vld [vmem:[%s9820_s2 + $0x4] ss:$16 sps:$4 sm:$0xff]  }
 0x5af   :  { %4841 = vmatprep.mubr.bf16.mxu0 %v9882_v40  ;;  %4882 = vmatprep.mubr.bf16.mxu1 %v9882_v40  ;;  %9931 = vst [vmem:[#allocation11_spill] sm:$0xff] %v9255_v53  ;;  %9932 = vst [vmem:[#allocation12_spill] sm:$0xff] %v9262_v33  ;;  %v9267_v59 = vld [vmem:[%s9820_s2 + $0xc] ss:$16 sps:$4 sm:$0xff]   ;;  %v9274_v12 = vld [vmem:[%s9820_s2] ss:$16 sps:$4 sm:$0xff]  }
 0x5b0   :  { %4810 = vmatpush1.bf16.msra.mxu0 %v9106_v7  ;;  %4851 = vmatpush1.bf16.msra.mxu1 %v9111_v4  ;;  %9933 = vst [vmem:[#allocation13_spill] sm:$0xff] %v9267_v59  ;;  %9934 = vst [vmem:[#allocation14_spill] sm:$0xff] %v9274_v12  ;;  %v9279_v62 = vld [vmem:[%s9820_s2 + $0x8] ss:$16 sps:$4 sm:$0xff]  }
 0x5b1   :  { %4811 = vmatprep.subr.bf16.mxu0 %v9120_v39  ;;  %4852 = vmatprep.subr.bf16.mxu1 %v9125_v43  ;;  %9935 = vst [vmem:[#allocation15_spill] sm:$0xff] %v9279_v62 }
 0x5b4   :  { %4812 = vmatpush1.bf16.msra.mxu0 %v9130_v21  ;;  %4853 = vmatpush1.bf16.msra.mxu1 %v9135_v26 }
 0x5b5   :  { %4813 = vmatprep.subr.bf16.mxu0 %v9144_v34  ;;  %4854 = vmatprep.subr.bf16.mxu1 %v9149_v14 }
 0x5b8   :  { %4814 = vmatpush1.bf16.msra.mxu0 %v9154_v37  ;;  %4855 = vmatpush1.bf16.msra.mxu1 %v9159_v54 }
 0x5b9   :  { %4815 = vmatprep.subr.bf16.mxu0 %v9166_v47  ;;  %4856 = vmatprep.subr.bf16.mxu1 %v9171_v5 }
 0x5bc   :  { %4816 = vmatpush1.bf16.msra.mxu0 %v9178_v55  ;;  %4857 = vmatpush1.bf16.msra.mxu1 %v9183_v51 }
 0x5bd   :  { %4817 = vmatprep.subr.bf16.mxu0 %v9190_v18  ;;  %4858 = vmatprep.subr.bf16.mxu1 %v9195_v2 }
 0x5c0   :  { %4818 = vmatpush1.bf16.msra.mxu0 %v9202_v57  ;;  %4859 = vmatpush1.bf16.msra.mxu1 %v9207_v32 }
 0x5c1   :  { %4819 = vmatprep.subr.bf16.mxu0 %v9214_v22  ;;  %4860 = vmatprep.subr.bf16.mxu1 %v9219_v48 }
 0x5c4   :  { %4820 = vmatpush1.bf16.msra.mxu0 %v9226_v56  ;;  %4861 = vmatpush1.bf16.msra.mxu1 %v9231_v23 }
 0x5c5   :  { %4821 = vmatprep.subr.bf16.mxu0 %v9238_v3  ;;  %4862 = vmatprep.subr.bf16.mxu1 %v9243_v29 }
 0x5c8   :  { %4822 = vmatpush1.bf16.msra.mxu0 %v9250_v63  ;;  %4863 = vmatpush1.bf16.msra.mxu1 %v9255_v53 }
 0x5c9   :  { %4823 = vmatprep.subr.bf16.mxu0 %v9262_v33  ;;  %4864 = vmatprep.subr.bf16.mxu1 %v9267_v59 }
 0x5cc   :  { %4824 = vmatpush1.bf16.msra.mxu0 %v9274_v12  ;;  %4865 = vmatpush1.bf16.msra.mxu1 %v9279_v62 }
 0x5cd   :  { %5478 = vmatprep.subr.bf16.mxu0 %v9096_v1  ;;  %5519 = vmatprep.subr.bf16.mxu1 %v9101_v30 }
 0x66e   :  { %v4151_v42 = vpop.f32.mrf.mxu0  ;;  %v4192_v46 = vpop.f32.mrf.mxu1 }
 0x670   :  { %v4153_v28 = vpop.f32.mrf.mxu0  ;;  %v4194_v10 = vpop.f32.mrf.mxu1 }
 0x671   :  { %v4203_v8 = vcombine.low %v4151_v42, %v4153_v28  ;;  %v4204_v50 = vcombine.high %v4151_v42, %v4153_v28  ;;  %v4205_v20 = vcombine.low %v4192_v46, %v4194_v10  ;;  %v4206_v61 = vcombine.high %v4192_v46, %v4194_v10  ;;  %v3894_v42 = vld [vmem:[#allocation2 + $0x5] ss:$8 sm:$0xf] }
 0x672   :  { %v4155_v52 = vpop.f32.mrf.mxu0  ;;  %v4196_v31 = vpop.f32.mrf.mxu1  ;;  %v3896_v46 = vld [vmem:[#allocation2 + $0x25] ss:$8 sm:$0xf] }
 0x673   :  { %v4213_v45 = vrot.slane %v4203_v8, %v9922_v36  ;;  %v4220_v58 = vrot.slane %v4204_v50, %v9922_v36  ;;  %v4227_v27 = vrot.slane %v4205_v20, %v9922_v36  ;;  %v4234_v16 = vrot.slane %v4206_v61, %v9922_v36  ;;  %v3898_v28 = vld [vmem:[#allocation2 + $0x45] ss:$8 sm:$0xf] }
 0x674   :  { %v4156_v41 = vpop.f32.mrf.mxu0  ;;  %v4197_v44 = vpop.f32.mrf.mxu1  ;;  %v3902_v10 = vld [vmem:[#allocation2 + $0x85] ss:$8 sm:$0xf] }
 0x675   :  { %v4235_v60 = vcombine.low %v4213_v45, %v4227_v27  ;;  %v4236_v17 = vcombine.high %v4213_v45, %v4227_v27  ;;  %v4237_v35 = vcombine.low %v4220_v58, %v4234_v16  ;;  %v4238_v19 = vcombine.high %v4220_v58, %v4234_v16  ;;  %v3900_v52 = vld [vmem:[#allocation2 + $0x65] ss:$8 sm:$0xf] }
 0x676   :  { %v3904_v31 = vld [vmem:[#allocation2 + $0xa5] ss:$8 sm:$0xf] }
 0x677   :  { %v4245_v6 = vrot.slane %v4235_v60, %v9922_v36  ;;  %v4252_v11 = vrot.slane %v4237_v35, %v9922_v36  ;;  %v4259_v1 = vrot.slane %v4236_v17, %v9922_v36  ;;  %v4266_v30 = vrot.slane %v4238_v19, %v9922_v36  ;;  %v3906_v16 = vld [vmem:[#allocation2 + $0xc5] ss:$8 sm:$0xf] }
 0x678   :  { %v3908_v17 = vld [vmem:[#allocation2 + $0xe5] ss:$8 sm:$0xf] }
 0x679   :  { %v4267_v8 = vcombine.high %v4245_v6, %v4245_v6  ;;  %v4268_v50 = vcombine.high %v4252_v11, %v4252_v11  ;;  %v4269_v20 = vcombine.high %v4259_v1, %v4259_v1  ;;  %v4270_v61 = vcombine.high %v4266_v30, %v4266_v30 }
 0x67a   :  { %v9295_v45 = vadd.f32 %v4245_v6, %v3894_v42  ;;  %v9297_v58 = vadd.f32 %v4259_v1, %v3896_v46  ;;  %v9299_v27 = vadd.f32 %v4252_v11, %v3902_v10  ;;  %v9305_v60 = vadd.f32 %v4266_v30, %v3904_v31 }
 0x67b   :  { %v9301_v41 = vadd.f32 %v4267_v8, %v3898_v28  ;;  %v9303_v44 = vadd.f32 %v4269_v20, %v3900_v52  ;;  %v9307_v35 = vadd.f32 %v4268_v50, %v3906_v16  ;;  %v9311_v6 = vadd.f32 %v4270_v61, %v3908_v17 }
 0x67c   :  { %v4287_v19 = vmul.f32 0.5, %v9295_v45  ;;  %v4288_v36 = vmul.f32 0.5, %v9297_v58  ;;  %v4291_v42 = vmul.f32 0.5, %v9299_v27  ;;  %v4327_v46 = vrot.slane %v9295_v45, 1 }
 0x67d   :  { %v4289_v1 = vmul.f32 0.5, %v9301_v41  ;;  %v4290_v11 = vmul.f32 0.5, %v9303_v44  ;;  %v4292_v30 = vmul.f32 0.5, %v9305_v60  ;;  %v4328_v28 = vrot.slane %v9297_v58, 1 }
 0x67e   :  { %7133 = vtanh.f32 %v4287_v19  ;;  %v4293_v10 = vmul.f32 0.5, %v9307_v35  ;;  %v4329_v8 = vrot.slane %v9301_v41, 1  ;;  %v4294_v50 = vmul.f32 0.5, %v9311_v6 }
 0x67f   :  { %7135 = vtanh.f32 %v4288_v36  ;;  %v4330_v20 = vrot.slane %v9303_v44, 1  ;;  %v4331_v61 = vrot.slane %v9299_v27, 1  ;;  %v4343_v52 = vmul.f32 0.5, %v4327_v46 }
 0x680   :  { %7137 = vtanh.f32 %v4289_v1  ;;  %v4332_v31 = vrot.slane %v9305_v60, 1  ;;  %v4344_v36 = vmul.f32 0.5, %v4328_v28  ;;  %v4333_v16 = vrot.slane %v9307_v35, 1 }
 0x681   :  { %7139 = vtanh.f32 %v4290_v11  ;;  %v4345_v17 = vmul.f32 0.5, %v4329_v8  ;;  %v4334_v19 = vrot.slane %v9311_v6, 1  ;;  %v4346_v1 = vmul.f32 0.5, %v4330_v20 }
 0x682   :  { %7141 = vtanh.f32 %v4291_v42  ;;  %v4347_v62 = vmul.f32 0.5, %v4331_v61  ;;  %v4348_v11 = vmul.f32 0.5, %v4332_v31  ;;  %v4349_v42 = vmul.f32 0.5, %v4333_v16 }
 0x683   :  { %7143 = vtanh.f32 %v4292_v30  ;;  %v4350_v12 = vmul.f32 0.5, %v4334_v19  ;;  %v4375_v46 = vrot.slane %v9295_v45, 2  ;;  %v4376_v30 = vrot.slane %v9297_v58, 2 }
 0x684   :  { %7145 = vtanh.f32 %v4293_v10  ;;  %v4377_v28 = vrot.slane %v9301_v41, 2  ;;  %v4378_v8 = vrot.slane %v9303_v44, 2  ;;  %v4399_v20 = vrot.slane %v9295_v45, 3 }
 0x685   :  { %7147 = vtanh.f32 %v4294_v50  ;;  %v4379_v50 = vrot.slane %v9299_v27, 2  ;;  %v4400_v31 = vrot.slane %v9297_v58, 3  ;;  %v4382_v16 = vrot.slane %v9311_v6, 2 }
 0x686   :  { %7149 = vtanh.f32 %v4343_v52  ;;  %v4380_v52 = vrot.slane %v9305_v60, 2  ;;  %v4402_v19 = vrot.slane %v9303_v44, 3  ;;  %v4403_v45 = vrot.slane %v9299_v27, 3 }
 0x687   :  { %7151 = vtanh.f32 %v4344_v36  ;;  %v4406_v58 = vrot.slane %v9311_v6, 3 }
 0x688   :  { %7153 = vtanh.f32 %v4345_v17  ;;  %v4401_v17 = vrot.slane %v9301_v41, 3  ;;  %v4416_v41 = vmul.f32 0.5, %v4400_v31  ;;  %v4418_v27 = vmul.f32 0.5, %v4402_v19 }
 0x689   :  { %7155 = vtanh.f32 %v4346_v1  ;;  %v4422_v6 = vmul.f32 0.5, %v4406_v58 }
 0x68a   :  { %7157 = vtanh.f32 %v4347_v62  ;;  %v4381_v62 = vrot.slane %v9307_v35, 2 }
 0x68b   :  { %v7134_v10 = vpop.eup %7133  ;;  %7159 = vtanh.f32 %v4348_v11  ;;  %v4404_v11 = vrot.slane %v9305_v60, 3  ;;  %v4419_v60 = vmul.f32 0.5, %v4403_v45 }
 0x68c   :  { %v7136_v61 = vpop.eup %7135  ;;  %7161 = vtanh.f32 %v4349_v42  ;;  %v4405_v42 = vrot.slane %v9307_v35, 3  ;;  %v4303_v33 = vadd.f32 1.0, %v7134_v10 }
 0x68d   :  { %v7138_v36 = vpop.eup %7137  ;;  %7163 = vtanh.f32 %v4350_v12  ;;  %v4415_v12 = vmul.f32 0.5, %v4399_v20  ;;  %v4304_v63 = vadd.f32 1.0, %v7136_v61  ;;  %v4420_v35 = vmul.f32 0.5, %v4404_v11 }
 0x68e   :  { %v7140_v1 = vpop.eup %7139  ;;  %7165 = vtanh.f32 %v4375_v46  ;;  %v4305_v29 = vadd.f32 1.0, %v7138_v36  ;;  %v4417_v46 = vmul.f32 0.5, %v4401_v17  ;;  %v4421_v56 = vmul.f32 0.5, %v4405_v42 }
 0x68f   :  { %v7142_v59 = vpop.eup %7141  ;;  %7167 = vtanh.f32 %v4376_v30  ;;  %v4306_v3 = vadd.f32 1.0, %v7140_v1  ;;  %v4311_v48 = vmul.f32 0.5, %v4303_v33  ;;  %v4312_v61 = vmul.f32 0.5, %v4304_v63 }
 0x690   :  { %v7144_v53 = vpop.eup %7143  ;;  %7169 = vtanh.f32 %v4377_v28  ;;  %v4307_v30 = vadd.f32 1.0, %v7142_v59  ;;  %v4313_v36 = vmul.f32 0.5, %v4305_v29 }
 0x691   :  { %v7146_v44 = vpop.eup %7145  ;;  %7171 = vtanh.f32 %v4378_v8  ;;  %v4308_v1 = vadd.f32 1.0, %v7144_v53  ;;  %v4314_v8 = vmul.f32 0.5, %v4306_v3 }
 0x692   :  { %v7148_v23 = vpop.eup %7147  ;;  %7173 = vtanh.f32 %v4379_v50  ;;  %v4309_v50 = vadd.f32 1.0, %v7146_v44  ;;  %v4315_v59 = vmul.f32 0.5, %v4307_v30 }
 0x693   :  { %v7150_v10 = vpop.eup %7149  ;;  %7175 = vtanh.f32 %v4380_v52  ;;  %v4310_v63 = vadd.f32 1.0, %v7148_v23  ;;  %v4316_v53 = vmul.f32 0.5, %v4308_v1 }
 0x694   :  { %v7152_v20 = vpop.eup %7151  ;;  %v4359_v28 = vadd.f32 1.0, %v7150_v10  ;;  %7177 = vtanh.f32 %v4381_v62 }
 0x695   :  { %v7154_v31 = vpop.eup %7153  ;;  %v4360_v17 = vadd.f32 1.0, %v7152_v20  ;;  %7179 = vtanh.f32 %v4382_v16 }
 0x696   :  { %v7156_v19 = vpop.eup %7155  ;;  %v4361_v45 = vadd.f32 1.0, %v7154_v31  ;;  %v4367_v11 = vmul.f32 0.5, %v4359_v28  ;;  %7181 = vtanh.f32 %v4415_v12 }
 0x697   :  { %v7158_v42 = vpop.eup %7157  ;;  %v4362_v33 = vadd.f32 1.0, %v7156_v19  ;;  %v4368_v52 = vmul.f32 0.5, %v4360_v17  ;;  %7183 = vtanh.f32 %v4416_v41 }
 0x698   :  { %v7160_v58 = vpop.eup %7159  ;;  %v4363_v29 = vadd.f32 1.0, %v7158_v42  ;;  %v4369_v10 = vmul.f32 0.5, %v4361_v45  ;;  %7185 = vtanh.f32 %v4417_v46  ;;  %v4447_v12 = vmul.f32 %v4367_v11, %v8984_v9 }
 0x699   :  { %v7162_v62 = vpop.eup %7161  ;;  %v4364_v3 = vadd.f32 1.0, %v7160_v58  ;;  %v4370_v20 = vmul.f32 0.5, %v4362_v33  ;;  %7187 = vtanh.f32 %v4418_v27  ;;  %v4448_v23 = vmul.f32 %v4368_v52, %v8987_v0 }
 0x69a   :  { %v7164_v16 = vpop.eup %7163  ;;  %v4365_v44 = vadd.f32 1.0, %v7162_v62  ;;  %v4371_v31 = vmul.f32 0.5, %v4363_v29  ;;  %7189 = vtanh.f32 %v4419_v60  ;;  %v4449_v46 = vmul.f32 %v4369_v10, %v8990_v49 }
 0x69b   :  { %v7166_v30 = vpop.eup %7165  ;;  %v4366_v28 = vadd.f32 1.0, %v7164_v16  ;;  %v4372_v17 = vmul.f32 0.5, %v4364_v3  ;;  %7191 = vtanh.f32 %v4420_v35  ;;  %v4450_v42 = vmul.f32 %v4370_v20, %v8994_v13 }
 0x69c   :  { %v7168_v41 = vpop.eup %7167  ;;  %v4373_v19 = vmul.f32 0.5, %v4365_v44  ;;  %7193 = vtanh.f32 %v4421_v56  ;;  %v4455_v1 = vmul.f32 %v7166_v30, %v4311_v48  ;;  %v4317_v9 = vmul.f32 0.5, %v4309_v50 }
 0x69d   :  { %v7170_v45 = vpop.eup %7169  ;;  %v4374_v27 = vmul.f32 0.5, %v4366_v28  ;;  %7195 = vtanh.f32 %v4422_v6  ;;  %v4456_v60 = vmul.f32 %v7168_v41, %v4312_v61  ;;  %v4451_v11 = vmul.f32 %v4371_v31, %v8997_v38 }
 0x69e   :  { %v7172_v33 = vpop.eup %7171  ;;  %v4457_v58 = vmul.f32 %v7170_v45, %v4313_v36  ;;  %v9348_v35 = vadd.f32 %v4455_v1, %v4447_v12  ;;  %v4318_v52 = vmul.f32 0.5, %v4310_v63  ;;  %v4452_v56 = vmul.f32 %v4372_v17, %v9000_v24 }
 0x69f   :  { %v7174_v0 = vpop.eup %7173  ;;  %v4458_v29 = vmul.f32 %v7172_v33, %v4314_v8  ;;  %v9351_v49 = vadd.f32 %v4456_v60, %v4448_v23  ;;  %v4453_v6 = vmul.f32 %v4373_v19, %v9003_v25  ;;  %v4454_v38 = vmul.f32 %v4374_v27, %v9006_v15 }
 0x6a0   :  { %v7176_v48 = vpop.eup %7175  ;;  %v4459_v10 = vmul.f32 %v7174_v0, %v4315_v59  ;;  %v9354_v13 = vadd.f32 %v4457_v58, %v4449_v46  ;;  %7197 = vtanh.f32 %v9348_v35 }
 0x6a1   :  { %v7178_v61 = vpop.eup %7177  ;;  %v4460_v36 = vmul.f32 %v7176_v48, %v4316_v53  ;;  %v9358_v50 = vadd.f32 %v4458_v29, %v4450_v42  ;;  %7199 = vtanh.f32 %v9351_v49 }
 0x6a2   :  { %v7180_v24 = vpop.eup %7179  ;;  %v4461_v8 = vmul.f32 %v7178_v61, %v4317_v9  ;;  %v9361_v63 = vadd.f32 %v4459_v10, %v4451_v11  ;;  %7201 = vtanh.f32 %v9354_v13 }
 0x6a3   :  { %v7182_v25 = vpop.eup %7181  ;;  %v4462_v59 = vmul.f32 %v7180_v24, %v4318_v52  ;;  %v9364_v62 = vadd.f32 %v4460_v36, %v4452_v56  ;;  %7203 = vtanh.f32 %v9358_v50 }
 0x6a4   :  { %v7184_v3 = vpop.eup %7183  ;;  %v9367_v20 = vadd.f32 %v4461_v8, %v4453_v6  ;;  %7205 = vtanh.f32 %v9361_v63  ;;  %v4431_v12 = vadd.f32 1.0, %v7182_v25 }
 0x6a5   :  { %v7186_v15 = vpop.eup %7185  ;;  %v9370_v53 = vadd.f32 %v4462_v59, %v4454_v38  ;;  %7207 = vtanh.f32 %v9364_v62  ;;  %v4432_v28 = vadd.f32 1.0, %v7184_v3 }
 0x6a6   :  { %v7188_v16 = vpop.eup %7187  ;;  %7209 = vtanh.f32 %v9367_v20  ;;  %v4433_v23 = vadd.f32 1.0, %v7186_v15  ;;  %v4439_v46 = vmul.f32 0.5, %v4431_v12 }
 0x6a7   :  { %v7190_v44 = vpop.eup %7189  ;;  %7211 = vtanh.f32 %v9370_v53  ;;  %v4434_v41 = vadd.f32 1.0, %v7188_v16  ;;  %v4440_v27 = vmul.f32 0.5, %v4432_v28 }
 0x6a8   :  { %v7192_v31 = vpop.eup %7191  ;;  %v4435_v19 = vadd.f32 1.0, %v7190_v44  ;;  %v4441_v9 = vmul.f32 0.5, %v4433_v23 }
 0x6a9   :  { %v7194_v30 = vpop.eup %7193  ;;  %v4436_v1 = vadd.f32 1.0, %v7192_v31  ;;  %v4442_v0 = vmul.f32 0.5, %v4434_v41 }
 0x6aa   :  { %v7196_v17 = vpop.eup %7195  ;;  %v4437_v42 = vadd.f32 1.0, %v7194_v30  ;;  %v4443_v29 = vmul.f32 0.5, %v4435_v19 }
 0x6ab   :  { %v4438_v60 = vadd.f32 1.0, %v7196_v17  ;;  %v4444_v6 = vmul.f32 0.5, %v4436_v1 }
 0x6ac   :  { %v4445_v36 = vmul.f32 0.5, %v4437_v42 }
 0x6ad   :  { %v7198_v45 = vpop.eup %7197  ;;  %v4446_v24 = vmul.f32 0.5, %v4438_v60 }
 0x6ae   :  { %v7200_v33 = vpop.eup %7199  ;;  %v4479_v11 = vmul.f32 %v7198_v45, %v4439_v46 }
 0x6af   :  { %v7202_v58 = vpop.eup %7201  ;;  %v4480_v52 = vmul.f32 %v7200_v33, %v4440_v27  ;;  %v4561_v27 = vld [vmem:[%s9822_s4] sm:$0x4] }
 0x6b0   :  { %v7204_v56 = vpop.eup %7203  ;;  %v9375_v48 = vpack.c.bf16 %v4479_v11, %v4479_v11  ;;  %v4481_v10 = vmul.f32 %v7202_v58, %v4441_v9  ;;  %v4564_v11 = vld [vmem:[%s9822_s4 + $0x4] sm:$0x4] }
 0x6b1   :  { %v7206_v61 = vpop.eup %7205  ;;  %v4488_v38 = vpack.c.bf16 %v4480_v52, %v4480_v52  ;;  %v4482_v8 = vmul.f32 %v7204_v56, %v4442_v0 }
 0x6b2   :  { %v7208_v25 = vpop.eup %7207  ;;  %v4520_v59 = vshll.u32 %v9375_v48, 16  ;;  %v4483_v3 = vmul.f32 %v7206_v61, %v4443_v29  ;;  %v4489_v15 = vpack.c.bf16 %v4481_v10, %v4481_v10  ;;  %v4503_v16 = vunpack.c.l.b16 %v9375_v48 }
 0x6b3   :  { %v7210_v44 = vpop.eup %7209  ;;  %v4524_v31 = vshll.u32 %v4488_v38, 16  ;;  %v4484_v30 = vmul.f32 %v7208_v25, %v4444_v6  ;;  %v4490_v28 = vpack.c.bf16 %v4482_v8, %v4482_v8  ;;  %v4504_v17 = vunpack.c.l.b16 %v4488_v38 }
 0x6b4   :  { %v7212_v23 = vpop.eup %7211  ;;  %v4522_v41 = vrot.slane %v4520_v59, 6  ;;  %v4485_v19 = vmul.f32 %v7210_v44, %v4445_v36  ;;  %v4491_v46 = vpack.c.bf16 %v4483_v3, %v4483_v3  ;;  %v4505_v1 = vunpack.c.l.b16 %v4489_v15 }
 0x6b5   :  { %v4526_v45 = vrot.slane %v4524_v31, 6  ;;  %v4486_v42 = vmul.f32 %v7212_v23, %v4446_v24  ;;  %v4492_v60 = vpack.c.bf16 %v4484_v30, %v4484_v30  ;;  %v4506_v33 = vunpack.c.l.b16 %v4490_v28  ;;  %v4567_v24 = vld [vmem:[%s9822_s4 + $0x8] sm:$0x4] }
 0x6b6   :  { %v4562_v9 = vsel %vm9381_vm10, %v4522_v41, %v4561_v27  ;;  %v4493_v58 = vpack.c.bf16 %v4485_v19, %v4485_v19  ;;  %v4507_v0 = vunpack.c.l.b16 %v4491_v46  ;;  %v4528_v52 = vshll.u32 %v4489_v15, 16  ;;  %v4570_v15 = vld [vmem:[%s9822_s4 + $0xc] sm:$0x4] }
 0x6b7   :  { %4563 = vst [vmem:[%s9822_s4] sm:$0x4] %v4562_v9  ;;  %v4565_v56 = vsel %vm9381_vm10, %v4526_v45, %v4564_v11  ;;  %v4494_v29 = vpack.c.bf16 %v4486_v42, %v4486_v42  ;;  %v4508_v48 = vunpack.c.l.b16 %v4492_v60  ;;  %v4532_v6 = vshll.u32 %v4490_v28, 16  ;;  %v4573_v28 = vld [vmem:[%s9822_s4 + $0x10] sm:$0x4]  ;;  %v4576_v45 = vld [vmem:[%s9822_s4 + $0x14] sm:$0x4] }
 0x6b8   :  { %4566 = vst [vmem:[%s9822_s4 + $0x4] sm:$0x4] %v4565_v56  ;;  %v4509_v10 = vunpack.c.l.b16 %v4493_v58  ;;  %v4530_v61 = vrot.slane %v4528_v52, 6  ;;  %v4536_v38 = vshll.u32 %v4491_v46, 16  ;;  %v4540_v36 = vshll.u32 %v4492_v60, 16 }
 0x6b9   :  { %v4510_v8 = vunpack.c.l.b16 %v4494_v29  ;;  %v4534_v25 = vrot.slane %v4532_v6, 6  ;;  %v4544_v59 = vshll.u32 %v4493_v58, 16  ;;  %v4548_v3 = vshll.u32 %v4494_v29, 16  ;;  %v4579_v60 = vld [vmem:[%s9822_s4 + $0x18] sm:$0x4] }
 0x6ba   :  { %v4538_v44 = vrot.slane %v4536_v38, 6  ;;  %v4542_v31 = vrot.slane %v4540_v36, 6  ;;  %v4568_v30 = vsel %vm9381_vm10, %v4530_v61, %v4567_v24  ;;  %v4633_v23 = vrot.slane %v4504_v17, 7  ;;  %v4582_v9 = vld [vmem:[%s9822_s4 + $0x1c] sm:$0x4] }
 0x6bb   :  { %v4546_v41 = vrot.slane %v4544_v59, 6  ;;  %v4550_v19 = vrot.slane %v4548_v3, 6  ;;  %4569 = vst [vmem:[%s9822_s4 + $0x8] sm:$0x4] %v4568_v30  ;;  %v4571_v46 = vsel %vm9381_vm10, %v4534_v25, %v4570_v15  ;;  %v4635_v27 = vrot.slane %v4505_v1, 6 }
 0x6bc   :  { %4572 = vst [vmem:[%s9822_s4 + $0xc] sm:$0x4] %v4571_v46  ;;  %v4574_v17 = vsel %vm9381_vm10, %v4538_v44, %v4573_v28  ;;  %v4577_v42 = vsel %vm9381_vm10, %v4542_v31, %v4576_v45  ;;  %v4634_v1 = vsel %vm1221_vm2, %v4633_v23, %v4503_v16  ;;  %v4637_v11 = vrot.slane %v4506_v33, 5 }
 0x6bd   :  { %4575 = vst [vmem:[%s9822_s4 + $0x10] sm:$0x4] %v4574_v17  ;;  %4578 = vst [vmem:[%s9822_s4 + $0x14] sm:$0x4] %v4577_v42  ;;  %v4580_v58 = vsel %vm9381_vm10, %v4546_v41, %v4579_v60  ;;  %v4583_v52 = vsel %vm9381_vm10, %v4550_v19, %v4582_v9  ;;  %v4636_v56 = vsel %vm1224_vm4, %v4635_v27, %v4634_v1  ;;  %v4639_v29 = vrot.slane %v4507_v0, 4 }
 0x6be   :  { %4581 = vst [vmem:[%s9822_s4 + $0x18] sm:$0x4] %v4580_v58  ;;  %4584 = vst [vmem:[%s9822_s4 + $0x1c] sm:$0x4] %v4583_v52  ;;  %v4638_v16 = vsel %vm1227_vm5, %v4637_v11, %v4636_v56  ;;  %v4641_v33 = vrot.slane %v4508_v48, 3  ;;  %v4643_v61 = vrot.slane %v4509_v10, 2 }
 0x6bf   :  { %v4640_v6 = vsel %vm1230_vm6, %v4639_v29, %v4638_v16  ;;  %v4645_v38 = vrot.slane %v4510_v8, 1  ;;  %v9949_v10 = vld [vmem:[#allocation5_spill] sm:$0xff] }
 0x6c0   :  { %v4642_v12 = vsel %vm1233_vm7, %v4641_v33, %v4640_v6  ;;  %v4586_v27 = vld [vmem:[#allocation2 + $0x6] ss:$8 sm:$0xf] }
 0x6c1   :  { %v4644_v36 = vsel %vm1236_vm8, %v4643_v61, %v4642_v12  ;;  %v4588_v17 = vld [vmem:[#allocation2 + $0x26] ss:$8 sm:$0xf] }
 0x6c2   :  { %v4646_v0 = vsel %vm1239_vm9, %v4645_v38, %v4644_v36  ;;  %v4590_v42 = vld [vmem:[#allocation2 + $0x46] ss:$8 sm:$0xf] }
 0x6c3   :  { %v4647_v24 = vpack.c.b16 %v4646_v0, %v4646_v0  ;;  %v4594_v60 = vld [vmem:[#allocation2 + $0x86] ss:$8 sm:$0xf] }
 0x6c4   :  { %v4592_v52 = vld [vmem:[#allocation2 + $0x66] ss:$8 sm:$0xf] }
 0x6c5   :  { %4842 = vmatmul.mubr.bf16.vlgmr.msra.gmra.mxu0 %v4647_v24  ;;  %4883 = vmatmul.mubr.bf16.vlgmr.msra.gmra.mxu1 %v4647_v24  ;;  %v4596_v56 = vld [vmem:[#allocation2 + $0xa6] ss:$8 sm:$0xf] }
 0x6c6   :  { %5479 = vmatpush1.bf16.msra.mxu0 %v9106_v7  ;;  %5520 = vmatpush1.bf16.msra.mxu1 %v9111_v4  ;;  %v9939_v7 = vld [vmem:[#allocation6_spill] sm:$0xff]  ;;  %v9940_v4 = vld [vmem:[#allocation7_spill] sm:$0xff] }
 0x6c7   :  { %5480 = vmatprep.subr.bf16.mxu0 %v9120_v39  ;;  %5521 = vmatprep.subr.bf16.mxu1 %v9125_v43  ;;  %v9941_v39 = vld [vmem:[#allocation8_spill] sm:$0xff]  ;;  %v9942_v43 = vld [vmem:[#allocation9_spill] sm:$0xff] }
 0x6c8   :  { %5510 = vmatprep.mubr.bf16.mxu0 %v9882_v40  ;;  %5551 = vmatprep.mubr.bf16.mxu1 %v9882_v40  ;;  %v9938_v40 = vld [vmem:[#allocation17_spill] sm:$0xff] }
 0x6c9   :  { %v4598_v6 = vld [vmem:[#allocation2 + $0xc6] ss:$8 sm:$0xf] }
 0x6ca   :  { %5481 = vmatpush1.bf16.msra.mxu0 %v9130_v21  ;;  %5522 = vmatpush1.bf16.msra.mxu1 %v9135_v26  ;;  %v9943_v21 = vld [vmem:[#allocation10_spill] sm:$0xff]  ;;  %v9944_v26 = vld [vmem:[#allocation11_spill] sm:$0xff] }
 0x6cb   :  { %5482 = vmatprep.subr.bf16.mxu0 %v9144_v34  ;;  %5523 = vmatprep.subr.bf16.mxu1 %v9149_v14  ;;  %v9945_v34 = vld [vmem:[#allocation12_spill] sm:$0xff]  ;;  %v9946_v14 = vld [vmem:[#allocation13_spill] sm:$0xff] }
 0x6cc   :  { %v4600_v36 = vld [vmem:[#allocation2 + $0xe6] ss:$8 sm:$0xf] }
 0x6ce   :  { %5483 = vmatpush1.bf16.msra.mxu0 %v9154_v37  ;;  %5524 = vmatpush1.bf16.msra.mxu1 %v9159_v54  ;;  %v9947_v37 = vld [vmem:[#allocation14_spill] sm:$0xff]  ;;  %v9948_v54 = vld [vmem:[#allocation15_spill] sm:$0xff] }
 0x6cf   :  { %5484 = vmatprep.subr.bf16.mxu0 %v9166_v47  ;;  %5525 = vmatprep.subr.bf16.mxu1 %v9171_v5 }
 0x6d2   :  { %5485 = vmatpush1.bf16.msra.mxu0 %v9178_v55  ;;  %5526 = vmatpush1.bf16.msra.mxu1 %v9183_v51 }
 0x6d3   :  { %5486 = vmatprep.subr.bf16.mxu0 %v9190_v18  ;;  %5527 = vmatprep.subr.bf16.mxu1 %v9195_v2 }
 0x6d6   :  { %5487 = vmatpush1.bf16.msra.mxu0 %v9202_v57  ;;  %5528 = vmatpush1.bf16.msra.mxu1 %v9207_v32 }
 0x6d7   :  { %5488 = vmatprep.subr.bf16.mxu0 %v9214_v22  ;;  %5529 = vmatprep.subr.bf16.mxu1 %v9938_v40 }
 0x6da   :  { %5489 = vmatpush1.bf16.msra.mxu0 %v9939_v7  ;;  %5530 = vmatpush1.bf16.msra.mxu1 %v9940_v4 }
 0x6db   :  { %5490 = vmatprep.subr.bf16.mxu0 %v9941_v39  ;;  %5531 = vmatprep.subr.bf16.mxu1 %v9942_v43 }
 0x6de   :  { %5491 = vmatpush1.bf16.msra.mxu0 %v9943_v21  ;;  %5532 = vmatpush1.bf16.msra.mxu1 %v9944_v26 }
 0x6df   :  { %5492 = vmatprep.subr.bf16.mxu0 %v9945_v34  ;;  %5533 = vmatprep.subr.bf16.mxu1 %v9946_v14 }
 0x6e2   :  { %5493 = vmatpush1.bf16.msra.mxu0 %v9947_v37  ;;  %5534 = vmatpush1.bf16.msra.mxu1 %v9948_v54 }
 0x785   :  { %v4843_v47 = vpop.f32.mrf.mxu0  ;;  %v4884_v5 = vpop.f32.mrf.mxu1 }
 0x787   :  { %v4845_v55 = vpop.f32.mrf.mxu0  ;;  %v4886_v51 = vpop.f32.mrf.mxu1 }
 0x788   :  { %v4895_v18 = vcombine.low %v4843_v47, %v4845_v55  ;;  %v4896_v2 = vcombine.high %v4843_v47, %v4845_v55  ;;  %v4897_v57 = vcombine.low %v4884_v5, %v4886_v51  ;;  %v4898_v32 = vcombine.high %v4884_v5, %v4886_v51 }
 0x789   :  { %v4847_v22 = vpop.f32.mrf.mxu0  ;;  %v4888_v48 = vpop.f32.mrf.mxu1 }
 0x78a   :  { %v4905_v8 = vrot.slane %v4895_v18, %v9949_v10  ;;  %v4912_v25 = vrot.slane %v4896_v2, %v9949_v10  ;;  %v4919_v59 = vrot.slane %v4897_v57, %v9949_v10  ;;  %v4926_v3 = vrot.slane %v4898_v32, %v9949_v10 }
 0x78b   :  { %v4848_v15 = vpop.f32.mrf.mxu0  ;;  %v4889_v44 = vpop.f32.mrf.mxu1 }
 0x78c   :  { %v4927_v31 = vcombine.low %v4905_v8, %v4919_v59  ;;  %v4928_v30 = vcombine.high %v4905_v8, %v4919_v59  ;;  %v4929_v28 = vcombine.low %v4912_v25, %v4926_v3  ;;  %v4930_v23 = vcombine.high %v4912_v25, %v4926_v3 }
 0x78e   :  { %v4937_v41 = vrot.slane %v4927_v31, %v9949_v10  ;;  %v4944_v19 = vrot.slane %v4929_v28, %v9949_v10  ;;  %v4951_v46 = vrot.slane %v4928_v30, %v9949_v10  ;;  %v4958_v45 = vrot.slane %v4930_v23, %v9949_v10 }
 0x790   :  { %v4959_v9 = vcombine.high %v4937_v41, %v4937_v41  ;;  %v4960_v1 = vcombine.high %v4944_v19, %v4944_v19  ;;  %v4961_v11 = vcombine.high %v4951_v46, %v4951_v46  ;;  %v4962_v58 = vcombine.high %v4958_v45, %v4958_v45 }
 0x791   :  { %v9496_v29 = vadd.f32 %v4937_v41, %v4586_v27  ;;  %v9498_v16 = vadd.f32 %v4951_v46, %v4588_v17  ;;  %v9500_v33 = vadd.f32 %v4944_v19, %v4594_v60  ;;  %v9506_v38 = vadd.f32 %v4958_v45, %v4596_v56 }
 0x792   :  { %v9502_v61 = vadd.f32 %v4959_v9, %v4590_v42  ;;  %v9504_v12 = vadd.f32 %v4961_v11, %v4592_v52  ;;  %v9508_v0 = vadd.f32 %v4960_v1, %v4598_v6  ;;  %v9512_v7 = vadd.f32 %v4962_v58, %v4600_v36 }
 0x793   :  { %v4979_v24 = vmul.f32 0.5, %v9496_v29  ;;  %v4980_v40 = vmul.f32 0.5, %v9498_v16  ;;  %v4983_v43 = vmul.f32 0.5, %v9500_v33  ;;  %v5019_v21 = vrot.slane %v9496_v29, 1 }
 0x794   :  { %v4981_v4 = vmul.f32 0.5, %v9502_v61  ;;  %v4982_v39 = vmul.f32 0.5, %v9504_v12  ;;  %v4984_v26 = vmul.f32 0.5, %v9506_v38  ;;  %v5020_v34 = vrot.slane %v9498_v16, 1 }
 0x795   :  { %7213 = vtanh.f32 %v4979_v24  ;;  %v4985_v14 = vmul.f32 0.5, %v9508_v0  ;;  %v5021_v37 = vrot.slane %v9502_v61, 1  ;;  %v4986_v54 = vmul.f32 0.5, %v9512_v7 }
 0x796   :  { %7215 = vtanh.f32 %v4980_v40  ;;  %v5022_v47 = vrot.slane %v9504_v12, 1  ;;  %v5023_v5 = vrot.slane %v9500_v33, 1  ;;  %v5035_v55 = vmul.f32 0.5, %v5019_v21 }
 0x797   :  { %7217 = vtanh.f32 %v4981_v4  ;;  %v5024_v51 = vrot.slane %v9506_v38, 1  ;;  %v5036_v18 = vmul.f32 0.5, %v5020_v34  ;;  %v5025_v2 = vrot.slane %v9508_v0, 1 }
 0x798   :  { %7219 = vtanh.f32 %v4982_v39  ;;  %v5037_v57 = vmul.f32 0.5, %v5021_v37  ;;  %v5026_v32 = vrot.slane %v9512_v7, 1  ;;  %v5038_v22 = vmul.f32 0.5, %v5022_v47 }
 0x799   :  { %7221 = vtanh.f32 %v4983_v43  ;;  %v5039_v48 = vmul.f32 0.5, %v5023_v5  ;;  %v5040_v8 = vmul.f32 0.5, %v5024_v51  ;;  %v5041_v25 = vmul.f32 0.5, %v5025_v2 }
 0x79a   :  { %7223 = vtanh.f32 %v4984_v26  ;;  %v5042_v59 = vmul.f32 0.5, %v5026_v32  ;;  %v5067_v3 = vrot.slane %v9496_v29, 2  ;;  %v5068_v15 = vrot.slane %v9498_v16, 2 }
 0x79b   :  { %7225 = vtanh.f32 %v4985_v14  ;;  %v5069_v44 = vrot.slane %v9502_v61, 2  ;;  %v5070_v30 = vrot.slane %v9504_v12, 2  ;;  %v5091_v28 = vrot.slane %v9496_v29, 3 }
 0x79c   :  { %7227 = vtanh.f32 %v4986_v54  ;;  %v5092_v23 = vrot.slane %v9498_v16, 3  ;;  %v5071_v19 = vrot.slane %v9500_v33, 2  ;;  %v5093_v46 = vrot.slane %v9502_v61, 3 }
 0x79d   :  { %7229 = vtanh.f32 %v5035_v55  ;;  %v5094_v45 = vrot.slane %v9504_v12, 3  ;;  %v5072_v17 = vrot.slane %v9506_v38, 2  ;;  %v5095_v42 = vrot.slane %v9500_v33, 3 }
 0x79e   :  { %7231 = vtanh.f32 %v5036_v18  ;;  %v5096_v60 = vrot.slane %v9506_v38, 3  ;;  %v5073_v1 = vrot.slane %v9508_v0, 2  ;;  %v5074_v11 = vrot.slane %v9512_v7, 2 }
 0x79f   :  { %7233 = vtanh.f32 %v5037_v57  ;;  %v5097_v58 = vrot.slane %v9508_v0, 3  ;;  %v5098_v56 = vrot.slane %v9512_v7, 3  ;;  %v5107_v29 = vmul.f32 0.5, %v5091_v28 }
 0x7a0   :  { %7235 = vtanh.f32 %v5038_v22  ;;  %v5108_v16 = vmul.f32 0.5, %v5092_v23  ;;  %v5109_v33 = vmul.f32 0.5, %v5093_v46  ;;  %v5110_v12 = vmul.f32 0.5, %v5094_v45 }
 0x7a1   :  { %7237 = vtanh.f32 %v5039_v48  ;;  %v5111_v24 = vmul.f32 0.5, %v5095_v42  ;;  %v5112_v40 = vmul.f32 0.5, %v5096_v60  ;;  %v5113_v0 = vmul.f32 0.5, %v5097_v58 }
 0x7a2   :  { %v7214_v31 = vpop.eup %7213  ;;  %7239 = vtanh.f32 %v5040_v8  ;;  %v5114_v34 = vmul.f32 0.5, %v5098_v56 }
 0x7a3   :  { %v7216_v41 = vpop.eup %7215  ;;  %7241 = vtanh.f32 %v5041_v25  ;;  %v4995_v61 = vadd.f32 1.0, %v7214_v31 }
 0x7a4   :  { %v7218_v27 = vpop.eup %7217  ;;  %7243 = vtanh.f32 %v5042_v59  ;;  %v4996_v36 = vadd.f32 1.0, %v7216_v41 }
 0x7a5   :  { %v7220_v9 = vpop.eup %7219  ;;  %7245 = vtanh.f32 %v5067_v3  ;;  %v4997_v39 = vadd.f32 1.0, %v7218_v27  ;;  %v5003_v54 = vmul.f32 0.5, %v4995_v61 }
 0x7a6   :  { %v7222_v52 = vpop.eup %7221  ;;  %7247 = vtanh.f32 %v5068_v15  ;;  %v4998_v43 = vadd.f32 1.0, %v7220_v9  ;;  %v5004_v51 = vmul.f32 0.5, %v4996_v36 }
 0x7a7   :  { %v7224_v6 = vpop.eup %7223  ;;  %7249 = vtanh.f32 %v5069_v44  ;;  %v4999_v26 = vadd.f32 1.0, %v7222_v52  ;;  %v5005_v57 = vmul.f32 0.5, %v4997_v39 }
 0x7a8   :  { %v7226_v38 = vpop.eup %7225  ;;  %7251 = vtanh.f32 %v5070_v30  ;;  %v5000_v7 = vadd.f32 1.0, %v7224_v6  ;;  %v5006_v32 = vmul.f32 0.5, %v4998_v43 }
 0x7a9   :  { %v7228_v4 = vpop.eup %7227  ;;  %7253 = vtanh.f32 %v5071_v19  ;;  %v5001_v37 = vadd.f32 1.0, %v7226_v38  ;;  %v5007_v25 = vmul.f32 0.5, %v4999_v26 }
 0x7aa   :  { %v7230_v21 = vpop.eup %7229  ;;  %7255 = vtanh.f32 %v5072_v17  ;;  %v5002_v55 = vadd.f32 1.0, %v7228_v4  ;;  %v5008_v59 = vmul.f32 0.5, %v5000_v7 }
 0x7ab   :  { %v7232_v14 = vpop.eup %7231  ;;  %v5051_v47 = vadd.f32 1.0, %v7230_v21  ;;  %7257 = vtanh.f32 %v5073_v1  ;;  %v5009_v31 = vmul.f32 0.5, %v5001_v37 }
 0x7ac   :  { %v7234_v5 = vpop.eup %7233  ;;  %v5052_v18 = vadd.f32 1.0, %v7232_v14  ;;  %7259 = vtanh.f32 %v5074_v11  ;;  %v5010_v41 = vmul.f32 0.5, %v5002_v55 }
 0x7ad   :  { %v7236_v2 = vpop.eup %7235  ;;  %v5053_v22 = vadd.f32 1.0, %v7234_v5  ;;  %v5059_v48 = vmul.f32 0.5, %v5051_v47  ;;  %7261 = vtanh.f32 %v5107_v29 }
 0x7ae   :  { %v7238_v8 = vpop.eup %7237  ;;  %v5054_v3 = vadd.f32 1.0, %v7236_v2  ;;  %v5060_v15 = vmul.f32 0.5, %v5052_v18  ;;  %7263 = vtanh.f32 %v5108_v16 }
 0x7af   :  { %v7240_v44 = vpop.eup %7239  ;;  %v5055_v30 = vadd.f32 1.0, %v7238_v8  ;;  %v5061_v28 = vmul.f32 0.5, %v5053_v22  ;;  %7265 = vtanh.f32 %v5109_v33  ;;  %v5139_v42 = vmul.f32 %v5059_v48, %v9348_v35 }
 0x7b0   :  { %v7242_v23 = vpop.eup %7241  ;;  %v5056_v19 = vadd.f32 1.0, %v7240_v44  ;;  %v5062_v46 = vmul.f32 0.5, %v5054_v3  ;;  %7267 = vtanh.f32 %v5110_v12  ;;  %v5140_v11 = vmul.f32 %v5060_v15, %v9351_v49 }
 0x7b1   :  { %v7244_v45 = vpop.eup %7243  ;;  %v5057_v27 = vadd.f32 1.0, %v7242_v23  ;;  %v5063_v17 = vmul.f32 0.5, %v5055_v30  ;;  %7269 = vtanh.f32 %v5111_v24  ;;  %v5141_v56 = vmul.f32 %v5061_v28, %v9354_v13 }
 0x7b2   :  { %v7246_v60 = vpop.eup %7245  ;;  %v5058_v9 = vadd.f32 1.0, %v7244_v45  ;;  %v5064_v1 = vmul.f32 0.5, %v5056_v19  ;;  %7271 = vtanh.f32 %v5112_v40  ;;  %v5142_v61 = vmul.f32 %v5062_v46, %v9358_v50 }
 0x7b3   :  { %v7248_v58 = vpop.eup %7247  ;;  %v5065_v52 = vmul.f32 0.5, %v5057_v27  ;;  %v5147_v29 = vmul.f32 %v7246_v60, %v5003_v54  ;;  %7273 = vtanh.f32 %v5113_v0  ;;  %v5143_v35 = vmul.f32 %v5063_v17, %v9361_v63 }
 0x7b4   :  { %v7250_v6 = vpop.eup %7249  ;;  %v5066_v16 = vmul.f32 0.5, %v5058_v9  ;;  %v5148_v33 = vmul.f32 %v7248_v58, %v5004_v51  ;;  %7275 = vtanh.f32 %v5114_v34  ;;  %v5144_v24 = vmul.f32 %v5064_v1, %v9364_v62  ;;  %v5230_v58 = vld [vmem:[%s9822_s4] sm:$0x8] }
 0x7b5   :  { %v7252_v38 = vpop.eup %7251  ;;  %v5149_v36 = vmul.f32 %v7250_v6, %v5005_v57  ;;  %v9549_v12 = vadd.f32 %v5147_v29, %v5139_v42  ;;  %v5145_v40 = vmul.f32 %v5065_v52, %v9367_v20 }
 0x7b6   :  { %v7254_v49 = vpop.eup %7253  ;;  %v5150_v4 = vmul.f32 %v7252_v38, %v5006_v32  ;;  %v9552_v13 = vadd.f32 %v5148_v33, %v5140_v11  ;;  %v5146_v63 = vmul.f32 %v5066_v16, %v9370_v53  ;;  %v5233_v16 = vld [vmem:[%s9822_s4 + $0x4] sm:$0x8] }
 0x7b7   :  { %v7256_v39 = vpop.eup %7255  ;;  %v5151_v43 = vmul.f32 %v7254_v49, %v5007_v25  ;;  %v9555_v50 = vadd.f32 %v5149_v36, %v5141_v56  ;;  %7277 = vtanh.f32 %v9549_v12 }
 0x7b8   :  { %v7258_v0 = vpop.eup %7257  ;;  %v5152_v21 = vmul.f32 %v7256_v39, %v5008_v59  ;;  %v9559_v26 = vadd.f32 %v5150_v4, %v5142_v61  ;;  %7279 = vtanh.f32 %v9552_v13 }
 0x7b9   :  { %v7260_v62 = vpop.eup %7259  ;;  %v5153_v7 = vmul.f32 %v7258_v0, %v5009_v31  ;;  %v9562_v34 = vadd.f32 %v5151_v43, %v5143_v35  ;;  %7281 = vtanh.f32 %v9555_v50 }
 0x7ba   :  { %v5154_v20 = vmul.f32 %v7260_v62, %v5010_v41  ;;  %v9565_v14 = vadd.f32 %v5152_v21, %v5144_v24  ;;  %7283 = vtanh.f32 %v9559_v26  ;;  %v7262_v53 = vpop.eup %7261 }
 0x7bb   :  { %v9568_v37 = vadd.f32 %v5153_v7, %v5145_v40  ;;  %7285 = vtanh.f32 %v9562_v34  ;;  %v7264_v47 = vpop.eup %7263  ;;  %v5123_v51 = vadd.f32 1.0, %v7262_v53  ;;  %v5236_v53 = vld [vmem:[%s9822_s4 + $0x8] sm:$0x8] }
 0x7bc   :  { %v9571_v54 = vadd.f32 %v5154_v20, %v5146_v63  ;;  %7287 = vtanh.f32 %v9565_v14  ;;  %v7266_v5 = vpop.eup %7265  ;;  %v5124_v2 = vadd.f32 1.0, %v7264_v47  ;;  %v5239_v47 = vld [vmem:[%s9822_s4 + $0xc] sm:$0x8] }
 0x7bd   :  { %7289 = vtanh.f32 %v9568_v37  ;;  %v7268_v55 = vpop.eup %7267  ;;  %v5125_v32 = vadd.f32 1.0, %v7266_v5  ;;  %v5131_v59 = vmul.f32 0.5, %v5123_v51 }
 0x7be   :  { %7291 = vtanh.f32 %v9571_v54  ;;  %v7270_v18 = vpop.eup %7269  ;;  %v5126_v48 = vadd.f32 1.0, %v7268_v55  ;;  %v5132_v15 = vmul.f32 0.5, %v5124_v2  ;;  %v5242_v2 = vld [vmem:[%s9822_s4 + $0x10] sm:$0x8] }
 0x7bf   :  { %v7272_v57 = vpop.eup %7271  ;;  %v5127_v25 = vadd.f32 1.0, %v7270_v18  ;;  %v5133_v30 = vmul.f32 0.5, %v5125_v32 }
 0x7c0   :  { %v7274_v22 = vpop.eup %7273  ;;  %v5128_v44 = vadd.f32 1.0, %v7272_v57  ;;  %v5134_v19 = vmul.f32 0.5, %v5126_v48  ;;  %v5245_v57 = vld [vmem:[%s9822_s4 + $0x14] sm:$0x8] }
 0x7c1   :  { %v7276_v8 = vpop.eup %7275  ;;  %v5129_v23 = vadd.f32 1.0, %v7274_v22  ;;  %v5135_v17 = vmul.f32 0.5, %v5127_v25  ;;  %v5248_v25 = vld [vmem:[%s9822_s4 + $0x18] sm:$0x8] }
 0x7c2   :  { %v5130_v45 = vadd.f32 1.0, %v7276_v8  ;;  %v5136_v52 = vmul.f32 0.5, %v5128_v44 }
 0x7c3   :  { %v5137_v61 = vmul.f32 0.5, %v5129_v23 }
 0x7c4   :  { %v7278_v3 = vpop.eup %7277  ;;  %v5138_v49 = vmul.f32 0.5, %v5130_v45 }
 0x7c5   :  { %v7280_v31 = vpop.eup %7279  ;;  %v5171_v28 = vmul.f32 %v7278_v3, %v5131_v59 }
 0x7c6   :  { %v7282_v41 = vpop.eup %7281  ;;  %v5172_v46 = vmul.f32 %v7280_v31, %v5132_v15  ;;  %v5251_v31 = vld [vmem:[%s9822_s4 + $0x1c] sm:$0x8] }
 0x7c7   :  { %v7284_v27 = vpop.eup %7283  ;;  %v9576_v42 = vpack.c.bf16 %v5171_v28, %v5171_v28  ;;  %v5173_v60 = vmul.f32 %v7282_v41, %v5133_v30 }
 0x7c8   :  { %v7286_v9 = vpop.eup %7285  ;;  %v5180_v1 = vpack.c.bf16 %v5172_v46, %v5172_v46  ;;  %v5174_v56 = vmul.f32 %v7284_v27, %v5134_v19 }
 0x7c9   :  { %v7288_v29 = vpop.eup %7287  ;;  %v5211_v6 = vrot.slane %v9576_v42, 5  ;;  %v5175_v33 = vmul.f32 %v7286_v9, %v5135_v17  ;;  %v5181_v38 = vpack.c.bf16 %v5173_v60, %v5173_v60  ;;  %v5195_v22 = vunpack.c.l.b16 %v9576_v42 }
 0x7ca   :  { %v7290_v35 = vpop.eup %7289  ;;  %v5212_v36 = vrot.slane %v5180_v1, 5  ;;  %v5176_v24 = vmul.f32 %v7288_v29, %v5136_v52  ;;  %v5182_v4 = vpack.c.bf16 %v5174_v56, %v5174_v56  ;;  %v5196_v63 = vunpack.c.l.b16 %v5180_v1 }
 0x7cb   :  { %v7292_v39 = vpop.eup %7291  ;;  %v5231_v40 = vsel %vm9579_vm12, %v5211_v6, %v5230_v58  ;;  %v5177_v43 = vmul.f32 %v7290_v35, %v5137_v61  ;;  %v5183_v0 = vpack.c.bf16 %v5175_v33, %v5175_v33  ;;  %v5197_v20 = vunpack.c.l.b16 %v5181_v38 }
 0x7cc   :  { %5232 = vst [vmem:[%s9822_s4] sm:$0x8] %v5231_v40  ;;  %v5234_v21 = vsel %vm9579_vm12, %v5212_v36, %v5233_v16  ;;  %v5178_v62 = vmul.f32 %v7292_v39, %v5138_v49  ;;  %v5184_v7 = vpack.c.bf16 %v5176_v24, %v5176_v24  ;;  %v5198_v55 = vunpack.c.l.b16 %v5182_v4 }
 0x7cd   :  { %5235 = vst [vmem:[%s9822_s4 + $0x4] sm:$0x8] %v5234_v21  ;;  %v5185_v5 = vpack.c.bf16 %v5177_v43, %v5177_v43  ;;  %v5213_v51 = vrot.slane %v5181_v38, 5  ;;  %v5214_v18 = vrot.slane %v5182_v4, 5  ;;  %v5215_v48 = vrot.slane %v5183_v0, 5 }
 0x7ce   :  { %v5186_v32 = vpack.c.bf16 %v5178_v62, %v5178_v62  ;;  %v5216_v8 = vrot.slane %v5184_v7, 5  ;;  %v5199_v59 = vunpack.c.l.b16 %v5183_v0  ;;  %v5200_v30 = vunpack.c.l.b16 %v5184_v7 }
 0x7cf   :  { %v5217_v3 = vrot.slane %v5185_v5, 5  ;;  %v5237_v15 = vsel %vm9579_vm12, %v5213_v51, %v5236_v53  ;;  %v5240_v44 = vsel %vm9579_vm12, %v5214_v18, %v5239_v47  ;;  %v5243_v23 = vsel %vm9579_vm12, %v5215_v48, %v5242_v2  ;;  %v5255_v48 = vld [vmem:[#allocation2 + $0x7] ss:$8 sm:$0xf] }
 0x7d0   :  { %v5218_v28 = vrot.slane %v5186_v32, 5  ;;  %5238 = vst [vmem:[%s9822_s4 + $0x8] sm:$0x8] %v5237_v15  ;;  %5241 = vst [vmem:[%s9822_s4 + $0xc] sm:$0x8] %v5240_v44  ;;  %v5246_v41 = vsel %vm9579_vm12, %v5216_v8, %v5245_v57  ;;  %v5302_v46 = vrot.slane %v5196_v63, 7  ;;  %v5201_v17 = vunpack.c.l.b16 %v5185_v5 }
 0x7d1   :  { %5244 = vst [vmem:[%s9822_s4 + $0x10] sm:$0x8] %v5243_v23  ;;  %5247 = vst [vmem:[%s9822_s4 + $0x14] sm:$0x8] %v5246_v41  ;;  %v5249_v19 = vsel %vm9579_vm12, %v5217_v3, %v5248_v25  ;;  %v5304_v45 = vrot.slane %v5197_v20, 6  ;;  %v5306_v27 = vrot.slane %v5198_v55, 5  ;;  %v5202_v60 = vunpack.c.l.b16 %v5186_v32 }
 0x7d2   :  { %5250 = vst [vmem:[%s9822_s4 + $0x18] sm:$0x8] %v5249_v19  ;;  %v5252_v42 = vsel %vm9579_vm12, %v5218_v28, %v5251_v31  ;;  %v5303_v9 = vsel %vm1221_vm2, %v5302_v46, %v5195_v22  ;;  %v5308_v58 = vrot.slane %v5199_v59, 4  ;;  %v5310_v56 = vrot.slane %v5200_v30, 3 }
 0x7d3   :  { %5253 = vst [vmem:[%s9822_s4 + $0x1c] sm:$0x8] %v5252_v42  ;;  %v5305_v1 = vsel %vm1224_vm4, %v5304_v45, %v5303_v9  ;;  %v5312_v6 = vrot.slane %v5201_v17, 2  ;;  %v5314_v11 = vrot.slane %v5202_v60, 1  ;;  %vm5920_vm2 = vsmask.f32 7950 }
 0x7d4   :  { %v5307_v52 = vsel %vm1227_vm5, %v5306_v27, %v5305_v1  ;;  %v5257_v8 = vld [vmem:[#allocation2 + $0x27] ss:$8 sm:$0xf]  ;;  %vm9741_vm4 = vmand %vm1227_vm5, %vm5920_vm2 }
 0x7d5   :  { %v5309_v29 = vsel %vm1230_vm6, %v5308_v58, %v5307_v52  ;;  %v5259_v25 = vld [vmem:[#allocation2 + $0x47] ss:$8 sm:$0xf] }
 0x7d6   :  { %v5311_v16 = vsel %vm1233_vm7, %v5310_v56, %v5309_v29  ;;  %v5263_v59 = vld [vmem:[#allocation2 + $0x87] ss:$8 sm:$0xf] }
 0x7d7   :  { %v5313_v61 = vsel %vm1236_vm8, %v5312_v6, %v5311_v16  ;;  %v5261_v30 = vld [vmem:[#allocation2 + $0x67] ss:$8 sm:$0xf] }
 0x7d8   :  { %v5315_v33 = vsel %vm1239_vm9, %v5314_v11, %v5313_v61  ;;  %v5265_v28 = vld [vmem:[#allocation2 + $0xa7] ss:$8 sm:$0xf] }
 0x7d9   :  { %v5316_v38 = vpack.c.b16 %v5315_v33, %v5315_v33  ;;  %v5267_v46 = vld [vmem:[#allocation2 + $0xc7] ss:$8 sm:$0xf] }
 0x7da   :  { %v5269_v42 = vld [vmem:[#allocation2 + $0xe7] ss:$8 sm:$0xf] }
 0x7db   :  { %5511 = vmatmul.mubr.bf16.vlgmr.msra.gmra.mxu0 %v5316_v38  ;;  %5552 = vmatmul.mubr.bf16.vlgmr.msra.gmra.mxu1 %v5316_v38 }
 0x89b   :  { %v5512_v35 = vpop.f32.mrf.mxu0  ;;  %v5553_v36 = vpop.f32.mrf.mxu1 }
 0x89d   :  { %v5514_v49 = vpop.f32.mrf.mxu0  ;;  %v5555_v24 = vpop.f32.mrf.mxu1 }
 0x89e   :  { %v5564_v4 = vcombine.low %v5512_v35, %v5514_v49  ;;  %v5565_v39 = vcombine.high %v5512_v35, %v5514_v49  ;;  %v5566_v40 = vcombine.low %v5553_v36, %v5555_v24  ;;  %v5567_v43 = vcombine.high %v5553_v36, %v5555_v24 }
 0x89f   :  { %v5516_v0 = vpop.f32.mrf.mxu0  ;;  %v5557_v63 = vpop.f32.mrf.mxu1 }
 0x8a0   :  { %v5574_v21 = vrot.slane %v5564_v4, %v9949_v10  ;;  %v5581_v62 = vrot.slane %v5565_v39, %v9949_v10  ;;  %v5588_v7 = vrot.slane %v5566_v40, %v9949_v10  ;;  %v5595_v20 = vrot.slane %v5567_v43, %v9949_v10 }
 0x8a1   :  { %v5517_v53 = vpop.f32.mrf.mxu0  ;;  %v5558_v47 = vpop.f32.mrf.mxu1 }
 0x8a2   :  { %v5596_v5 = vcombine.low %v5574_v21, %v5588_v7  ;;  %v5597_v55 = vcombine.high %v5574_v21, %v5588_v7  ;;  %v5598_v51 = vcombine.low %v5581_v62, %v5595_v20  ;;  %v5599_v18 = vcombine.high %v5581_v62, %v5595_v20 }
 0x8a4   :  { %v5606_v2 = vrot.slane %v5596_v5, %v9949_v10  ;;  %v5613_v57 = vrot.slane %v5598_v51, %v9949_v10  ;;  %v5620_v32 = vrot.slane %v5597_v55, %v9949_v10  ;;  %v5627_v22 = vrot.slane %v5599_v18, %v9949_v10 }
 0x8a6   :  { %v5628_v3 = vcombine.high %v5606_v2, %v5606_v2  ;;  %v5629_v15 = vcombine.high %v5613_v57, %v5613_v57  ;;  %v5630_v44 = vcombine.high %v5620_v32, %v5620_v32  ;;  %v5631_v31 = vcombine.high %v5627_v22, %v5627_v22 }
 0x8a7   :  { %v9664_v23 = vadd.f32 %v5606_v2, %v5255_v48  ;;  %v9666_v41 = vadd.f32 %v5620_v32, %v5257_v8  ;;  %v9668_v19 = vadd.f32 %v5613_v57, %v5263_v59  ;;  %v9674_v17 = vadd.f32 %v5627_v22, %v5265_v28 }
 0x8a8   :  { %v9670_v45 = vadd.f32 %v5628_v3, %v5259_v25  ;;  %v9672_v27 = vadd.f32 %v5630_v44, %v5261_v30  ;;  %v9676_v60 = vadd.f32 %v5629_v15, %v5267_v46  ;;  %v9680_v58 = vadd.f32 %v5631_v31, %v5269_v42 }
 0x8a9   :  { %v5648_v9 = vmul.f32 0.5, %v9664_v23  ;;  %v5649_v1 = vmul.f32 0.5, %v9666_v41  ;;  %v5652_v29 = vmul.f32 0.5, %v9668_v19  ;;  %v5688_v6 = vrot.slane %v9664_v23, 1 }
 0x8aa   :  { %v5650_v52 = vmul.f32 0.5, %v9670_v45  ;;  %v5651_v56 = vmul.f32 0.5, %v9672_v27  ;;  %v5653_v16 = vmul.f32 0.5, %v9674_v17  ;;  %v5689_v11 = vrot.slane %v9666_v41, 1 }
 0x8ab   :  { %7293 = vtanh.f32 %v5648_v9  ;;  %v5654_v61 = vmul.f32 0.5, %v9676_v60  ;;  %v5690_v33 = vrot.slane %v9670_v45, 1  ;;  %v5655_v38 = vmul.f32 0.5, %v9680_v58 }
 0x8ac   :  { %7295 = vtanh.f32 %v5649_v1  ;;  %v5691_v35 = vrot.slane %v9672_v27, 1  ;;  %v5692_v36 = vrot.slane %v9668_v19, 1  ;;  %v5704_v49 = vmul.f32 0.5, %v5688_v6 }
 0x8ad   :  { %7297 = vtanh.f32 %v5650_v52  ;;  %v5693_v24 = vrot.slane %v9674_v17, 1  ;;  %v5705_v4 = vmul.f32 0.5, %v5689_v11  ;;  %v5694_v39 = vrot.slane %v9676_v60, 1 }
 0x8ae   :  { %7299 = vtanh.f32 %v5651_v56  ;;  %v5706_v40 = vmul.f32 0.5, %v5690_v33  ;;  %v5695_v43 = vrot.slane %v9680_v58, 1  ;;  %v5707_v0 = vmul.f32 0.5, %v5691_v35 }
 0x8af   :  { %7301 = vtanh.f32 %v5652_v29  ;;  %v5708_v63 = vmul.f32 0.5, %v5692_v36  ;;  %v5709_v21 = vmul.f32 0.5, %v5693_v24  ;;  %v5710_v62 = vmul.f32 0.5, %v5694_v39 }
 0x8b0   :  { %7303 = vtanh.f32 %v5653_v16  ;;  %v5711_v7 = vmul.f32 0.5, %v5695_v43  ;;  %v5736_v20 = vrot.slane %v9664_v23, 2  ;;  %v5737_v53 = vrot.slane %v9666_v41, 2 }
 0x8b1   :  { %7305 = vtanh.f32 %v5654_v61  ;;  %v5738_v47 = vrot.slane %v9670_v45, 2  ;;  %v5739_v55 = vrot.slane %v9672_v27, 2  ;;  %v5740_v51 = vrot.slane %v9668_v19, 2 }
 0x8b2   :  { %7307 = vtanh.f32 %v5655_v38  ;;  %v5760_v18 = vrot.slane %v9664_v23, 3  ;;  %v5741_v57 = vrot.slane %v9674_v17, 2  ;;  %v5742_v32 = vrot.slane %v9676_v60, 2 }
 0x8b3   :  { %7309 = vtanh.f32 %v5704_v49  ;;  %v5761_v22 = vrot.slane %v9666_v41, 3  ;;  %v5743_v8 = vrot.slane %v9680_v58, 2  ;;  %v5762_v25 = vrot.slane %v9670_v45, 3 }
 0x8b4   :  { %7311 = vtanh.f32 %v5705_v4  ;;  %v5763_v59 = vrot.slane %v9672_v27, 3  ;;  %v5764_v15 = vrot.slane %v9668_v19, 3  ;;  %v5765_v44 = vrot.slane %v9674_v17, 3 }
 0x8b5   :  { %7313 = vtanh.f32 %v5706_v40  ;;  %v5766_v31 = vrot.slane %v9676_v60, 3  ;;  %v5767_v23 = vrot.slane %v9680_v58, 3  ;;  %v5776_v41 = vmul.f32 0.5, %v5760_v18 }
 0x8b6   :  { %7315 = vtanh.f32 %v5707_v0  ;;  %v5777_v45 = vmul.f32 0.5, %v5761_v22  ;;  %v5778_v52 = vmul.f32 0.5, %v5762_v25  ;;  %v5779_v19 = vmul.f32 0.5, %v5763_v59 }
 0x8b7   :  { %7317 = vtanh.f32 %v5708_v63  ;;  %v5780_v17 = vmul.f32 0.5, %v5764_v15  ;;  %v5781_v60 = vmul.f32 0.5, %v5765_v44  ;;  %v5782_v29 = vmul.f32 0.5, %v5766_v31 }
 0x8b8   :  { %v7294_v5 = vpop.eup %7293  ;;  %7319 = vtanh.f32 %v5709_v21  ;;  %v5783_v58 = vmul.f32 0.5, %v5767_v23 }
 0x8b9   :  { %v7296_v2 = vpop.eup %7295  ;;  %7321 = vtanh.f32 %v5710_v62  ;;  %v5664_v28 = vadd.f32 1.0, %v7294_v5 }
 0x8ba   :  { %v7298_v48 = vpop.eup %7297  ;;  %7323 = vtanh.f32 %v5711_v7  ;;  %v5665_v42 = vadd.f32 1.0, %v7296_v2 }
 0x8bb   :  { %v7300_v3 = vpop.eup %7299  ;;  %7325 = vtanh.f32 %v5736_v20  ;;  %v5666_v9 = vadd.f32 1.0, %v7298_v48  ;;  %v5672_v11 = vmul.f32 0.5, %v5664_v28 }
 0x8bc   :  { %v7302_v30 = vpop.eup %7301  ;;  %7327 = vtanh.f32 %v5737_v53  ;;  %v5667_v1 = vadd.f32 1.0, %v7300_v3  ;;  %v5673_v33 = vmul.f32 0.5, %v5665_v42 }
 0x8bd   :  { %v7304_v46 = vpop.eup %7303  ;;  %7329 = vtanh.f32 %v5738_v47  ;;  %v5668_v16 = vadd.f32 1.0, %v7302_v30  ;;  %v5674_v38 = vmul.f32 0.5, %v5666_v9 }
 0x8be   :  { %v7306_v27 = vpop.eup %7305  ;;  %7331 = vtanh.f32 %v5739_v55  ;;  %v5669_v49 = vadd.f32 1.0, %v7304_v46  ;;  %v5675_v24 = vmul.f32 0.5, %v5667_v1 }
 0x8bf   :  { %v7308_v56 = vpop.eup %7307  ;;  %7333 = vtanh.f32 %v5740_v51  ;;  %v5670_v40 = vadd.f32 1.0, %v7306_v27  ;;  %v5676_v21 = vmul.f32 0.5, %v5668_v16 }
 0x8c0   :  { %v7310_v6 = vpop.eup %7309  ;;  %7335 = vtanh.f32 %v5741_v57  ;;  %v5671_v53 = vadd.f32 1.0, %v7308_v56  ;;  %v5677_v51 = vmul.f32 0.5, %v5669_v49 }
 0x8c1   :  { %v7312_v61 = vpop.eup %7311  ;;  %v5720_v35 = vadd.f32 1.0, %v7310_v6  ;;  %7337 = vtanh.f32 %v5742_v32 }
 0x8c2   :  { %v7314_v36 = vpop.eup %7313  ;;  %v5721_v4 = vadd.f32 1.0, %v7312_v61  ;;  %7339 = vtanh.f32 %v5743_v8 }
 0x8c3   :  { %v7316_v39 = vpop.eup %7315  ;;  %v5722_v43 = vadd.f32 1.0, %v7314_v36  ;;  %v5728_v0 = vmul.f32 0.5, %v5720_v35  ;;  %7341 = vtanh.f32 %v5776_v41 }
 0x8c4   :  { %v7318_v63 = vpop.eup %7317  ;;  %v5723_v62 = vadd.f32 1.0, %v7316_v39  ;;  %v5729_v7 = vmul.f32 0.5, %v5721_v4  ;;  %7343 = vtanh.f32 %v5777_v45 }
 0x8c5   :  { %v7320_v20 = vpop.eup %7319  ;;  %v5724_v47 = vadd.f32 1.0, %v7318_v63  ;;  %v5730_v5 = vmul.f32 0.5, %v5722_v43  ;;  %7345 = vtanh.f32 %v5778_v52  ;;  %v5808_v48 = vmul.f32 %v5728_v0, %v9549_v12 }
 0x8c6   :  { %v7322_v55 = vpop.eup %7321  ;;  %v5725_v18 = vadd.f32 1.0, %v7320_v20  ;;  %v5731_v2 = vmul.f32 0.5, %v5723_v62  ;;  %7347 = vtanh.f32 %v5779_v19  ;;  %v5809_v3 = vmul.f32 %v5729_v7, %v9552_v13 }
 0x8c7   :  { %v7324_v57 = vpop.eup %7323  ;;  %v5726_v32 = vadd.f32 1.0, %v7322_v55  ;;  %v5732_v22 = vmul.f32 0.5, %v5724_v47  ;;  %7349 = vtanh.f32 %v5780_v17  ;;  %v5810_v31 = vmul.f32 %v5730_v5, %v9555_v50 }
 0x8c8   :  { %v7326_v8 = vpop.eup %7325  ;;  %v5727_v25 = vadd.f32 1.0, %v7324_v57  ;;  %v5733_v59 = vmul.f32 0.5, %v5725_v18  ;;  %7351 = vtanh.f32 %v5781_v60  ;;  %v5811_v41 = vmul.f32 %v5731_v2, %v9559_v26 }
 0x8c9   :  { %v7328_v15 = vpop.eup %7327  ;;  %v5734_v44 = vmul.f32 0.5, %v5726_v32  ;;  %7353 = vtanh.f32 %v5782_v29  ;;  %v5816_v30 = vmul.f32 %v7326_v8, %v5672_v11  ;;  %v5678_v12 = vmul.f32 0.5, %v5670_v40 }
 0x8ca   :  { %v7330_v28 = vpop.eup %7329  ;;  %v5735_v23 = vmul.f32 0.5, %v5727_v25  ;;  %7355 = vtanh.f32 %v5783_v58  ;;  %v5817_v46 = vmul.f32 %v7328_v15, %v5673_v33  ;;  %v5812_v9 = vmul.f32 %v5732_v22, %v9562_v34 }
 0x8cb   :  { %v7332_v42 = vpop.eup %7331  ;;  %v5818_v45 = vmul.f32 %v7330_v28, %v5674_v38  ;;  %v5824_v27 = vadd.f32 %v5816_v30, %v5808_v48  ;;  %v5679_v13 = vmul.f32 0.5, %v5671_v53  ;;  %v5813_v52 = vmul.f32 %v5733_v59, %v9565_v14 }
 0x8cc   :  { %v7334_v1 = vpop.eup %7333  ;;  %v5819_v19 = vmul.f32 %v7332_v42, %v5675_v24  ;;  %v5825_v56 = vadd.f32 %v5817_v46, %v5809_v3  ;;  %v5814_v17 = vmul.f32 %v5734_v44, %v9568_v37  ;;  %v5815_v6 = vmul.f32 %v5735_v23, %v9571_v54 }
 0x8cd   :  { %v7336_v50 = vpop.eup %7335  ;;  %v5820_v60 = vmul.f32 %v7334_v1, %v5676_v21  ;;  %v5826_v29 = vadd.f32 %v5818_v45, %v5810_v31  ;;  %7357 = vtanh.f32 %v5824_v27 }
 0x8ce   :  { %v7338_v26 = vpop.eup %7337  ;;  %v5821_v16 = vmul.f32 %v7336_v50, %v5677_v51  ;;  %v5827_v11 = vadd.f32 %v5819_v19, %v5811_v41  ;;  %7359 = vtanh.f32 %v5825_v56  ;;  %v6013_v33 = vcombine.low %v5824_v27, %v5825_v56 }
 0x8cf   :  { %v7340_v34 = vpop.eup %7339  ;;  %v5822_v58 = vmul.f32 %v7338_v26, %v5678_v12  ;;  %v5828_v61 = vadd.f32 %v5820_v60, %v5812_v9  ;;  %7361 = vtanh.f32 %v5826_v29 }
 0x8d0   :  { %v7342_v14 = vpop.eup %7341  ;;  %v5823_v38 = vmul.f32 %v7340_v34, %v5679_v13  ;;  %v5829_v35 = vadd.f32 %v5821_v16, %v5813_v52  ;;  %7363 = vtanh.f32 %v5827_v11  ;;  %v6014_v36 = vcombine.low %v5826_v29, %v5827_v11 }
 0x8d1   :  { %v7344_v37 = vpop.eup %7343  ;;  %v5830_v49 = vadd.f32 %v5822_v58, %v5814_v17  ;;  %7365 = vtanh.f32 %v5828_v61  ;;  %v6023_v40 = vrot.slane %v6013_v33, %v9949_v10  ;;  %v5792_v62 = vadd.f32 1.0, %v7342_v14 }
 0x8d2   :  { %v7346_v24 = vpop.eup %7345  ;;  %v5831_v4 = vadd.f32 %v5823_v38, %v5815_v6  ;;  %7367 = vtanh.f32 %v5829_v35  ;;  %v6015_v54 = vcombine.low %v5828_v61, %v5829_v35  ;;  %v6030_v43 = vrot.slane %v6014_v36, %v9949_v10 }
 0x8d3   :  { %v7348_v39 = vpop.eup %7347  ;;  %7369 = vtanh.f32 %v5830_v49  ;;  %v5793_v53 = vadd.f32 1.0, %v7344_v37  ;;  %v5794_v51 = vadd.f32 1.0, %v7346_v24  ;;  %v5800_v48 = vmul.f32 0.5, %v5792_v62 }
 0x8d4   :  { %v7350_v0 = vpop.eup %7349  ;;  %7371 = vtanh.f32 %v5831_v4  ;;  %v6016_v63 = vcombine.low %v5830_v49, %v5831_v4  ;;  %v6045_v7 = vcombine.low %v6023_v40, %v6030_v43  ;;  %v6037_v47 = vrot.slane %v6015_v54, %v9949_v10  ;;  %v5922_v54 = vld [vmem:[%s9822_s4] sm:$0x8] }
 0x8d5   :  { %v7352_v21 = vpop.eup %7351  ;;  %v5795_v18 = vadd.f32 1.0, %v7348_v39  ;;  %v5796_v32 = vadd.f32 1.0, %v7350_v0  ;;  %v5801_v3 = vmul.f32 0.5, %v5793_v53  ;;  %v5802_v31 = vmul.f32 0.5, %v5794_v51  ;;  %v5928_v53 = vld [vmem:[%s9822_s4 + $0x8] sm:$0x8] }
 0x8d6   :  { %v7354_v20 = vpop.eup %7353  ;;  %v6044_v5 = vrot.slane %v6016_v63, %v9949_v10  ;;  %v6053_v57 = vrot.slane %v6045_v7, %v9949_v10  ;;  %v5797_v22 = vadd.f32 1.0, %v7352_v21  ;;  %v5925_v63 = vld [vmem:[%s9822_s4 + $0x4] sm:$0x8]  ;;  %v5931_v51 = vld [vmem:[%s9822_s4 + $0xc] sm:$0x8] }
 0x8d7   :  { %v7356_v55 = vpop.eup %7355  ;;  %v5798_v25 = vadd.f32 1.0, %v7354_v20  ;;  %v5803_v23 = vmul.f32 0.5, %v5795_v18  ;;  %v5804_v12 = vmul.f32 0.5, %v5796_v32 }
 0x8d8   :  { %v6046_v2 = vcombine.low %v6037_v47, %v6044_v5  ;;  %v5799_v59 = vadd.f32 1.0, %v7356_v55  ;;  %v5805_v9 = vmul.f32 0.5, %v5797_v22  ;;  %v5934_v22 = vld [vmem:[%s9822_s4 + $0x10] sm:$0x8] }
 0x8d9   :  { %v5806_v13 = vmul.f32 0.5, %v5798_v25 }
 0x8da   :  { %v7358_v8 = vpop.eup %7357  ;;  %v6060_v15 = vrot.slane %v6046_v2, %v9949_v10  ;;  %v5807_v52 = vmul.f32 0.5, %v5799_v59  ;;  %v5937_v59 = vld [vmem:[%s9822_s4 + $0x14] sm:$0x8] }
 0x8db   :  { %v7360_v44 = vpop.eup %7359  ;;  %v9726_v30 = vmul.f32 %v7358_v8, %v5800_v48 }
 0x8dc   :  { %v7362_v28 = vpop.eup %7361  ;;  %v9728_v41 = vmul.f32 %v7360_v44, %v5801_v3  ;;  %v6061_v46 = vcombine.low %v6053_v57, %v6060_v15 }
 0x8dd   :  { %v7364_v42 = vpop.eup %7363  ;;  %v5842_v45 = vmul.f32 %v7362_v28, %v5802_v31  ;;  %v6477_v27 = vpack.c.bf16 %v9726_v30, %v9726_v30 }
 0x8de   :  { %v7366_v1 = vpop.eup %7365  ;;  %v5843_v19 = vmul.f32 %v7364_v42, %v5803_v23  ;;  %v6478_v56 = vpack.c.bf16 %v9728_v41, %v9728_v41  ;;  %6068 = vst [vmem:[%s9823_s6] sm:$0xff] %v6061_v46  ;;  %v5954_v26 = vcombine.low %v9726_v30, %v9728_v41  ;;  %v5940_v30 = vld [vmem:[%s9822_s4 + $0x18] sm:$0x8]  ;;  %v5943_v46 = vld [vmem:[%s9822_s4 + $0x1c] sm:$0x8] }
 0x8df   :  { %v7368_v50 = vpop.eup %7367  ;;  %v5844_v17 = vmul.f32 %v7366_v1, %v5804_v12  ;;  %v6479_v60 = vpack.c.bf16 %v5842_v45, %v5842_v45  ;;  %v5881_v29 = vshll.u32 %v6477_v27, 16 }
 0x8e0   :  { %v7370_v6 = vpop.eup %7369  ;;  %v5845_v16 = vmul.f32 %v7368_v50, %v5805_v9  ;;  %v6480_v11 = vpack.c.bf16 %v5843_v19, %v5843_v19  ;;  %v5885_v34 = vshll.u32 %v6478_v56, 16  ;;  %v5955_v61 = vcombine.low %v5842_v45, %v5843_v19 }
 0x8e1   :  { %v7372_v33 = vpop.eup %7371  ;;  %v5846_v14 = vmul.f32 %v7370_v6, %v5806_v13  ;;  %v6481_v38 = vpack.c.bf16 %v5844_v17, %v5844_v17  ;;  %v5883_v35 = vrot.slane %v5881_v29, 5  ;;  %v5889_v36 = vshll.u32 %v6479_v60, 16 }
 0x8e2   :  { %v5847_v37 = vmul.f32 %v7372_v33, %v5807_v52  ;;  %v6482_v49 = vpack.c.bf16 %v5845_v16, %v5845_v16  ;;  %v5887_v24 = vrot.slane %v5885_v34, 5  ;;  %v5893_v4 = vshll.u32 %v6480_v11, 16 }
 0x8e3   :  { %v6483_v39 = vpack.c.bf16 %v5846_v14, %v5846_v14  ;;  %v5891_v40 = vrot.slane %v5889_v36, 5  ;;  %v5897_v43 = vshll.u32 %v6481_v38, 16  ;;  %v5923_v0 = vsel %vm9741_vm4, %v5883_v35, %v5922_v54 }
 0x8e4   :  { %v6484_v21 = vpack.c.bf16 %v5847_v37, %v5847_v37  ;;  %v5895_v62 = vrot.slane %v5893_v4, 5  ;;  %v5901_v7 = vshll.u32 %v6482_v49, 16  ;;  %5924 = vst [vmem:[%s9822_s4] sm:$0x8] %v5923_v0  ;;  %v5926_v20 = vsel %vm9741_vm4, %v5887_v24, %v5925_v63 }
 0x8e5   :  { %v5899_v47 = vrot.slane %v5897_v43, 5  ;;  %v5905_v5 = vshll.u32 %v6483_v39, 16  ;;  %5927 = vst [vmem:[%s9822_s4 + $0x4] sm:$0x8] %v5926_v20  ;;  %v5929_v55 = vsel %vm9741_vm4, %v5891_v40, %v5928_v53  ;;  %v5956_v18 = vcombine.low %v5844_v17, %v5845_v16 }
 0x8e6   :  { %v5903_v2 = vrot.slane %v5901_v7, 5  ;;  %v5909_v57 = vshll.u32 %v6484_v21, 16  ;;  %5930 = vst [vmem:[%s9822_s4 + $0x8] sm:$0x8] %v5929_v55  ;;  %v5932_v32 = vsel %vm9741_vm4, %v5895_v62, %v5931_v51  ;;  %v5957_v48 = vcombine.low %v5846_v14, %v5847_v37 }
 0x8e7   :  { %v5907_v8 = vrot.slane %v5905_v5, 5  ;;  %5933 = vst [vmem:[%s9822_s4 + $0xc] sm:$0x8] %v5932_v32  ;;  %v5935_v25 = vsel %vm9741_vm4, %v5899_v47, %v5934_v22  ;;  %v5964_v3 = vrot.slane %v5954_v26, %v9949_v10  ;;  %v5971_v15 = vrot.slane %v5955_v61, %v9949_v10 }
 0x8e8   :  { %v5911_v44 = vrot.slane %v5909_v57, 5  ;;  %5936 = vst [vmem:[%s9822_s4 + $0x10] sm:$0x8] %v5935_v25  ;;  %v5938_v31 = vsel %vm9741_vm4, %v5903_v2, %v5937_v59  ;;  %v5978_v28 = vrot.slane %v5956_v18, %v9949_v10  ;;  %v5985_v23 = vrot.slane %v5957_v48, %v9949_v10 }
 0x8e9   :  { %5939 = vst [vmem:[%s9822_s4 + $0x14] sm:$0x8] %v5938_v31  ;;  %v5941_v41 = vsel %vm9741_vm4, %v5907_v8, %v5940_v30  ;;  %v5986_v42 = vcombine.low %v5964_v3, %v5971_v15 }
 0x8ea   :  { %5942 = vst [vmem:[%s9822_s4 + $0x18] sm:$0x8] %v5941_v41  ;;  %v5944_v12 = vsel %vm9741_vm4, %v5911_v44, %v5943_v46  ;;  %v5987_v9 = vcombine.low %v5978_v28, %v5985_v23 }
 0x8eb   :  { %5945 = vst [vmem:[%s9822_s4 + $0x1c] sm:$0x8] %v5944_v12  ;;  %v5994_v45 = vrot.slane %v5986_v42, %v9949_v10 }
 0x8ec   :  { %v6001_v27 = vrot.slane %v5987_v9, %v9949_v10 }
 0x8ee   :  { %v6002_v1 = vcombine.low %v5994_v45, %v6001_v27 }
 0x8f0   :  { %6067 = vst [vmem:[%s9824_s5] sm:$0xff] %v6002_v1 }

// kernel: encoder_forward.3
= control target key start
LH: loop header
LB: loop body
LE: loop exit
PB: predicated region body
PF: predicated region fallthrough
CT: control target
= control target key end

     0   :  { %v8888_v1 = vmov 0   ;;  %vm1202_vm0 = vcmask 1041409   ;;  %vm1205_vm1 = vcmask 1042434   ;;  %vm1208_vm2 = vcmask 1043459   ;;  %s8881_s1 = inlined_call_operand.vmem [shape: bf16[128,512], index: 1, kind: input, shape index: {}]   ;;  %s8882_s0 = inlined_call_operand.vmem [shape: bf16[8,8,128], index: 0, kind: input, shape index: {}]   ;;  %s8883_s2 = inlined_call_operand.vmem [shape: bf16[128,512], index: 2, kind: input, shape index: {}]   ;;  %s8884_s3 = inlined_call_operand.vmem [shape: f32[1,512], index: 3, kind: input, shape index: {}]   ;;  %s8885_s4 = inlined_call_operand.vmem [shape: f32[8,8,128], index: 4, kind: output, shape index: {0}]   ;;  %s8886_s6 = inlined_call_operand.vmem [shape: f32[8,128], index: 6, kind: output, shape index: {2}]   ;;  %s8887_s5 = inlined_call_operand.vmem [shape: f32[8,128], index: 5, kind: output, shape index: {1}]  }
   0x1   :  { %v5949_v0 = vld [vmem:[%s8881_s1 + $0xe4] ss:$16 sps:$4 sm:$0xff]   ;;  %285 = vmatprep.mubr.bf16.mxu0 %v8888_v1  ;;  %358 = vmatprep.mubr.bf16.mxu1 %v8888_v1  ;;  %v5951_v2 = vld [vmem:[%s8881_s1 + $0xec] ss:$16 sps:$4 sm:$0xff]   ;;  %v5953_v3 = vld [vmem:[%s8881_s1 + $0xe0] ss:$16 sps:$4 sm:$0xff]  }
   0x2   :  { %253 = vmatprep.subr.bf16.mxu0 %v5949_v0  ;;  %v5954_v4 = vld [vmem:[%s8881_s1 + $0xe8] ss:$16 sps:$4 sm:$0xff]   ;;  %326 = vmatprep.subr.bf16.mxu1 %v5951_v2  ;;  %v5955_v5 = vld [vmem:[%s8881_s1 + $0xc4] ss:$16 sps:$4 sm:$0xff]   ;;  %v5957_v6 = vld [vmem:[%s8881_s1 + $0xcc] ss:$16 sps:$4 sm:$0xff]  }
   0x3   :  { %254 = vmatpush1.bf16.msra.mxu0 %v5953_v3  ;;  %327 = vmatpush1.bf16.msra.mxu1 %v5954_v4  ;;  %v5959_v7 = vld [vmem:[%s8881_s1 + $0xc0] ss:$16 sps:$4 sm:$0xff]   ;;  %v5960_v8 = vld [vmem:[%s8881_s1 + $0xc8] ss:$16 sps:$4 sm:$0xff]   ;;  %v5961_v9 = vld [vmem:[%s8881_s1 + $0xa4] ss:$16 sps:$4 sm:$0xff]  }
   0x4   :  { %255 = vmatprep.subr.bf16.mxu0 %v5955_v5  ;;  %328 = vmatprep.subr.bf16.mxu1 %v5957_v6  ;;  %v5963_v10 = vld [vmem:[%s8881_s1 + $0xac] ss:$16 sps:$4 sm:$0xff]   ;;  %v5965_v11 = vld [vmem:[%s8881_s1 + $0xa0] ss:$16 sps:$4 sm:$0xff]   ;;  %v5966_v12 = vld [vmem:[%s8881_s1 + $0xa8] ss:$16 sps:$4 sm:$0xff]  }
   0x5   :  { %v5967_v13 = vld [vmem:[%s8881_s1 + $0x84] ss:$16 sps:$4 sm:$0xff]   ;;  %v5969_v14 = vld [vmem:[%s8881_s1 + $0x8c] ss:$16 sps:$4 sm:$0xff]   ;;  %v5971_v15 = vld [vmem:[%s8881_s1 + $0x80] ss:$16 sps:$4 sm:$0xff]  }
   0x6   :  { %v5972_v16 = vld [vmem:[%s8881_s1 + $0x88] ss:$16 sps:$4 sm:$0xff]   ;;  %v5973_v17 = vld [vmem:[%s8881_s1 + $0x64] ss:$16 sps:$4 sm:$0xff]   ;;  %v5975_v18 = vld [vmem:[%s8881_s1 + $0x6c] ss:$16 sps:$4 sm:$0xff]  }
   0x7   :  { %256 = vmatpush1.bf16.msra.mxu0 %v5959_v7  ;;  %329 = vmatpush1.bf16.msra.mxu1 %v5960_v8  ;;  %v5977_v19 = vld [vmem:[%s8881_s1 + $0x60] ss:$16 sps:$4 sm:$0xff]   ;;  %v5978_v20 = vld [vmem:[%s8881_s1 + $0x68] ss:$16 sps:$4 sm:$0xff]   ;;  %v5979_v21 = vld [vmem:[%s8881_s1 + $0x44] ss:$16 sps:$4 sm:$0xff]   ;;  %v401_v7 = vlaneseq }
   0x8   :  { %257 = vmatprep.subr.bf16.mxu0 %v5961_v9  ;;  %330 = vmatprep.subr.bf16.mxu1 %v5963_v10  ;;  %v5981_v22 = vld [vmem:[%s8881_s1 + $0x4c] ss:$16 sps:$4 sm:$0xff]   ;;  %v5983_v23 = vld [vmem:[%s8881_s1 + $0x40] ss:$16 sps:$4 sm:$0xff]   ;;  %v5984_v24 = vld [vmem:[%s8881_s1 + $0x48] ss:$16 sps:$4 sm:$0xff]  }
   0x9   :  { %v5985_v25 = vld [vmem:[%s8881_s1 + $0x24] ss:$16 sps:$4 sm:$0xff]   ;;  %v5987_v26 = vld [vmem:[%s8881_s1 + $0x2c] ss:$16 sps:$4 sm:$0xff]   ;;  %v5989_v27 = vld [vmem:[%s8881_s1 + $0x20] ss:$16 sps:$4 sm:$0xff]  }
   0xa   :  { %v5990_v28 = vld [vmem:[%s8881_s1 + $0x28] ss:$16 sps:$4 sm:$0xff]   ;;  %v5991_v29 = vld [vmem:[%s8881_s1 + $0x4] ss:$16 sps:$4 sm:$0xff]   ;;  %v5993_v30 = vld [vmem:[%s8881_s1 + $0xc] ss:$16 sps:$4 sm:$0xff]  }
   0xb   :  { %258 = vmatpush1.bf16.msra.mxu0 %v5965_v11  ;;  %331 = vmatpush1.bf16.msra.mxu1 %v5966_v12  ;;  %v5995_v31 = vld [vmem:[%s8881_s1] ss:$16 sps:$4 sm:$0xff]   ;;  %v5996_v32 = vld [vmem:[%s8881_s1 + $0x8] ss:$16 sps:$4 sm:$0xff]   ;;  %v6973_v33 = vld [vmem:[%s8883_s2 + $0xe4] ss:$16 sps:$4 sm:$0xff]  }
   0xc   :  { %259 = vmatprep.subr.bf16.mxu0 %v5967_v13  ;;  %332 = vmatprep.subr.bf16.mxu1 %v5969_v14  ;;  %v6978_v34 = vld [vmem:[%s8883_s2 + $0xec] ss:$16 sps:$4 sm:$0xff]   ;;  %v5997_v35 = vld [vmem:[%s8882_s0] sm:$0xff]   ;;  %v6991_v37 = vld [vmem:[%s8883_s2 + $0xe8] ss:$16 sps:$4 sm:$0xff]   ;;  %v6834_v6 = vmov 0.0|0.0  }
   0xd   :  { %v6986_v36 = vld [vmem:[%s8883_s2 + $0xe0] ss:$16 sps:$4 sm:$0xff]   ;;  %v6998_v38 = vld [vmem:[%s8883_s2 + $0xc4] ss:$16 sps:$4 sm:$0xff]   ;;  %v7003_v39 = vld [vmem:[%s8883_s2 + $0xcc] ss:$16 sps:$4 sm:$0xff]  }
   0xe   :  { %v7008_v40 = vld [vmem:[%s8883_s2 + $0xc0] ss:$16 sps:$4 sm:$0xff]   ;;  %v7015_v41 = vld [vmem:[%s8883_s2 + $0xc8] ss:$16 sps:$4 sm:$0xff]   ;;  %v7022_v42 = vld [vmem:[%s8883_s2 + $0xa4] ss:$16 sps:$4 sm:$0xff]  }
   0xf   :  { %260 = vmatpush1.bf16.msra.mxu0 %v5971_v15  ;;  %333 = vmatpush1.bf16.msra.mxu1 %v5972_v16  ;;  %v7027_v43 = vld [vmem:[%s8883_s2 + $0xac] ss:$16 sps:$4 sm:$0xff]   ;;  %v7037_v45 = vld [vmem:[%s8883_s2 + $0xa0] ss:$16 sps:$4 sm:$0xff]   ;;  %v7042_v46 = vld [vmem:[%s8883_s2 + $0xa8] ss:$16 sps:$4 sm:$0xff]  }
  0x10   :  { %261 = vmatprep.subr.bf16.mxu0 %v5973_v17  ;;  %334 = vmatprep.subr.bf16.mxu1 %v5975_v18  ;;  %v6010_v44 = vld [vmem:[%s8882_s0 + $0x8] sm:$0xff]   ;;  %v7049_v47 = vld [vmem:[%s8883_s2 + $0x84] ss:$16 sps:$4 sm:$0xff]   ;;  %v7061_v49 = vld [vmem:[%s8883_s2 + $0x80] ss:$16 sps:$4 sm:$0xff]   ;;  %v7176_v8 = vshrl.u32 %v401_v7, 7 }
  0x11   :  { %v7056_v48 = vld [vmem:[%s8883_s2 + $0x8c] ss:$16 sps:$4 sm:$0xff]   ;;  %v7066_v50 = vld [vmem:[%s8883_s2 + $0x88] ss:$16 sps:$4 sm:$0xff]   ;;  %v7073_v51 = vld [vmem:[%s8883_s2 + $0x64] ss:$16 sps:$4 sm:$0xff]  }
  0x12   :  { %v6023_v52 = vld [vmem:[%s8882_s0 + $0x10] sm:$0xff]   ;;  %v7083_v53 = vld [vmem:[%s8883_s2 + $0x6c] ss:$16 sps:$4 sm:$0xff]   ;;  %v7095_v55 = vld [vmem:[%s8883_s2 + $0x68] ss:$16 sps:$4 sm:$0xff]   ;;  %v403_v9 = vsub.s32 0, %v7176_v8 }
  0x13   :  { %262 = vmatpush1.bf16.msra.mxu0 %v5977_v19  ;;  %335 = vmatpush1.bf16.msra.mxu1 %v5978_v20  ;;  %v7090_v54 = vld [vmem:[%s8883_s2 + $0x60] ss:$16 sps:$4 sm:$0xff]   ;;  %v7100_v56 = vld [vmem:[%s8883_s2 + $0x44] ss:$16 sps:$4 sm:$0xff]   ;;  %v7105_v57 = vld [vmem:[%s8883_s2 + $0x4c] ss:$16 sps:$4 sm:$0xff]  }
  0x14   :  { %263 = vmatprep.subr.bf16.mxu0 %v5979_v21  ;;  %336 = vmatprep.subr.bf16.mxu1 %v5981_v22  ;;  %v6030_v58 = vld [vmem:[%s8883_s2 + $0x40] ss:$16 sps:$4 sm:$0xff]   ;;  %v6033_v59 = vld [vmem:[%s8883_s2 + $0x48] ss:$16 sps:$4 sm:$0xff]   ;;  %v6039_v60 = vld [vmem:[%s8883_s2 + $0x24] ss:$16 sps:$4 sm:$0xff]  }
  0x15   :  { %v6042_v61 = vld [vmem:[%s8883_s2 + $0x2c] ss:$16 sps:$4 sm:$0xff]   ;;  %v6037_v63 = vld [vmem:[%s8883_s2 + $0x20] ss:$16 sps:$4 sm:$0xff]   ;;  %v6040_v0 = vld [vmem:[%s8883_s2 + $0x28] ss:$16 sps:$4 sm:$0xff]  }
  0x16   :  { %v6036_v62 = vld [vmem:[%s8882_s0 + $0x18] sm:$0xff]   ;;  %v6045_v2 = vld [vmem:[%s8883_s2 + $0x4] ss:$16 sps:$4 sm:$0xff]   ;;  %v6043_v4 = vld [vmem:[%s8883_s2] ss:$16 sps:$4 sm:$0xff]   ;;  %v411_v10 = vsub.s32 2, %v7176_v8 }
  0x17   :  { %264 = vmatpush1.bf16.msra.mxu0 %v5983_v23  ;;  %337 = vmatpush1.bf16.msra.mxu1 %v5984_v24  ;;  %v6048_v3 = vld [vmem:[%s8883_s2 + $0xc] ss:$16 sps:$4 sm:$0xff]   ;;  %v6046_v5 = vld [vmem:[%s8883_s2 + $0x8] ss:$16 sps:$4 sm:$0xff]   ;;  %v399_v11 = vld [vmem:[%s8884_s3] sm:$0xf] }
  0x18   :  { %265 = vmatprep.subr.bf16.mxu0 %v5985_v25  ;;  %338 = vmatprep.subr.bf16.mxu1 %v5987_v26  ;;  %v407_v12 = vsub.s32 1, %v7176_v8  ;;  %v415_v13 = vsub.s32 3, %v7176_v8  ;;  %v7185_v14 = vrot.slane %v399_v11, %v403_v9  ;;  %v7187_v15 = vrot.slane %v399_v11, %v411_v10 }
  0x19   :  { %v6835_v7 = vmov 1966171168   ;;  %vm1211_vm3 = vcmask 1044484   ;;  %vm1214_vm4 = vcmask 1045509   ;;  %vm1217_vm5 = vcmask 1046534  }
  0x1a   :  { %v7189_v16 = vrot.slane %v399_v11, %v407_v12  ;;  %v7191_v17 = vrot.slane %v399_v11, %v415_v13  ;;  %v784_v9 = vunpack.c.l.s4 %v6835_v7  ;;  %vm1220_vm6 = vcmask 1047559  }
  0x1b   :  { %266 = vmatpush1.bf16.msra.mxu0 %v5989_v27  ;;  %339 = vmatpush1.bf16.msra.mxu1 %v5990_v28 }
  0x1c   :  { %267 = vmatprep.subr.bf16.mxu0 %v5991_v29  ;;  %340 = vmatprep.subr.bf16.mxu1 %v5993_v30 }
  0x1f   :  { %268 = vmatpush1.bf16.msra.mxu0 %v5995_v31  ;;  %341 = vmatpush1.bf16.msra.mxu1 %v5996_v32 }
  0x20   :  { %693 = vmatprep.subr.bf16.mxu0 %v6973_v33  ;;  %734 = vmatprep.subr.bf16.mxu1 %v6978_v34 }
  0x22   :  { %286 = vmatmul.mubr.bf16.vlgmr.msra.gmra.mxu0 %v5997_v35  ;;  %359 = vmatmul.mubr.bf16.vlgmr.msra.gmra.mxu1 %v5997_v35 }
  0x23   :  { %694 = vmatpush1.bf16.msra.mxu0 %v6986_v36  ;;  %735 = vmatpush1.bf16.msra.mxu1 %v6991_v37 }
  0x24   :  { %695 = vmatprep.subr.bf16.mxu0 %v6998_v38  ;;  %736 = vmatprep.subr.bf16.mxu1 %v7003_v39 }
  0x25   :  { %295 = vmatprep.mubr.bf16.mxu0 %v8888_v1  ;;  %368 = vmatprep.mubr.bf16.mxu1 %v8888_v1 }
  0x27   :  { %696 = vmatpush1.bf16.msra.mxu0 %v7008_v40  ;;  %737 = vmatpush1.bf16.msra.mxu1 %v7015_v41 }
  0x28   :  { %697 = vmatprep.subr.bf16.mxu0 %v7022_v42  ;;  %738 = vmatprep.subr.bf16.mxu1 %v7027_v43 }
  0x2a   :  { %296 = vmatmul.mubr.bf16.gmra.mxu0 %v6010_v44  ;;  %369 = vmatmul.mubr.bf16.gmra.mxu1 %v6010_v44 }
  0x2b   :  { %698 = vmatpush1.bf16.msra.mxu0 %v7037_v45  ;;  %739 = vmatpush1.bf16.msra.mxu1 %v7042_v46 }
  0x2c   :  { %699 = vmatprep.subr.bf16.mxu0 %v7049_v47  ;;  %740 = vmatprep.subr.bf16.mxu1 %v7056_v48 }
  0x2d   :  { %305 = vmatprep.mubr.bf16.mxu0 %v8888_v1  ;;  %378 = vmatprep.mubr.bf16.mxu1 %v8888_v1 }
  0x2f   :  { %700 = vmatpush1.bf16.msra.mxu0 %v7061_v49  ;;  %741 = vmatpush1.bf16.msra.mxu1 %v7066_v50 }
  0x30   :  { %701 = vmatprep.subr.bf16.mxu0 %v7073_v51  ;;  %742 = vmatprep.subr.bf16.mxu1 %v7083_v53 }
  0x32   :  { %306 = vmatmul.mubr.bf16.gmra.mxu0 %v6023_v52  ;;  %379 = vmatmul.mubr.bf16.gmra.mxu1 %v6023_v52 }
  0x33   :  { %702 = vmatpush1.bf16.msra.mxu0 %v7090_v54  ;;  %743 = vmatpush1.bf16.msra.mxu1 %v7095_v55 }
  0x34   :  { %703 = vmatprep.subr.bf16.mxu0 %v7100_v56  ;;  %744 = vmatprep.subr.bf16.mxu1 %v7105_v57 }
  0x35   :  { %315 = vmatprep.mubr.bf16.mxu0 %v8888_v1  ;;  %388 = vmatprep.mubr.bf16.mxu1 %v8888_v1 }
  0x37   :  { %704 = vmatpush1.bf16.msra.mxu0 %v6030_v58  ;;  %745 = vmatpush1.bf16.msra.mxu1 %v6033_v59 }
  0x38   :  { %705 = vmatprep.subr.bf16.mxu0 %v6039_v60  ;;  %746 = vmatprep.subr.bf16.mxu1 %v6042_v61 }
  0x3a   :  { %316 = vmatmul.mubr.bf16.gmra.mxu0 %v6036_v62  ;;  %389 = vmatmul.mubr.bf16.gmra.mxu1 %v6036_v62 }
  0x3b   :  { %706 = vmatpush1.bf16.msra.mxu0 %v6037_v63  ;;  %747 = vmatpush1.bf16.msra.mxu1 %v6040_v0 }
  0x3c   :  { %707 = vmatprep.subr.bf16.mxu0 %v6045_v2  ;;  %748 = vmatprep.subr.bf16.mxu1 %v6048_v3 }
  0x3d   :  { %725 = vmatprep.mubr.bf16.mxu0 %v8888_v1  ;;  %766 = vmatprep.mubr.bf16.mxu1 %v8888_v1 }
  0x3f   :  { %708 = vmatpush1.bf16.msra.mxu0 %v6043_v4  ;;  %749 = vmatpush1.bf16.msra.mxu1 %v6046_v5 }
  0x40   :  { %1384 = vmatprep.subr.bf16.mxu0 %v6973_v33  ;;  %1425 = vmatprep.subr.bf16.mxu1 %v6978_v34 }
  0x42   :  { %726 = vmatmul.mubr.bf16.vlgmr.msra.gmra.mxu0 %v6834_v6  ;;  %767 = vmatmul.mubr.bf16.vlgmr.msra.gmra.mxu1 %v6834_v6 }
  0x43   :  { %1385 = vmatpush1.bf16.msra.mxu0 %v6986_v36  ;;  %1426 = vmatpush1.bf16.msra.mxu1 %v6991_v37 }
  0x44   :  { %1386 = vmatprep.subr.bf16.mxu0 %v6998_v38  ;;  %1427 = vmatprep.subr.bf16.mxu1 %v7003_v39 }
  0x45   :  { %1416 = vmatprep.mubr.bf16.mxu0 %v8888_v1  ;;  %1457 = vmatprep.mubr.bf16.mxu1 %v8888_v1 }
  0x47   :  { %1387 = vmatpush1.bf16.msra.mxu0 %v7008_v40  ;;  %1428 = vmatpush1.bf16.msra.mxu1 %v7015_v41 }
  0x48   :  { %1388 = vmatprep.subr.bf16.mxu0 %v7022_v42  ;;  %1429 = vmatprep.subr.bf16.mxu1 %v7027_v43 }
  0x4b   :  { %1389 = vmatpush1.bf16.msra.mxu0 %v7037_v45  ;;  %1430 = vmatpush1.bf16.msra.mxu1 %v7042_v46 }
  0x4c   :  { %1390 = vmatprep.subr.bf16.mxu0 %v7049_v47  ;;  %1431 = vmatprep.subr.bf16.mxu1 %v7056_v48 }
  0x4f   :  { %1391 = vmatpush1.bf16.msra.mxu0 %v7061_v49  ;;  %1432 = vmatpush1.bf16.msra.mxu1 %v7066_v50 }
  0x50   :  { %1392 = vmatprep.subr.bf16.mxu0 %v7073_v51  ;;  %1433 = vmatprep.subr.bf16.mxu1 %v7083_v53 }
  0x53   :  { %1393 = vmatpush1.bf16.msra.mxu0 %v7090_v54  ;;  %1434 = vmatpush1.bf16.msra.mxu1 %v7095_v55 }
  0x54   :  { %1394 = vmatprep.subr.bf16.mxu0 %v7100_v56  ;;  %1435 = vmatprep.subr.bf16.mxu1 %v7105_v57 }
  0x57   :  { %1395 = vmatpush1.bf16.msra.mxu0 %v6030_v58  ;;  %1436 = vmatpush1.bf16.msra.mxu1 %v6033_v59 }
  0x58   :  { %1396 = vmatprep.subr.bf16.mxu0 %v6039_v60  ;;  %1437 = vmatprep.subr.bf16.mxu1 %v6042_v61 }
  0x5b   :  { %1397 = vmatpush1.bf16.msra.mxu0 %v6037_v63  ;;  %1438 = vmatpush1.bf16.msra.mxu1 %v6040_v0 }
  0x5c   :  { %1398 = vmatprep.subr.bf16.mxu0 %v6045_v2  ;;  %1439 = vmatprep.subr.bf16.mxu1 %v6048_v3 }
  0x5f   :  { %1399 = vmatpush1.bf16.msra.mxu0 %v6043_v4  ;;  %1440 = vmatpush1.bf16.msra.mxu1 %v6046_v5 }
  0xe2   :  { %v287_v18 = vpop.f32.mrf.mxu0  ;;  %v360_v19 = vpop.f32.mrf.mxu1 }
  0xe3   :  { %v421_v20 = vadd.f32 %v7185_v14, %v287_v18  ;;  %v423_v21 = vadd.f32 %v7187_v15, %v360_v19 }
  0xe4   :  { %v289_v22 = vpop.f32.mrf.mxu0  ;;  %v362_v23 = vpop.f32.mrf.mxu1 }
  0xe5   :  { %453 = vst [vmem:[#allocation2] sm:$0xff] %v421_v20  ;;  %455 = vst [vmem:[#allocation2 + $0x10] sm:$0xff] %v423_v21  ;;  %v422_v24 = vadd.f32 %v7189_v16, %v289_v22  ;;  %v424_v25 = vadd.f32 %v7191_v17, %v362_v23  ;;  %v785_v22 = vunpack.c.0.s8 %v784_v9 }
  0xe6   :  { %v291_v26 = vpop.f32.mrf.mxu0  ;;  %v364_v27 = vpop.f32.mrf.mxu1 }
  0xe7   :  { %454 = vst [vmem:[#allocation2 + $0x8] sm:$0xff] %v422_v24  ;;  %456 = vst [vmem:[#allocation2 + $0x18] sm:$0xff] %v424_v25  ;;  %v425_v28 = vadd.f32 %v7185_v14, %v291_v26  ;;  %v427_v29 = vadd.f32 %v7187_v15, %v364_v27 }
  0xe8   :  { %v293_v30 = vpop.f32.mrf.mxu0  ;;  %v366_v31 = vpop.f32.mrf.mxu1 }
  0xe9   :  { %457 = vst [vmem:[#allocation2 + $0x20] sm:$0xff] %v425_v28  ;;  %459 = vst [vmem:[#allocation2 + $0x30] sm:$0xff] %v427_v29  ;;  %v426_v32 = vadd.f32 %v7189_v16, %v293_v30  ;;  %v428_v33 = vadd.f32 %v7191_v17, %v366_v31  ;;  %v7226_v29 = vsub.s32 %v785_v22, %v7176_v8 }
  0xea   :  { %v297_v34 = vpop.f32.mrf.mxu0  ;;  %v370_v35 = vpop.f32.mrf.mxu1 }
  0xeb   :  { %458 = vst [vmem:[#allocation2 + $0x28] sm:$0xff] %v426_v32  ;;  %460 = vst [vmem:[#allocation2 + $0x38] sm:$0xff] %v428_v33  ;;  %v429_v36 = vadd.f32 %v7185_v14, %v297_v34  ;;  %v431_v37 = vadd.f32 %v7187_v15, %v370_v35 }
  0xec   :  { %v299_v38 = vpop.f32.mrf.mxu0  ;;  %v372_v39 = vpop.f32.mrf.mxu1  ;;  %8932 = vst [vmem:[#allocation5_spill] sm:$0xff] %v7226_v29 }
  0xed   :  { %461 = vst [vmem:[#allocation2 + $0x40] sm:$0xff] %v429_v36  ;;  %463 = vst [vmem:[#allocation2 + $0x50] sm:$0xff] %v431_v37  ;;  %v430_v40 = vadd.f32 %v7189_v16, %v299_v38  ;;  %v432_v41 = vadd.f32 %v7191_v17, %v372_v39 }
  0xee   :  { %v301_v42 = vpop.f32.mrf.mxu0  ;;  %v374_v43 = vpop.f32.mrf.mxu1 }
  0xef   :  { %462 = vst [vmem:[#allocation2 + $0x48] sm:$0xff] %v430_v40  ;;  %464 = vst [vmem:[#allocation2 + $0x58] sm:$0xff] %v432_v41  ;;  %v433_v44 = vadd.f32 %v7185_v14, %v301_v42  ;;  %v435_v45 = vadd.f32 %v7187_v15, %v374_v43 }
  0xf0   :  { %v303_v46 = vpop.f32.mrf.mxu0  ;;  %v376_v47 = vpop.f32.mrf.mxu1 }
  0xf1   :  { %465 = vst [vmem:[#allocation2 + $0x60] sm:$0xff] %v433_v44  ;;  %467 = vst [vmem:[#allocation2 + $0x70] sm:$0xff] %v435_v45  ;;  %v434_v48 = vadd.f32 %v7189_v16, %v303_v46  ;;  %v436_v49 = vadd.f32 %v7191_v17, %v376_v47  ;;  %v485_v47 = vld [vmem:[#allocation2] ss:$8 sm:$0xf] }
  0xf2   :  { %v307_v50 = vpop.f32.mrf.mxu0  ;;  %v380_v51 = vpop.f32.mrf.mxu1 }
  0xf3   :  { %466 = vst [vmem:[#allocation2 + $0x68] sm:$0xff] %v434_v48  ;;  %468 = vst [vmem:[#allocation2 + $0x78] sm:$0xff] %v436_v49  ;;  %v437_v52 = vadd.f32 %v7185_v14, %v307_v50  ;;  %v439_v53 = vadd.f32 %v7187_v15, %v380_v51  ;;  %v487_v48 = vld [vmem:[#allocation2 + $0x20] ss:$8 sm:$0xf]  ;;  %v6836_v49 = vmov 0.0  }
  0xf4   :  { %v309_v54 = vpop.f32.mrf.mxu0  ;;  %v382_v55 = vpop.f32.mrf.mxu1  ;;  %v1024_v50 = vcombine.high %v6836_v49, %v6836_v49  ;;  %v1031_v7 = vrot.slane %v6836_v49, %v7226_v29 }
  0xf5   :  { %469 = vst [vmem:[#allocation2 + $0x80] sm:$0xff] %v437_v52  ;;  %471 = vst [vmem:[#allocation2 + $0x90] sm:$0xff] %v439_v53  ;;  %v438_v56 = vadd.f32 %v7189_v16, %v309_v54  ;;  %v440_v57 = vadd.f32 %v7191_v17, %v382_v55 }
  0xf6   :  { %v311_v58 = vpop.f32.mrf.mxu0  ;;  %v384_v59 = vpop.f32.mrf.mxu1  ;;  %v489_v51 = vld [vmem:[#allocation2 + $0x40] ss:$8 sm:$0xf] }
  0xf7   :  { %470 = vst [vmem:[#allocation2 + $0x88] sm:$0xff] %v438_v56  ;;  %472 = vst [vmem:[#allocation2 + $0x98] sm:$0xff] %v440_v57  ;;  %v441_v60 = vadd.f32 %v7185_v14, %v311_v58  ;;  %v443_v61 = vadd.f32 %v7187_v15, %v384_v59 }
  0xf8   :  { %v313_v62 = vpop.f32.mrf.mxu0  ;;  %v386_v63 = vpop.f32.mrf.mxu1 }
  0xf9   :  { %473 = vst [vmem:[#allocation2 + $0xa0] sm:$0xff] %v441_v60  ;;  %475 = vst [vmem:[#allocation2 + $0xb0] sm:$0xff] %v443_v61  ;;  %v442_v0 = vadd.f32 %v7189_v16, %v313_v62  ;;  %v444_v2 = vadd.f32 %v7191_v17, %v386_v63 }
  0xfa   :  { %v317_v3 = vpop.f32.mrf.mxu0  ;;  %v390_v4 = vpop.f32.mrf.mxu1  ;;  %v491_v57 = vld [vmem:[#allocation2 + $0x60] ss:$8 sm:$0xf] }
  0xfb   :  { %474 = vst [vmem:[#allocation2 + $0xa8] sm:$0xff] %v442_v0  ;;  %476 = vst [vmem:[#allocation2 + $0xb8] sm:$0xff] %v444_v2  ;;  %v445_v5 = vadd.f32 %v7185_v14, %v317_v3  ;;  %v447_v6 = vadd.f32 %v7187_v15, %v390_v4 }
  0xfc   :  { %v319_v10 = vpop.f32.mrf.mxu0  ;;  %v392_v11 = vpop.f32.mrf.mxu1 }
  0xfd   :  { %477 = vst [vmem:[#allocation2 + $0xc0] sm:$0xff] %v445_v5  ;;  %479 = vst [vmem:[#allocation2 + $0xd0] sm:$0xff] %v447_v6  ;;  %v446_v12 = vadd.f32 %v7189_v16, %v319_v10  ;;  %v448_v13 = vadd.f32 %v7191_v17, %v392_v11 }
  0xfe   :  { %v321_v18 = vpop.f32.mrf.mxu0  ;;  %v394_v19 = vpop.f32.mrf.mxu1  ;;  %v493_v52 = vld [vmem:[#allocation2 + $0x80] ss:$8 sm:$0xf] }
  0xff   :  { %478 = vst [vmem:[#allocation2 + $0xc8] sm:$0xff] %v446_v12  ;;  %480 = vst [vmem:[#allocation2 + $0xd8] sm:$0xff] %v448_v13  ;;  %v449_v20 = vadd.f32 %v7185_v14, %v321_v18  ;;  %v451_v21 = vadd.f32 %v7187_v15, %v394_v19  ;;  %v1038_v12 = vrot.slane %v1024_v50, %v7226_v29 }
 0x100   :  { %v323_v23 = vpop.f32.mrf.mxu0  ;;  %v396_v24 = vpop.f32.mrf.mxu1 }
 0x101   :  { %481 = vst [vmem:[#allocation2 + $0xe0] sm:$0xff] %v449_v20  ;;  %483 = vst [vmem:[#allocation2 + $0xf0] sm:$0xff] %v451_v21  ;;  %v450_v25 = vadd.f32 %v7189_v16, %v323_v23  ;;  %v452_v26 = vadd.f32 %v7191_v17, %v396_v24  ;;  %v1039_v23 = vcombine.high %v1031_v7, %v1031_v7 }
 0x102   :  { %v727_v27 = vpop.f32.mrf.mxu0  ;;  %v768_v28 = vpop.f32.mrf.mxu1  ;;  %v495_v58 = vld [vmem:[#allocation2 + $0xa0] ss:$8 sm:$0xf] }
 0x103   :  { %482 = vst [vmem:[#allocation2 + $0xe8] sm:$0xff] %v450_v25  ;;  %484 = vst [vmem:[#allocation2 + $0xf8] sm:$0xff] %v452_v26  ;;  %v1040_v26 = vcombine.high %v1038_v12, %v1038_v12 }
 0x104   :  { %v729_v30 = vpop.f32.mrf.mxu0  ;;  %v770_v14 = vpop.f32.mrf.mxu1 }
 0x105   :  { %v779_v31 = vcombine.low %v727_v27, %v729_v30  ;;  %v780_v15 = vcombine.high %v727_v27, %v729_v30  ;;  %v781_v32 = vcombine.low %v768_v28, %v770_v14  ;;  %v782_v33 = vcombine.high %v768_v28, %v770_v14 }
 0x106   :  { %v731_v34 = vpop.f32.mrf.mxu0  ;;  %v772_v35 = vpop.f32.mrf.mxu1  ;;  %v497_v62 = vld [vmem:[#allocation2 + $0xc0] ss:$8 sm:$0xf]  ;;  %v7268_v30 = vrot.slane %v1031_v7, %v7226_v29 }
 0x107   :  { %v789_v36 = vrot.slane %v779_v31, %v7226_v29  ;;  %v796_v16 = vrot.slane %v780_v15, %v7226_v29  ;;  %v803_v17 = vrot.slane %v781_v32, %v7226_v29  ;;  %v810_v37 = vrot.slane %v782_v33, %v7226_v29 }
 0x108   :  { %v732_v38 = vpop.f32.mrf.mxu0  ;;  %v773_v39 = vpop.f32.mrf.mxu1  ;;  %v7272_v15 = vrot.slane %v1038_v12, %v7226_v29  ;;  %v7276_v34 = vrot.slane %v1039_v23, %v7226_v29 }
 0x109   :  { %v811_v8 = vcombine.low %v789_v36, %v803_v17  ;;  %v812_v40 = vcombine.high %v789_v36, %v803_v17  ;;  %v813_v41 = vcombine.low %v796_v16, %v810_v37  ;;  %v814_v42 = vcombine.high %v796_v16, %v810_v37 }
 0x10a   :  { %v499_v3 = vld [vmem:[#allocation2 + $0xe0] ss:$8 sm:$0xf]  ;;  %v7280_v16 = vrot.slane %v1040_v26, %v7226_v29  ;;  %v1069_v39 = vcombine.high %v7268_v30, %v7268_v30 }
 0x10b   :  { %v821_v43 = vrot.slane %v811_v8, %v7226_v29  ;;  %v828_v44 = vrot.slane %v813_v41, %v7226_v29  ;;  %v835_v45 = vrot.slane %v812_v40, %v7226_v29  ;;  %v842_v46 = vrot.slane %v814_v42, %v7226_v29 }
 0x10c   :  { %v1070_v8 = vcombine.high %v7272_v15, %v7272_v15  ;;  %v1071_v41 = vcombine.high %v7276_v34, %v7276_v34  ;;  %v1072_v42 = vcombine.high %v7280_v16, %v7280_v16 }
 0x10d   :  { %v843_v53 = vcombine.high %v821_v43, %v821_v43  ;;  %v844_v54 = vcombine.high %v828_v44, %v828_v44  ;;  %v845_v55 = vcombine.high %v835_v45, %v835_v45  ;;  %v846_v56 = vcombine.high %v842_v46, %v842_v46 }
 0x10e   :  { %v7236_v59 = vadd.f32 %v821_v43, %v485_v47  ;;  %v7238_v60 = vadd.f32 %v835_v45, %v487_v48  ;;  %v7240_v61 = vadd.f32 %v828_v44, %v493_v52  ;;  %v7246_v2 = vadd.f32 %v842_v46, %v495_v58 }
 0x10f   :  { %v7242_v63 = vadd.f32 %v843_v53, %v489_v51  ;;  %v7244_v0 = vadd.f32 %v845_v55, %v491_v57  ;;  %v7248_v4 = vadd.f32 %v844_v54, %v497_v62  ;;  %v7253_v9 = vadd.f32 %v846_v56, %v499_v3 }
 0x110   :  { %v863_v5 = vmul.f32 0.5, %v7236_v59  ;;  %v864_v6 = vmul.f32 0.5, %v7238_v60  ;;  %v867_v13 = vmul.f32 0.5, %v7240_v61  ;;  %v903_v18 = vrot.slane %v7236_v59, 1 }
 0x111   :  { %v865_v10 = vmul.f32 0.5, %v7242_v63  ;;  %v866_v11 = vmul.f32 0.5, %v7244_v0  ;;  %v868_v19 = vmul.f32 0.5, %v7246_v2  ;;  %v904_v20 = vrot.slane %v7238_v60, 1 }
 0x112   :  { %6193 = vtanh.f32 %v863_v5  ;;  %v869_v21 = vmul.f32 0.5, %v7248_v4  ;;  %v905_v22 = vrot.slane %v7242_v63, 1  ;;  %v870_v24 = vmul.f32 0.5, %v7253_v9 }
 0x113   :  { %6195 = vtanh.f32 %v864_v6  ;;  %v906_v25 = vrot.slane %v7244_v0, 1  ;;  %v907_v27 = vrot.slane %v7240_v61, 1  ;;  %v919_v28 = vmul.f32 0.5, %v903_v18 }
 0x114   :  { %6197 = vtanh.f32 %v865_v10  ;;  %v908_v14 = vrot.slane %v7246_v2, 1  ;;  %v920_v31 = vmul.f32 0.5, %v904_v20  ;;  %v909_v32 = vrot.slane %v7248_v4, 1 }
 0x115   :  { %6199 = vtanh.f32 %v866_v11  ;;  %v921_v33 = vmul.f32 0.5, %v905_v22  ;;  %v910_v35 = vrot.slane %v7253_v9, 1  ;;  %v922_v36 = vmul.f32 0.5, %v906_v25 }
 0x116   :  { %6201 = vtanh.f32 %v867_v13  ;;  %v923_v17 = vmul.f32 0.5, %v907_v27  ;;  %v924_v37 = vmul.f32 0.5, %v908_v14  ;;  %v925_v38 = vmul.f32 0.5, %v909_v32 }
 0x117   :  { %6203 = vtanh.f32 %v868_v19  ;;  %v926_v40 = vmul.f32 0.5, %v910_v35  ;;  %v951_v43 = vrot.slane %v7236_v59, 2  ;;  %v952_v44 = vrot.slane %v7238_v60, 2 }
 0x118   :  { %6205 = vtanh.f32 %v869_v21  ;;  %v953_v45 = vrot.slane %v7242_v63, 2  ;;  %v954_v47 = vrot.slane %v7244_v0, 2  ;;  %v975_v48 = vrot.slane %v7236_v59, 3 }
 0x119   :  { %6207 = vtanh.f32 %v870_v24  ;;  %v976_v49 = vrot.slane %v7238_v60, 3  ;;  %v955_v51 = vrot.slane %v7240_v61, 2  ;;  %v977_v52 = vrot.slane %v7242_v63, 3 }
 0x11a   :  { %6209 = vtanh.f32 %v919_v28  ;;  %v978_v53 = vrot.slane %v7244_v0, 3  ;;  %v956_v55 = vrot.slane %v7246_v2, 2  ;;  %v979_v56 = vrot.slane %v7240_v61, 3 }
 0x11b   :  { %6211 = vtanh.f32 %v920_v31  ;;  %v980_v57 = vrot.slane %v7246_v2, 3  ;;  %v957_v59 = vrot.slane %v7248_v4, 2  ;;  %v958_v60 = vrot.slane %v7253_v9, 2 }
 0x11c   :  { %6213 = vtanh.f32 %v921_v33  ;;  %v981_v62 = vrot.slane %v7248_v4, 3  ;;  %v982_v63 = vrot.slane %v7253_v9, 3  ;;  %v991_v0 = vmul.f32 0.5, %v975_v48 }
 0x11d   :  { %6215 = vtanh.f32 %v922_v36  ;;  %v992_v5 = vmul.f32 0.5, %v976_v49  ;;  %v993_v61 = vmul.f32 0.5, %v977_v52  ;;  %v994_v10 = vmul.f32 0.5, %v978_v53 }
 0x11e   :  { %6217 = vtanh.f32 %v923_v17  ;;  %v995_v12 = vmul.f32 0.5, %v979_v56  ;;  %v996_v13 = vmul.f32 0.5, %v980_v57  ;;  %v997_v4 = vmul.f32 0.5, %v981_v62 }
 0x11f   :  { %v6194_v46 = vpop.eup %6193  ;;  %6219 = vtanh.f32 %v924_v37  ;;  %v998_v23 = vmul.f32 0.5, %v982_v63 }
 0x120   :  { %v6196_v50 = vpop.eup %6195  ;;  %6221 = vtanh.f32 %v925_v38  ;;  %v879_v7 = vadd.f32 1.0, %v6194_v46 }
 0x121   :  { %v6198_v54 = vpop.eup %6197  ;;  %6223 = vtanh.f32 %v926_v40  ;;  %v880_v11 = vadd.f32 1.0, %v6196_v50 }
 0x122   :  { %v6200_v58 = vpop.eup %6199  ;;  %6225 = vtanh.f32 %v951_v43  ;;  %v881_v19 = vadd.f32 1.0, %v6198_v54  ;;  %v887_v26 = vmul.f32 0.5, %v879_v7 }
 0x123   :  { %v6202_v3 = vpop.eup %6201  ;;  %6227 = vtanh.f32 %v952_v44  ;;  %v882_v20 = vadd.f32 1.0, %v6200_v58  ;;  %v888_v31 = vmul.f32 0.5, %v880_v11 }
 0x124   :  { %v6204_v6 = vpop.eup %6203  ;;  %6229 = vtanh.f32 %v953_v45  ;;  %v883_v22 = vadd.f32 1.0, %v6202_v3  ;;  %v889_v35 = vmul.f32 0.5, %v881_v19 }
 0x125   :  { %v6206_v2 = vpop.eup %6205  ;;  %6231 = vtanh.f32 %v954_v47  ;;  %v884_v9 = vadd.f32 1.0, %v6204_v6  ;;  %v890_v36 = vmul.f32 0.5, %v882_v20 }
 0x126   :  { %v6208_v18 = vpop.eup %6207  ;;  %6233 = vtanh.f32 %v955_v51  ;;  %v885_v25 = vadd.f32 1.0, %v6206_v2  ;;  %v891_v40 = vmul.f32 0.5, %v883_v22 }
 0x127   :  { %v6210_v21 = vpop.eup %6209  ;;  %6235 = vtanh.f32 %v956_v55  ;;  %v886_v14 = vadd.f32 1.0, %v6208_v18  ;;  %v892_v43 = vmul.f32 0.5, %v884_v9 }
 0x128   :  { %v6212_v24 = vpop.eup %6211  ;;  %v935_v27 = vadd.f32 1.0, %v6210_v21  ;;  %6237 = vtanh.f32 %v957_v59  ;;  %v893_v47 = vmul.f32 0.5, %v885_v25 }
 0x129   :  { %v6214_v28 = vpop.eup %6213  ;;  %v936_v32 = vadd.f32 1.0, %v6212_v24  ;;  %6239 = vtanh.f32 %v958_v60  ;;  %v894_v51 = vmul.f32 0.5, %v886_v14 }
 0x12a   :  { %v6216_v33 = vpop.eup %6215  ;;  %v937_v17 = vadd.f32 1.0, %v6214_v28  ;;  %v943_v37 = vmul.f32 0.5, %v935_v27  ;;  %6241 = vtanh.f32 %v991_v0 }
 0x12b   :  { %v6218_v38 = vpop.eup %6217  ;;  %v938_v44 = vadd.f32 1.0, %v6216_v33  ;;  %v944_v45 = vmul.f32 0.5, %v936_v32  ;;  %6243 = vtanh.f32 %v992_v5 }
 0x12c   :  { %v6220_v46 = vpop.eup %6219  ;;  %v939_v48 = vadd.f32 1.0, %v6218_v38  ;;  %v945_v49 = vmul.f32 0.5, %v937_v17  ;;  %6245 = vtanh.f32 %v993_v61  ;;  %v1081_v57 = vmul.f32 %v7268_v30, %v943_v37 }
 0x12d   :  { %v6222_v50 = vpop.eup %6221  ;;  %v940_v52 = vadd.f32 1.0, %v6220_v46  ;;  %v946_v53 = vmul.f32 0.5, %v938_v44  ;;  %6247 = vtanh.f32 %v994_v10  ;;  %v1082_v62 = vmul.f32 %v7276_v34, %v944_v45 }
 0x12e   :  { %v6224_v54 = vpop.eup %6223  ;;  %v941_v55 = vadd.f32 1.0, %v6222_v50  ;;  %v947_v56 = vmul.f32 0.5, %v939_v48  ;;  %6249 = vtanh.f32 %v995_v12  ;;  %v1083_v0 = vmul.f32 %v1069_v39, %v945_v49 }
 0x12f   :  { %v6226_v58 = vpop.eup %6225  ;;  %v942_v59 = vadd.f32 1.0, %v6224_v54  ;;  %v948_v60 = vmul.f32 0.5, %v940_v52  ;;  %6251 = vtanh.f32 %v996_v13  ;;  %v1084_v61 = vmul.f32 %v1071_v41, %v946_v53 }
 0x130   :  { %v6228_v3 = vpop.eup %6227  ;;  %v949_v63 = vmul.f32 0.5, %v941_v55  ;;  %v1089_v5 = vmul.f32 %v6226_v58, %v887_v26  ;;  %6253 = vtanh.f32 %v997_v4  ;;  %v1085_v10 = vmul.f32 %v7272_v15, %v947_v56 }
 0x131   :  { %v6230_v6 = vpop.eup %6229  ;;  %v950_v7 = vmul.f32 0.5, %v942_v59  ;;  %v1090_v2 = vmul.f32 %v6228_v3, %v888_v31  ;;  %6255 = vtanh.f32 %v998_v23  ;;  %v1086_v30 = vmul.f32 %v7280_v16, %v948_v60 }
 0x132   :  { %v6232_v11 = vpop.eup %6231  ;;  %v1091_v18 = vmul.f32 %v6230_v6, %v889_v35  ;;  %v7315_v19 = vadd.f32 %v1089_v5, %v1081_v57  ;;  %v1087_v34 = vmul.f32 %v1070_v8, %v949_v63 }
 0x133   :  { %v6234_v12 = vpop.eup %6233  ;;  %v1092_v39 = vmul.f32 %v6232_v11, %v890_v36  ;;  %v7318_v20 = vadd.f32 %v1090_v2, %v1082_v62  ;;  %v1088_v22 = vmul.f32 %v1072_v42, %v950_v7 }
 0x134   :  { %v6236_v13 = vpop.eup %6235  ;;  %v1093_v41 = vmul.f32 %v6234_v12, %v891_v40  ;;  %v7323_v21 = vadd.f32 %v1091_v18, %v1083_v0  ;;  %6257 = vtanh.f32 %v7315_v19 }
 0x135   :  { %v6238_v4 = vpop.eup %6237  ;;  %v1094_v9 = vmul.f32 %v6236_v13, %v892_v43  ;;  %v7329_v23 = vadd.f32 %v1092_v39, %v1084_v61  ;;  %6259 = vtanh.f32 %v7318_v20 }
 0x136   :  { %v6240_v24 = vpop.eup %6239  ;;  %v1095_v25 = vmul.f32 %v6238_v4, %v893_v47  ;;  %v7332_v26 = vadd.f32 %v1093_v41, %v1085_v10  ;;  %6261 = vtanh.f32 %v7323_v21 }
 0x137   :  { %v1096_v15 = vmul.f32 %v6240_v24, %v894_v51  ;;  %v7335_v8 = vadd.f32 %v1094_v9, %v1086_v30  ;;  %6263 = vtanh.f32 %v7329_v23  ;;  %v6242_v16 = vpop.eup %6241 }
 0x138   :  { %v7338_v27 = vadd.f32 %v1095_v25, %v1087_v34  ;;  %6265 = vtanh.f32 %v7332_v26  ;;  %v6244_v28 = vpop.eup %6243  ;;  %v1007_v32 = vadd.f32 1.0, %v6242_v16 }
 0x139   :  { %v7341_v42 = vadd.f32 %v1096_v15, %v1088_v22  ;;  %6267 = vtanh.f32 %v7335_v8  ;;  %v6246_v14 = vpop.eup %6245  ;;  %v1008_v35 = vadd.f32 1.0, %v6244_v28 }
 0x13a   :  { %6269 = vtanh.f32 %v7338_v27  ;;  %v6248_v31 = vpop.eup %6247  ;;  %v1009_v17 = vadd.f32 1.0, %v6246_v14  ;;  %v1015_v44 = vmul.f32 0.5, %v1007_v32 }
 0x13b   :  { %6271 = vtanh.f32 %v7341_v42  ;;  %v6250_v33 = vpop.eup %6249  ;;  %v1010_v38 = vadd.f32 1.0, %v6248_v31  ;;  %v1016_v46 = vmul.f32 0.5, %v1008_v35 }
 0x13c   :  { %v6252_v36 = vpop.eup %6251  ;;  %v1011_v43 = vadd.f32 1.0, %v6250_v33  ;;  %v1017_v49 = vmul.f32 0.5, %v1009_v17 }
 0x13d   :  { %v6254_v37 = vpop.eup %6253  ;;  %v1012_v47 = vadd.f32 1.0, %v6252_v36  ;;  %v1018_v53 = vmul.f32 0.5, %v1010_v38 }
 0x13e   :  { %v6256_v40 = vpop.eup %6255  ;;  %v1013_v51 = vadd.f32 1.0, %v6254_v37  ;;  %v1019_v57 = vmul.f32 0.5, %v1011_v43 }
 0x13f   :  { %v1014_v55 = vadd.f32 1.0, %v6256_v40  ;;  %v1020_v62 = vmul.f32 0.5, %v1012_v47 }
 0x140   :  { %v1021_v5 = vmul.f32 0.5, %v1013_v51  ;;  %v7397_v51 = vld [vmem:[%s8883_s2 + $0xe8] ss:$16 sps:$4 sm:$0xff]  }
 0x141   :  { %v6258_v45 = vpop.eup %6257  ;;  %v1022_v2 = vmul.f32 0.5, %v1014_v55  ;;  %v7421_v55 = vld [vmem:[%s8883_s2 + $0xcc] ss:$16 sps:$4 sm:$0xff]  }
 0x142   :  { %v6260_v48 = vpop.eup %6259  ;;  %v1113_v50 = vmul.f32 %v6258_v45, %v1015_v44 }
 0x143   :  { %v6262_v52 = vpop.eup %6261  ;;  %v1114_v54 = vmul.f32 %v6260_v48, %v1016_v46  ;;  %v7382_v48 = vld [vmem:[%s8883_s2 + $0xe4] ss:$16 sps:$4 sm:$0xff]  }
 0x144   :  { %v6264_v56 = vpop.eup %6263  ;;  %1121 = vst [vmem:[%s8885_s4] sm:$0x1] %v1113_v50  ;;  %v1115_v58 = vmul.f32 %v6262_v52, %v1017_v49  ;;  %v1145_v59 = vpack.c.bf16 %v1113_v50, %v1113_v50  ;;  %v7387_v49 = vld [vmem:[%s8883_s2 + $0xec] ss:$16 sps:$4 sm:$0xff]   ;;  %v7392_v50 = vld [vmem:[%s8883_s2 + $0xe0] ss:$16 sps:$4 sm:$0xff]   ;;  %2010 = vmatprep.subr.bf16.mxu0 %v7382_v48 }
 0x145   :  { %v6266_v60 = vpop.eup %6265  ;;  %1122 = vst [vmem:[%s8885_s4 + $0x8] sm:$0x1] %v1114_v54  ;;  %v1116_v3 = vmul.f32 %v6264_v56, %v1018_v53  ;;  %v1146_v63 = vpack.c.bf16 %v1114_v54, %v1114_v54  ;;  %2051 = vmatprep.subr.bf16.mxu1 %v7387_v49  ;;  %v7404_v52 = vld [vmem:[%s8883_s2 + $0xc4] ss:$16 sps:$4 sm:$0xff]   ;;  %v7411_v53 = vld [vmem:[%s8883_s2 + $0xc0] ss:$16 sps:$4 sm:$0xff]  }
 0x146   :  { %v6268_v0 = vpop.eup %6267  ;;  %v1117_v6 = vmul.f32 %v6266_v60, %v1019_v57  ;;  %1123 = vst [vmem:[%s8885_s4 + $0x10] sm:$0x1] %v1115_v58  ;;  %v1147_v7 = vpack.c.bf16 %v1115_v58, %v1115_v58  ;;  %v1193_v13 = vunpack.c.l.b16 %v1145_v59  ;;  %v7416_v54 = vld [vmem:[%s8883_s2 + $0xc8] ss:$16 sps:$4 sm:$0xff]   ;;  %v7427_v56 = vld [vmem:[%s8883_s2 + $0xa4] ss:$16 sps:$4 sm:$0xff]  }
 0x147   :  { %v6270_v61 = vpop.eup %6269  ;;  %v1118_v11 = vmul.f32 %v6268_v0, %v1020_v62  ;;  %1124 = vst [vmem:[%s8885_s4 + $0x18] sm:$0x1] %v1116_v3  ;;  %v1148_v10 = vpack.c.bf16 %v1116_v3, %v1116_v3  ;;  %v1194_v18 = vunpack.c.l.b16 %v1146_v63  ;;  %v7432_v57 = vld [vmem:[%s8883_s2 + $0xac] ss:$16 sps:$4 sm:$0xff]   ;;  %v7440_v58 = vld [vmem:[%s8883_s2 + $0xa0] ss:$16 sps:$4 sm:$0xff]  }
 0x148   :  { %v6272_v12 = vpop.eup %6271  ;;  %v1119_v30 = vmul.f32 %v6270_v61, %v1021_v5  ;;  %1125 = vst [vmem:[%s8885_s4 + $0x20] sm:$0x1] %v1117_v6  ;;  %v1149_v39 = vpack.c.bf16 %v1117_v6, %v1117_v6  ;;  %v1195_v34 = vunpack.c.l.b16 %v1147_v7  ;;  %v7445_v59 = vld [vmem:[%s8883_s2 + $0xa8] ss:$16 sps:$4 sm:$0xff]   ;;  %v7452_v60 = vld [vmem:[%s8883_s2 + $0x84] ss:$16 sps:$4 sm:$0xff]  }
 0x149   :  { %v1120_v41 = vmul.f32 %v6272_v12, %v1022_v2  ;;  %1126 = vst [vmem:[%s8885_s4 + $0x28] sm:$0x1] %v1118_v11  ;;  %v1150_v4 = vpack.c.bf16 %v1118_v11, %v1118_v11  ;;  %v1196_v22 = vunpack.c.l.b16 %v1148_v10  ;;  %v1201_v9 = vrot.slane %v1194_v18, 7  ;;  %v7457_v62 = vld [vmem:[%s8883_s2 + $0x8c] ss:$16 sps:$4 sm:$0xff]  }
 0x14a   :  { %1127 = vst [vmem:[%s8885_s4 + $0x30] sm:$0x1] %v1119_v30  ;;  %v1151_v24 = vpack.c.bf16 %v1119_v30, %v1119_v30  ;;  %v1197_v25 = vunpack.c.l.b16 %v1149_v39  ;;  %v1204_v15 = vrot.slane %v1195_v34, 6  ;;  %v7464_v3 = vld [vmem:[%s8883_s2 + $0x80] ss:$16 sps:$4 sm:$0xff]  }
 0x14b   :  { %1128 = vst [vmem:[%s8885_s4 + $0x38] sm:$0x1] %v1120_v41  ;;  %v1152_v16 = vpack.c.bf16 %v1120_v41, %v1120_v41  ;;  %v1198_v28 = vunpack.c.l.b16 %v1150_v4  ;;  %v1203_v14 = vsel %vm1202_vm0, %v1201_v9, %v1193_v13  ;;  %v1207_v31 = vrot.slane %v1196_v22, 5  ;;  %v7469_v63 = vld [vmem:[%s8883_s2 + $0x88] ss:$16 sps:$4 sm:$0xff]  }
 0x14c   :  { %v1199_v32 = vunpack.c.l.b16 %v1151_v24  ;;  %v1206_v33 = vsel %vm1205_vm1, %v1204_v15, %v1203_v14  ;;  %v1210_v35 = vrot.slane %v1197_v25, 4  ;;  %v7476_v0 = vld [vmem:[%s8883_s2 + $0x64] ss:$16 sps:$4 sm:$0xff]   ;;  %v7481_v5 = vld [vmem:[%s8883_s2 + $0x6c] ss:$16 sps:$4 sm:$0xff]  }
 0x14d   :  { %v1200_v36 = vunpack.c.l.b16 %v1152_v16  ;;  %v1209_v17 = vsel %vm1208_vm2, %v1207_v31, %v1206_v33  ;;  %v1213_v37 = vrot.slane %v1198_v28, 3  ;;  %v7488_v6 = vld [vmem:[%s8883_s2 + $0x60] ss:$16 sps:$4 sm:$0xff]   ;;  %v7493_v7 = vld [vmem:[%s8883_s2 + $0x68] ss:$16 sps:$4 sm:$0xff]  }
 0x14e   :  { %v1212_v38 = vsel %vm1211_vm3, %v1210_v35, %v1209_v17  ;;  %v1216_v40 = vrot.slane %v1199_v32, 2  ;;  %v7500_v61 = vld [vmem:[%s8883_s2 + $0x44] ss:$16 sps:$4 sm:$0xff]   ;;  %v7505_v2 = vld [vmem:[%s8883_s2 + $0x4c] ss:$16 sps:$4 sm:$0xff]  }
 0x14f   :  { %v1215_v43 = vsel %vm1214_vm4, %v1213_v37, %v1212_v38  ;;  %v1219_v44 = vrot.slane %v1200_v36, 1  ;;  %8933 = vst [vmem:[#allocation6_spill] sm:$0xff] %v7500_v61  ;;  %8934 = vst [vmem:[#allocation7_spill] sm:$0xff] %v7505_v2  ;;  %v7512_v11 = vld [vmem:[%s8883_s2 + $0x40] ss:$16 sps:$4 sm:$0xff]  }
 0x150   :  { %v1218_v45 = vsel %vm1217_vm5, %v1216_v40, %v1215_v43  ;;  %8935 = vst [vmem:[#allocation8_spill] sm:$0xff] %v7512_v11  ;;  %v7517_v10 = vld [vmem:[%s8883_s2 + $0x48] ss:$16 sps:$4 sm:$0xff]   ;;  %v7524_v18 = vld [vmem:[%s8883_s2 + $0x24] ss:$16 sps:$4 sm:$0xff]  }
 0x151   :  { %v1221_v46 = vsel %vm1220_vm6, %v1219_v44, %v1218_v45  ;;  %8936 = vst [vmem:[#allocation9_spill] sm:$0xff] %v7517_v10  ;;  %8937 = vst [vmem:[#allocation10_spill] sm:$0xff] %v7524_v18  ;;  %v7529_v12 = vld [vmem:[%s8883_s2 + $0x2c] ss:$16 sps:$4 sm:$0xff]   ;;  %v7536_v30 = vld [vmem:[%s8883_s2 + $0x20] ss:$16 sps:$4 sm:$0xff]  }
 0x152   :  { %v1222_v47 = vpack.c.b16 %v1221_v46, %v1221_v46  ;;  %8938 = vst [vmem:[#allocation11_spill] sm:$0xff] %v7529_v12  ;;  %8939 = vst [vmem:[#allocation12_spill] sm:$0xff] %v7536_v30  ;;  %v7541_v39 = vld [vmem:[%s8883_s2 + $0x28] ss:$16 sps:$4 sm:$0xff]   ;;  %v7548_v13 = vld [vmem:[%s8883_s2 + $0x4] ss:$16 sps:$4 sm:$0xff]  }
 0x153   :  { %8940 = vst [vmem:[#allocation13_spill] sm:$0xff] %v7541_v39  ;;  %8941 = vst [vmem:[#allocation14_spill] sm:$0xff] %v7548_v13  ;;  %v7553_v34 = vld [vmem:[%s8883_s2 + $0xc] ss:$16 sps:$4 sm:$0xff]   ;;  %v7560_v41 = vld [vmem:[%s8883_s2] ss:$16 sps:$4 sm:$0xff]  }
 0x154   :  { %1417 = vmatmul.mubr.bf16.vlgmr.msra.gmra.mxu0 %v1222_v47  ;;  %1458 = vmatmul.mubr.bf16.vlgmr.msra.gmra.mxu1 %v1222_v47  ;;  %8942 = vst [vmem:[#allocation15_spill] sm:$0xff] %v7553_v34  ;;  %8943 = vst [vmem:[#allocation16_spill] sm:$0xff] %v7560_v41  ;;  %v7565_v4 = vld [vmem:[%s8883_s2 + $0x8] ss:$16 sps:$4 sm:$0xff]  }
 0x155   :  { %2042 = vmatprep.mubr.bf16.mxu0 %v8888_v1  ;;  %2083 = vmatprep.mubr.bf16.mxu1 %v8888_v1  ;;  %8944 = vst [vmem:[#allocation17_spill] sm:$0xff] %v7565_v4 }
 0x156   :  { %2011 = vmatpush1.bf16.msra.mxu0 %v7392_v50  ;;  %2052 = vmatpush1.bf16.msra.mxu1 %v7397_v51 }
 0x157   :  { %2012 = vmatprep.subr.bf16.mxu0 %v7404_v52  ;;  %2053 = vmatprep.subr.bf16.mxu1 %v7421_v55 }
 0x15a   :  { %2013 = vmatpush1.bf16.msra.mxu0 %v7411_v53  ;;  %2054 = vmatpush1.bf16.msra.mxu1 %v7416_v54 }
 0x15b   :  { %2014 = vmatprep.subr.bf16.mxu0 %v7427_v56  ;;  %2055 = vmatprep.subr.bf16.mxu1 %v7432_v57 }
 0x15e   :  { %2015 = vmatpush1.bf16.msra.mxu0 %v7440_v58  ;;  %2056 = vmatpush1.bf16.msra.mxu1 %v7445_v59 }
 0x15f   :  { %2016 = vmatprep.subr.bf16.mxu0 %v7452_v60  ;;  %2057 = vmatprep.subr.bf16.mxu1 %v7457_v62 }
 0x162   :  { %2017 = vmatpush1.bf16.msra.mxu0 %v7464_v3  ;;  %2058 = vmatpush1.bf16.msra.mxu1 %v7469_v63 }
 0x163   :  { %2018 = vmatprep.subr.bf16.mxu0 %v7476_v0  ;;  %2059 = vmatprep.subr.bf16.mxu1 %v7481_v5 }
 0x166   :  { %2019 = vmatpush1.bf16.msra.mxu0 %v7488_v6  ;;  %2060 = vmatpush1.bf16.msra.mxu1 %v7493_v7 }
 0x167   :  { %2020 = vmatprep.subr.bf16.mxu0 %v7500_v61  ;;  %2061 = vmatprep.subr.bf16.mxu1 %v7505_v2 }
 0x16a   :  { %2021 = vmatpush1.bf16.msra.mxu0 %v7512_v11  ;;  %2062 = vmatpush1.bf16.msra.mxu1 %v7517_v10 }
 0x16b   :  { %2022 = vmatprep.subr.bf16.mxu0 %v7524_v18  ;;  %2063 = vmatprep.subr.bf16.mxu1 %v7529_v12 }
 0x16e   :  { %2023 = vmatpush1.bf16.msra.mxu0 %v7536_v30  ;;  %2064 = vmatpush1.bf16.msra.mxu1 %v7541_v39 }
 0x16f   :  { %2024 = vmatprep.subr.bf16.mxu0 %v7548_v13  ;;  %2065 = vmatprep.subr.bf16.mxu1 %v7553_v34 }
 0x172   :  { %2025 = vmatpush1.bf16.msra.mxu0 %v7560_v41  ;;  %2066 = vmatpush1.bf16.msra.mxu1 %v7565_v4 }
 0x173   :  { %2636 = vmatprep.subr.bf16.mxu0 %v7382_v48  ;;  %2677 = vmatprep.subr.bf16.mxu1 %v7387_v49 }
 0x214   :  { %v1418_v22 = vpop.f32.mrf.mxu0  ;;  %v1459_v9 = vpop.f32.mrf.mxu1 }
 0x216   :  { %v1420_v24 = vpop.f32.mrf.mxu0  ;;  %v1461_v25 = vpop.f32.mrf.mxu1 }
 0x217   :  { %v1470_v15 = vcombine.low %v1418_v22, %v1420_v24  ;;  %v1471_v16 = vcombine.high %v1418_v22, %v1420_v24  ;;  %v1472_v28 = vcombine.low %v1459_v9, %v1461_v25  ;;  %v1473_v14 = vcombine.high %v1459_v9, %v1461_v25  ;;  %v1130_v22 = vld [vmem:[#allocation2 + $0x1] ss:$8 sm:$0xf] }
 0x218   :  { %v1422_v31 = vpop.f32.mrf.mxu0  ;;  %v1463_v32 = vpop.f32.mrf.mxu1  ;;  %v1132_v9 = vld [vmem:[#allocation2 + $0x21] ss:$8 sm:$0xf] }
 0x219   :  { %v1480_v33 = vrot.slane %v1470_v15, %v7226_v29  ;;  %v1487_v35 = vrot.slane %v1471_v16, %v7226_v29  ;;  %v1494_v36 = vrot.slane %v1472_v28, %v7226_v29  ;;  %v1501_v17 = vrot.slane %v1473_v14, %v7226_v29  ;;  %v1134_v24 = vld [vmem:[#allocation2 + $0x41] ss:$8 sm:$0xf] }
 0x21a   :  { %v1423_v37 = vpop.f32.mrf.mxu0  ;;  %v1464_v38 = vpop.f32.mrf.mxu1  ;;  %v1138_v25 = vld [vmem:[#allocation2 + $0x81] ss:$8 sm:$0xf] }
 0x21b   :  { %v1502_v40 = vcombine.low %v1480_v33, %v1494_v36  ;;  %v1503_v43 = vcombine.high %v1480_v33, %v1494_v36  ;;  %v1504_v44 = vcombine.low %v1487_v35, %v1501_v17  ;;  %v1505_v45 = vcombine.high %v1487_v35, %v1501_v17  ;;  %v1136_v31 = vld [vmem:[#allocation2 + $0x61] ss:$8 sm:$0xf] }
 0x21c   :  { %v1140_v32 = vld [vmem:[#allocation2 + $0xa1] ss:$8 sm:$0xf] }
 0x21d   :  { %v1512_v46 = vrot.slane %v1502_v40, %v7226_v29  ;;  %v1519_v47 = vrot.slane %v1504_v44, %v7226_v29  ;;  %v1526_v48 = vrot.slane %v1503_v43, %v7226_v29  ;;  %v1533_v49 = vrot.slane %v1505_v45, %v7226_v29  ;;  %v1142_v17 = vld [vmem:[#allocation2 + $0xc1] ss:$8 sm:$0xf] }
 0x21e   :  { %v1144_v43 = vld [vmem:[#allocation2 + $0xe1] ss:$8 sm:$0xf] }
 0x21f   :  { %v1534_v15 = vcombine.high %v1512_v46, %v1512_v46  ;;  %v1535_v16 = vcombine.high %v1519_v47, %v1519_v47  ;;  %v1536_v28 = vcombine.high %v1526_v48, %v1526_v48  ;;  %v1537_v14 = vcombine.high %v1533_v49, %v1533_v49 }
 0x220   :  { %v7581_v33 = vadd.f32 %v1512_v46, %v1130_v22  ;;  %v7583_v35 = vadd.f32 %v1526_v48, %v1132_v9  ;;  %v7585_v36 = vadd.f32 %v1519_v47, %v1138_v25  ;;  %v7591_v40 = vadd.f32 %v1533_v49, %v1140_v32 }
 0x221   :  { %v7587_v37 = vadd.f32 %v1534_v15, %v1134_v24  ;;  %v7589_v38 = vadd.f32 %v1536_v28, %v1136_v31  ;;  %v7593_v44 = vadd.f32 %v1535_v16, %v1142_v17  ;;  %v7597_v46 = vadd.f32 %v1537_v14, %v1144_v43 }
 0x222   :  { %v1554_v45 = vmul.f32 0.5, %v7581_v33  ;;  %v1555_v1 = vmul.f32 0.5, %v7583_v35  ;;  %v1558_v22 = vmul.f32 0.5, %v7585_v36  ;;  %v1594_v9 = vrot.slane %v7581_v33, 1 }
 0x223   :  { %v1556_v48 = vmul.f32 0.5, %v7587_v37  ;;  %v1557_v47 = vmul.f32 0.5, %v7589_v38  ;;  %v1559_v49 = vmul.f32 0.5, %v7591_v40  ;;  %v1595_v24 = vrot.slane %v7583_v35, 1 }
 0x224   :  { %6273 = vtanh.f32 %v1554_v45  ;;  %v1560_v25 = vmul.f32 0.5, %v7593_v44  ;;  %v1596_v15 = vrot.slane %v7587_v37, 1  ;;  %v1561_v16 = vmul.f32 0.5, %v7597_v46 }
 0x225   :  { %6275 = vtanh.f32 %v1555_v1  ;;  %v1597_v28 = vrot.slane %v7589_v38, 1  ;;  %v1598_v14 = vrot.slane %v7585_v36, 1  ;;  %v1610_v31 = vmul.f32 0.5, %v1594_v9 }
 0x226   :  { %6277 = vtanh.f32 %v1556_v48  ;;  %v1599_v32 = vrot.slane %v7591_v40, 1  ;;  %v1611_v1 = vmul.f32 0.5, %v1595_v24  ;;  %v1600_v17 = vrot.slane %v7593_v44, 1 }
 0x227   :  { %6279 = vtanh.f32 %v1557_v47  ;;  %v1612_v43 = vmul.f32 0.5, %v1596_v15  ;;  %v1601_v45 = vrot.slane %v7597_v46, 1  ;;  %v1613_v48 = vmul.f32 0.5, %v1597_v28 }
 0x228   :  { %6281 = vtanh.f32 %v1558_v22  ;;  %v1614_v29 = vmul.f32 0.5, %v1598_v14  ;;  %v1615_v47 = vmul.f32 0.5, %v1599_v32  ;;  %v1616_v22 = vmul.f32 0.5, %v1600_v17 }
 0x229   :  { %6283 = vtanh.f32 %v1559_v49  ;;  %v1617_v4 = vmul.f32 0.5, %v1601_v45  ;;  %v1642_v9 = vrot.slane %v7581_v33, 2  ;;  %v1643_v49 = vrot.slane %v7583_v35, 2 }
 0x22a   :  { %6285 = vtanh.f32 %v1560_v25  ;;  %v1644_v24 = vrot.slane %v7587_v37, 2  ;;  %v1645_v15 = vrot.slane %v7589_v38, 2  ;;  %v1667_v28 = vrot.slane %v7583_v35, 3 }
 0x22b   :  { %6287 = vtanh.f32 %v1561_v16  ;;  %v1666_v16 = vrot.slane %v7581_v33, 3  ;;  %v1669_v32 = vrot.slane %v7589_v38, 3  ;;  %v1647_v17 = vrot.slane %v7591_v40, 2 }
 0x22c   :  { %6289 = vtanh.f32 %v1610_v31  ;;  %v1646_v31 = vrot.slane %v7585_v36, 2  ;;  %v1671_v45 = vrot.slane %v7591_v40, 3  ;;  %v1648_v33 = vrot.slane %v7593_v44, 2 }
 0x22d   :  { %6291 = vtanh.f32 %v1611_v1  ;;  %v1649_v35 = vrot.slane %v7597_v46, 2  ;;  %v1682_v38 = vmul.f32 0.5, %v1666_v16  ;;  %v1685_v13 = vmul.f32 0.5, %v1669_v32 }
 0x22e   :  { %6293 = vtanh.f32 %v1612_v43  ;;  %v1670_v43 = vrot.slane %v7585_v36, 3  ;;  %v1687_v12 = vmul.f32 0.5, %v1671_v45 }
 0x22f   :  { %6295 = vtanh.f32 %v1613_v48 }
 0x230   :  { %6297 = vtanh.f32 %v1614_v29  ;;  %v1668_v29 = vrot.slane %v7587_v37, 3  ;;  %v1673_v37 = vrot.slane %v7597_v46, 3  ;;  %v1686_v30 = vmul.f32 0.5, %v1670_v43 }
 0x231   :  { %v6274_v25 = vpop.eup %6273  ;;  %6299 = vtanh.f32 %v1615_v47  ;;  %v1672_v47 = vrot.slane %v7593_v44, 3 }
 0x232   :  { %v6276_v14 = vpop.eup %6275  ;;  %6301 = vtanh.f32 %v1616_v22  ;;  %v1570_v34 = vadd.f32 1.0, %v6274_v25  ;;  %v1684_v36 = vmul.f32 0.5, %v1668_v29  ;;  %v1689_v16 = vmul.f32 0.5, %v1673_v37 }
 0x233   :  { %v6278_v1 = vpop.eup %6277  ;;  %6303 = vtanh.f32 %v1617_v4  ;;  %v1683_v4 = vmul.f32 0.5, %v1667_v28  ;;  %v1571_v39 = vadd.f32 1.0, %v6276_v14  ;;  %v1688_v44 = vmul.f32 0.5, %v1672_v47 }
 0x234   :  { %v6280_v48 = vpop.eup %6279  ;;  %6305 = vtanh.f32 %v1642_v9  ;;  %v1572_v9 = vadd.f32 1.0, %v6278_v1 }
 0x235   :  { %v6282_v22 = vpop.eup %6281  ;;  %6307 = vtanh.f32 %v1643_v49  ;;  %v1573_v10 = vadd.f32 1.0, %v6280_v48 }
 0x236   :  { %v6284_v41 = vpop.eup %6283  ;;  %6309 = vtanh.f32 %v1644_v24  ;;  %v1574_v11 = vadd.f32 1.0, %v6282_v22  ;;  %v1578_v24 = vmul.f32 0.5, %v1570_v34  ;;  %v1580_v1 = vmul.f32 0.5, %v1572_v9 }
 0x237   :  { %v6286_v40 = vpop.eup %6285  ;;  %6311 = vtanh.f32 %v1645_v15  ;;  %v1575_v46 = vadd.f32 1.0, %v6284_v41  ;;  %v1579_v15 = vmul.f32 0.5, %v1571_v39  ;;  %v1581_v48 = vmul.f32 0.5, %v1573_v10 }
 0x238   :  { %v6288_v18 = vpop.eup %6287  ;;  %6313 = vtanh.f32 %v1646_v31  ;;  %v1576_v25 = vadd.f32 1.0, %v6286_v40  ;;  %v1582_v22 = vmul.f32 0.5, %v1574_v11 }
 0x239   :  { %v6290_v49 = vpop.eup %6289  ;;  %6315 = vtanh.f32 %v1647_v17  ;;  %v1577_v14 = vadd.f32 1.0, %v6288_v18  ;;  %v1583_v41 = vmul.f32 0.5, %v1575_v46 }
 0x23a   :  { %v6292_v28 = vpop.eup %6291  ;;  %v1626_v29 = vadd.f32 1.0, %v6290_v49  ;;  %6317 = vtanh.f32 %v1648_v33  ;;  %v1584_v40 = vmul.f32 0.5, %v1576_v25 }
 0x23b   :  { %v6294_v32 = vpop.eup %6293  ;;  %v1627_v43 = vadd.f32 1.0, %v6292_v28  ;;  %6319 = vtanh.f32 %v1649_v35  ;;  %v1585_v18 = vmul.f32 0.5, %v1577_v14 }
 0x23c   :  { %v6296_v45 = vpop.eup %6295  ;;  %v1628_v31 = vadd.f32 1.0, %v6294_v32  ;;  %v1634_v47 = vmul.f32 0.5, %v1626_v29  ;;  %6321 = vtanh.f32 %v1682_v38 }
 0x23d   :  { %v6298_v2 = vpop.eup %6297  ;;  %v1629_v17 = vadd.f32 1.0, %v6296_v45  ;;  %v1635_v37 = vmul.f32 0.5, %v1627_v43  ;;  %6323 = vtanh.f32 %v1683_v4 }
 0x23e   :  { %v6300_v61 = vpop.eup %6299  ;;  %v1630_v34 = vadd.f32 1.0, %v6298_v2  ;;  %v1636_v49 = vmul.f32 0.5, %v1628_v31  ;;  %6325 = vtanh.f32 %v1684_v36  ;;  %v1714_v29 = vmul.f32 %v1634_v47, %v7315_v19 }
 0x23f   :  { %v6302_v33 = vpop.eup %6301  ;;  %v1631_v39 = vadd.f32 1.0, %v6300_v61  ;;  %v1637_v28 = vmul.f32 0.5, %v1629_v17  ;;  %6327 = vtanh.f32 %v1685_v13  ;;  %v1715_v25 = vmul.f32 %v1635_v37, %v7318_v20 }
 0x240   :  { %v6304_v35 = vpop.eup %6303  ;;  %v1632_v9 = vadd.f32 1.0, %v6302_v33  ;;  %v1638_v10 = vmul.f32 0.5, %v1630_v34  ;;  %6329 = vtanh.f32 %v1686_v30  ;;  %v1716_v38 = vmul.f32 %v1636_v49, %v7323_v21 }
 0x241   :  { %v6306_v11 = vpop.eup %6305  ;;  %v1633_v46 = vadd.f32 1.0, %v6304_v35  ;;  %v1639_v32 = vmul.f32 0.5, %v1631_v39  ;;  %6331 = vtanh.f32 %v1687_v12  ;;  %v1717_v45 = vmul.f32 %v1637_v28, %v7329_v23 }
 0x242   :  { %v6308_v2 = vpop.eup %6307  ;;  %v1640_v43 = vmul.f32 0.5, %v1632_v9  ;;  %v1722_v61 = vmul.f32 %v6306_v11, %v1578_v24  ;;  %6333 = vtanh.f32 %v1688_v44  ;;  %v1718_v19 = vmul.f32 %v1638_v10, %v7332_v26 }
 0x243   :  { %v6310_v14 = vpop.eup %6309  ;;  %v1641_v4 = vmul.f32 0.5, %v1633_v46  ;;  %v1723_v36 = vmul.f32 %v6308_v2, %v1579_v15  ;;  %6335 = vtanh.f32 %v1689_v16  ;;  %v1719_v30 = vmul.f32 %v1639_v32, %v7335_v8 }
 0x244   :  { %v6312_v31 = vpop.eup %6311  ;;  %v1724_v47 = vmul.f32 %v6310_v14, %v1580_v1  ;;  %v7634_v13 = vadd.f32 %v1722_v61, %v1714_v29  ;;  %v1720_v12 = vmul.f32 %v1640_v43, %v7338_v27 }
 0x245   :  { %v6314_v20 = vpop.eup %6313  ;;  %v1725_v17 = vmul.f32 %v6312_v31, %v1581_v48  ;;  %v7637_v21 = vadd.f32 %v1723_v36, %v1715_v25  ;;  %v1721_v26 = vmul.f32 %v1641_v4, %v7341_v42 }
 0x246   :  { %v6316_v24 = vpop.eup %6315  ;;  %v1726_v37 = vmul.f32 %v6314_v20, %v1582_v22  ;;  %v7640_v23 = vadd.f32 %v1724_v47, %v1716_v38  ;;  %6337 = vtanh.f32 %v7634_v13 }
 0x247   :  { %v6318_v44 = vpop.eup %6317  ;;  %v1727_v15 = vmul.f32 %v6316_v24, %v1583_v41  ;;  %v7644_v1 = vadd.f32 %v1725_v17, %v1717_v45  ;;  %6339 = vtanh.f32 %v7637_v21 }
 0x248   :  { %v6320_v8 = vpop.eup %6319  ;;  %v1728_v16 = vmul.f32 %v6318_v44, %v1584_v40  ;;  %v7647_v48 = vadd.f32 %v1726_v37, %v1718_v19  ;;  %6341 = vtanh.f32 %v7640_v23 }
 0x249   :  { %v1729_v27 = vmul.f32 %v6320_v8, %v1585_v18  ;;  %v7650_v22 = vadd.f32 %v1727_v15, %v1719_v30  ;;  %6343 = vtanh.f32 %v7644_v1  ;;  %v6322_v42 = vpop.eup %6321 }
 0x24a   :  { %v7653_v34 = vadd.f32 %v1728_v16, %v1720_v12  ;;  %6345 = vtanh.f32 %v7647_v48  ;;  %v6324_v49 = vpop.eup %6323  ;;  %v1698_v18 = vadd.f32 1.0, %v6322_v42 }
 0x24b   :  { %v7656_v41 = vadd.f32 %v1729_v27, %v1721_v26  ;;  %6347 = vtanh.f32 %v7650_v22  ;;  %v6326_v40 = vpop.eup %6325  ;;  %v1699_v28 = vadd.f32 1.0, %v6324_v49 }
 0x24c   :  { %6349 = vtanh.f32 %v7653_v34  ;;  %v6328_v33 = vpop.eup %6327  ;;  %v1700_v9 = vadd.f32 1.0, %v6326_v40  ;;  %v1706_v32 = vmul.f32 0.5, %v1698_v18 }
 0x24d   :  { %6351 = vtanh.f32 %v7656_v41  ;;  %v6330_v39 = vpop.eup %6329  ;;  %v1701_v29 = vadd.f32 1.0, %v6328_v33  ;;  %v1707_v2 = vmul.f32 0.5, %v1699_v28 }
 0x24e   :  { %v6332_v35 = vpop.eup %6331  ;;  %v1702_v46 = vadd.f32 1.0, %v6330_v39  ;;  %v1708_v61 = vmul.f32 0.5, %v1700_v9 }
 0x24f   :  { %v6334_v10 = vpop.eup %6333  ;;  %v1703_v43 = vadd.f32 1.0, %v6332_v35  ;;  %v1709_v36 = vmul.f32 0.5, %v1701_v29 }
 0x250   :  { %v6336_v11 = vpop.eup %6335  ;;  %v1704_v4 = vadd.f32 1.0, %v6334_v10  ;;  %v1710_v20 = vmul.f32 0.5, %v1702_v46 }
 0x251   :  { %v1705_v19 = vadd.f32 1.0, %v6336_v11  ;;  %v1711_v12 = vmul.f32 0.5, %v1703_v43 }
 0x252   :  { %v1712_v15 = vmul.f32 0.5, %v1704_v4 }
 0x253   :  { %v6338_v25 = vpop.eup %6337  ;;  %v1713_v42 = vmul.f32 0.5, %v1705_v19 }
 0x254   :  { %v6340_v38 = vpop.eup %6339  ;;  %v1746_v14 = vmul.f32 %v6338_v25, %v1706_v32 }
 0x255   :  { %v6342_v45 = vpop.eup %6341  ;;  %v1747_v31 = vmul.f32 %v6340_v38, %v1707_v2 }
 0x256   :  { %v6344_v47 = vpop.eup %6343  ;;  %1754 = vst [vmem:[%s8885_s4 + $0x1] sm:$0x1] %v1746_v14  ;;  %v1748_v30 = vmul.f32 %v6342_v45, %v1708_v61  ;;  %v1778_v17 = vpack.c.bf16 %v1746_v14, %v1746_v14 }
 0x257   :  { %v6346_v24 = vpop.eup %6345  ;;  %1755 = vst [vmem:[%s8885_s4 + $0x9] sm:$0x1] %v1747_v31  ;;  %v1749_v37 = vmul.f32 %v6344_v47, %v1709_v36  ;;  %v1779_v44 = vpack.c.bf16 %v1747_v31, %v1747_v31 }
 0x258   :  { %v6348_v26 = vpop.eup %6347  ;;  %v1750_v8 = vmul.f32 %v6346_v24, %v1710_v20  ;;  %1756 = vst [vmem:[%s8885_s4 + $0x11] sm:$0x1] %v1748_v30  ;;  %v1780_v16 = vpack.c.bf16 %v1748_v30, %v1748_v30  ;;  %v1826_v35 = vunpack.c.l.b16 %v1778_v17 }
 0x259   :  { %v6350_v27 = vpop.eup %6349  ;;  %v1751_v49 = vmul.f32 %v6348_v26, %v1711_v12  ;;  %1757 = vst [vmem:[%s8885_s4 + $0x19] sm:$0x1] %v1749_v37  ;;  %v1781_v40 = vpack.c.bf16 %v1749_v37, %v1749_v37  ;;  %v1827_v33 = vunpack.c.l.b16 %v1779_v44  ;;  %v8945_v26 = vmov 0  }
 0x25a   :  { %v6352_v18 = vpop.eup %6351  ;;  %v1752_v39 = vmul.f32 %v6350_v27, %v1712_v15  ;;  %1758 = vst [vmem:[%s8885_s4 + $0x21] sm:$0x1] %v1750_v8  ;;  %v1782_v28 = vpack.c.bf16 %v1750_v8, %v1750_v8  ;;  %v1828_v9 = vunpack.c.l.b16 %v1780_v16 }
 0x25b   :  { %v1753_v10 = vmul.f32 %v6352_v18, %v1713_v42  ;;  %1759 = vst [vmem:[%s8885_s4 + $0x29] sm:$0x1] %v1751_v49  ;;  %v1783_v29 = vpack.c.bf16 %v1751_v49, %v1751_v49  ;;  %v1829_v11 = vunpack.c.l.b16 %v1781_v40  ;;  %v1834_v46 = vrot.slane %v1827_v33, 7  ;;  %v8958_v42 = vld [vmem:[#allocation5_spill] sm:$0xff] }
 0x25c   :  { %1760 = vst [vmem:[%s8885_s4 + $0x31] sm:$0x1] %v1752_v39  ;;  %v1784_v32 = vpack.c.bf16 %v1752_v39, %v1752_v39  ;;  %v1830_v25 = vunpack.c.l.b16 %v1782_v28  ;;  %v1836_v2 = vrot.slane %v1828_v9, 6 }
 0x25d   :  { %1761 = vst [vmem:[%s8885_s4 + $0x39] sm:$0x1] %v1753_v10  ;;  %v1785_v43 = vpack.c.bf16 %v1753_v10, %v1753_v10  ;;  %v1831_v38 = vunpack.c.l.b16 %v1783_v29  ;;  %v1835_v61 = vsel %vm1202_vm0, %v1834_v46, %v1826_v35  ;;  %v1838_v14 = vrot.slane %v1829_v11, 5 }
 0x25e   :  { %v1832_v4 = vunpack.c.l.b16 %v1784_v32  ;;  %v1837_v45 = vsel %vm1205_vm1, %v1836_v2, %v1835_v61  ;;  %v1840_v36 = vrot.slane %v1830_v25, 4  ;;  %v1763_v2 = vld [vmem:[#allocation2 + $0x2] ss:$8 sm:$0xf] }
 0x25f   :  { %v1833_v31 = vunpack.c.l.b16 %v1785_v43  ;;  %v1839_v19 = vsel %vm1208_vm2, %v1838_v14, %v1837_v45  ;;  %v1842_v47 = vrot.slane %v1831_v38, 3  ;;  %v1765_v43 = vld [vmem:[#allocation2 + $0x22] ss:$8 sm:$0xf] }
 0x260   :  { %v1841_v20 = vsel %vm1211_vm3, %v1840_v36, %v1839_v19  ;;  %v1844_v30 = vrot.slane %v1832_v4, 2  ;;  %v1767_v38 = vld [vmem:[#allocation2 + $0x42] ss:$8 sm:$0xf] }
 0x261   :  { %v1843_v17 = vsel %vm1214_vm4, %v1842_v47, %v1841_v20  ;;  %v1846_v24 = vrot.slane %v1833_v31, 1  ;;  %v1771_v61 = vld [vmem:[#allocation2 + $0x82] ss:$8 sm:$0xf] }
 0x262   :  { %v1845_v12 = vsel %vm1217_vm5, %v1844_v30, %v1843_v17  ;;  %v1769_v31 = vld [vmem:[#allocation2 + $0x62] ss:$8 sm:$0xf] }
 0x263   :  { %v1847_v37 = vsel %vm1220_vm6, %v1846_v24, %v1845_v12  ;;  %v1773_v19 = vld [vmem:[#allocation2 + $0xa2] ss:$8 sm:$0xf] }
 0x264   :  { %v1848_v44 = vpack.c.b16 %v1847_v37, %v1847_v37  ;;  %v1775_v17 = vld [vmem:[#allocation2 + $0xc2] ss:$8 sm:$0xf] }
 0x266   :  { %2043 = vmatmul.mubr.bf16.vlgmr.msra.gmra.mxu0 %v1848_v44  ;;  %2084 = vmatmul.mubr.bf16.vlgmr.msra.gmra.mxu1 %v1848_v44  ;;  %v1777_v44 = vld [vmem:[#allocation2 + $0xe2] ss:$8 sm:$0xf] }
 0x267   :  { %2637 = vmatpush1.bf16.msra.mxu0 %v7392_v50  ;;  %2678 = vmatpush1.bf16.msra.mxu1 %v7397_v51  ;;  %v8946_v50 = vld [vmem:[#allocation6_spill] sm:$0xff]  ;;  %v8947_v51 = vld [vmem:[#allocation7_spill] sm:$0xff] }
 0x268   :  { %2638 = vmatprep.subr.bf16.mxu0 %v7404_v52  ;;  %2679 = vmatprep.subr.bf16.mxu1 %v7421_v55  ;;  %v8948_v52 = vld [vmem:[#allocation8_spill] sm:$0xff]  ;;  %v8951_v55 = vld [vmem:[#allocation11_spill] sm:$0xff] }
 0x269   :  { %2668 = vmatprep.mubr.bf16.mxu0 %v8945_v26  ;;  %2709 = vmatprep.mubr.bf16.mxu1 %v8945_v26 }
 0x26b   :  { %2639 = vmatpush1.bf16.msra.mxu0 %v7411_v53  ;;  %2680 = vmatpush1.bf16.msra.mxu1 %v7416_v54  ;;  %v8949_v53 = vld [vmem:[#allocation9_spill] sm:$0xff]  ;;  %v8950_v54 = vld [vmem:[#allocation10_spill] sm:$0xff] }
 0x26c   :  { %2640 = vmatprep.subr.bf16.mxu0 %v7427_v56  ;;  %2681 = vmatprep.subr.bf16.mxu1 %v7432_v57  ;;  %v8952_v56 = vld [vmem:[#allocation12_spill] sm:$0xff]  ;;  %v8953_v57 = vld [vmem:[#allocation13_spill] sm:$0xff] }
 0x26f   :  { %2641 = vmatpush1.bf16.msra.mxu0 %v7440_v58  ;;  %2682 = vmatpush1.bf16.msra.mxu1 %v7445_v59  ;;  %v8954_v58 = vld [vmem:[#allocation14_spill] sm:$0xff]  ;;  %v8955_v59 = vld [vmem:[#allocation15_spill] sm:$0xff] }
 0x270   :  { %2642 = vmatprep.subr.bf16.mxu0 %v7452_v60  ;;  %2683 = vmatprep.subr.bf16.mxu1 %v7457_v62  ;;  %v8956_v60 = vld [vmem:[#allocation16_spill] sm:$0xff]  ;;  %v8957_v62 = vld [vmem:[#allocation17_spill] sm:$0xff] }
 0x273   :  { %2643 = vmatpush1.bf16.msra.mxu0 %v7464_v3  ;;  %2684 = vmatpush1.bf16.msra.mxu1 %v7469_v63 }
 0x274   :  { %2644 = vmatprep.subr.bf16.mxu0 %v7476_v0  ;;  %2685 = vmatprep.subr.bf16.mxu1 %v7481_v5 }
 0x277   :  { %2645 = vmatpush1.bf16.msra.mxu0 %v7488_v6  ;;  %2686 = vmatpush1.bf16.msra.mxu1 %v7493_v7 }
 0x278   :  { %2646 = vmatprep.subr.bf16.mxu0 %v8946_v50  ;;  %2687 = vmatprep.subr.bf16.mxu1 %v8947_v51 }
 0x27b   :  { %2647 = vmatpush1.bf16.msra.mxu0 %v8948_v52  ;;  %2688 = vmatpush1.bf16.msra.mxu1 %v8949_v53 }
 0x27c   :  { %2648 = vmatprep.subr.bf16.mxu0 %v8950_v54  ;;  %2689 = vmatprep.subr.bf16.mxu1 %v8951_v55 }
 0x27f   :  { %2649 = vmatpush1.bf16.msra.mxu0 %v8952_v56  ;;  %2690 = vmatpush1.bf16.msra.mxu1 %v8953_v57 }
 0x280   :  { %2650 = vmatprep.subr.bf16.mxu0 %v8954_v58  ;;  %2691 = vmatprep.subr.bf16.mxu1 %v8955_v59 }
 0x283   :  { %2651 = vmatpush1.bf16.msra.mxu0 %v8956_v60  ;;  %2692 = vmatpush1.bf16.msra.mxu1 %v8957_v62 }
 0x326   :  { %v2044_v3 = vpop.f32.mrf.mxu0  ;;  %v2085_v63 = vpop.f32.mrf.mxu1 }
 0x328   :  { %v2046_v0 = vpop.f32.mrf.mxu0  ;;  %v2087_v5 = vpop.f32.mrf.mxu1 }
 0x329   :  { %v2096_v6 = vcombine.low %v2044_v3, %v2046_v0  ;;  %v2097_v7 = vcombine.high %v2044_v3, %v2046_v0  ;;  %v2098_v15 = vcombine.low %v2085_v63, %v2087_v5  ;;  %v2099_v8 = vcombine.high %v2085_v63, %v2087_v5 }
 0x32a   :  { %v2048_v16 = vpop.f32.mrf.mxu0  ;;  %v2089_v27 = vpop.f32.mrf.mxu1 }
 0x32b   :  { %v2106_v49 = vrot.slane %v2096_v6, %v8958_v42  ;;  %v2113_v40 = vrot.slane %v2097_v7, %v8958_v42  ;;  %v2120_v33 = vrot.slane %v2098_v15, %v8958_v42  ;;  %v2127_v18 = vrot.slane %v2099_v8, %v8958_v42 }
 0x32c   :  { %v2049_v39 = vpop.f32.mrf.mxu0  ;;  %v2090_v28 = vpop.f32.mrf.mxu1 }
 0x32d   :  { %v2128_v35 = vcombine.low %v2106_v49, %v2120_v33  ;;  %v2129_v9 = vcombine.high %v2106_v49, %v2120_v33  ;;  %v2130_v10 = vcombine.low %v2113_v40, %v2127_v18  ;;  %v2131_v29 = vcombine.high %v2113_v40, %v2127_v18 }
 0x32f   :  { %v2138_v11 = vrot.slane %v2128_v35, %v8958_v42  ;;  %v2145_v46 = vrot.slane %v2130_v10, %v8958_v42  ;;  %v2152_v32 = vrot.slane %v2129_v9, %v8958_v42  ;;  %v2159_v25 = vrot.slane %v2131_v29, %v8958_v42 }
 0x331   :  { %v2160_v14 = vcombine.high %v2138_v11, %v2138_v11  ;;  %v2161_v4 = vcombine.high %v2145_v46, %v2145_v46  ;;  %v2162_v45 = vcombine.high %v2152_v32, %v2152_v32  ;;  %v2163_v36 = vcombine.high %v2159_v25, %v2159_v25 }
 0x332   :  { %v7732_v47 = vadd.f32 %v2138_v11, %v1763_v2  ;;  %v7734_v20 = vadd.f32 %v2152_v32, %v1765_v43  ;;  %v7736_v30 = vadd.f32 %v2145_v46, %v1771_v61  ;;  %v7742_v37 = vadd.f32 %v2159_v25, %v1773_v19 }
 0x333   :  { %v7738_v24 = vadd.f32 %v2160_v14, %v1767_v38  ;;  %v7740_v12 = vadd.f32 %v2162_v45, %v1769_v31  ;;  %v7744_v50 = vadd.f32 %v2161_v4, %v1775_v17  ;;  %v7748_v53 = vadd.f32 %v2163_v36, %v1777_v44 }
 0x334   :  { %v2180_v51 = vmul.f32 0.5, %v7732_v47  ;;  %v2181_v52 = vmul.f32 0.5, %v7734_v20  ;;  %v2184_v56 = vmul.f32 0.5, %v7736_v30  ;;  %v2220_v57 = vrot.slane %v7732_v47, 1 }
 0x335   :  { %v2182_v54 = vmul.f32 0.5, %v7738_v24  ;;  %v2183_v55 = vmul.f32 0.5, %v7740_v12  ;;  %v2185_v58 = vmul.f32 0.5, %v7742_v37  ;;  %v2221_v59 = vrot.slane %v7734_v20, 1 }
 0x336   :  { %6353 = vtanh.f32 %v2180_v51  ;;  %v2186_v60 = vmul.f32 0.5, %v7744_v50  ;;  %v2222_v62 = vrot.slane %v7738_v24, 1  ;;  %v2187_v3 = vmul.f32 0.5, %v7748_v53 }
 0x337   :  { %6355 = vtanh.f32 %v2181_v52  ;;  %v2223_v63 = vrot.slane %v7740_v12, 1  ;;  %v2224_v0 = vrot.slane %v7736_v30, 1  ;;  %v2236_v5 = vmul.f32 0.5, %v2220_v57 }
 0x338   :  { %6357 = vtanh.f32 %v2182_v54  ;;  %v2225_v6 = vrot.slane %v7742_v37, 1  ;;  %v2237_v7 = vmul.f32 0.5, %v2221_v59  ;;  %v2226_v15 = vrot.slane %v7744_v50, 1 }
 0x339   :  { %6359 = vtanh.f32 %v2183_v55  ;;  %v2238_v8 = vmul.f32 0.5, %v2222_v62  ;;  %v2227_v16 = vrot.slane %v7748_v53, 1  ;;  %v2239_v27 = vmul.f32 0.5, %v2223_v63 }
 0x33a   :  { %6361 = vtanh.f32 %v2184_v56  ;;  %v2240_v49 = vmul.f32 0.5, %v2224_v0  ;;  %v2241_v40 = vmul.f32 0.5, %v2225_v6  ;;  %v2242_v33 = vmul.f32 0.5, %v2226_v15 }
 0x33b   :  { %6363 = vtanh.f32 %v2185_v58  ;;  %v2243_v18 = vmul.f32 0.5, %v2227_v16  ;;  %v2268_v39 = vrot.slane %v7732_v47, 2  ;;  %v2269_v28 = vrot.slane %v7734_v20, 2 }
 0x33c   :  { %6365 = vtanh.f32 %v2186_v60  ;;  %v2270_v35 = vrot.slane %v7738_v24, 2  ;;  %v2271_v10 = vrot.slane %v7740_v12, 2  ;;  %v2292_v29 = vrot.slane %v7732_v47, 3 }
 0x33d   :  { %6367 = vtanh.f32 %v2187_v3  ;;  %v2293_v11 = vrot.slane %v7734_v20, 3  ;;  %v2272_v32 = vrot.slane %v7736_v30, 2  ;;  %v2294_v25 = vrot.slane %v7738_v24, 3 }
 0x33e   :  { %6369 = vtanh.f32 %v2236_v5  ;;  %v2295_v2 = vrot.slane %v7740_v12, 3  ;;  %v2273_v38 = vrot.slane %v7742_v37, 2  ;;  %v2296_v61 = vrot.slane %v7736_v30, 3 }
 0x33f   :  { %6371 = vtanh.f32 %v2237_v7  ;;  %v2297_v14 = vrot.slane %v7742_v37, 3  ;;  %v2274_v45 = vrot.slane %v7744_v50, 2  ;;  %v2275_v36 = vrot.slane %v7748_v53, 2 }
 0x340   :  { %6373 = vtanh.f32 %v2238_v8  ;;  %v2298_v31 = vrot.slane %v7744_v50, 3  ;;  %v2299_v47 = vrot.slane %v7748_v53, 3  ;;  %v2308_v20 = vmul.f32 0.5, %v2292_v29 }
 0x341   :  { %6375 = vtanh.f32 %v2239_v27  ;;  %v2309_v17 = vmul.f32 0.5, %v2293_v11  ;;  %v2310_v30 = vmul.f32 0.5, %v2294_v25  ;;  %v2311_v44 = vmul.f32 0.5, %v2295_v2 }
 0x342   :  { %6377 = vtanh.f32 %v2240_v49  ;;  %v2312_v52 = vmul.f32 0.5, %v2296_v61  ;;  %v2313_v54 = vmul.f32 0.5, %v2297_v14  ;;  %v2314_v50 = vmul.f32 0.5, %v2298_v31 }
 0x343   :  { %v6354_v9 = vpop.eup %6353  ;;  %6379 = vtanh.f32 %v2241_v40  ;;  %v2315_v60 = vmul.f32 0.5, %v2299_v47 }
 0x344   :  { %v6356_v46 = vpop.eup %6355  ;;  %6381 = vtanh.f32 %v2242_v33  ;;  %v2196_v12 = vadd.f32 1.0, %v6354_v9 }
 0x345   :  { %v6358_v43 = vpop.eup %6357  ;;  %6383 = vtanh.f32 %v2243_v18  ;;  %v2197_v51 = vadd.f32 1.0, %v6356_v46 }
 0x346   :  { %v6360_v4 = vpop.eup %6359  ;;  %6385 = vtanh.f32 %v2268_v39  ;;  %v2198_v56 = vadd.f32 1.0, %v6358_v43  ;;  %v2204_v63 = vmul.f32 0.5, %v2196_v12 }
 0x347   :  { %v6362_v19 = vpop.eup %6361  ;;  %6387 = vtanh.f32 %v2269_v28  ;;  %v2199_v57 = vadd.f32 1.0, %v6360_v4  ;;  %v2205_v7 = vmul.f32 0.5, %v2197_v51 }
 0x348   :  { %v6364_v24 = vpop.eup %6363  ;;  %6389 = vtanh.f32 %v2270_v35  ;;  %v2200_v59 = vadd.f32 1.0, %v6362_v19  ;;  %v2206_v16 = vmul.f32 0.5, %v2198_v56 }
 0x349   :  { %v6366_v37 = vpop.eup %6365  ;;  %6391 = vtanh.f32 %v2271_v10  ;;  %v2201_v53 = vadd.f32 1.0, %v6364_v24  ;;  %v2207_v27 = vmul.f32 0.5, %v2199_v57 }
 0x34a   :  { %v6368_v55 = vpop.eup %6367  ;;  %6393 = vtanh.f32 %v2272_v32  ;;  %v2202_v3 = vadd.f32 1.0, %v6366_v37  ;;  %v2208_v18 = vmul.f32 0.5, %v2200_v59 }
 0x34b   :  { %v6370_v58 = vpop.eup %6369  ;;  %6395 = vtanh.f32 %v2273_v38  ;;  %v2203_v6 = vadd.f32 1.0, %v6368_v55  ;;  %v2209_v39 = vmul.f32 0.5, %v2201_v53 }
 0x34c   :  { %v6372_v62 = vpop.eup %6371  ;;  %v2252_v0 = vadd.f32 1.0, %v6370_v58  ;;  %6397 = vtanh.f32 %v2274_v45  ;;  %v2210_v10 = vmul.f32 0.5, %v2202_v3 }
 0x34d   :  { %v6374_v5 = vpop.eup %6373  ;;  %v2253_v15 = vadd.f32 1.0, %v6372_v62  ;;  %6399 = vtanh.f32 %v2275_v36  ;;  %v2211_v32 = vmul.f32 0.5, %v2203_v6 }
 0x34e   :  { %v6376_v8 = vpop.eup %6375  ;;  %v2254_v49 = vadd.f32 1.0, %v6374_v5  ;;  %v2260_v40 = vmul.f32 0.5, %v2252_v0  ;;  %6401 = vtanh.f32 %v2308_v20 }
 0x34f   :  { %v6378_v33 = vpop.eup %6377  ;;  %v2255_v28 = vadd.f32 1.0, %v6376_v8  ;;  %v2261_v35 = vmul.f32 0.5, %v2253_v15  ;;  %6403 = vtanh.f32 %v2309_v17 }
 0x350   :  { %v6380_v9 = vpop.eup %6379  ;;  %v2256_v29 = vadd.f32 1.0, %v6378_v33  ;;  %v2262_v11 = vmul.f32 0.5, %v2254_v49  ;;  %6405 = vtanh.f32 %v2310_v30  ;;  %v2340_v14 = vmul.f32 %v2260_v40, %v7634_v13 }
 0x351   :  { %v6382_v46 = vpop.eup %6381  ;;  %v2257_v25 = vadd.f32 1.0, %v6380_v9  ;;  %v2263_v2 = vmul.f32 0.5, %v2255_v28  ;;  %6407 = vtanh.f32 %v2311_v44  ;;  %v2341_v31 = vmul.f32 %v2261_v35, %v7637_v21 }
 0x352   :  { %v6384_v43 = vpop.eup %6383  ;;  %v2258_v38 = vadd.f32 1.0, %v6382_v46  ;;  %v2264_v61 = vmul.f32 0.5, %v2256_v29  ;;  %6409 = vtanh.f32 %v2312_v52  ;;  %v2342_v20 = vmul.f32 %v2262_v11, %v7640_v23 }
 0x353   :  { %v6386_v4 = vpop.eup %6385  ;;  %v2259_v45 = vadd.f32 1.0, %v6384_v43  ;;  %v2265_v36 = vmul.f32 0.5, %v2257_v25  ;;  %6411 = vtanh.f32 %v2313_v54  ;;  %v2343_v37 = vmul.f32 %v2263_v2, %v7644_v1 }
 0x354   :  { %v6388_v19 = vpop.eup %6387  ;;  %v2266_v47 = vmul.f32 0.5, %v2258_v38  ;;  %v2348_v24 = vmul.f32 %v6386_v4, %v2204_v63  ;;  %6413 = vtanh.f32 %v2314_v50  ;;  %v2344_v13 = vmul.f32 %v2264_v61, %v7647_v48 }
 0x355   :  { %v6390_v12 = vpop.eup %6389  ;;  %v2267_v17 = vmul.f32 0.5, %v2259_v45  ;;  %v2349_v30 = vmul.f32 %v6388_v19, %v2205_v7  ;;  %6415 = vtanh.f32 %v2315_v60  ;;  %v2345_v52 = vmul.f32 %v2265_v36, %v7650_v22 }
 0x356   :  { %v6392_v51 = vpop.eup %6391  ;;  %v2350_v55 = vmul.f32 %v6390_v12, %v2206_v16  ;;  %v7785_v44 = vadd.f32 %v2348_v24, %v2340_v14  ;;  %v2346_v54 = vmul.f32 %v2266_v47, %v7653_v34 }
 0x357   :  { %v6394_v21 = vpop.eup %6393  ;;  %v2351_v56 = vmul.f32 %v6392_v51, %v2207_v27  ;;  %v7788_v23 = vadd.f32 %v2349_v30, %v2341_v31  ;;  %v2347_v48 = vmul.f32 %v2267_v17, %v7656_v41 }
 0x358   :  { %v6396_v57 = vpop.eup %6395  ;;  %v2352_v58 = vmul.f32 %v6394_v21, %v2208_v18  ;;  %v7791_v1 = vadd.f32 %v2350_v55, %v2342_v20  ;;  %6417 = vtanh.f32 %v7785_v44 }
 0x359   :  { %v6398_v50 = vpop.eup %6397  ;;  %v2353_v59 = vmul.f32 %v6396_v57, %v2209_v39  ;;  %v7795_v53 = vadd.f32 %v2351_v56, %v2343_v37  ;;  %6419 = vtanh.f32 %v7788_v23 }
 0x35a   :  { %v6400_v22 = vpop.eup %6399  ;;  %v2354_v60 = vmul.f32 %v6398_v50, %v2210_v10  ;;  %v7798_v62 = vadd.f32 %v2352_v58, %v2344_v13  ;;  %6421 = vtanh.f32 %v7791_v1 }
 0x35b   :  { %v2355_v34 = vmul.f32 %v6400_v22, %v2211_v32  ;;  %v7801_v3 = vadd.f32 %v2353_v59, %v2345_v52  ;;  %6423 = vtanh.f32 %v7795_v53  ;;  %v6402_v41 = vpop.eup %6401 }
 0x35c   :  { %v7804_v63 = vadd.f32 %v2354_v60, %v2346_v54  ;;  %6425 = vtanh.f32 %v7798_v62  ;;  %v6404_v5 = vpop.eup %6403  ;;  %v2324_v15 = vadd.f32 1.0, %v6402_v41 }
 0x35d   :  { %v7807_v0 = vadd.f32 %v2355_v34, %v2347_v48  ;;  %6427 = vtanh.f32 %v7801_v3  ;;  %v6406_v6 = vpop.eup %6405  ;;  %v2325_v16 = vadd.f32 1.0, %v6404_v5 }
 0x35e   :  { %6429 = vtanh.f32 %v7804_v63  ;;  %v6408_v7 = vpop.eup %6407  ;;  %v2326_v49 = vadd.f32 1.0, %v6406_v6  ;;  %v2332_v28 = vmul.f32 0.5, %v2324_v15 }
 0x35f   :  { %6431 = vtanh.f32 %v7807_v0  ;;  %v6410_v8 = vpop.eup %6409  ;;  %v2327_v33 = vadd.f32 1.0, %v6408_v7  ;;  %v2333_v9 = vmul.f32 0.5, %v2325_v16 }
 0x360   :  { %v6412_v27 = vpop.eup %6411  ;;  %v2328_v39 = vadd.f32 1.0, %v6410_v8  ;;  %v2334_v11 = vmul.f32 0.5, %v2326_v49 }
 0x361   :  { %v6414_v40 = vpop.eup %6413  ;;  %v2329_v10 = vadd.f32 1.0, %v6412_v27  ;;  %v2335_v2 = vmul.f32 0.5, %v2327_v33 }
 0x362   :  { %v6416_v18 = vpop.eup %6415  ;;  %v2330_v32 = vadd.f32 1.0, %v6414_v40  ;;  %v2336_v14 = vmul.f32 0.5, %v2328_v39 }
 0x363   :  { %v2331_v38 = vadd.f32 1.0, %v6416_v18  ;;  %v2337_v31 = vmul.f32 0.5, %v2329_v10 }
 0x364   :  { %v2338_v24 = vmul.f32 0.5, %v2330_v32  ;;  %v7863_v32 = vld [vmem:[%s8883_s2 + $0xe8] ss:$16 sps:$4 sm:$0xff]  }
 0x365   :  { %v6418_v35 = vpop.eup %6417  ;;  %v2339_v30 = vmul.f32 0.5, %v2331_v38  ;;  %v7887_v38 = vld [vmem:[%s8883_s2 + $0xcc] ss:$16 sps:$4 sm:$0xff]  }
 0x366   :  { %v6420_v29 = vpop.eup %6419  ;;  %v2372_v46 = vmul.f32 %v6418_v35, %v2332_v28 }
 0x367   :  { %v6422_v25 = vpop.eup %6421  ;;  %v2373_v43 = vmul.f32 %v6420_v29, %v2333_v9  ;;  %v7848_v29 = vld [vmem:[%s8883_s2 + $0xe4] ss:$16 sps:$4 sm:$0xff]  }
 0x368   :  { %v6424_v61 = vpop.eup %6423  ;;  %2380 = vst [vmem:[%s8885_s4 + $0x2] sm:$0x1] %v2372_v46  ;;  %v2374_v4 = vmul.f32 %v6422_v25, %v2334_v11  ;;  %v2404_v45 = vpack.c.bf16 %v2372_v46, %v2372_v46  ;;  %v7853_v11 = vld [vmem:[%s8883_s2 + $0xec] ss:$16 sps:$4 sm:$0xff]   ;;  %v7858_v46 = vld [vmem:[%s8883_s2 + $0xe0] ss:$16 sps:$4 sm:$0xff]   ;;  %3262 = vmatprep.subr.bf16.mxu0 %v7848_v29 }
 0x369   :  { %v6426_v36 = vpop.eup %6425  ;;  %2381 = vst [vmem:[%s8885_s4 + $0xa] sm:$0x1] %v2373_v43  ;;  %v2375_v19 = vmul.f32 %v6424_v61, %v2335_v2  ;;  %v2405_v47 = vpack.c.bf16 %v2373_v43, %v2373_v43  ;;  %3303 = vmatprep.subr.bf16.mxu1 %v7853_v11  ;;  %v7870_v25 = vld [vmem:[%s8883_s2 + $0xc4] ss:$16 sps:$4 sm:$0xff]   ;;  %v7877_v2 = vld [vmem:[%s8883_s2 + $0xc0] ss:$16 sps:$4 sm:$0xff]  }
 0x36a   :  { %v6428_v20 = vpop.eup %6427  ;;  %v2376_v12 = vmul.f32 %v6426_v36, %v2336_v14  ;;  %2382 = vst [vmem:[%s8885_s4 + $0x12] sm:$0x1] %v2374_v4  ;;  %v2406_v17 = vpack.c.bf16 %v2374_v4, %v2374_v4  ;;  %v2452_v57 = vunpack.c.l.b16 %v2404_v45  ;;  %v7882_v43 = vld [vmem:[%s8883_s2 + $0xc8] ss:$16 sps:$4 sm:$0xff]   ;;  %v7893_v61 = vld [vmem:[%s8883_s2 + $0xa4] ss:$16 sps:$4 sm:$0xff]  }
 0x36b   :  { %v6430_v37 = vpop.eup %6429  ;;  %v2377_v51 = vmul.f32 %v6428_v20, %v2337_v31  ;;  %2383 = vst [vmem:[%s8885_s4 + $0x1a] sm:$0x1] %v2375_v19  ;;  %v2407_v13 = vpack.c.bf16 %v2375_v19, %v2375_v19  ;;  %v2453_v55 = vunpack.c.l.b16 %v2405_v47  ;;  %v7898_v14 = vld [vmem:[%s8883_s2 + $0xac] ss:$16 sps:$4 sm:$0xff]   ;;  %v7906_v4 = vld [vmem:[%s8883_s2 + $0xa0] ss:$16 sps:$4 sm:$0xff]  }
 0x36c   :  { %v6432_v21 = vpop.eup %6431  ;;  %v2378_v52 = vmul.f32 %v6430_v37, %v2338_v24  ;;  %2384 = vst [vmem:[%s8885_s4 + $0x22] sm:$0x1] %v2376_v12  ;;  %v2408_v56 = vpack.c.bf16 %v2376_v12, %v2376_v12  ;;  %v2454_v54 = vunpack.c.l.b16 %v2406_v17  ;;  %v7911_v45 = vld [vmem:[%s8883_s2 + $0xa8] ss:$16 sps:$4 sm:$0xff]   ;;  %v7918_v36 = vld [vmem:[%s8883_s2 + $0x84] ss:$16 sps:$4 sm:$0xff]  }
 0x36d   :  { %v2379_v58 = vmul.f32 %v6432_v21, %v2339_v30  ;;  %2385 = vst [vmem:[%s8885_s4 + $0x2a] sm:$0x1] %v2377_v51  ;;  %v2409_v50 = vpack.c.bf16 %v2377_v51, %v2377_v51  ;;  %v2455_v48 = vunpack.c.l.b16 %v2407_v13  ;;  %v2460_v59 = vrot.slane %v2453_v55, 7  ;;  %v7923_v31 = vld [vmem:[%s8883_s2 + $0x8c] ss:$16 sps:$4 sm:$0xff]  }
 0x36e   :  { %2386 = vst [vmem:[%s8885_s4 + $0x32] sm:$0x1] %v2378_v52  ;;  %v2410_v22 = vpack.c.bf16 %v2378_v52, %v2378_v52  ;;  %v2456_v60 = vunpack.c.l.b16 %v2408_v56  ;;  %v2462_v34 = vrot.slane %v2454_v54, 6  ;;  %v7930_v19 = vld [vmem:[%s8883_s2 + $0x80] ss:$16 sps:$4 sm:$0xff]  }
 0x36f   :  { %2387 = vst [vmem:[%s8885_s4 + $0x3a] sm:$0x1] %v2379_v58  ;;  %v2411_v41 = vpack.c.bf16 %v2379_v58, %v2379_v58  ;;  %v2457_v5 = vunpack.c.l.b16 %v2409_v50  ;;  %v2461_v6 = vsel %vm1202_vm0, %v2460_v59, %v2452_v57  ;;  %v2464_v7 = vrot.slane %v2455_v48, 5  ;;  %v7935_v47 = vld [vmem:[%s8883_s2 + $0x88] ss:$16 sps:$4 sm:$0xff]  }
 0x370   :  { %v2458_v15 = vunpack.c.l.b16 %v2410_v22  ;;  %v2463_v8 = vsel %vm1205_vm1, %v2462_v34, %v2461_v6  ;;  %v2466_v16 = vrot.slane %v2456_v60, 4  ;;  %v7942_v20 = vld [vmem:[%s8883_s2 + $0x64] ss:$16 sps:$4 sm:$0xff]   ;;  %v7947_v24 = vld [vmem:[%s8883_s2 + $0x6c] ss:$16 sps:$4 sm:$0xff]  }
 0x371   :  { %v2459_v27 = vunpack.c.l.b16 %v2411_v41  ;;  %v2465_v49 = vsel %vm1208_vm2, %v2464_v7, %v2463_v8  ;;  %v2468_v40 = vrot.slane %v2457_v5, 3  ;;  %v7954_v12 = vld [vmem:[%s8883_s2 + $0x60] ss:$16 sps:$4 sm:$0xff]   ;;  %v7959_v17 = vld [vmem:[%s8883_s2 + $0x68] ss:$16 sps:$4 sm:$0xff]  }
 0x372   :  { %v2467_v33 = vsel %vm1211_vm3, %v2466_v16, %v2465_v49  ;;  %v2470_v18 = vrot.slane %v2458_v15, 2  ;;  %8959 = vst [vmem:[#allocation6_spill] sm:$0xff] %v7959_v17  ;;  %v7966_v37 = vld [vmem:[%s8883_s2 + $0x44] ss:$16 sps:$4 sm:$0xff]   ;;  %v7971_v30 = vld [vmem:[%s8883_s2 + $0x4c] ss:$16 sps:$4 sm:$0xff]  }
 0x373   :  { %v2469_v39 = vsel %vm1214_vm4, %v2468_v40, %v2467_v33  ;;  %v2472_v28 = vrot.slane %v2459_v27, 1  ;;  %8960 = vst [vmem:[#allocation7_spill] sm:$0xff] %v7966_v37  ;;  %8961 = vst [vmem:[#allocation8_spill] sm:$0xff] %v7971_v30  ;;  %v7978_v51 = vld [vmem:[%s8883_s2 + $0x40] ss:$16 sps:$4 sm:$0xff]  }
 0x374   :  { %v2471_v35 = vsel %vm1217_vm5, %v2470_v18, %v2469_v39  ;;  %8962 = vst [vmem:[#allocation9_spill] sm:$0xff] %v7978_v51  ;;  %v7983_v13 = vld [vmem:[%s8883_s2 + $0x48] ss:$16 sps:$4 sm:$0xff]   ;;  %v7990_v55 = vld [vmem:[%s8883_s2 + $0x24] ss:$16 sps:$4 sm:$0xff]  }
 0x375   :  { %v2473_v9 = vsel %vm1220_vm6, %v2472_v28, %v2471_v35  ;;  %8963 = vst [vmem:[#allocation10_spill] sm:$0xff] %v7983_v13  ;;  %8964 = vst [vmem:[#allocation11_spill] sm:$0xff] %v7990_v55  ;;  %v7995_v21 = vld [vmem:[%s8883_s2 + $0x2c] ss:$16 sps:$4 sm:$0xff]   ;;  %v8002_v52 = vld [vmem:[%s8883_s2 + $0x20] ss:$16 sps:$4 sm:$0xff]  }
 0x376   :  { %v2474_v10 = vpack.c.b16 %v2473_v9, %v2473_v9  ;;  %8965 = vst [vmem:[#allocation12_spill] sm:$0xff] %v7995_v21  ;;  %8966 = vst [vmem:[#allocation13_spill] sm:$0xff] %v8002_v52  ;;  %v8007_v56 = vld [vmem:[%s8883_s2 + $0x28] ss:$16 sps:$4 sm:$0xff]   ;;  %v8014_v57 = vld [vmem:[%s8883_s2 + $0x4] ss:$16 sps:$4 sm:$0xff]  }
 0x377   :  { %8967 = vst [vmem:[#allocation14_spill] sm:$0xff] %v8007_v56  ;;  %8968 = vst [vmem:[#allocation15_spill] sm:$0xff] %v8014_v57  ;;  %v8019_v54 = vld [vmem:[%s8883_s2 + $0xc] ss:$16 sps:$4 sm:$0xff]   ;;  %v8026_v58 = vld [vmem:[%s8883_s2] ss:$16 sps:$4 sm:$0xff]  }
 0x378   :  { %2669 = vmatmul.mubr.bf16.vlgmr.msra.gmra.mxu0 %v2474_v10  ;;  %2710 = vmatmul.mubr.bf16.vlgmr.msra.gmra.mxu1 %v2474_v10  ;;  %8969 = vst [vmem:[#allocation16_spill] sm:$0xff] %v8019_v54  ;;  %8970 = vst [vmem:[#allocation17_spill] sm:$0xff] %v8026_v58  ;;  %v8031_v50 = vld [vmem:[%s8883_s2 + $0x8] ss:$16 sps:$4 sm:$0xff]  }
 0x379   :  { %3294 = vmatprep.mubr.bf16.mxu0 %v8945_v26  ;;  %3335 = vmatprep.mubr.bf16.mxu1 %v8945_v26  ;;  %8971 = vst [vmem:[#allocation18_spill] sm:$0xff] %v8031_v50 }
 0x37a   :  { %3263 = vmatpush1.bf16.msra.mxu0 %v7858_v46  ;;  %3304 = vmatpush1.bf16.msra.mxu1 %v7863_v32 }
 0x37b   :  { %3264 = vmatprep.subr.bf16.mxu0 %v7870_v25  ;;  %3305 = vmatprep.subr.bf16.mxu1 %v7887_v38 }
 0x37e   :  { %3265 = vmatpush1.bf16.msra.mxu0 %v7877_v2  ;;  %3306 = vmatpush1.bf16.msra.mxu1 %v7882_v43 }
 0x37f   :  { %3266 = vmatprep.subr.bf16.mxu0 %v7893_v61  ;;  %3307 = vmatprep.subr.bf16.mxu1 %v7898_v14 }
 0x382   :  { %3267 = vmatpush1.bf16.msra.mxu0 %v7906_v4  ;;  %3308 = vmatpush1.bf16.msra.mxu1 %v7911_v45 }
 0x383   :  { %3268 = vmatprep.subr.bf16.mxu0 %v7918_v36  ;;  %3309 = vmatprep.subr.bf16.mxu1 %v7923_v31 }
 0x386   :  { %3269 = vmatpush1.bf16.msra.mxu0 %v7930_v19  ;;  %3310 = vmatpush1.bf16.msra.mxu1 %v7935_v47 }
 0x387   :  { %3270 = vmatprep.subr.bf16.mxu0 %v7942_v20  ;;  %3311 = vmatprep.subr.bf16.mxu1 %v7947_v24 }
 0x38a   :  { %3271 = vmatpush1.bf16.msra.mxu0 %v7954_v12  ;;  %3312 = vmatpush1.bf16.msra.mxu1 %v7959_v17 }
 0x38b   :  { %3272 = vmatprep.subr.bf16.mxu0 %v7966_v37  ;;  %3313 = vmatprep.subr.bf16.mxu1 %v7971_v30 }
 0x38e   :  { %3273 = vmatpush1.bf16.msra.mxu0 %v7978_v51  ;;  %3314 = vmatpush1.bf16.msra.mxu1 %v7983_v13 }
 0x38f   :  { %3274 = vmatprep.subr.bf16.mxu0 %v7990_v55  ;;  %3315 = vmatprep.subr.bf16.mxu1 %v7995_v21 }
 0x392   :  { %3275 = vmatpush1.bf16.msra.mxu0 %v8002_v52  ;;  %3316 = vmatpush1.bf16.msra.mxu1 %v8007_v56 }
 0x393   :  { %3276 = vmatprep.subr.bf16.mxu0 %v8014_v57  ;;  %3317 = vmatprep.subr.bf16.mxu1 %v8019_v54 }
 0x396   :  { %3277 = vmatpush1.bf16.msra.mxu0 %v8026_v58  ;;  %3318 = vmatpush1.bf16.msra.mxu1 %v8031_v50 }
 0x397   :  { %3888 = vmatprep.subr.bf16.mxu0 %v7848_v29  ;;  %3929 = vmatprep.subr.bf16.mxu1 %v7853_v11 }
 0x438   :  { %v2670_v48 = vpop.f32.mrf.mxu0  ;;  %v2711_v59 = vpop.f32.mrf.mxu1 }
 0x43a   :  { %v2672_v22 = vpop.f32.mrf.mxu0  ;;  %v2713_v60 = vpop.f32.mrf.mxu1 }
 0x43b   :  { %v2722_v34 = vcombine.low %v2670_v48, %v2672_v22  ;;  %v2723_v41 = vcombine.high %v2670_v48, %v2672_v22  ;;  %v2724_v5 = vcombine.low %v2711_v59, %v2713_v60  ;;  %v2725_v6 = vcombine.high %v2711_v59, %v2713_v60  ;;  %v2389_v48 = vld [vmem:[#allocation2 + $0x3] ss:$8 sm:$0xf] }
 0x43c   :  { %v2674_v7 = vpop.f32.mrf.mxu0  ;;  %v2715_v15 = vpop.f32.mrf.mxu1  ;;  %v2391_v59 = vld [vmem:[#allocation2 + $0x23] ss:$8 sm:$0xf] }
 0x43d   :  { %v2732_v8 = vrot.slane %v2722_v34, %v8958_v42  ;;  %v2739_v16 = vrot.slane %v2723_v41, %v8958_v42  ;;  %v2746_v27 = vrot.slane %v2724_v5, %v8958_v42  ;;  %v2753_v49 = vrot.slane %v2725_v6, %v8958_v42  ;;  %v2393_v22 = vld [vmem:[#allocation2 + $0x43] ss:$8 sm:$0xf] }
 0x43e   :  { %v2675_v40 = vpop.f32.mrf.mxu0  ;;  %v2716_v33 = vpop.f32.mrf.mxu1  ;;  %v2397_v60 = vld [vmem:[#allocation2 + $0x83] ss:$8 sm:$0xf] }
 0x43f   :  { %v2754_v18 = vcombine.low %v2732_v8, %v2746_v27  ;;  %v2755_v39 = vcombine.high %v2732_v8, %v2746_v27  ;;  %v2756_v28 = vcombine.low %v2739_v16, %v2753_v49  ;;  %v2757_v35 = vcombine.high %v2739_v16, %v2753_v49  ;;  %v2395_v7 = vld [vmem:[#allocation2 + $0x63] ss:$8 sm:$0xf] }
 0x440   :  { %v2399_v15 = vld [vmem:[#allocation2 + $0xa3] ss:$8 sm:$0xf] }
 0x441   :  { %v2764_v9 = vrot.slane %v2754_v18, %v8958_v42  ;;  %v2771_v10 = vrot.slane %v2756_v28, %v8958_v42  ;;  %v2778_v29 = vrot.slane %v2755_v39, %v8958_v42  ;;  %v2785_v11 = vrot.slane %v2757_v35, %v8958_v42  ;;  %v2401_v49 = vld [vmem:[#allocation2 + $0xc3] ss:$8 sm:$0xf] }
 0x442   :  { %v2403_v39 = vld [vmem:[#allocation2 + $0xe3] ss:$8 sm:$0xf] }
 0x443   :  { %v2786_v34 = vcombine.high %v2764_v9, %v2764_v9  ;;  %v2787_v41 = vcombine.high %v2771_v10, %v2771_v10  ;;  %v2788_v5 = vcombine.high %v2778_v29, %v2778_v29  ;;  %v2789_v6 = vcombine.high %v2785_v11, %v2785_v11 }
 0x444   :  { %v8047_v8 = vadd.f32 %v2764_v9, %v2389_v48  ;;  %v8049_v16 = vadd.f32 %v2778_v29, %v2391_v59  ;;  %v8051_v27 = vadd.f32 %v2771_v10, %v2397_v60  ;;  %v8057_v18 = vadd.f32 %v2785_v11, %v2399_v15 }
 0x445   :  { %v8053_v40 = vadd.f32 %v2786_v34, %v2393_v22  ;;  %v8055_v33 = vadd.f32 %v2788_v5, %v2395_v7  ;;  %v8059_v28 = vadd.f32 %v2787_v41, %v2401_v49  ;;  %v8063_v9 = vadd.f32 %v2789_v6, %v2403_v39 }
 0x446   :  { %v2806_v35 = vmul.f32 0.5, %v8047_v8  ;;  %v2807_v42 = vmul.f32 0.5, %v8049_v16  ;;  %v2810_v48 = vmul.f32 0.5, %v8051_v27  ;;  %v2846_v59 = vrot.slane %v8047_v8, 1 }
 0x447   :  { %v2808_v29 = vmul.f32 0.5, %v8053_v40  ;;  %v2809_v10 = vmul.f32 0.5, %v8055_v33  ;;  %v2811_v11 = vmul.f32 0.5, %v8057_v18  ;;  %v2847_v22 = vrot.slane %v8049_v16, 1 }
 0x448   :  { %6433 = vtanh.f32 %v2806_v35  ;;  %v2812_v60 = vmul.f32 0.5, %v8059_v28  ;;  %v2848_v34 = vrot.slane %v8053_v40, 1  ;;  %v2813_v41 = vmul.f32 0.5, %v8063_v9 }
 0x449   :  { %6435 = vtanh.f32 %v2807_v42  ;;  %v2849_v5 = vrot.slane %v8055_v33, 1  ;;  %v2850_v6 = vrot.slane %v8051_v27, 1  ;;  %v2862_v7 = vmul.f32 0.5, %v2846_v59 }
 0x44a   :  { %6437 = vtanh.f32 %v2808_v29  ;;  %v2851_v15 = vrot.slane %v8057_v18, 1  ;;  %v2863_v42 = vmul.f32 0.5, %v2847_v22  ;;  %v2852_v49 = vrot.slane %v8059_v28, 1 }
 0x44b   :  { %6439 = vtanh.f32 %v2809_v10  ;;  %v2864_v39 = vmul.f32 0.5, %v2848_v34  ;;  %v2853_v35 = vrot.slane %v8063_v9, 1  ;;  %v2865_v29 = vmul.f32 0.5, %v2849_v5 }
 0x44c   :  { %6441 = vtanh.f32 %v2810_v48  ;;  %v2866_v50 = vmul.f32 0.5, %v2850_v6  ;;  %v2867_v10 = vmul.f32 0.5, %v2851_v15  ;;  %v2868_v48 = vmul.f32 0.5, %v2852_v49 }
 0x44d   :  { %6443 = vtanh.f32 %v2811_v11  ;;  %v2869_v58 = vmul.f32 0.5, %v2853_v35  ;;  %v2894_v59 = vrot.slane %v8047_v8, 2  ;;  %v2895_v11 = vrot.slane %v8049_v16, 2 }
 0x44e   :  { %6445 = vtanh.f32 %v2812_v60  ;;  %v2896_v22 = vrot.slane %v8053_v40, 2  ;;  %v2897_v34 = vrot.slane %v8055_v33, 2  ;;  %v2919_v5 = vrot.slane %v8049_v16, 3 }
 0x44f   :  { %6447 = vtanh.f32 %v2813_v41  ;;  %v2918_v41 = vrot.slane %v8047_v8, 3  ;;  %v2921_v15 = vrot.slane %v8055_v33, 3  ;;  %v2899_v49 = vrot.slane %v8057_v18, 2 }
 0x450   :  { %6449 = vtanh.f32 %v2862_v7  ;;  %v2898_v7 = vrot.slane %v8051_v27, 2  ;;  %v2923_v35 = vrot.slane %v8057_v18, 3  ;;  %v2900_v8 = vrot.slane %v8059_v28, 2 }
 0x451   :  { %6451 = vtanh.f32 %v2863_v42  ;;  %v2901_v16 = vrot.slane %v8063_v9, 2  ;;  %v2934_v33 = vmul.f32 0.5, %v2918_v41  ;;  %v2937_v56 = vmul.f32 0.5, %v2921_v15 }
 0x452   :  { %6453 = vtanh.f32 %v2864_v39  ;;  %v2922_v39 = vrot.slane %v8051_v27, 3  ;;  %v2939_v55 = vmul.f32 0.5, %v2923_v35 }
 0x453   :  { %6455 = vtanh.f32 %v2865_v29 }
 0x454   :  { %6457 = vtanh.f32 %v2866_v50  ;;  %v2920_v50 = vrot.slane %v8053_v40, 3  ;;  %v2925_v40 = vrot.slane %v8063_v9, 3  ;;  %v2938_v21 = vmul.f32 0.5, %v2922_v39 }
 0x455   :  { %v6434_v60 = vpop.eup %6433  ;;  %6459 = vtanh.f32 %v2867_v10  ;;  %v2924_v10 = vrot.slane %v8059_v28, 3 }
 0x456   :  { %v6436_v6 = vpop.eup %6435  ;;  %6461 = vtanh.f32 %v2868_v48  ;;  %v2822_v57 = vadd.f32 1.0, %v6434_v60  ;;  %v2936_v27 = vmul.f32 0.5, %v2920_v50  ;;  %v2941_v41 = vmul.f32 0.5, %v2925_v40 }
 0x457   :  { %v6438_v42 = vpop.eup %6437  ;;  %6463 = vtanh.f32 %v2869_v58  ;;  %v2935_v58 = vmul.f32 0.5, %v2919_v5  ;;  %v2823_v52 = vadd.f32 1.0, %v6436_v6  ;;  %v2940_v28 = vmul.f32 0.5, %v2924_v10 }
 0x458   :  { %v6440_v29 = vpop.eup %6439  ;;  %6465 = vtanh.f32 %v2894_v59  ;;  %v2824_v59 = vadd.f32 1.0, %v6438_v42 }
 0x459   :  { %v6442_v48 = vpop.eup %6441  ;;  %6467 = vtanh.f32 %v2895_v11  ;;  %v2825_v51 = vadd.f32 1.0, %v6440_v29 }
 0x45a   :  { %v6444_v54 = vpop.eup %6443  ;;  %6469 = vtanh.f32 %v2896_v22  ;;  %v2826_v30 = vadd.f32 1.0, %v6442_v48  ;;  %v2830_v22 = vmul.f32 0.5, %v2822_v57  ;;  %v2832_v42 = vmul.f32 0.5, %v2824_v59 }
 0x45b   :  { %v6446_v18 = vpop.eup %6445  ;;  %6471 = vtanh.f32 %v2897_v34  ;;  %v2827_v9 = vadd.f32 1.0, %v6444_v54  ;;  %v2831_v34 = vmul.f32 0.5, %v2823_v52  ;;  %v2833_v29 = vmul.f32 0.5, %v2825_v51 }
 0x45c   :  { %v6448_v13 = vpop.eup %6447  ;;  %6473 = vtanh.f32 %v2898_v7  ;;  %v2828_v60 = vadd.f32 1.0, %v6446_v18  ;;  %v2834_v48 = vmul.f32 0.5, %v2826_v30 }
 0x45d   :  { %v6450_v11 = vpop.eup %6449  ;;  %6475 = vtanh.f32 %v2899_v49  ;;  %v2829_v6 = vadd.f32 1.0, %v6448_v13  ;;  %v2835_v54 = vmul.f32 0.5, %v2827_v9 }
 0x45e   :  { %v6452_v5 = vpop.eup %6451  ;;  %v2878_v50 = vadd.f32 1.0, %v6450_v11  ;;  %6477 = vtanh.f32 %v2900_v8  ;;  %v2836_v18 = vmul.f32 0.5, %v2828_v60 }
 0x45f   :  { %v6454_v15 = vpop.eup %6453  ;;  %v2879_v39 = vadd.f32 1.0, %v6452_v5  ;;  %6479 = vtanh.f32 %v2901_v16  ;;  %v2837_v13 = vmul.f32 0.5, %v2829_v6 }
 0x460   :  { %v6456_v35 = vpop.eup %6455  ;;  %v2880_v7 = vadd.f32 1.0, %v6454_v15  ;;  %v2886_v10 = vmul.f32 0.5, %v2878_v50  ;;  %6481 = vtanh.f32 %v2934_v33 }
 0x461   :  { %v6458_v37 = vpop.eup %6457  ;;  %v2881_v49 = vadd.f32 1.0, %v6456_v35  ;;  %v2887_v40 = vmul.f32 0.5, %v2879_v39  ;;  %6483 = vtanh.f32 %v2935_v58 }
 0x462   :  { %v6460_v17 = vpop.eup %6459  ;;  %v2882_v57 = vadd.f32 1.0, %v6458_v37  ;;  %v2888_v11 = vmul.f32 0.5, %v2880_v7  ;;  %6485 = vtanh.f32 %v2936_v27  ;;  %v2966_v50 = vmul.f32 %v2886_v10, %v7785_v44 }
 0x463   :  { %v6462_v8 = vpop.eup %6461  ;;  %v2883_v52 = vadd.f32 1.0, %v6460_v17  ;;  %v2889_v5 = vmul.f32 0.5, %v2881_v49  ;;  %6487 = vtanh.f32 %v2937_v56  ;;  %v2967_v60 = vmul.f32 %v2887_v40, %v7788_v23 }
 0x464   :  { %v6464_v16 = vpop.eup %6463  ;;  %v2884_v59 = vadd.f32 1.0, %v6462_v8  ;;  %v2890_v51 = vmul.f32 0.5, %v2882_v57  ;;  %6489 = vtanh.f32 %v2938_v21  ;;  %v2968_v33 = vmul.f32 %v2888_v11, %v7791_v1 }
 0x465   :  { %v6466_v30 = vpop.eup %6465  ;;  %v2885_v9 = vadd.f32 1.0, %v6464_v16  ;;  %v2891_v15 = vmul.f32 0.5, %v2883_v52  ;;  %6491 = vtanh.f32 %v2939_v55  ;;  %v2969_v35 = vmul.f32 %v2889_v5, %v7795_v53 }
 0x466   :  { %v6468_v37 = vpop.eup %6467  ;;  %v2892_v39 = vmul.f32 0.5, %v2884_v59  ;;  %v2974_v17 = vmul.f32 %v6466_v30, %v2830_v22  ;;  %6493 = vtanh.f32 %v2940_v28  ;;  %v2970_v44 = vmul.f32 %v2890_v51, %v7798_v62 }
 0x467   :  { %v6470_v6 = vpop.eup %6469  ;;  %v2893_v58 = vmul.f32 0.5, %v2885_v9  ;;  %v2975_v27 = vmul.f32 %v6468_v37, %v2831_v34  ;;  %6495 = vtanh.f32 %v2941_v41  ;;  %v2971_v21 = vmul.f32 %v2891_v15, %v7801_v3 }
 0x468   :  { %v6472_v7 = vpop.eup %6471  ;;  %v2976_v10 = vmul.f32 %v6470_v6, %v2832_v42  ;;  %v8100_v56 = vadd.f32 %v2974_v17, %v2966_v50  ;;  %v2972_v55 = vmul.f32 %v2892_v39, %v7804_v63 }
 0x469   :  { %v6474_v23 = vpop.eup %6473  ;;  %v2977_v49 = vmul.f32 %v6472_v7, %v2833_v29  ;;  %v8103_v1 = vadd.f32 %v2975_v27, %v2967_v60  ;;  %v2973_v62 = vmul.f32 %v2893_v58, %v7807_v0 }
 0x46a   :  { %v6476_v22 = vpop.eup %6475  ;;  %v2978_v40 = vmul.f32 %v6474_v23, %v2834_v48  ;;  %v8106_v53 = vadd.f32 %v2976_v10, %v2968_v33  ;;  %6497 = vtanh.f32 %v8100_v56 }
 0x46b   :  { %v6478_v28 = vpop.eup %6477  ;;  %v2979_v34 = vmul.f32 %v6476_v22, %v2835_v54  ;;  %v8110_v42 = vadd.f32 %v2977_v49, %v2969_v35  ;;  %6499 = vtanh.f32 %v8103_v1 }
 0x46c   :  { %v6480_v3 = vpop.eup %6479  ;;  %v2980_v41 = vmul.f32 %v6478_v28, %v2836_v18  ;;  %v8113_v29 = vadd.f32 %v2978_v40, %v2970_v44  ;;  %6501 = vtanh.f32 %v8106_v53 }
 0x46d   :  { %v2981_v63 = vmul.f32 %v6480_v3, %v2837_v13  ;;  %v8116_v48 = vadd.f32 %v2979_v34, %v2971_v21  ;;  %6503 = vtanh.f32 %v8110_v42  ;;  %v6482_v0 = vpop.eup %6481 }
 0x46e   :  { %v8119_v57 = vadd.f32 %v2980_v41, %v2972_v55  ;;  %6505 = vtanh.f32 %v8113_v29  ;;  %v6484_v11 = vpop.eup %6483  ;;  %v2950_v13 = vadd.f32 1.0, %v6482_v0 }
 0x46f   :  { %v8122_v54 = vadd.f32 %v2981_v63, %v2973_v62  ;;  %6507 = vtanh.f32 %v8116_v48  ;;  %v6486_v18 = vpop.eup %6485  ;;  %v2951_v5 = vadd.f32 1.0, %v6484_v11 }
 0x470   :  { %6509 = vtanh.f32 %v8119_v57  ;;  %v6488_v8 = vpop.eup %6487  ;;  %v2952_v59 = vadd.f32 1.0, %v6486_v18  ;;  %v2958_v15 = vmul.f32 0.5, %v2950_v13 }
 0x471   :  { %6511 = vtanh.f32 %v8122_v54  ;;  %v6490_v52 = vpop.eup %6489  ;;  %v2953_v50 = vadd.f32 1.0, %v6488_v8  ;;  %v2959_v37 = vmul.f32 0.5, %v2951_v5 }
 0x472   :  { %v6492_v16 = vpop.eup %6491  ;;  %v2954_v9 = vadd.f32 1.0, %v6490_v52  ;;  %v2960_v17 = vmul.f32 0.5, %v2952_v59 }
 0x473   :  { %v6494_v51 = vpop.eup %6493  ;;  %v2955_v39 = vadd.f32 1.0, %v6492_v16  ;;  %v2961_v27 = vmul.f32 0.5, %v2953_v50 }
 0x474   :  { %v6496_v30 = vpop.eup %6495  ;;  %v2956_v58 = vadd.f32 1.0, %v6494_v51  ;;  %v2962_v23 = vmul.f32 0.5, %v2954_v9 }
 0x475   :  { %v2957_v44 = vadd.f32 1.0, %v6496_v30  ;;  %v2963_v55 = vmul.f32 0.5, %v2955_v39 }
 0x476   :  { %v2964_v34 = vmul.f32 0.5, %v2956_v58 }
 0x477   :  { %v6498_v60 = vpop.eup %6497  ;;  %v2965_v0 = vmul.f32 0.5, %v2957_v44 }
 0x478   :  { %v6500_v33 = vpop.eup %6499  ;;  %v2998_v6 = vmul.f32 %v6498_v60, %v2958_v15 }
 0x479   :  { %v6502_v35 = vpop.eup %6501  ;;  %v2999_v7 = vmul.f32 %v6500_v33, %v2959_v37 }
 0x47a   :  { %v6504_v10 = vpop.eup %6503  ;;  %3006 = vst [vmem:[%s8885_s4 + $0x3] sm:$0x1] %v2998_v6  ;;  %v3000_v21 = vmul.f32 %v6502_v35, %v2960_v17  ;;  %v3030_v49 = vpack.c.bf16 %v2998_v6, %v2998_v6 }
 0x47b   :  { %v6506_v22 = vpop.eup %6505  ;;  %3007 = vst [vmem:[%s8885_s4 + $0xb] sm:$0x1] %v2999_v7  ;;  %v3001_v40 = vmul.f32 %v6504_v10, %v2961_v27  ;;  %v3031_v28 = vpack.c.bf16 %v2999_v7, %v2999_v7 }
 0x47c   :  { %v6508_v62 = vpop.eup %6507  ;;  %v3002_v3 = vmul.f32 %v6506_v22, %v2962_v23  ;;  %3008 = vst [vmem:[%s8885_s4 + $0x13] sm:$0x1] %v3000_v21  ;;  %v3032_v41 = vpack.c.bf16 %v3000_v21, %v3000_v21  ;;  %v3078_v16 = vunpack.c.l.b16 %v3030_v49 }
 0x47d   :  { %v6510_v63 = vpop.eup %6509  ;;  %v3003_v11 = vmul.f32 %v6508_v62, %v2963_v55  ;;  %3009 = vst [vmem:[%s8885_s4 + $0x1b] sm:$0x1] %v3001_v40  ;;  %v3033_v18 = vpack.c.bf16 %v3001_v40, %v3001_v40  ;;  %v3079_v8 = vunpack.c.l.b16 %v3031_v28 }
 0x47e   :  { %v6512_v13 = vpop.eup %6511  ;;  %v3004_v52 = vmul.f32 %v6510_v63, %v2964_v34  ;;  %3010 = vst [vmem:[%s8885_s4 + $0x23] sm:$0x1] %v3002_v3  ;;  %v3034_v5 = vpack.c.bf16 %v3002_v3, %v3002_v3  ;;  %v3080_v59 = vunpack.c.l.b16 %v3032_v41 }
 0x47f   :  { %v3005_v51 = vmul.f32 %v6512_v13, %v2965_v0  ;;  %3011 = vst [vmem:[%s8885_s4 + $0x2b] sm:$0x1] %v3003_v11  ;;  %v3035_v50 = vpack.c.bf16 %v3003_v11, %v3003_v11  ;;  %v3081_v30 = vunpack.c.l.b16 %v3033_v18  ;;  %v3086_v9 = vrot.slane %v3079_v8, 7  ;;  %v8985_v11 = vld [vmem:[#allocation5_spill] sm:$0xff] }
 0x480   :  { %3012 = vst [vmem:[%s8885_s4 + $0x33] sm:$0x1] %v3004_v52  ;;  %v3036_v15 = vpack.c.bf16 %v3004_v52, %v3004_v52  ;;  %v3082_v60 = vunpack.c.l.b16 %v3034_v5  ;;  %v3088_v37 = vrot.slane %v3080_v59, 6 }
 0x481   :  { %3013 = vst [vmem:[%s8885_s4 + $0x3b] sm:$0x1] %v3005_v51  ;;  %v3037_v39 = vpack.c.bf16 %v3005_v51, %v3005_v51  ;;  %v3083_v33 = vunpack.c.l.b16 %v3035_v50  ;;  %v3087_v17 = vsel %vm1202_vm0, %v3086_v9, %v3078_v16  ;;  %v3090_v6 = vrot.slane %v3081_v30, 5 }
 0x482   :  { %v3084_v58 = vunpack.c.l.b16 %v3036_v15  ;;  %v3089_v35 = vsel %vm1205_vm1, %v3088_v37, %v3087_v17  ;;  %v3092_v27 = vrot.slane %v3082_v60, 4  ;;  %v3019_v17 = vld [vmem:[#allocation2 + $0x44] ss:$8 sm:$0xf] }
 0x483   :  { %v3085_v7 = vunpack.c.l.b16 %v3037_v39  ;;  %v3091_v44 = vsel %vm1208_vm2, %v3090_v6, %v3089_v35  ;;  %v3094_v10 = vrot.slane %v3083_v33, 3  ;;  %v3015_v39 = vld [vmem:[#allocation2 + $0x4] ss:$8 sm:$0xf] }
 0x484   :  { %v3093_v23 = vsel %vm1211_vm3, %v3092_v27, %v3091_v44  ;;  %v3096_v21 = vrot.slane %v3084_v58, 2  ;;  %v3017_v33 = vld [vmem:[#allocation2 + $0x24] ss:$8 sm:$0xf] }
 0x485   :  { %v3095_v49 = vsel %vm1214_vm4, %v3094_v10, %v3093_v23  ;;  %v3098_v22 = vrot.slane %v3085_v7, 1  ;;  %v3023_v6 = vld [vmem:[#allocation2 + $0x84] ss:$8 sm:$0xf] }
 0x486   :  { %v3097_v55 = vsel %vm1217_vm5, %v3096_v21, %v3095_v49  ;;  %v3021_v44 = vld [vmem:[#allocation2 + $0x64] ss:$8 sm:$0xf] }
 0x487   :  { %v3099_v40 = vsel %vm1220_vm6, %v3098_v22, %v3097_v55  ;;  %v3025_v10 = vld [vmem:[#allocation2 + $0xa4] ss:$8 sm:$0xf] }
 0x488   :  { %v3100_v28 = vpack.c.b16 %v3099_v40, %v3099_v40  ;;  %v3027_v22 = vld [vmem:[#allocation2 + $0xc4] ss:$8 sm:$0xf] }
 0x48a   :  { %3295 = vmatmul.mubr.bf16.vlgmr.msra.gmra.mxu0 %v3100_v28  ;;  %3336 = vmatmul.mubr.bf16.vlgmr.msra.gmra.mxu1 %v3100_v28 }
 0x48b   :  { %3889 = vmatpush1.bf16.msra.mxu0 %v7858_v46  ;;  %3930 = vmatpush1.bf16.msra.mxu1 %v7863_v32  ;;  %v8972_v46 = vld [vmem:[#allocation6_spill] sm:$0xff]  ;;  %v8973_v32 = vld [vmem:[#allocation7_spill] sm:$0xff] }
 0x48c   :  { %3890 = vmatprep.subr.bf16.mxu0 %v7870_v25  ;;  %3931 = vmatprep.subr.bf16.mxu1 %v7887_v38  ;;  %v8974_v25 = vld [vmem:[#allocation8_spill] sm:$0xff]  ;;  %v8977_v38 = vld [vmem:[#allocation11_spill] sm:$0xff] }
 0x48d   :  { %3920 = vmatprep.mubr.bf16.mxu0 %v8945_v26  ;;  %3961 = vmatprep.mubr.bf16.mxu1 %v8945_v26 }
 0x48f   :  { %3891 = vmatpush1.bf16.msra.mxu0 %v7877_v2  ;;  %3932 = vmatpush1.bf16.msra.mxu1 %v7882_v43  ;;  %v8975_v2 = vld [vmem:[#allocation9_spill] sm:$0xff]  ;;  %v8976_v43 = vld [vmem:[#allocation10_spill] sm:$0xff] }
 0x490   :  { %3892 = vmatprep.subr.bf16.mxu0 %v7893_v61  ;;  %3933 = vmatprep.subr.bf16.mxu1 %v7898_v14  ;;  %v8978_v61 = vld [vmem:[#allocation12_spill] sm:$0xff]  ;;  %v8979_v14 = vld [vmem:[#allocation13_spill] sm:$0xff] }
 0x493   :  { %3893 = vmatpush1.bf16.msra.mxu0 %v7906_v4  ;;  %3934 = vmatpush1.bf16.msra.mxu1 %v7911_v45  ;;  %v8980_v4 = vld [vmem:[#allocation14_spill] sm:$0xff]  ;;  %v8981_v45 = vld [vmem:[#allocation15_spill] sm:$0xff] }
 0x494   :  { %3894 = vmatprep.subr.bf16.mxu0 %v7918_v36  ;;  %3935 = vmatprep.subr.bf16.mxu1 %v7923_v31  ;;  %v8982_v36 = vld [vmem:[#allocation16_spill] sm:$0xff]  ;;  %v8983_v31 = vld [vmem:[#allocation17_spill] sm:$0xff] }
 0x497   :  { %3895 = vmatpush1.bf16.msra.mxu0 %v7930_v19  ;;  %3936 = vmatpush1.bf16.msra.mxu1 %v7935_v47  ;;  %v8984_v19 = vld [vmem:[#allocation18_spill] sm:$0xff] }
 0x498   :  { %3896 = vmatprep.subr.bf16.mxu0 %v7942_v20  ;;  %3937 = vmatprep.subr.bf16.mxu1 %v7947_v24 }
 0x49b   :  { %3897 = vmatpush1.bf16.msra.mxu0 %v7954_v12  ;;  %3938 = vmatpush1.bf16.msra.mxu1 %v8972_v46  ;;  %v3029_v46 = vld [vmem:[#allocation2 + $0xe4] ss:$8 sm:$0xf] }
 0x49c   :  { %3898 = vmatprep.subr.bf16.mxu0 %v8973_v32  ;;  %3939 = vmatprep.subr.bf16.mxu1 %v8974_v25 }
 0x49f   :  { %3899 = vmatpush1.bf16.msra.mxu0 %v8975_v2  ;;  %3940 = vmatpush1.bf16.msra.mxu1 %v8976_v43 }
 0x4a0   :  { %3900 = vmatprep.subr.bf16.mxu0 %v8977_v38  ;;  %3941 = vmatprep.subr.bf16.mxu1 %v8978_v61 }
 0x4a3   :  { %3901 = vmatpush1.bf16.msra.mxu0 %v8979_v14  ;;  %3942 = vmatpush1.bf16.msra.mxu1 %v8980_v4 }
 0x4a4   :  { %3902 = vmatprep.subr.bf16.mxu0 %v8981_v45  ;;  %3943 = vmatprep.subr.bf16.mxu1 %v8982_v36 }
 0x4a7   :  { %3903 = vmatpush1.bf16.msra.mxu0 %v8983_v31  ;;  %3944 = vmatpush1.bf16.msra.mxu1 %v8984_v19 }
 0x54a   :  { %v3296_v47 = vpop.f32.mrf.mxu0  ;;  %v3337_v20 = vpop.f32.mrf.mxu1 }
 0x54c   :  { %v3298_v24 = vpop.f32.mrf.mxu0  ;;  %v3339_v12 = vpop.f32.mrf.mxu1 }
 0x54d   :  { %v3348_v62 = vcombine.low %v3296_v47, %v3298_v24  ;;  %v3349_v34 = vcombine.high %v3296_v47, %v3298_v24  ;;  %v3350_v3 = vcombine.low %v3337_v20, %v3339_v12  ;;  %v3351_v41 = vcombine.high %v3337_v20, %v3339_v12 }
 0x54e   :  { %v3300_v63 = vpop.f32.mrf.mxu0  ;;  %v3341_v0 = vpop.f32.mrf.mxu1 }
 0x54f   :  { %v3358_v18 = vrot.slane %v3348_v62, %v8985_v11  ;;  %v3365_v8 = vrot.slane %v3349_v34, %v8985_v11  ;;  %v3372_v13 = vrot.slane %v3350_v3, %v8985_v11  ;;  %v3379_v52 = vrot.slane %v3351_v41, %v8985_v11 }
 0x550   :  { %v3301_v5 = vpop.f32.mrf.mxu0  ;;  %v3342_v16 = vpop.f32.mrf.mxu1 }
 0x551   :  { %v3380_v59 = vcombine.low %v3358_v18, %v3372_v13  ;;  %v3381_v51 = vcombine.high %v3358_v18, %v3372_v13  ;;  %v3382_v50 = vcombine.low %v3365_v8, %v3379_v52  ;;  %v3383_v30 = vcombine.high %v3365_v8, %v3379_v52 }
 0x553   :  { %v3390_v9 = vrot.slane %v3380_v59, %v8985_v11  ;;  %v3397_v15 = vrot.slane %v3382_v50, %v8985_v11  ;;  %v3404_v60 = vrot.slane %v3381_v51, %v8985_v11  ;;  %v3411_v37 = vrot.slane %v3383_v30, %v8985_v11 }
 0x555   :  { %v3412_v58 = vcombine.high %v3390_v9, %v3390_v9  ;;  %v3413_v35 = vcombine.high %v3397_v15, %v3397_v15  ;;  %v3414_v27 = vcombine.high %v3404_v60, %v3404_v60  ;;  %v3415_v7 = vcombine.high %v3411_v37, %v3411_v37 }
 0x556   :  { %v8198_v23 = vadd.f32 %v3390_v9, %v3015_v39  ;;  %v8200_v21 = vadd.f32 %v3404_v60, %v3017_v33  ;;  %v8202_v49 = vadd.f32 %v3397_v15, %v3023_v6  ;;  %v8208_v28 = vadd.f32 %v3411_v37, %v3025_v10 }
 0x557   :  { %v8204_v55 = vadd.f32 %v3412_v58, %v3019_v17  ;;  %v8206_v40 = vadd.f32 %v3414_v27, %v3021_v44  ;;  %v8210_v32 = vadd.f32 %v3413_v35, %v3027_v22  ;;  %v8214_v43 = vadd.f32 %v3415_v7, %v3029_v46 }
 0x558   :  { %v3432_v25 = vmul.f32 0.5, %v8198_v23  ;;  %v3433_v2 = vmul.f32 0.5, %v8200_v21  ;;  %v3436_v14 = vmul.f32 0.5, %v8202_v49  ;;  %v3472_v4 = vrot.slane %v8198_v23, 1 }
 0x559   :  { %v3434_v38 = vmul.f32 0.5, %v8204_v55  ;;  %v3435_v61 = vmul.f32 0.5, %v8206_v40  ;;  %v3437_v45 = vmul.f32 0.5, %v8208_v28  ;;  %v3473_v36 = vrot.slane %v8200_v21, 1 }
 0x55a   :  { %6513 = vtanh.f32 %v3432_v25  ;;  %v3438_v31 = vmul.f32 0.5, %v8210_v32  ;;  %v3474_v19 = vrot.slane %v8204_v55, 1  ;;  %v3439_v47 = vmul.f32 0.5, %v8214_v43 }
 0x55b   :  { %6515 = vtanh.f32 %v3433_v2  ;;  %v3475_v20 = vrot.slane %v8206_v40, 1  ;;  %v3476_v24 = vrot.slane %v8202_v49, 1  ;;  %v3488_v12 = vmul.f32 0.5, %v3472_v4 }
 0x55c   :  { %6517 = vtanh.f32 %v3434_v38  ;;  %v3477_v62 = vrot.slane %v8208_v28, 1  ;;  %v3489_v34 = vmul.f32 0.5, %v3473_v36  ;;  %v3478_v3 = vrot.slane %v8210_v32, 1 }
 0x55d   :  { %6519 = vtanh.f32 %v3435_v61  ;;  %v3490_v41 = vmul.f32 0.5, %v3474_v19  ;;  %v3479_v63 = vrot.slane %v8214_v43, 1  ;;  %v3491_v0 = vmul.f32 0.5, %v3475_v20 }
 0x55e   :  { %6521 = vtanh.f32 %v3436_v14  ;;  %v3492_v18 = vmul.f32 0.5, %v3476_v24  ;;  %v3493_v8 = vmul.f32 0.5, %v3477_v62  ;;  %v3494_v13 = vmul.f32 0.5, %v3478_v3 }
 0x55f   :  { %6523 = vtanh.f32 %v3437_v45  ;;  %v3495_v52 = vmul.f32 0.5, %v3479_v63  ;;  %v3520_v5 = vrot.slane %v8198_v23, 2  ;;  %v3521_v16 = vrot.slane %v8200_v21, 2 }
 0x560   :  { %6525 = vtanh.f32 %v3438_v31  ;;  %v3522_v59 = vrot.slane %v8204_v55, 2  ;;  %v3523_v50 = vrot.slane %v8206_v40, 2  ;;  %v3544_v30 = vrot.slane %v8198_v23, 3 }
 0x561   :  { %6527 = vtanh.f32 %v3439_v47  ;;  %v3545_v9 = vrot.slane %v8200_v21, 3  ;;  %v3524_v60 = vrot.slane %v8202_v49, 2  ;;  %v3546_v37 = vrot.slane %v8204_v55, 3 }
 0x562   :  { %6529 = vtanh.f32 %v3488_v12  ;;  %v3547_v39 = vrot.slane %v8206_v40, 3  ;;  %v3525_v17 = vrot.slane %v8208_v28, 2  ;;  %v3548_v6 = vrot.slane %v8202_v49, 3 }
 0x563   :  { %6531 = vtanh.f32 %v3489_v34  ;;  %v3549_v58 = vrot.slane %v8208_v28, 3  ;;  %v3526_v27 = vrot.slane %v8210_v32, 2  ;;  %v3527_v7 = vrot.slane %v8214_v43, 2 }
 0x564   :  { %6533 = vtanh.f32 %v3490_v41  ;;  %v3550_v44 = vrot.slane %v8210_v32, 3  ;;  %v3551_v23 = vrot.slane %v8214_v43, 3  ;;  %v3560_v21 = vmul.f32 0.5, %v3544_v30 }
 0x565   :  { %6535 = vtanh.f32 %v3491_v0  ;;  %v3561_v22 = vmul.f32 0.5, %v3545_v9  ;;  %v3562_v49 = vmul.f32 0.5, %v3546_v37  ;;  %v3563_v46 = vmul.f32 0.5, %v3547_v39 }
 0x566   :  { %6537 = vtanh.f32 %v3492_v18  ;;  %v3564_v2 = vmul.f32 0.5, %v3548_v6  ;;  %v3565_v38 = vmul.f32 0.5, %v3549_v58  ;;  %v3566_v32 = vmul.f32 0.5, %v3550_v44 }
 0x567   :  { %v6514_v51 = vpop.eup %6513  ;;  %6539 = vtanh.f32 %v3493_v8  ;;  %v3567_v31 = vmul.f32 0.5, %v3551_v23 }
 0x568   :  { %v6516_v15 = vpop.eup %6515  ;;  %6541 = vtanh.f32 %v3494_v13  ;;  %v3448_v40 = vadd.f32 1.0, %v6514_v51 }
 0x569   :  { %v6518_v33 = vpop.eup %6517  ;;  %6543 = vtanh.f32 %v3495_v52  ;;  %v3449_v25 = vadd.f32 1.0, %v6516_v15 }
 0x56a   :  { %v6520_v35 = vpop.eup %6519  ;;  %6545 = vtanh.f32 %v3520_v5  ;;  %v3450_v14 = vadd.f32 1.0, %v6518_v33  ;;  %v3456_v20 = vmul.f32 0.5, %v3448_v40 }
 0x56b   :  { %v6522_v10 = vpop.eup %6521  ;;  %6547 = vtanh.f32 %v3521_v16  ;;  %v3451_v4 = vadd.f32 1.0, %v6520_v35  ;;  %v3457_v34 = vmul.f32 0.5, %v3449_v25 }
 0x56c   :  { %v6524_v55 = vpop.eup %6523  ;;  %6549 = vtanh.f32 %v3522_v59  ;;  %v3452_v36 = vadd.f32 1.0, %v6522_v10  ;;  %v3458_v63 = vmul.f32 0.5, %v3450_v14 }
 0x56d   :  { %v6526_v28 = vpop.eup %6525  ;;  %6551 = vtanh.f32 %v3523_v50  ;;  %v3453_v43 = vadd.f32 1.0, %v6524_v55  ;;  %v3459_v0 = vmul.f32 0.5, %v3451_v4 }
 0x56e   :  { %v6528_v61 = vpop.eup %6527  ;;  %6553 = vtanh.f32 %v3524_v60  ;;  %v3454_v47 = vadd.f32 1.0, %v6526_v28  ;;  %v3460_v52 = vmul.f32 0.5, %v3452_v36 }
 0x56f   :  { %v6530_v45 = vpop.eup %6529  ;;  %6555 = vtanh.f32 %v3525_v17  ;;  %v3455_v62 = vadd.f32 1.0, %v6528_v61  ;;  %v3461_v5 = vmul.f32 0.5, %v3453_v43 }
 0x570   :  { %v6532_v19 = vpop.eup %6531  ;;  %v3504_v24 = vadd.f32 1.0, %v6530_v45  ;;  %6557 = vtanh.f32 %v3526_v27  ;;  %v3462_v50 = vmul.f32 0.5, %v3454_v47 }
 0x571   :  { %v6534_v12 = vpop.eup %6533  ;;  %v3505_v3 = vadd.f32 1.0, %v6532_v19  ;;  %6559 = vtanh.f32 %v3527_v7  ;;  %v3463_v60 = vmul.f32 0.5, %v3455_v62 }
 0x572   :  { %v6536_v41 = vpop.eup %6535  ;;  %v3506_v18 = vadd.f32 1.0, %v6534_v12  ;;  %v3512_v8 = vmul.f32 0.5, %v3504_v24  ;;  %6561 = vtanh.f32 %v3560_v21 }
 0x573   :  { %v6538_v13 = vpop.eup %6537  ;;  %v3507_v16 = vadd.f32 1.0, %v6536_v41  ;;  %v3513_v59 = vmul.f32 0.5, %v3505_v3  ;;  %6563 = vtanh.f32 %v3561_v22 }
 0x574   :  { %v6540_v51 = vpop.eup %6539  ;;  %v3508_v30 = vadd.f32 1.0, %v6538_v13  ;;  %v3514_v9 = vmul.f32 0.5, %v3506_v18  ;;  %6565 = vtanh.f32 %v3562_v49  ;;  %v3592_v58 = vmul.f32 %v3512_v8, %v8100_v56 }
 0x575   :  { %v6542_v15 = vpop.eup %6541  ;;  %v3509_v37 = vadd.f32 1.0, %v6540_v51  ;;  %v3515_v39 = vmul.f32 0.5, %v3507_v16  ;;  %6567 = vtanh.f32 %v3563_v46  ;;  %v3593_v44 = vmul.f32 %v3513_v59, %v8103_v1 }
 0x576   :  { %v6544_v33 = vpop.eup %6543  ;;  %v3510_v17 = vadd.f32 1.0, %v6542_v15  ;;  %v3516_v6 = vmul.f32 0.5, %v3508_v30  ;;  %6569 = vtanh.f32 %v3564_v2  ;;  %v3594_v21 = vmul.f32 %v3514_v9, %v8106_v53 }
 0x577   :  { %v6546_v35 = vpop.eup %6545  ;;  %v3511_v27 = vadd.f32 1.0, %v6544_v33  ;;  %v3517_v7 = vmul.f32 0.5, %v3509_v37  ;;  %6571 = vtanh.f32 %v3565_v38  ;;  %v3595_v28 = vmul.f32 %v3515_v39, %v8110_v42 }
 0x578   :  { %v6548_v10 = vpop.eup %6547  ;;  %v3518_v23 = vmul.f32 0.5, %v3510_v17  ;;  %v3600_v55 = vmul.f32 %v6546_v35, %v3456_v20  ;;  %6573 = vtanh.f32 %v3566_v32  ;;  %v3596_v56 = vmul.f32 %v3516_v6, %v8113_v29 }
 0x579   :  { %v6550_v40 = vpop.eup %6549  ;;  %v3519_v22 = vmul.f32 0.5, %v3511_v27  ;;  %v3601_v49 = vmul.f32 %v6548_v10, %v3457_v34  ;;  %6575 = vtanh.f32 %v3567_v31  ;;  %v3597_v2 = vmul.f32 %v3517_v7, %v8116_v48 }
 0x57a   :  { %v6552_v25 = vpop.eup %6551  ;;  %v3602_v61 = vmul.f32 %v6550_v40, %v3458_v63  ;;  %v8251_v46 = vadd.f32 %v3600_v55, %v3592_v58  ;;  %v3598_v38 = vmul.f32 %v3518_v23, %v8119_v57 }
 0x57b   :  { %v6554_v1 = vpop.eup %6553  ;;  %v3603_v14 = vmul.f32 %v6552_v25, %v3459_v0  ;;  %v8254_v53 = vadd.f32 %v3601_v49, %v3593_v44  ;;  %v3599_v29 = vmul.f32 %v3519_v22, %v8122_v54 }
 0x57c   :  { %v6556_v4 = vpop.eup %6555  ;;  %v3604_v45 = vmul.f32 %v6554_v1, %v3460_v52  ;;  %v8257_v42 = vadd.f32 %v3602_v61, %v3594_v21  ;;  %6577 = vtanh.f32 %v8251_v46 }
 0x57d   :  { %v6558_v32 = vpop.eup %6557  ;;  %v3605_v36 = vmul.f32 %v6556_v4, %v3461_v5  ;;  %v8261_v43 = vadd.f32 %v3603_v14, %v3595_v28  ;;  %6579 = vtanh.f32 %v8254_v53 }
 0x57e   :  { %v6560_v48 = vpop.eup %6559  ;;  %v3606_v31 = vmul.f32 %v6558_v32, %v3462_v50  ;;  %v8264_v19 = vadd.f32 %v3604_v45, %v3596_v56  ;;  %6581 = vtanh.f32 %v8257_v42 }
 0x57f   :  { %v3607_v57 = vmul.f32 %v6560_v48, %v3463_v60  ;;  %v8267_v47 = vadd.f32 %v3605_v36, %v3597_v2  ;;  %6583 = vtanh.f32 %v8261_v43  ;;  %v6562_v54 = vpop.eup %6561 }
 0x580   :  { %v8270_v20 = vadd.f32 %v3606_v31, %v3598_v38  ;;  %6585 = vtanh.f32 %v8264_v19  ;;  %v6564_v12 = vpop.eup %6563  ;;  %v3576_v3 = vadd.f32 1.0, %v6562_v54 }
 0x581   :  { %v8273_v24 = vadd.f32 %v3607_v57, %v3599_v29  ;;  %6587 = vtanh.f32 %v8267_v47  ;;  %v6566_v62 = vpop.eup %6565  ;;  %v3577_v63 = vadd.f32 1.0, %v6564_v12 }
 0x582   :  { %6589 = vtanh.f32 %v8270_v20  ;;  %v6568_v34 = vpop.eup %6567  ;;  %v3578_v18 = vadd.f32 1.0, %v6566_v62  ;;  %v3584_v16 = vmul.f32 0.5, %v3576_v3 }
 0x583   :  { %6591 = vtanh.f32 %v8273_v24  ;;  %v6570_v41 = vpop.eup %6569  ;;  %v3579_v13 = vadd.f32 1.0, %v6568_v34  ;;  %v3585_v51 = vmul.f32 0.5, %v3577_v63 }
 0x584   :  { %v6572_v0 = vpop.eup %6571  ;;  %v3580_v5 = vadd.f32 1.0, %v6570_v41  ;;  %v3586_v9 = vmul.f32 0.5, %v3578_v18 }
 0x585   :  { %v6574_v8 = vpop.eup %6573  ;;  %v3581_v50 = vadd.f32 1.0, %v6572_v0  ;;  %v3587_v39 = vmul.f32 0.5, %v3579_v13 }
 0x586   :  { %v6576_v52 = vpop.eup %6575  ;;  %v3582_v60 = vadd.f32 1.0, %v6574_v8  ;;  %v3588_v58 = vmul.f32 0.5, %v3580_v5 }
 0x587   :  { %v3583_v17 = vadd.f32 1.0, %v6576_v52  ;;  %v3589_v44 = vmul.f32 0.5, %v3581_v50 }
 0x588   :  { %v3590_v55 = vmul.f32 0.5, %v3582_v60  ;;  %v8329_v60 = vld [vmem:[%s8883_s2 + $0xe8] ss:$16 sps:$4 sm:$0xff]  }
 0x589   :  { %v6578_v59 = vpop.eup %6577  ;;  %v3591_v49 = vmul.f32 0.5, %v3583_v17  ;;  %v8353_v17 = vld [vmem:[%s8883_s2 + $0xcc] ss:$16 sps:$4 sm:$0xff]  }
 0x58a   :  { %v6580_v30 = vpop.eup %6579  ;;  %v3624_v15 = vmul.f32 %v6578_v59, %v3584_v16 }
 0x58b   :  { %v6582_v37 = vpop.eup %6581  ;;  %v3625_v33 = vmul.f32 %v6580_v30, %v3585_v51  ;;  %v8314_v30 = vld [vmem:[%s8883_s2 + $0xe4] ss:$16 sps:$4 sm:$0xff]  }
 0x58c   :  { %v6584_v6 = vpop.eup %6583  ;;  %3632 = vst [vmem:[%s8885_s4 + $0x4] sm:$0x1] %v3624_v15  ;;  %v3626_v35 = vmul.f32 %v6582_v37, %v3586_v9  ;;  %v3656_v27 = vpack.c.bf16 %v3624_v15, %v3624_v15  ;;  %v8319_v9 = vld [vmem:[%s8883_s2 + $0xec] ss:$16 sps:$4 sm:$0xff]   ;;  %v8324_v15 = vld [vmem:[%s8883_s2 + $0xe0] ss:$16 sps:$4 sm:$0xff]   ;;  %4514 = vmatprep.subr.bf16.mxu0 %v8314_v30 }
 0x58d   :  { %v6586_v7 = vpop.eup %6585  ;;  %3633 = vst [vmem:[%s8885_s4 + $0xc] sm:$0x1] %v3625_v33  ;;  %v3627_v10 = vmul.f32 %v6584_v6, %v3587_v39  ;;  %v3657_v23 = vpack.c.bf16 %v3625_v33, %v3625_v33  ;;  %4555 = vmatprep.subr.bf16.mxu1 %v8319_v9  ;;  %v8336_v37 = vld [vmem:[%s8883_s2 + $0xc4] ss:$16 sps:$4 sm:$0xff]   ;;  %v8343_v39 = vld [vmem:[%s8883_s2 + $0xc0] ss:$16 sps:$4 sm:$0xff]  }
 0x58e   :  { %v6588_v21 = vpop.eup %6587  ;;  %v3628_v40 = vmul.f32 %v6586_v7, %v3588_v58  ;;  %3634 = vst [vmem:[%s8885_s4 + $0x14] sm:$0x1] %v3626_v35  ;;  %v3658_v22 = vpack.c.bf16 %v3626_v35, %v3626_v35  ;;  %v3704_v4 = vunpack.c.l.b16 %v3656_v27  ;;  %v8348_v33 = vld [vmem:[%s8883_s2 + $0xc8] ss:$16 sps:$4 sm:$0xff]   ;;  %v8359_v6 = vld [vmem:[%s8883_s2 + $0xa4] ss:$16 sps:$4 sm:$0xff]  }
 0x58f   :  { %v6590_v28 = vpop.eup %6589  ;;  %v3629_v25 = vmul.f32 %v6588_v21, %v3589_v44  ;;  %3635 = vst [vmem:[%s8885_s4 + $0x1c] sm:$0x1] %v3627_v10  ;;  %v3659_v56 = vpack.c.bf16 %v3627_v10, %v3627_v10  ;;  %v3705_v61 = vunpack.c.l.b16 %v3657_v23  ;;  %v8364_v58 = vld [vmem:[%s8883_s2 + $0xac] ss:$16 sps:$4 sm:$0xff]   ;;  %v8372_v35 = vld [vmem:[%s8883_s2 + $0xa0] ss:$16 sps:$4 sm:$0xff]  }
 0x590   :  { %v6592_v1 = vpop.eup %6591  ;;  %v3630_v2 = vmul.f32 %v6590_v28, %v3590_v55  ;;  %3636 = vst [vmem:[%s8885_s4 + $0x24] sm:$0x1] %v3628_v40  ;;  %v3660_v14 = vpack.c.bf16 %v3628_v40, %v3628_v40  ;;  %v3706_v38 = vunpack.c.l.b16 %v3658_v22  ;;  %v8377_v27 = vld [vmem:[%s8883_s2 + $0xa8] ss:$16 sps:$4 sm:$0xff]   ;;  %v8384_v7 = vld [vmem:[%s8883_s2 + $0x84] ss:$16 sps:$4 sm:$0xff]  }
 0x591   :  { %v3631_v45 = vmul.f32 %v6592_v1, %v3591_v49  ;;  %3637 = vst [vmem:[%s8885_s4 + $0x2c] sm:$0x1] %v3629_v25  ;;  %v3661_v32 = vpack.c.bf16 %v3629_v25, %v3629_v25  ;;  %v3707_v29 = vunpack.c.l.b16 %v3659_v56  ;;  %v3712_v36 = vrot.slane %v3705_v61, 7  ;;  %v8389_v44 = vld [vmem:[%s8883_s2 + $0x8c] ss:$16 sps:$4 sm:$0xff]  }
 0x592   :  { %3638 = vst [vmem:[%s8885_s4 + $0x34] sm:$0x1] %v3630_v2  ;;  %v3662_v48 = vpack.c.bf16 %v3630_v2, %v3630_v2  ;;  %v3708_v31 = vunpack.c.l.b16 %v3660_v14  ;;  %v3714_v57 = vrot.slane %v3706_v38, 6  ;;  %v8396_v10 = vld [vmem:[%s8883_s2 + $0x80] ss:$16 sps:$4 sm:$0xff]  }
 0x593   :  { %3639 = vst [vmem:[%s8885_s4 + $0x3c] sm:$0x1] %v3631_v45  ;;  %v3663_v54 = vpack.c.bf16 %v3631_v45, %v3631_v45  ;;  %v3709_v12 = vunpack.c.l.b16 %v3661_v32  ;;  %v3713_v62 = vsel %vm1202_vm0, %v3712_v36, %v3704_v4  ;;  %v3716_v34 = vrot.slane %v3707_v29, 5  ;;  %v8401_v23 = vld [vmem:[%s8883_s2 + $0x88] ss:$16 sps:$4 sm:$0xff]  }
 0x594   :  { %v3710_v3 = vunpack.c.l.b16 %v3662_v48  ;;  %v3715_v41 = vsel %vm1205_vm1, %v3714_v57, %v3713_v62  ;;  %v3718_v63 = vrot.slane %v3708_v31, 4  ;;  %v8408_v21 = vld [vmem:[%s8883_s2 + $0x64] ss:$16 sps:$4 sm:$0xff]   ;;  %v8413_v55 = vld [vmem:[%s8883_s2 + $0x6c] ss:$16 sps:$4 sm:$0xff]  }
 0x595   :  { %v3711_v0 = vunpack.c.l.b16 %v3663_v54  ;;  %v3717_v18 = vsel %vm1208_vm2, %v3716_v34, %v3715_v41  ;;  %v3720_v8 = vrot.slane %v3709_v12, 3  ;;  %v8420_v40 = vld [vmem:[%s8883_s2 + $0x60] ss:$16 sps:$4 sm:$0xff]   ;;  %v8425_v22 = vld [vmem:[%s8883_s2 + $0x68] ss:$16 sps:$4 sm:$0xff]  }
 0x596   :  { %v3719_v13 = vsel %vm1211_vm3, %v3718_v63, %v3717_v18  ;;  %v3722_v52 = vrot.slane %v3710_v3, 2  ;;  %8986 = vst [vmem:[#allocation6_spill] sm:$0xff] %v8425_v22  ;;  %v8432_v28 = vld [vmem:[%s8883_s2 + $0x44] ss:$16 sps:$4 sm:$0xff]   ;;  %v8437_v49 = vld [vmem:[%s8883_s2 + $0x4c] ss:$16 sps:$4 sm:$0xff]  }
 0x597   :  { %v3721_v5 = vsel %vm1214_vm4, %v3720_v8, %v3719_v13  ;;  %v3724_v16 = vrot.slane %v3711_v0, 1  ;;  %8987 = vst [vmem:[#allocation7_spill] sm:$0xff] %v8432_v28  ;;  %8988 = vst [vmem:[#allocation8_spill] sm:$0xff] %v8437_v49  ;;  %v8444_v25 = vld [vmem:[%s8883_s2 + $0x40] ss:$16 sps:$4 sm:$0xff]  }
 0x598   :  { %v3723_v59 = vsel %vm1217_vm5, %v3722_v52, %v3721_v5  ;;  %8989 = vst [vmem:[#allocation9_spill] sm:$0xff] %v8444_v25  ;;  %v8449_v56 = vld [vmem:[%s8883_s2 + $0x48] ss:$16 sps:$4 sm:$0xff]   ;;  %v8456_v61 = vld [vmem:[%s8883_s2 + $0x24] ss:$16 sps:$4 sm:$0xff]  }
 0x599   :  { %v3725_v51 = vsel %vm1220_vm6, %v3724_v16, %v3723_v59  ;;  %8990 = vst [vmem:[#allocation10_spill] sm:$0xff] %v8449_v56  ;;  %8991 = vst [vmem:[#allocation11_spill] sm:$0xff] %v8456_v61  ;;  %v8461_v1 = vld [vmem:[%s8883_s2 + $0x2c] ss:$16 sps:$4 sm:$0xff]   ;;  %v8468_v2 = vld [vmem:[%s8883_s2 + $0x20] ss:$16 sps:$4 sm:$0xff]  }
 0x59a   :  { %v3726_v50 = vpack.c.b16 %v3725_v51, %v3725_v51  ;;  %8992 = vst [vmem:[#allocation12_spill] sm:$0xff] %v8461_v1  ;;  %8993 = vst [vmem:[#allocation13_spill] sm:$0xff] %v8468_v2  ;;  %v8473_v14 = vld [vmem:[%s8883_s2 + $0x28] ss:$16 sps:$4 sm:$0xff]   ;;  %v8480_v4 = vld [vmem:[%s8883_s2 + $0x4] ss:$16 sps:$4 sm:$0xff]  }
 0x59b   :  { %8994 = vst [vmem:[#allocation14_spill] sm:$0xff] %v8473_v14  ;;  %8995 = vst [vmem:[#allocation15_spill] sm:$0xff] %v8480_v4  ;;  %v8485_v38 = vld [vmem:[%s8883_s2 + $0xc] ss:$16 sps:$4 sm:$0xff]   ;;  %v8492_v45 = vld [vmem:[%s8883_s2] ss:$16 sps:$4 sm:$0xff]  }
 0x59c   :  { %3921 = vmatmul.mubr.bf16.vlgmr.msra.gmra.mxu0 %v3726_v50  ;;  %3962 = vmatmul.mubr.bf16.vlgmr.msra.gmra.mxu1 %v3726_v50  ;;  %8996 = vst [vmem:[#allocation16_spill] sm:$0xff] %v8485_v38  ;;  %8997 = vst [vmem:[#allocation17_spill] sm:$0xff] %v8492_v45  ;;  %v8497_v32 = vld [vmem:[%s8883_s2 + $0x8] ss:$16 sps:$4 sm:$0xff]  }
 0x59d   :  { %4546 = vmatprep.mubr.bf16.mxu0 %v8945_v26  ;;  %4587 = vmatprep.mubr.bf16.mxu1 %v8945_v26  ;;  %8998 = vst [vmem:[#allocation18_spill] sm:$0xff] %v8497_v32 }
 0x59e   :  { %4515 = vmatpush1.bf16.msra.mxu0 %v8324_v15  ;;  %4556 = vmatpush1.bf16.msra.mxu1 %v8329_v60 }
 0x59f   :  { %4516 = vmatprep.subr.bf16.mxu0 %v8336_v37  ;;  %4557 = vmatprep.subr.bf16.mxu1 %v8353_v17 }
 0x5a2   :  { %4517 = vmatpush1.bf16.msra.mxu0 %v8343_v39  ;;  %4558 = vmatpush1.bf16.msra.mxu1 %v8348_v33 }
 0x5a3   :  { %4518 = vmatprep.subr.bf16.mxu0 %v8359_v6  ;;  %4559 = vmatprep.subr.bf16.mxu1 %v8364_v58 }
 0x5a6   :  { %4519 = vmatpush1.bf16.msra.mxu0 %v8372_v35  ;;  %4560 = vmatpush1.bf16.msra.mxu1 %v8377_v27 }
 0x5a7   :  { %4520 = vmatprep.subr.bf16.mxu0 %v8384_v7  ;;  %4561 = vmatprep.subr.bf16.mxu1 %v8389_v44 }
 0x5aa   :  { %4521 = vmatpush1.bf16.msra.mxu0 %v8396_v10  ;;  %4562 = vmatpush1.bf16.msra.mxu1 %v8401_v23 }
 0x5ab   :  { %4522 = vmatprep.subr.bf16.mxu0 %v8408_v21  ;;  %4563 = vmatprep.subr.bf16.mxu1 %v8413_v55 }
 0x5ae   :  { %4523 = vmatpush1.bf16.msra.mxu0 %v8420_v40  ;;  %4564 = vmatpush1.bf16.msra.mxu1 %v8425_v22 }
 0x5af   :  { %4524 = vmatprep.subr.bf16.mxu0 %v8432_v28  ;;  %4565 = vmatprep.subr.bf16.mxu1 %v8437_v49 }
 0x5b2   :  { %4525 = vmatpush1.bf16.msra.mxu0 %v8444_v25  ;;  %4566 = vmatpush1.bf16.msra.mxu1 %v8449_v56 }
 0x5b3   :  { %4526 = vmatprep.subr.bf16.mxu0 %v8456_v61  ;;  %4567 = vmatprep.subr.bf16.mxu1 %v8461_v1 }
 0x5b6   :  { %4527 = vmatpush1.bf16.msra.mxu0 %v8468_v2  ;;  %4568 = vmatpush1.bf16.msra.mxu1 %v8473_v14 }
 0x5b7   :  { %4528 = vmatprep.subr.bf16.mxu0 %v8480_v4  ;;  %4569 = vmatprep.subr.bf16.mxu1 %v8485_v38 }
 0x5ba   :  { %4529 = vmatpush1.bf16.msra.mxu0 %v8492_v45  ;;  %4570 = vmatpush1.bf16.msra.mxu1 %v8497_v32 }
 0x5bb   :  { %5140 = vmatprep.subr.bf16.mxu0 %v8314_v30  ;;  %5181 = vmatprep.subr.bf16.mxu1 %v8319_v9 }
 0x65c   :  { %v3922_v29 = vpop.f32.mrf.mxu0  ;;  %v3963_v36 = vpop.f32.mrf.mxu1 }
 0x65e   :  { %v3924_v48 = vpop.f32.mrf.mxu0  ;;  %v3965_v31 = vpop.f32.mrf.mxu1 }
 0x65f   :  { %v3974_v57 = vcombine.low %v3922_v29, %v3924_v48  ;;  %v3975_v54 = vcombine.high %v3922_v29, %v3924_v48  ;;  %v3976_v12 = vcombine.low %v3963_v36, %v3965_v31  ;;  %v3977_v62 = vcombine.high %v3963_v36, %v3965_v31  ;;  %v3641_v29 = vld [vmem:[#allocation2 + $0x5] ss:$8 sm:$0xf] }
 0x660   :  { %v3926_v34 = vpop.f32.mrf.mxu0  ;;  %v3967_v3 = vpop.f32.mrf.mxu1  ;;  %v3643_v36 = vld [vmem:[#allocation2 + $0x25] ss:$8 sm:$0xf] }
 0x661   :  { %v3984_v41 = vrot.slane %v3974_v57, %v8985_v11  ;;  %v3991_v63 = vrot.slane %v3975_v54, %v8985_v11  ;;  %v3998_v0 = vrot.slane %v3976_v12, %v8985_v11  ;;  %v4005_v18 = vrot.slane %v3977_v62, %v8985_v11  ;;  %v3645_v48 = vld [vmem:[#allocation2 + $0x45] ss:$8 sm:$0xf] }
 0x662   :  { %v3927_v8 = vpop.f32.mrf.mxu0  ;;  %v3968_v13 = vpop.f32.mrf.mxu1  ;;  %v3649_v31 = vld [vmem:[#allocation2 + $0x85] ss:$8 sm:$0xf] }
 0x663   :  { %v4006_v52 = vcombine.low %v3984_v41, %v3998_v0  ;;  %v4007_v5 = vcombine.high %v3984_v41, %v3998_v0  ;;  %v4008_v16 = vcombine.low %v3991_v63, %v4005_v18  ;;  %v4009_v59 = vcombine.high %v3991_v63, %v4005_v18  ;;  %v3647_v34 = vld [vmem:[#allocation2 + $0x65] ss:$8 sm:$0xf] }
 0x664   :  { %v3651_v3 = vld [vmem:[#allocation2 + $0xa5] ss:$8 sm:$0xf] }
 0x665   :  { %v4016_v51 = vrot.slane %v4006_v52, %v8985_v11  ;;  %v4023_v50 = vrot.slane %v4008_v16, %v8985_v11  ;;  %v4030_v30 = vrot.slane %v4007_v5, %v8985_v11  ;;  %v4037_v9 = vrot.slane %v4009_v59, %v8985_v11  ;;  %v3653_v18 = vld [vmem:[#allocation2 + $0xc5] ss:$8 sm:$0xf] }
 0x666   :  { %v3655_v5 = vld [vmem:[#allocation2 + $0xe5] ss:$8 sm:$0xf] }
 0x667   :  { %v4038_v57 = vcombine.high %v4016_v51, %v4016_v51  ;;  %v4039_v54 = vcombine.high %v4023_v50, %v4023_v50  ;;  %v4040_v12 = vcombine.high %v4030_v30, %v4030_v30  ;;  %v4041_v62 = vcombine.high %v4037_v9, %v4037_v9 }
 0x668   :  { %v8513_v41 = vadd.f32 %v4016_v51, %v3641_v29  ;;  %v8515_v63 = vadd.f32 %v4030_v30, %v3643_v36  ;;  %v8517_v0 = vadd.f32 %v4023_v50, %v3649_v31  ;;  %v8523_v52 = vadd.f32 %v4037_v9, %v3651_v3 }
 0x669   :  { %v8519_v8 = vadd.f32 %v4038_v57, %v3645_v48  ;;  %v8521_v13 = vadd.f32 %v4040_v12, %v3647_v34  ;;  %v8525_v16 = vadd.f32 %v4039_v54, %v3653_v18  ;;  %v8529_v51 = vadd.f32 %v4041_v62, %v3655_v5 }
 0x66a   :  { %v4058_v59 = vmul.f32 0.5, %v8513_v41  ;;  %v4059_v11 = vmul.f32 0.5, %v8515_v63  ;;  %v4062_v29 = vmul.f32 0.5, %v8517_v0  ;;  %v4098_v36 = vrot.slane %v8513_v41, 1 }
 0x66b   :  { %v4060_v30 = vmul.f32 0.5, %v8519_v8  ;;  %v4061_v50 = vmul.f32 0.5, %v8521_v13  ;;  %v4063_v9 = vmul.f32 0.5, %v8523_v52  ;;  %v4099_v48 = vrot.slane %v8515_v63, 1 }
 0x66c   :  { %6593 = vtanh.f32 %v4058_v59  ;;  %v4064_v31 = vmul.f32 0.5, %v8525_v16  ;;  %v4100_v57 = vrot.slane %v8519_v8, 1  ;;  %v4065_v54 = vmul.f32 0.5, %v8529_v51 }
 0x66d   :  { %6595 = vtanh.f32 %v4059_v11  ;;  %v4101_v12 = vrot.slane %v8521_v13, 1  ;;  %v4102_v62 = vrot.slane %v8517_v0, 1  ;;  %v4114_v34 = vmul.f32 0.5, %v4098_v36 }
 0x66e   :  { %6597 = vtanh.f32 %v4060_v30  ;;  %v4103_v3 = vrot.slane %v8523_v52, 1  ;;  %v4115_v11 = vmul.f32 0.5, %v4099_v48  ;;  %v4104_v18 = vrot.slane %v8525_v16, 1 }
 0x66f   :  { %6599 = vtanh.f32 %v4061_v50  ;;  %v4116_v5 = vmul.f32 0.5, %v4100_v57  ;;  %v4105_v59 = vrot.slane %v8529_v51, 1  ;;  %v4117_v30 = vmul.f32 0.5, %v4101_v12 }
 0x670   :  { %6601 = vtanh.f32 %v4062_v29  ;;  %v4118_v32 = vmul.f32 0.5, %v4102_v62  ;;  %v4119_v50 = vmul.f32 0.5, %v4103_v3  ;;  %v4120_v29 = vmul.f32 0.5, %v4104_v18 }
 0x671   :  { %6603 = vtanh.f32 %v4063_v9  ;;  %v4121_v45 = vmul.f32 0.5, %v4105_v59  ;;  %v4146_v36 = vrot.slane %v8513_v41, 2  ;;  %v4147_v9 = vrot.slane %v8515_v63, 2 }
 0x672   :  { %6605 = vtanh.f32 %v4064_v31  ;;  %v4148_v48 = vrot.slane %v8519_v8, 2  ;;  %v4149_v57 = vrot.slane %v8521_v13, 2  ;;  %v4171_v12 = vrot.slane %v8515_v63, 3 }
 0x673   :  { %6607 = vtanh.f32 %v4065_v54  ;;  %v4170_v54 = vrot.slane %v8513_v41, 3  ;;  %v4173_v3 = vrot.slane %v8521_v13, 3  ;;  %v4151_v18 = vrot.slane %v8523_v52, 2 }
 0x674   :  { %6609 = vtanh.f32 %v4114_v34  ;;  %v4150_v34 = vrot.slane %v8517_v0, 2  ;;  %v4175_v59 = vrot.slane %v8523_v52, 3  ;;  %v4152_v41 = vrot.slane %v8525_v16, 2 }
 0x675   :  { %6611 = vtanh.f32 %v4115_v11  ;;  %v4153_v63 = vrot.slane %v8529_v51, 2  ;;  %v4186_v13 = vmul.f32 0.5, %v4170_v54  ;;  %v4189_v14 = vmul.f32 0.5, %v4173_v3 }
 0x676   :  { %6613 = vtanh.f32 %v4116_v5  ;;  %v4174_v5 = vrot.slane %v8517_v0, 3  ;;  %v4191_v61 = vmul.f32 0.5, %v4175_v59 }
 0x677   :  { %6615 = vtanh.f32 %v4117_v30 }
 0x678   :  { %6617 = vtanh.f32 %v4118_v32  ;;  %v4172_v32 = vrot.slane %v8519_v8, 3  ;;  %v4177_v8 = vrot.slane %v8529_v51, 3  ;;  %v4190_v1 = vmul.f32 0.5, %v4174_v5 }
 0x679   :  { %v6594_v31 = vpop.eup %6593  ;;  %6619 = vtanh.f32 %v4119_v50  ;;  %v4176_v50 = vrot.slane %v8525_v16, 3 }
 0x67a   :  { %v6596_v62 = vpop.eup %6595  ;;  %6621 = vtanh.f32 %v4120_v29  ;;  %v4074_v4 = vadd.f32 1.0, %v6594_v31  ;;  %v4188_v0 = vmul.f32 0.5, %v4172_v32  ;;  %v4193_v54 = vmul.f32 0.5, %v4177_v8 }
 0x67b   :  { %v6598_v11 = vpop.eup %6597  ;;  %6623 = vtanh.f32 %v4121_v45  ;;  %v4187_v45 = vmul.f32 0.5, %v4171_v12  ;;  %v4075_v2 = vadd.f32 1.0, %v6596_v62  ;;  %v4192_v16 = vmul.f32 0.5, %v4176_v50 }
 0x67c   :  { %v6600_v30 = vpop.eup %6599  ;;  %6625 = vtanh.f32 %v4146_v36  ;;  %v4076_v36 = vadd.f32 1.0, %v6598_v11 }
 0x67d   :  { %v6602_v29 = vpop.eup %6601  ;;  %6627 = vtanh.f32 %v4147_v9  ;;  %v4077_v25 = vadd.f32 1.0, %v6600_v30 }
 0x67e   :  { %v6604_v38 = vpop.eup %6603  ;;  %6629 = vtanh.f32 %v4148_v48  ;;  %v4078_v49 = vadd.f32 1.0, %v6602_v29  ;;  %v4082_v48 = vmul.f32 0.5, %v4074_v4  ;;  %v4084_v11 = vmul.f32 0.5, %v4076_v36 }
 0x67f   :  { %v6606_v52 = vpop.eup %6605  ;;  %6631 = vtanh.f32 %v4149_v57  ;;  %v4079_v51 = vadd.f32 1.0, %v6604_v38  ;;  %v4083_v57 = vmul.f32 0.5, %v4075_v2  ;;  %v4085_v30 = vmul.f32 0.5, %v4077_v25 }
 0x680   :  { %v6608_v56 = vpop.eup %6607  ;;  %6633 = vtanh.f32 %v4150_v34  ;;  %v4080_v31 = vadd.f32 1.0, %v6606_v52  ;;  %v4086_v29 = vmul.f32 0.5, %v4078_v49 }
 0x681   :  { %v6610_v9 = vpop.eup %6609  ;;  %6635 = vtanh.f32 %v4151_v18  ;;  %v4081_v62 = vadd.f32 1.0, %v6608_v56  ;;  %v4087_v38 = vmul.f32 0.5, %v4079_v51 }
 0x682   :  { %v6612_v12 = vpop.eup %6611  ;;  %v4130_v32 = vadd.f32 1.0, %v6610_v9  ;;  %6637 = vtanh.f32 %v4152_v41  ;;  %v4088_v52 = vmul.f32 0.5, %v4080_v31 }
 0x683   :  { %v6614_v3 = vpop.eup %6613  ;;  %v4131_v5 = vadd.f32 1.0, %v6612_v12  ;;  %6639 = vtanh.f32 %v4153_v63  ;;  %v4089_v56 = vmul.f32 0.5, %v4081_v62 }
 0x684   :  { %v6616_v59 = vpop.eup %6615  ;;  %v4132_v34 = vadd.f32 1.0, %v6614_v3  ;;  %v4138_v50 = vmul.f32 0.5, %v4130_v32  ;;  %6641 = vtanh.f32 %v4186_v13 }
 0x685   :  { %v6618_v28 = vpop.eup %6617  ;;  %v4133_v18 = vadd.f32 1.0, %v6616_v59  ;;  %v4139_v8 = vmul.f32 0.5, %v4131_v5  ;;  %6643 = vtanh.f32 %v4187_v45 }
 0x686   :  { %v6620_v22 = vpop.eup %6619  ;;  %v4134_v4 = vadd.f32 1.0, %v6618_v28  ;;  %v4140_v9 = vmul.f32 0.5, %v4132_v34  ;;  %6645 = vtanh.f32 %v4188_v0  ;;  %v4218_v32 = vmul.f32 %v4138_v50, %v8251_v46 }
 0x687   :  { %v6622_v41 = vpop.eup %6621  ;;  %v4135_v2 = vadd.f32 1.0, %v6620_v22  ;;  %v4141_v12 = vmul.f32 0.5, %v4133_v18  ;;  %6647 = vtanh.f32 %v4189_v14  ;;  %v4219_v31 = vmul.f32 %v4139_v8, %v8254_v53 }
 0x688   :  { %v6624_v63 = vpop.eup %6623  ;;  %v4136_v36 = vadd.f32 1.0, %v6622_v41  ;;  %v4142_v25 = vmul.f32 0.5, %v4134_v4  ;;  %6649 = vtanh.f32 %v4190_v1  ;;  %v4220_v13 = vmul.f32 %v4140_v9, %v8257_v42 }
 0x689   :  { %v6626_v49 = vpop.eup %6625  ;;  %v4137_v51 = vadd.f32 1.0, %v6624_v63  ;;  %v4143_v3 = vmul.f32 0.5, %v4135_v2  ;;  %6651 = vtanh.f32 %v4191_v61  ;;  %v4221_v59 = vmul.f32 %v4141_v12, %v8261_v43 }
 0x68a   :  { %v6628_v28 = vpop.eup %6627  ;;  %v4144_v5 = vmul.f32 0.5, %v4136_v36  ;;  %v4226_v22 = vmul.f32 %v6626_v49, %v4082_v48  ;;  %6653 = vtanh.f32 %v4192_v16  ;;  %v4222_v46 = vmul.f32 %v4142_v25, %v8264_v19 }
 0x68b   :  { %v6630_v62 = vpop.eup %6629  ;;  %v4145_v45 = vmul.f32 0.5, %v4137_v51  ;;  %v4227_v0 = vmul.f32 %v6628_v28, %v4083_v57  ;;  %6655 = vtanh.f32 %v4193_v54  ;;  %v4223_v1 = vmul.f32 %v4143_v3, %v8267_v47 }
 0x68c   :  { %v6632_v34 = vpop.eup %6631  ;;  %v4228_v50 = vmul.f32 %v6630_v62, %v4084_v11  ;;  %v8566_v14 = vadd.f32 %v4226_v22, %v4218_v32  ;;  %v4224_v61 = vmul.f32 %v4144_v5, %v8270_v20 }
 0x68d   :  { %v6634_v53 = vpop.eup %6633  ;;  %v4229_v18 = vmul.f32 %v6632_v34, %v4085_v30  ;;  %v8569_v42 = vadd.f32 %v4227_v0, %v4219_v31  ;;  %v4225_v19 = vmul.f32 %v4145_v45, %v8273_v24 }
 0x68e   :  { %v6636_v48 = vpop.eup %6635  ;;  %v4230_v8 = vmul.f32 %v6634_v53, %v4086_v29  ;;  %v8572_v43 = vadd.f32 %v4228_v50, %v4220_v13  ;;  %6657 = vtanh.f32 %v8566_v14 }
 0x68f   :  { %v6638_v16 = vpop.eup %6637  ;;  %v4231_v57 = vmul.f32 %v6636_v48, %v4087_v38  ;;  %v8576_v11 = vadd.f32 %v4229_v18, %v4221_v59  ;;  %6659 = vtanh.f32 %v8569_v42 }
 0x690   :  { %v6640_v47 = vpop.eup %6639  ;;  %v4232_v54 = vmul.f32 %v6638_v16, %v4088_v52  ;;  %v8579_v30 = vadd.f32 %v4230_v8, %v4222_v46  ;;  %6661 = vtanh.f32 %v8572_v43 }
 0x691   :  { %v4233_v20 = vmul.f32 %v6640_v47, %v4089_v56  ;;  %v8582_v29 = vadd.f32 %v4231_v57, %v4223_v1  ;;  %6663 = vtanh.f32 %v8576_v11  ;;  %v6642_v24 = vpop.eup %6641 }
 0x692   :  { %v8585_v4 = vadd.f32 %v4232_v54, %v4224_v61  ;;  %6665 = vtanh.f32 %v8579_v30  ;;  %v6644_v9 = vpop.eup %6643  ;;  %v4202_v56 = vadd.f32 1.0, %v6642_v24 }
 0x693   :  { %v8588_v38 = vadd.f32 %v4233_v20, %v4225_v19  ;;  %6667 = vtanh.f32 %v8582_v29  ;;  %v6646_v52 = vpop.eup %6645  ;;  %v4203_v12 = vadd.f32 1.0, %v6644_v9 }
 0x694   :  { %6669 = vtanh.f32 %v8585_v4  ;;  %v6648_v41 = vpop.eup %6647  ;;  %v4204_v36 = vadd.f32 1.0, %v6646_v52  ;;  %v4210_v3 = vmul.f32 0.5, %v4202_v56 }
 0x695   :  { %6671 = vtanh.f32 %v8588_v38  ;;  %v6650_v2 = vpop.eup %6649  ;;  %v4205_v32 = vadd.f32 1.0, %v6648_v41  ;;  %v4211_v28 = vmul.f32 0.5, %v4203_v12 }
 0x696   :  { %v6652_v63 = vpop.eup %6651  ;;  %v4206_v51 = vadd.f32 1.0, %v6650_v2  ;;  %v4212_v22 = vmul.f32 0.5, %v4204_v36 }
 0x697   :  { %v6654_v25 = vpop.eup %6653  ;;  %v4207_v5 = vadd.f32 1.0, %v6652_v63  ;;  %v4213_v0 = vmul.f32 0.5, %v4205_v32 }
 0x698   :  { %v6656_v49 = vpop.eup %6655  ;;  %v4208_v45 = vadd.f32 1.0, %v6654_v25  ;;  %v4214_v53 = vmul.f32 0.5, %v4206_v51 }
 0x699   :  { %v4209_v46 = vadd.f32 1.0, %v6656_v49  ;;  %v4215_v61 = vmul.f32 0.5, %v4207_v5 }
 0x69a   :  { %v4216_v57 = vmul.f32 0.5, %v4208_v45 }
 0x69b   :  { %v6658_v31 = vpop.eup %6657  ;;  %v4217_v24 = vmul.f32 0.5, %v4209_v46 }
 0x69c   :  { %v6660_v13 = vpop.eup %6659  ;;  %v4250_v62 = vmul.f32 %v6658_v31, %v4210_v3 }
 0x69d   :  { %v6662_v59 = vpop.eup %6661  ;;  %v4251_v34 = vmul.f32 %v6660_v13, %v4211_v28 }
 0x69e   :  { %v6664_v50 = vpop.eup %6663  ;;  %4258 = vst [vmem:[%s8885_s4 + $0x5] sm:$0x1] %v4250_v62  ;;  %v4252_v1 = vmul.f32 %v6662_v59, %v4212_v22  ;;  %v4282_v18 = vpack.c.bf16 %v4250_v62, %v4250_v62 }
 0x69f   :  { %v6666_v48 = vpop.eup %6665  ;;  %4259 = vst [vmem:[%s8885_s4 + $0xd] sm:$0x1] %v4251_v34  ;;  %v4253_v8 = vmul.f32 %v6664_v50, %v4213_v0  ;;  %v4283_v16 = vpack.c.bf16 %v4251_v34, %v4251_v34 }
 0x6a0   :  { %v6668_v19 = vpop.eup %6667  ;;  %v4254_v47 = vmul.f32 %v6666_v48, %v4214_v53  ;;  %4260 = vst [vmem:[%s8885_s4 + $0x15] sm:$0x1] %v4252_v1  ;;  %v4284_v54 = vpack.c.bf16 %v4252_v1, %v4252_v1  ;;  %v4330_v63 = vunpack.c.l.b16 %v4282_v18 }
 0x6a1   :  { %v6670_v20 = vpop.eup %6669  ;;  %v4255_v9 = vmul.f32 %v6668_v19, %v4215_v61  ;;  %4261 = vst [vmem:[%s8885_s4 + $0x1d] sm:$0x1] %v4253_v8  ;;  %v4285_v52 = vpack.c.bf16 %v4253_v8, %v4253_v8  ;;  %v4331_v41 = vunpack.c.l.b16 %v4283_v16 }
 0x6a2   :  { %v6672_v56 = vpop.eup %6671  ;;  %v4256_v2 = vmul.f32 %v6670_v20, %v4216_v57  ;;  %4262 = vst [vmem:[%s8885_s4 + $0x25] sm:$0x1] %v4254_v47  ;;  %v4286_v12 = vpack.c.bf16 %v4254_v47, %v4254_v47  ;;  %v4332_v36 = vunpack.c.l.b16 %v4284_v54 }
 0x6a3   :  { %v4257_v25 = vmul.f32 %v6672_v56, %v4217_v24  ;;  %4263 = vst [vmem:[%s8885_s4 + $0x2d] sm:$0x1] %v4255_v9  ;;  %v4287_v32 = vpack.c.bf16 %v4255_v9, %v4255_v9  ;;  %v4333_v49 = vunpack.c.l.b16 %v4285_v52  ;;  %v4338_v51 = vrot.slane %v4331_v41, 7  ;;  %v9012_v24 = vld [vmem:[#allocation5_spill] sm:$0xff] }
 0x6a4   :  { %4264 = vst [vmem:[%s8885_s4 + $0x35] sm:$0x1] %v4256_v2  ;;  %v4288_v3 = vpack.c.bf16 %v4256_v2, %v4256_v2  ;;  %v4334_v31 = vunpack.c.l.b16 %v4286_v12  ;;  %v4340_v28 = vrot.slane %v4332_v36, 6 }
 0x6a5   :  { %4265 = vst [vmem:[%s8885_s4 + $0x3d] sm:$0x1] %v4257_v25  ;;  %v4289_v5 = vpack.c.bf16 %v4257_v25, %v4257_v25  ;;  %v4335_v13 = vunpack.c.l.b16 %v4287_v32  ;;  %v4339_v22 = vsel %vm1202_vm0, %v4338_v51, %v4330_v63  ;;  %v4342_v62 = vrot.slane %v4333_v49, 5 }
 0x6a6   :  { %v4336_v45 = vunpack.c.l.b16 %v4288_v3  ;;  %v4341_v59 = vsel %vm1205_vm1, %v4340_v28, %v4339_v22  ;;  %v4344_v0 = vrot.slane %v4334_v31, 4  ;;  %v4267_v28 = vld [vmem:[#allocation2 + $0x6] ss:$8 sm:$0xf] }
 0x6a7   :  { %v4337_v34 = vunpack.c.l.b16 %v4289_v5  ;;  %v4343_v46 = vsel %vm1208_vm2, %v4342_v62, %v4341_v59  ;;  %v4346_v50 = vrot.slane %v4335_v13, 3  ;;  %v4269_v5 = vld [vmem:[#allocation2 + $0x26] ss:$8 sm:$0xf] }
 0x6a8   :  { %v4345_v53 = vsel %vm1211_vm3, %v4344_v0, %v4343_v46  ;;  %v4348_v1 = vrot.slane %v4336_v45, 2  ;;  %v4271_v13 = vld [vmem:[#allocation2 + $0x46] ss:$8 sm:$0xf] }
 0x6a9   :  { %v4347_v18 = vsel %vm1214_vm4, %v4346_v50, %v4345_v53  ;;  %v4350_v48 = vrot.slane %v4337_v34, 1  ;;  %v4275_v22 = vld [vmem:[#allocation2 + $0x86] ss:$8 sm:$0xf] }
 0x6aa   :  { %v4349_v61 = vsel %vm1217_vm5, %v4348_v1, %v4347_v18  ;;  %v4273_v34 = vld [vmem:[#allocation2 + $0x66] ss:$8 sm:$0xf] }
 0x6ab   :  { %v4351_v8 = vsel %vm1220_vm6, %v4350_v48, %v4349_v61  ;;  %v4277_v46 = vld [vmem:[#allocation2 + $0xa6] ss:$8 sm:$0xf] }
 0x6ac   :  { %v4352_v16 = vpack.c.b16 %v4351_v8, %v4351_v8  ;;  %v4279_v18 = vld [vmem:[#allocation2 + $0xc6] ss:$8 sm:$0xf] }
 0x6ae   :  { %4547 = vmatmul.mubr.bf16.vlgmr.msra.gmra.mxu0 %v4352_v16  ;;  %4588 = vmatmul.mubr.bf16.vlgmr.msra.gmra.mxu1 %v4352_v16  ;;  %v4281_v16 = vld [vmem:[#allocation2 + $0xe6] ss:$8 sm:$0xf] }
 0x6af   :  { %5141 = vmatpush1.bf16.msra.mxu0 %v8324_v15  ;;  %5182 = vmatpush1.bf16.msra.mxu1 %v8329_v60  ;;  %v9000_v15 = vld [vmem:[#allocation7_spill] sm:$0xff]  ;;  %v9001_v60 = vld [vmem:[#allocation8_spill] sm:$0xff] }
 0x6b0   :  { %5142 = vmatprep.subr.bf16.mxu0 %v8336_v37  ;;  %5183 = vmatprep.subr.bf16.mxu1 %v8353_v17  ;;  %v9002_v37 = vld [vmem:[#allocation9_spill] sm:$0xff]  ;;  %v9005_v17 = vld [vmem:[#allocation12_spill] sm:$0xff] }
 0x6b1   :  { %5172 = vmatprep.mubr.bf16.mxu0 %v8945_v26  ;;  %5213 = vmatprep.mubr.bf16.mxu1 %v8945_v26  ;;  %v8999_v26 = vld [vmem:[#allocation6_spill] sm:$0xff] }
 0x6b3   :  { %5143 = vmatpush1.bf16.msra.mxu0 %v8343_v39  ;;  %5184 = vmatpush1.bf16.msra.mxu1 %v8348_v33  ;;  %v9003_v39 = vld [vmem:[#allocation10_spill] sm:$0xff]  ;;  %v9004_v33 = vld [vmem:[#allocation11_spill] sm:$0xff] }
 0x6b4   :  { %5144 = vmatprep.subr.bf16.mxu0 %v8359_v6  ;;  %5185 = vmatprep.subr.bf16.mxu1 %v8364_v58  ;;  %v9006_v6 = vld [vmem:[#allocation13_spill] sm:$0xff]  ;;  %v9007_v58 = vld [vmem:[#allocation14_spill] sm:$0xff] }
 0x6b7   :  { %5145 = vmatpush1.bf16.msra.mxu0 %v8372_v35  ;;  %5186 = vmatpush1.bf16.msra.mxu1 %v8377_v27  ;;  %v9008_v35 = vld [vmem:[#allocation15_spill] sm:$0xff]  ;;  %v9009_v27 = vld [vmem:[#allocation16_spill] sm:$0xff] }
 0x6b8   :  { %5146 = vmatprep.subr.bf16.mxu0 %v8384_v7  ;;  %5187 = vmatprep.subr.bf16.mxu1 %v8389_v44  ;;  %v9010_v7 = vld [vmem:[#allocation17_spill] sm:$0xff]  ;;  %v9011_v44 = vld [vmem:[#allocation18_spill] sm:$0xff] }
 0x6bb   :  { %5147 = vmatpush1.bf16.msra.mxu0 %v8396_v10  ;;  %5188 = vmatpush1.bf16.msra.mxu1 %v8401_v23 }
 0x6bc   :  { %5148 = vmatprep.subr.bf16.mxu0 %v8408_v21  ;;  %5189 = vmatprep.subr.bf16.mxu1 %v8413_v55 }
 0x6bf   :  { %5149 = vmatpush1.bf16.msra.mxu0 %v8420_v40  ;;  %5190 = vmatpush1.bf16.msra.mxu1 %v8999_v26 }
 0x6c0   :  { %5150 = vmatprep.subr.bf16.mxu0 %v9000_v15  ;;  %5191 = vmatprep.subr.bf16.mxu1 %v9001_v60 }
 0x6c3   :  { %5151 = vmatpush1.bf16.msra.mxu0 %v9002_v37  ;;  %5192 = vmatpush1.bf16.msra.mxu1 %v9003_v39 }
 0x6c4   :  { %5152 = vmatprep.subr.bf16.mxu0 %v9004_v33  ;;  %5193 = vmatprep.subr.bf16.mxu1 %v9005_v17 }
 0x6c7   :  { %5153 = vmatpush1.bf16.msra.mxu0 %v9006_v6  ;;  %5194 = vmatpush1.bf16.msra.mxu1 %v9007_v58 }
 0x6c8   :  { %5154 = vmatprep.subr.bf16.mxu0 %v9008_v35  ;;  %5195 = vmatprep.subr.bf16.mxu1 %v9009_v27 }
 0x6cb   :  { %5155 = vmatpush1.bf16.msra.mxu0 %v9010_v7  ;;  %5196 = vmatpush1.bf16.msra.mxu1 %v9011_v44 }
 0x76e   :  { %v4548_v10 = vpop.f32.mrf.mxu0  ;;  %v4589_v23 = vpop.f32.mrf.mxu1 }
 0x770   :  { %v4550_v21 = vpop.f32.mrf.mxu0  ;;  %v4591_v55 = vpop.f32.mrf.mxu1 }
 0x771   :  { %v4600_v40 = vcombine.low %v4548_v10, %v4550_v21  ;;  %v4601_v19 = vcombine.high %v4548_v10, %v4550_v21  ;;  %v4602_v57 = vcombine.low %v4589_v23, %v4591_v55  ;;  %v4603_v47 = vcombine.high %v4589_v23, %v4591_v55 }
 0x772   :  { %v4552_v54 = vpop.f32.mrf.mxu0  ;;  %v4593_v20 = vpop.f32.mrf.mxu1 }
 0x773   :  { %v4610_v9 = vrot.slane %v4600_v40, %v9012_v24  ;;  %v4617_v52 = vrot.slane %v4601_v19, %v9012_v24  ;;  %v4624_v41 = vrot.slane %v4602_v57, %v9012_v24  ;;  %v4631_v56 = vrot.slane %v4603_v47, %v9012_v24 }
 0x774   :  { %v4553_v2 = vpop.f32.mrf.mxu0  ;;  %v4594_v12 = vpop.f32.mrf.mxu1 }
 0x775   :  { %v4632_v63 = vcombine.low %v4610_v9, %v4624_v41  ;;  %v4633_v36 = vcombine.high %v4610_v9, %v4624_v41  ;;  %v4634_v25 = vcombine.low %v4617_v52, %v4631_v56  ;;  %v4635_v32 = vcombine.high %v4617_v52, %v4631_v56 }
 0x777   :  { %v4642_v49 = vrot.slane %v4632_v63, %v9012_v24  ;;  %v4649_v51 = vrot.slane %v4634_v25, %v9012_v24  ;;  %v4656_v3 = vrot.slane %v4633_v36, %v9012_v24  ;;  %v4663_v31 = vrot.slane %v4635_v32, %v9012_v24 }
 0x779   :  { %v4664_v62 = vcombine.high %v4642_v49, %v4642_v49  ;;  %v4665_v45 = vcombine.high %v4649_v51, %v4649_v51  ;;  %v4666_v59 = vcombine.high %v4656_v3, %v4656_v3  ;;  %v4667_v0 = vcombine.high %v4663_v31, %v4663_v31 }
 0x77a   :  { %v8664_v50 = vadd.f32 %v4642_v49, %v4267_v28  ;;  %v8666_v53 = vadd.f32 %v4656_v3, %v4269_v5  ;;  %v8668_v1 = vadd.f32 %v4649_v51, %v4275_v22  ;;  %v8674_v8 = vadd.f32 %v4663_v31, %v4277_v46 }
 0x77b   :  { %v8670_v48 = vadd.f32 %v4664_v62, %v4271_v13  ;;  %v8672_v61 = vadd.f32 %v4666_v59, %v4273_v34  ;;  %v8676_v26 = vadd.f32 %v4665_v45, %v4279_v18  ;;  %v8680_v37 = vadd.f32 %v4667_v0, %v4281_v16 }
 0x77c   :  { %v4684_v15 = vmul.f32 0.5, %v8664_v50  ;;  %v4685_v60 = vmul.f32 0.5, %v8666_v53  ;;  %v4688_v17 = vmul.f32 0.5, %v8668_v1  ;;  %v4724_v6 = vrot.slane %v8664_v50, 1 }
 0x77d   :  { %v4686_v39 = vmul.f32 0.5, %v8670_v48  ;;  %v4687_v33 = vmul.f32 0.5, %v8672_v61  ;;  %v4689_v58 = vmul.f32 0.5, %v8674_v8  ;;  %v4725_v35 = vrot.slane %v8666_v53, 1 }
 0x77e   :  { %6673 = vtanh.f32 %v4684_v15  ;;  %v4690_v27 = vmul.f32 0.5, %v8676_v26  ;;  %v4726_v7 = vrot.slane %v8670_v48, 1  ;;  %v4691_v44 = vmul.f32 0.5, %v8680_v37 }
 0x77f   :  { %6675 = vtanh.f32 %v4685_v60  ;;  %v4727_v10 = vrot.slane %v8672_v61, 1  ;;  %v4728_v23 = vrot.slane %v8668_v1, 1  ;;  %v4740_v21 = vmul.f32 0.5, %v4724_v6 }
 0x780   :  { %6677 = vtanh.f32 %v4686_v39  ;;  %v4729_v55 = vrot.slane %v8674_v8, 1  ;;  %v4741_v40 = vmul.f32 0.5, %v4725_v35  ;;  %v4730_v19 = vrot.slane %v8676_v26, 1 }
 0x781   :  { %6679 = vtanh.f32 %v4687_v33  ;;  %v4742_v57 = vmul.f32 0.5, %v4726_v7  ;;  %v4731_v47 = vrot.slane %v8680_v37, 1  ;;  %v4743_v54 = vmul.f32 0.5, %v4727_v10 }
 0x782   :  { %6681 = vtanh.f32 %v4688_v17  ;;  %v4744_v20 = vmul.f32 0.5, %v4728_v23  ;;  %v4745_v9 = vmul.f32 0.5, %v4729_v55  ;;  %v4746_v52 = vmul.f32 0.5, %v4730_v19 }
 0x783   :  { %6683 = vtanh.f32 %v4689_v58  ;;  %v4747_v41 = vmul.f32 0.5, %v4731_v47  ;;  %v4772_v56 = vrot.slane %v8664_v50, 2  ;;  %v4773_v2 = vrot.slane %v8666_v53, 2 }
 0x784   :  { %6685 = vtanh.f32 %v4690_v27  ;;  %v4774_v12 = vrot.slane %v8670_v48, 2  ;;  %v4775_v36 = vrot.slane %v8672_v61, 2  ;;  %v4796_v25 = vrot.slane %v8664_v50, 3 }
 0x785   :  { %6687 = vtanh.f32 %v4691_v44  ;;  %v4797_v32 = vrot.slane %v8666_v53, 3  ;;  %v4776_v51 = vrot.slane %v8668_v1, 2  ;;  %v4798_v3 = vrot.slane %v8670_v48, 3 }
 0x786   :  { %6689 = vtanh.f32 %v4740_v21  ;;  %v4799_v31 = vrot.slane %v8672_v61, 3  ;;  %v4777_v5 = vrot.slane %v8674_v8, 2  ;;  %v4800_v13 = vrot.slane %v8668_v1, 3 }
 0x787   :  { %6691 = vtanh.f32 %v4741_v40  ;;  %v4801_v22 = vrot.slane %v8674_v8, 3  ;;  %v4778_v45 = vrot.slane %v8676_v26, 2  ;;  %v4779_v59 = vrot.slane %v8680_v37, 2 }
 0x788   :  { %6693 = vtanh.f32 %v4742_v57  ;;  %v4802_v0 = vrot.slane %v8676_v26, 3  ;;  %v4803_v46 = vrot.slane %v8680_v37, 3  ;;  %v4812_v50 = vmul.f32 0.5, %v4796_v25 }
 0x789   :  { %6695 = vtanh.f32 %v4743_v54  ;;  %v4813_v53 = vmul.f32 0.5, %v4797_v32  ;;  %v4814_v1 = vmul.f32 0.5, %v4798_v3  ;;  %v4815_v61 = vmul.f32 0.5, %v4799_v31 }
 0x78a   :  { %6697 = vtanh.f32 %v4744_v20  ;;  %v4816_v15 = vmul.f32 0.5, %v4800_v13  ;;  %v4817_v60 = vmul.f32 0.5, %v4801_v22  ;;  %v4818_v26 = vmul.f32 0.5, %v4802_v0 }
 0x78b   :  { %v6674_v63 = vpop.eup %6673  ;;  %6699 = vtanh.f32 %v4745_v9  ;;  %v4819_v35 = vmul.f32 0.5, %v4803_v46 }
 0x78c   :  { %v6676_v49 = vpop.eup %6675  ;;  %6701 = vtanh.f32 %v4746_v52  ;;  %v4700_v48 = vadd.f32 1.0, %v6674_v63 }
 0x78d   :  { %v6678_v28 = vpop.eup %6677  ;;  %6703 = vtanh.f32 %v4747_v41  ;;  %v4701_v16 = vadd.f32 1.0, %v6676_v49 }
 0x78e   :  { %v6680_v62 = vpop.eup %6679  ;;  %6705 = vtanh.f32 %v4772_v56  ;;  %v4702_v33 = vadd.f32 1.0, %v6678_v28  ;;  %v4708_v44 = vmul.f32 0.5, %v4700_v48 }
 0x78f   :  { %v6682_v34 = vpop.eup %6681  ;;  %6707 = vtanh.f32 %v4773_v2  ;;  %v4703_v17 = vadd.f32 1.0, %v6680_v62  ;;  %v4709_v55 = vmul.f32 0.5, %v4701_v16 }
 0x790   :  { %v6684_v18 = vpop.eup %6683  ;;  %6709 = vtanh.f32 %v4774_v12  ;;  %v4704_v58 = vadd.f32 1.0, %v6682_v34  ;;  %v4710_v57 = vmul.f32 0.5, %v4702_v33 }
 0x791   :  { %v6686_v8 = vpop.eup %6685  ;;  %6711 = vtanh.f32 %v4775_v36  ;;  %v4705_v37 = vadd.f32 1.0, %v6684_v18  ;;  %v4711_v47 = vmul.f32 0.5, %v4703_v17 }
 0x792   :  { %v6688_v39 = vpop.eup %6687  ;;  %6713 = vtanh.f32 %v4776_v51  ;;  %v4706_v7 = vadd.f32 1.0, %v6686_v8  ;;  %v4712_v52 = vmul.f32 0.5, %v4704_v58 }
 0x793   :  { %v6690_v6 = vpop.eup %6689  ;;  %6715 = vtanh.f32 %v4777_v5  ;;  %v4707_v21 = vadd.f32 1.0, %v6688_v39  ;;  %v4713_v41 = vmul.f32 0.5, %v4705_v37 }
 0x794   :  { %v6692_v27 = vpop.eup %6691  ;;  %v4756_v10 = vadd.f32 1.0, %v6690_v6  ;;  %6717 = vtanh.f32 %v4778_v45  ;;  %v4714_v63 = vmul.f32 0.5, %v4706_v7 }
 0x795   :  { %v6694_v23 = vpop.eup %6693  ;;  %v4757_v40 = vadd.f32 1.0, %v6692_v27  ;;  %6719 = vtanh.f32 %v4779_v59  ;;  %v4715_v49 = vmul.f32 0.5, %v4707_v21 }
 0x796   :  { %v6696_v19 = vpop.eup %6695  ;;  %v4758_v54 = vadd.f32 1.0, %v6694_v23  ;;  %v4764_v20 = vmul.f32 0.5, %v4756_v10  ;;  %6721 = vtanh.f32 %v4812_v50 }
 0x797   :  { %v6698_v9 = vpop.eup %6697  ;;  %v4759_v56 = vadd.f32 1.0, %v6696_v19  ;;  %v4765_v2 = vmul.f32 0.5, %v4757_v40  ;;  %6723 = vtanh.f32 %v4813_v53 }
 0x798   :  { %v6700_v12 = vpop.eup %6699  ;;  %v4760_v36 = vadd.f32 1.0, %v6698_v9  ;;  %v4766_v25 = vmul.f32 0.5, %v4758_v54  ;;  %6725 = vtanh.f32 %v4814_v1  ;;  %v4844_v13 = vmul.f32 %v4764_v20, %v8566_v14 }
 0x799   :  { %v6702_v32 = vpop.eup %6701  ;;  %v4761_v51 = vadd.f32 1.0, %v6700_v12  ;;  %v4767_v3 = vmul.f32 0.5, %v4759_v56  ;;  %6727 = vtanh.f32 %v4815_v61  ;;  %v4845_v59 = vmul.f32 %v4765_v2, %v8569_v42 }
 0x79a   :  { %v6704_v31 = vpop.eup %6703  ;;  %v4762_v28 = vadd.f32 1.0, %v6702_v32  ;;  %v4768_v5 = vmul.f32 0.5, %v4760_v36  ;;  %6729 = vtanh.f32 %v4816_v15  ;;  %v4846_v46 = vmul.f32 %v4766_v25, %v8572_v43 }
 0x79b   :  { %v6706_v22 = vpop.eup %6705  ;;  %v4763_v62 = vadd.f32 1.0, %v6704_v31  ;;  %v4769_v45 = vmul.f32 0.5, %v4761_v51  ;;  %6731 = vtanh.f32 %v4817_v60  ;;  %v4847_v48 = vmul.f32 %v4767_v3, %v8576_v11 }
 0x79c   :  { %v6708_v0 = vpop.eup %6707  ;;  %v4770_v34 = vmul.f32 0.5, %v4762_v28  ;;  %v4852_v50 = vmul.f32 %v6706_v22, %v4708_v44  ;;  %6733 = vtanh.f32 %v4818_v26  ;;  %v4848_v14 = vmul.f32 %v4768_v5, %v8579_v30 }
 0x79d   :  { %v6710_v18 = vpop.eup %6709  ;;  %v4771_v53 = vmul.f32 0.5, %v4763_v62  ;;  %v4853_v1 = vmul.f32 %v6708_v0, %v4709_v55  ;;  %6735 = vtanh.f32 %v4819_v35  ;;  %v4849_v15 = vmul.f32 %v4769_v45, %v8582_v29 }
 0x79e   :  { %v6712_v8 = vpop.eup %6711  ;;  %v4854_v16 = vmul.f32 %v6710_v18, %v4710_v57  ;;  %v8717_v61 = vadd.f32 %v4852_v50, %v4844_v13  ;;  %v4850_v60 = vmul.f32 %v4770_v34, %v8585_v4 }
 0x79f   :  { %v6714_v42 = vpop.eup %6713  ;;  %v4855_v39 = vmul.f32 %v6712_v8, %v4711_v47  ;;  %v8720_v43 = vadd.f32 %v4853_v1, %v4845_v59  ;;  %v4851_v30 = vmul.f32 %v4771_v53, %v8588_v38 }
 0x7a0   :  { %v6716_v33 = vpop.eup %6715  ;;  %v4856_v17 = vmul.f32 %v6714_v42, %v4712_v52  ;;  %v8723_v11 = vadd.f32 %v4854_v16, %v4846_v46  ;;  %6737 = vtanh.f32 %v8717_v61 }
 0x7a1   :  { %v6718_v26 = vpop.eup %6717  ;;  %v4857_v6 = vmul.f32 %v6716_v33, %v4713_v41  ;;  %v8727_v58 = vadd.f32 %v4855_v39, %v4847_v48  ;;  %6739 = vtanh.f32 %v8720_v43 }
 0x7a2   :  { %v6720_v29 = vpop.eup %6719  ;;  %v4858_v37 = vmul.f32 %v6718_v26, %v4714_v63  ;;  %v8730_v35 = vadd.f32 %v4856_v17, %v4848_v14  ;;  %6741 = vtanh.f32 %v8723_v11 }
 0x7a3   :  { %v4859_v4 = vmul.f32 %v6720_v29, %v4715_v49  ;;  %v8733_v27 = vadd.f32 %v4857_v6, %v4849_v15  ;;  %6743 = vtanh.f32 %v8727_v58  ;;  %v6722_v38 = vpop.eup %6721 }
 0x7a4   :  { %v8736_v7 = vadd.f32 %v4858_v37, %v4850_v60  ;;  %6745 = vtanh.f32 %v8730_v35  ;;  %v6724_v10 = vpop.eup %6723  ;;  %v4828_v55 = vadd.f32 1.0, %v6722_v38 }
 0x7a5   :  { %v8739_v44 = vadd.f32 %v4859_v4, %v4851_v30  ;;  %6747 = vtanh.f32 %v8733_v27  ;;  %v6726_v23 = vpop.eup %6725  ;;  %v4829_v19 = vadd.f32 1.0, %v6724_v10 }
 0x7a6   :  { %6749 = vtanh.f32 %v8736_v7  ;;  %v6728_v21 = vpop.eup %6727  ;;  %v4830_v47 = vadd.f32 1.0, %v6726_v23  ;;  %v4836_v41 = vmul.f32 0.5, %v4828_v55 }
 0x7a7   :  { %6751 = vtanh.f32 %v8739_v44  ;;  %v6730_v40 = vpop.eup %6729  ;;  %v4831_v20 = vadd.f32 1.0, %v6728_v21  ;;  %v4837_v2 = vmul.f32 0.5, %v4829_v19 }
 0x7a8   :  { %v6732_v57 = vpop.eup %6731  ;;  %v4832_v52 = vadd.f32 1.0, %v6730_v40  ;;  %v4838_v36 = vmul.f32 0.5, %v4830_v47 }
 0x7a9   :  { %v6734_v54 = vpop.eup %6733  ;;  %v4833_v12 = vadd.f32 1.0, %v6732_v57  ;;  %v4839_v51 = vmul.f32 0.5, %v4831_v20 }
 0x7aa   :  { %v6736_v9 = vpop.eup %6735  ;;  %v4834_v32 = vadd.f32 1.0, %v6734_v54  ;;  %v4840_v5 = vmul.f32 0.5, %v4832_v52 }
 0x7ab   :  { %v4835_v31 = vadd.f32 1.0, %v6736_v9  ;;  %v4841_v45 = vmul.f32 0.5, %v4833_v12 }
 0x7ac   :  { %v4842_v46 = vmul.f32 0.5, %v4834_v32 }
 0x7ad   :  { %v6738_v56 = vpop.eup %6737  ;;  %v4843_v48 = vmul.f32 0.5, %v4835_v31 }
 0x7ae   :  { %v6740_v63 = vpop.eup %6739  ;;  %v4876_v25 = vmul.f32 %v6738_v56, %v4836_v41 }
 0x7af   :  { %v6742_v49 = vpop.eup %6741  ;;  %v4877_v3 = vmul.f32 %v6740_v63, %v4837_v2 }
 0x7b0   :  { %v6744_v28 = vpop.eup %6743  ;;  %4884 = vst [vmem:[%s8885_s4 + $0x6] sm:$0x1] %v4876_v25  ;;  %v4878_v13 = vmul.f32 %v6742_v49, %v4838_v36  ;;  %v4908_v22 = vpack.c.bf16 %v4876_v25, %v4876_v25 }
 0x7b1   :  { %v6746_v62 = vpop.eup %6745  ;;  %4885 = vst [vmem:[%s8885_s4 + $0xe] sm:$0x1] %v4877_v3  ;;  %v4879_v59 = vmul.f32 %v6744_v28, %v4839_v51  ;;  %v4909_v0 = vpack.c.bf16 %v4877_v3, %v4877_v3 }
 0x7b2   :  { %v6748_v34 = vpop.eup %6747  ;;  %v4880_v50 = vmul.f32 %v6746_v62, %v4840_v5  ;;  %4886 = vst [vmem:[%s8885_s4 + $0x16] sm:$0x1] %v4878_v13  ;;  %v4910_v18 = vpack.c.bf16 %v4878_v13, %v4878_v13  ;;  %v4956_v39 = vunpack.c.l.b16 %v4908_v22 }
 0x7b3   :  { %v6750_v53 = vpop.eup %6749  ;;  %v4881_v1 = vmul.f32 %v6748_v34, %v4841_v45  ;;  %4887 = vst [vmem:[%s8885_s4 + $0x1e] sm:$0x1] %v4879_v59  ;;  %v4911_v8 = vpack.c.bf16 %v4879_v59, %v4879_v59  ;;  %v4957_v14 = vunpack.c.l.b16 %v4909_v0 }
 0x7b4   :  { %v6752_v16 = vpop.eup %6751  ;;  %v4882_v42 = vmul.f32 %v6750_v53, %v4842_v46  ;;  %4888 = vst [vmem:[%s8885_s4 + $0x26] sm:$0x1] %v4880_v50  ;;  %v4912_v15 = vpack.c.bf16 %v4880_v50, %v4880_v50  ;;  %v4958_v33 = vunpack.c.l.b16 %v4910_v18 }
 0x7b5   :  { %v4883_v60 = vmul.f32 %v6752_v16, %v4843_v48  ;;  %4889 = vst [vmem:[%s8885_s4 + $0x2e] sm:$0x1] %v4881_v1  ;;  %v4913_v17 = vpack.c.bf16 %v4881_v1, %v4881_v1  ;;  %v4959_v26 = vunpack.c.l.b16 %v4911_v8  ;;  %v4964_v30 = vrot.slane %v4957_v14, 7  ;;  %v4893_v8 = vld [vmem:[#allocation2 + $0x7] ss:$8 sm:$0xf] }
 0x7b6   :  { %4890 = vst [vmem:[%s8885_s4 + $0x36] sm:$0x1] %v4882_v42  ;;  %v4914_v6 = vpack.c.bf16 %v4882_v42, %v4882_v42  ;;  %v4960_v29 = vunpack.c.l.b16 %v4912_v15  ;;  %v4966_v37 = vrot.slane %v4958_v33, 6  ;;  %v4895_v14 = vld [vmem:[#allocation2 + $0x27] ss:$8 sm:$0xf] }
 0x7b7   :  { %4891 = vst [vmem:[%s8885_s4 + $0x3e] sm:$0x1] %v4883_v60  ;;  %v4915_v4 = vpack.c.bf16 %v4883_v60, %v4883_v60  ;;  %v4961_v38 = vunpack.c.l.b16 %v4913_v17  ;;  %v4965_v10 = vsel %vm1202_vm0, %v4964_v30, %v4956_v39  ;;  %v4968_v23 = vrot.slane %v4959_v26, 5  ;;  %v4897_v16 = vld [vmem:[#allocation2 + $0x47] ss:$8 sm:$0xf] }
 0x7b8   :  { %v4962_v21 = vunpack.c.l.b16 %v4914_v6  ;;  %v4967_v55 = vsel %vm1205_vm1, %v4966_v37, %v4965_v10  ;;  %v4970_v40 = vrot.slane %v4960_v29, 4  ;;  %v4901_v42 = vld [vmem:[#allocation2 + $0x87] ss:$8 sm:$0xf] }
 0x7b9   :  { %v4963_v19 = vunpack.c.l.b16 %v4915_v4  ;;  %v4969_v57 = vsel %vm1208_vm2, %v4968_v23, %v4967_v55  ;;  %v4972_v47 = vrot.slane %v4961_v38, 3  ;;  %v4899_v17 = vld [vmem:[#allocation2 + $0x67] ss:$8 sm:$0xf] }
 0x7ba   :  { %v4971_v54 = vsel %vm1211_vm3, %v4970_v40, %v4969_v57  ;;  %v4974_v20 = vrot.slane %v4962_v21, 2  ;;  %v4903_v26 = vld [vmem:[#allocation2 + $0xa7] ss:$8 sm:$0xf] }
 0x7bb   :  { %v4973_v9 = vsel %vm1214_vm4, %v4972_v47, %v4971_v54  ;;  %v4976_v52 = vrot.slane %v4963_v19, 1  ;;  %v4905_v37 = vld [vmem:[#allocation2 + $0xc7] ss:$8 sm:$0xf] }
 0x7bc   :  { %v4975_v41 = vsel %vm1217_vm5, %v4974_v20, %v4973_v9  ;;  %v4907_v23 = vld [vmem:[#allocation2 + $0xe7] ss:$8 sm:$0xf] }
 0x7bd   :  { %v4977_v56 = vsel %vm1220_vm6, %v4976_v52, %v4975_v41 }
 0x7be   :  { %v4978_v2 = vpack.c.b16 %v4977_v56, %v4977_v56 }
 0x7c0   :  { %5173 = vmatmul.mubr.bf16.vlgmr.msra.gmra.mxu0 %v4978_v2  ;;  %5214 = vmatmul.mubr.bf16.vlgmr.msra.gmra.mxu1 %v4978_v2 }
 0x880   :  { %v5174_v12 = vpop.f32.mrf.mxu0  ;;  %v5215_v63 = vpop.f32.mrf.mxu1 }
 0x882   :  { %v5176_v36 = vpop.f32.mrf.mxu0  ;;  %v5217_v25 = vpop.f32.mrf.mxu1 }
 0x883   :  { %v5226_v32 = vcombine.low %v5174_v12, %v5176_v36  ;;  %v5227_v49 = vcombine.high %v5174_v12, %v5176_v36  ;;  %v5228_v51 = vcombine.low %v5215_v63, %v5217_v25  ;;  %v5229_v3 = vcombine.high %v5215_v63, %v5217_v25 }
 0x884   :  { %v5178_v31 = vpop.f32.mrf.mxu0  ;;  %v5219_v28 = vpop.f32.mrf.mxu1 }
 0x885   :  { %v5236_v5 = vrot.slane %v5226_v32, %v9012_v24  ;;  %v5243_v13 = vrot.slane %v5227_v49, %v9012_v24  ;;  %v5250_v22 = vrot.slane %v5228_v51, %v9012_v24  ;;  %v5257_v62 = vrot.slane %v5229_v3, %v9012_v24 }
 0x886   :  { %v5179_v45 = vpop.f32.mrf.mxu0  ;;  %v5220_v59 = vpop.f32.mrf.mxu1 }
 0x887   :  { %v5258_v0 = vcombine.low %v5236_v5, %v5250_v22  ;;  %v5259_v34 = vcombine.high %v5236_v5, %v5250_v22  ;;  %v5260_v46 = vcombine.low %v5243_v13, %v5257_v62  ;;  %v5261_v50 = vcombine.high %v5243_v13, %v5257_v62 }
 0x889   :  { %v5268_v18 = vrot.slane %v5258_v0, %v9012_v24  ;;  %v5275_v53 = vrot.slane %v5260_v46, %v9012_v24  ;;  %v5282_v48 = vrot.slane %v5259_v34, %v9012_v24  ;;  %v5289_v1 = vrot.slane %v5261_v50, %v9012_v24 }
 0x88b   :  { %v5290_v15 = vcombine.high %v5268_v18, %v5268_v18  ;;  %v5291_v39 = vcombine.high %v5275_v53, %v5275_v53  ;;  %v5292_v33 = vcombine.high %v5282_v48, %v5282_v48  ;;  %v5293_v60 = vcombine.high %v5289_v1, %v5289_v1 }
 0x88c   :  { %v8783_v30 = vadd.f32 %v5268_v18, %v4893_v8  ;;  %v8785_v6 = vadd.f32 %v5282_v48, %v4895_v14  ;;  %v8787_v29 = vadd.f32 %v5275_v53, %v4901_v42  ;;  %v8793_v10 = vadd.f32 %v5289_v1, %v4903_v26 }
 0x88d   :  { %v8789_v4 = vadd.f32 %v5290_v15, %v4897_v16  ;;  %v8791_v38 = vadd.f32 %v5292_v33, %v4899_v17  ;;  %v8795_v21 = vadd.f32 %v5291_v39, %v4905_v37  ;;  %v8799_v19 = vadd.f32 %v5293_v60, %v4907_v23 }
 0x88e   :  { %v5310_v55 = vmul.f32 0.5, %v8783_v30  ;;  %v5311_v40 = vmul.f32 0.5, %v8785_v6  ;;  %v5314_v54 = vmul.f32 0.5, %v8787_v29  ;;  %v5350_v20 = vrot.slane %v8783_v30, 1 }
 0x88f   :  { %v5312_v57 = vmul.f32 0.5, %v8789_v4  ;;  %v5313_v47 = vmul.f32 0.5, %v8791_v38  ;;  %v5315_v9 = vmul.f32 0.5, %v8793_v10  ;;  %v5351_v52 = vrot.slane %v8785_v6, 1 }
 0x890   :  { %6753 = vtanh.f32 %v5310_v55  ;;  %v5316_v41 = vmul.f32 0.5, %v8795_v21  ;;  %v5352_v56 = vrot.slane %v8789_v4, 1  ;;  %v5317_v2 = vmul.f32 0.5, %v8799_v19 }
 0x891   :  { %6755 = vtanh.f32 %v5311_v40  ;;  %v5353_v12 = vrot.slane %v8791_v38, 1  ;;  %v5354_v63 = vrot.slane %v8787_v29, 1  ;;  %v5366_v36 = vmul.f32 0.5, %v5350_v20 }
 0x892   :  { %6757 = vtanh.f32 %v5312_v57  ;;  %v5355_v25 = vrot.slane %v8793_v10, 1  ;;  %v5367_v32 = vmul.f32 0.5, %v5351_v52  ;;  %v5356_v49 = vrot.slane %v8795_v21, 1 }
 0x893   :  { %6759 = vtanh.f32 %v5313_v47  ;;  %v5368_v51 = vmul.f32 0.5, %v5352_v56  ;;  %v5357_v3 = vrot.slane %v8799_v19, 1  ;;  %v5369_v31 = vmul.f32 0.5, %v5353_v12 }
 0x894   :  { %6761 = vtanh.f32 %v5314_v54  ;;  %v5370_v28 = vmul.f32 0.5, %v5354_v63  ;;  %v5371_v5 = vmul.f32 0.5, %v5355_v25  ;;  %v5372_v13 = vmul.f32 0.5, %v5356_v49 }
 0x895   :  { %6763 = vtanh.f32 %v5315_v9  ;;  %v5373_v22 = vmul.f32 0.5, %v5357_v3  ;;  %v5398_v62 = vrot.slane %v8783_v30, 2  ;;  %v5399_v45 = vrot.slane %v8785_v6, 2 }
 0x896   :  { %6765 = vtanh.f32 %v5316_v41  ;;  %v5400_v59 = vrot.slane %v8789_v4, 2  ;;  %v5401_v34 = vrot.slane %v8791_v38, 2  ;;  %v5422_v46 = vrot.slane %v8783_v30, 3 }
 0x897   :  { %6767 = vtanh.f32 %v5317_v2  ;;  %v5423_v50 = vrot.slane %v8785_v6, 3  ;;  %v5402_v53 = vrot.slane %v8787_v29, 2  ;;  %v5424_v48 = vrot.slane %v8789_v4, 3 }
 0x898   :  { %6769 = vtanh.f32 %v5366_v36  ;;  %v5425_v1 = vrot.slane %v8791_v38, 3  ;;  %v5403_v14 = vrot.slane %v8793_v10, 2  ;;  %v5426_v16 = vrot.slane %v8787_v29, 3 }
 0x899   :  { %6771 = vtanh.f32 %v5367_v32  ;;  %v5427_v42 = vrot.slane %v8793_v10, 3  ;;  %v5404_v39 = vrot.slane %v8795_v21, 2  ;;  %v5405_v33 = vrot.slane %v8799_v19, 2 }
 0x89a   :  { %6773 = vtanh.f32 %v5368_v51  ;;  %v5428_v60 = vrot.slane %v8795_v21, 3  ;;  %v5429_v26 = vrot.slane %v8799_v19, 3  ;;  %v5438_v30 = vmul.f32 0.5, %v5422_v46 }
 0x89b   :  { %6775 = vtanh.f32 %v5369_v31  ;;  %v5439_v6 = vmul.f32 0.5, %v5423_v50  ;;  %v5440_v29 = vmul.f32 0.5, %v5424_v48  ;;  %v5441_v38 = vmul.f32 0.5, %v5425_v1 }
 0x89c   :  { %6777 = vtanh.f32 %v5370_v28  ;;  %v5442_v55 = vmul.f32 0.5, %v5426_v16  ;;  %v5443_v40 = vmul.f32 0.5, %v5427_v42  ;;  %v5444_v21 = vmul.f32 0.5, %v5428_v60 }
 0x89d   :  { %v6754_v0 = vpop.eup %6753  ;;  %6779 = vtanh.f32 %v5371_v5  ;;  %v5445_v52 = vmul.f32 0.5, %v5429_v26 }
 0x89e   :  { %v6756_v18 = vpop.eup %6755  ;;  %6781 = vtanh.f32 %v5372_v13  ;;  %v5326_v4 = vadd.f32 1.0, %v6754_v0 }
 0x89f   :  { %v6758_v8 = vpop.eup %6757  ;;  %6783 = vtanh.f32 %v5373_v22  ;;  %v5327_v23 = vadd.f32 1.0, %v6756_v18 }
 0x8a0   :  { %v6760_v15 = vpop.eup %6759  ;;  %6785 = vtanh.f32 %v5398_v62  ;;  %v5328_v47 = vadd.f32 1.0, %v6758_v8  ;;  %v5334_v2 = vmul.f32 0.5, %v5326_v4 }
 0x8a1   :  { %v6762_v17 = vpop.eup %6761  ;;  %6787 = vtanh.f32 %v5399_v45  ;;  %v5329_v54 = vadd.f32 1.0, %v6760_v15  ;;  %v5335_v25 = vmul.f32 0.5, %v5327_v23 }
 0x8a2   :  { %v6764_v37 = vpop.eup %6763  ;;  %6789 = vtanh.f32 %v5400_v59  ;;  %v5330_v9 = vadd.f32 1.0, %v6762_v17  ;;  %v5336_v51 = vmul.f32 0.5, %v5328_v47 }
 0x8a3   :  { %v6766_v10 = vpop.eup %6765  ;;  %6791 = vtanh.f32 %v5401_v34  ;;  %v5331_v19 = vadd.f32 1.0, %v6764_v37  ;;  %v5337_v3 = vmul.f32 0.5, %v5329_v54 }
 0x8a4   :  { %v6768_v57 = vpop.eup %6767  ;;  %6793 = vtanh.f32 %v5402_v53  ;;  %v5332_v56 = vadd.f32 1.0, %v6766_v10  ;;  %v5338_v13 = vmul.f32 0.5, %v5330_v9 }
 0x8a5   :  { %v6770_v20 = vpop.eup %6769  ;;  %6795 = vtanh.f32 %v5403_v14  ;;  %v5333_v36 = vadd.f32 1.0, %v6768_v57  ;;  %v5339_v22 = vmul.f32 0.5, %v5331_v19 }
 0x8a6   :  { %v6772_v41 = vpop.eup %6771  ;;  %v5382_v12 = vadd.f32 1.0, %v6770_v20  ;;  %6797 = vtanh.f32 %v5404_v39  ;;  %v5340_v0 = vmul.f32 0.5, %v5332_v56 }
 0x8a7   :  { %v6774_v63 = vpop.eup %6773  ;;  %v5383_v32 = vadd.f32 1.0, %v6772_v41  ;;  %6799 = vtanh.f32 %v5405_v33  ;;  %v5341_v18 = vmul.f32 0.5, %v5333_v36 }
 0x8a8   :  { %v6776_v49 = vpop.eup %6775  ;;  %v5384_v31 = vadd.f32 1.0, %v6774_v63  ;;  %v5390_v28 = vmul.f32 0.5, %v5382_v12  ;;  %6801 = vtanh.f32 %v5438_v30 }
 0x8a9   :  { %v6778_v5 = vpop.eup %6777  ;;  %v5385_v62 = vadd.f32 1.0, %v6776_v49  ;;  %v5391_v45 = vmul.f32 0.5, %v5383_v32  ;;  %6803 = vtanh.f32 %v5439_v6 }
 0x8aa   :  { %v6780_v59 = vpop.eup %6779  ;;  %v5386_v34 = vadd.f32 1.0, %v6778_v5  ;;  %v5392_v46 = vmul.f32 0.5, %v5384_v31  ;;  %6805 = vtanh.f32 %v5440_v29  ;;  %v5470_v16 = vmul.f32 %v5390_v28, %v8717_v61 }
 0x8ab   :  { %v6782_v50 = vpop.eup %6781  ;;  %v5387_v53 = vadd.f32 1.0, %v6780_v59  ;;  %v5393_v48 = vmul.f32 0.5, %v5385_v62  ;;  %6807 = vtanh.f32 %v5441_v38  ;;  %v5471_v33 = vmul.f32 %v5391_v45, %v8720_v43 }
 0x8ac   :  { %v6784_v1 = vpop.eup %6783  ;;  %v5388_v8 = vadd.f32 1.0, %v6782_v50  ;;  %v5394_v14 = vmul.f32 0.5, %v5386_v34  ;;  %6809 = vtanh.f32 %v5442_v55  ;;  %v5472_v26 = vmul.f32 %v5392_v46, %v8723_v11 }
 0x8ad   :  { %v6786_v42 = vpop.eup %6785  ;;  %v5389_v15 = vadd.f32 1.0, %v6784_v1  ;;  %v5395_v39 = vmul.f32 0.5, %v5387_v53  ;;  %6811 = vtanh.f32 %v5443_v40  ;;  %v5473_v4 = vmul.f32 %v5393_v48, %v8727_v58 }
 0x8ae   :  { %v6788_v60 = vpop.eup %6787  ;;  %v5396_v17 = vmul.f32 0.5, %v5388_v8  ;;  %v5478_v30 = vmul.f32 %v6786_v42, %v5334_v2  ;;  %6813 = vtanh.f32 %v5444_v21  ;;  %v5474_v61 = vmul.f32 %v5394_v14, %v8730_v35 }
 0x8af   :  { %v6790_v37 = vpop.eup %6789  ;;  %v5397_v6 = vmul.f32 0.5, %v5389_v15  ;;  %v5479_v29 = vmul.f32 %v6788_v60, %v5335_v25  ;;  %6815 = vtanh.f32 %v5445_v52  ;;  %v5475_v43 = vmul.f32 %v5395_v39, %v8733_v27 }
 0x8b0   :  { %v6792_v10 = vpop.eup %6791  ;;  %v5480_v23 = vmul.f32 %v6790_v37, %v5336_v51  ;;  %v5486_v38 = vadd.f32 %v5478_v30, %v5470_v16  ;;  %v5476_v54 = vmul.f32 %v5396_v17, %v8736_v7 }
 0x8b1   :  { %v6794_v57 = vpop.eup %6793  ;;  %v5481_v55 = vmul.f32 %v6792_v10, %v5337_v3  ;;  %v5487_v47 = vadd.f32 %v5479_v29, %v5471_v33  ;;  %v5477_v9 = vmul.f32 %v5397_v6, %v8739_v44 }
 0x8b2   :  { %v6796_v11 = vpop.eup %6795  ;;  %v5482_v20 = vmul.f32 %v6794_v57, %v5338_v13  ;;  %v5488_v40 = vadd.f32 %v5480_v23, %v5472_v26  ;;  %6817 = vtanh.f32 %v5486_v38 }
 0x8b3   :  { %v6798_v58 = vpop.eup %6797  ;;  %v5483_v21 = vmul.f32 %v6796_v11, %v5339_v22  ;;  %v5489_v19 = vadd.f32 %v5481_v55, %v5473_v4  ;;  %6819 = vtanh.f32 %v5487_v47  ;;  %v5585_v52 = vcombine.low %v5486_v38, %v5487_v47 }
 0x8b4   :  { %v6800_v35 = vpop.eup %6799  ;;  %v5484_v41 = vmul.f32 %v6798_v58, %v5340_v0  ;;  %v5490_v56 = vadd.f32 %v5482_v20, %v5474_v61  ;;  %6821 = vtanh.f32 %v5488_v40 }
 0x8b5   :  { %v5485_v27 = vmul.f32 %v6800_v35, %v5341_v18  ;;  %v5491_v2 = vadd.f32 %v5483_v21, %v5475_v43  ;;  %6823 = vtanh.f32 %v5489_v19  ;;  %v5586_v12 = vcombine.low %v5488_v40, %v5489_v19  ;;  %v6802_v7 = vpop.eup %6801 }
 0x8b6   :  { %v5492_v63 = vadd.f32 %v5484_v41, %v5476_v54  ;;  %6825 = vtanh.f32 %v5490_v56  ;;  %v6804_v32 = vpop.eup %6803  ;;  %v5595_v44 = vrot.slane %v5585_v52, %v9012_v24  ;;  %v5454_v28 = vadd.f32 1.0, %v6802_v7 }
 0x8b7   :  { %v5493_v36 = vadd.f32 %v5485_v27, %v5477_v9  ;;  %6827 = vtanh.f32 %v5491_v2  ;;  %v5587_v25 = vcombine.low %v5490_v56, %v5491_v2  ;;  %v5602_v49 = vrot.slane %v5586_v12, %v9012_v24  ;;  %v6806_v51 = vpop.eup %6805 }
 0x8b8   :  { %6829 = vtanh.f32 %v5492_v63  ;;  %v6808_v31 = vpop.eup %6807  ;;  %v5455_v22 = vadd.f32 1.0, %v6804_v32  ;;  %v5456_v0 = vadd.f32 1.0, %v6806_v51  ;;  %v5462_v1 = vmul.f32 0.5, %v5454_v28 }
 0x8b9   :  { %6831 = vtanh.f32 %v5493_v36  ;;  %v5588_v3 = vcombine.low %v5492_v63, %v5493_v36  ;;  %v5617_v5 = vcombine.low %v5595_v44, %v5602_v49  ;;  %v6810_v13 = vpop.eup %6809  ;;  %v5609_v62 = vrot.slane %v5587_v25, %v9012_v24 }
 0x8ba   :  { %v6812_v59 = vpop.eup %6811  ;;  %v5457_v46 = vadd.f32 1.0, %v6808_v31  ;;  %v5458_v48 = vadd.f32 1.0, %v6810_v13  ;;  %v5463_v16 = vmul.f32 0.5, %v5455_v22  ;;  %v5464_v33 = vmul.f32 0.5, %v5456_v0 }
 0x8bb   :  { %v5616_v45 = vrot.slane %v5588_v3, %v9012_v24  ;;  %v6814_v34 = vpop.eup %6813  ;;  %v5625_v18 = vrot.slane %v5617_v5, %v9012_v24  ;;  %v5459_v14 = vadd.f32 1.0, %v6812_v59 }
 0x8bc   :  { %v6816_v53 = vpop.eup %6815  ;;  %v5460_v39 = vadd.f32 1.0, %v6814_v34  ;;  %v5465_v30 = vmul.f32 0.5, %v5457_v46  ;;  %v5466_v29 = vmul.f32 0.5, %v5458_v48 }
 0x8bd   :  { %v5618_v50 = vcombine.low %v5609_v62, %v5616_v45  ;;  %v5461_v26 = vadd.f32 1.0, %v6816_v53  ;;  %v5467_v23 = vmul.f32 0.5, %v5459_v14 }
 0x8be   :  { %v5468_v55 = vmul.f32 0.5, %v5460_v39 }
 0x8bf   :  { %v6818_v8 = vpop.eup %6817  ;;  %v5632_v42 = vrot.slane %v5618_v50, %v9012_v24  ;;  %v5469_v54 = vmul.f32 0.5, %v5461_v26 }
 0x8c0   :  { %v6820_v15 = vpop.eup %6819  ;;  %v5502_v60 = vmul.f32 %v6818_v8, %v5462_v1 }
 0x8c1   :  { %v6822_v17 = vpop.eup %6821  ;;  %v5503_v37 = vmul.f32 %v6820_v15, %v5463_v16  ;;  %v5633_v6 = vcombine.low %v5625_v18, %v5632_v42 }
 0x8c2   :  { %v6824_v4 = vpop.eup %6823  ;;  %v5504_v10 = vmul.f32 %v6822_v17, %v5464_v33  ;;  %5510 = vst [vmem:[%s8885_s4 + $0x7] sm:$0x1] %v5502_v60 }
 0x8c3   :  { %v6826_v61 = vpop.eup %6825  ;;  %v5505_v38 = vmul.f32 %v6824_v4, %v5465_v30  ;;  %5511 = vst [vmem:[%s8885_s4 + $0xf] sm:$0x1] %v5503_v37  ;;  %v5526_v57 = vcombine.low %v5502_v60, %v5503_v37  ;;  %5640 = vst [vmem:[%s8886_s6] sm:$0xff] %v5633_v6 }
 0x8c4   :  { %v6828_v43 = vpop.eup %6827  ;;  %v5506_v47 = vmul.f32 %v6826_v61, %v5466_v29  ;;  %5512 = vst [vmem:[%s8885_s4 + $0x17] sm:$0x1] %v5504_v10 }
 0x8c5   :  { %v6830_v11 = vpop.eup %6829  ;;  %v5507_v20 = vmul.f32 %v6828_v43, %v5467_v23  ;;  %5513 = vst [vmem:[%s8885_s4 + $0x1f] sm:$0x1] %v5505_v38  ;;  %v5527_v40 = vcombine.low %v5504_v10, %v5505_v38  ;;  %v5536_v35 = vrot.slane %v5526_v57, %v9012_v24 }
 0x8c6   :  { %v6832_v58 = vpop.eup %6831  ;;  %v5508_v9 = vmul.f32 %v6830_v11, %v5468_v55  ;;  %5514 = vst [vmem:[%s8885_s4 + $0x27] sm:$0x1] %v5506_v47 }
 0x8c7   :  { %v5509_v21 = vmul.f32 %v6832_v58, %v5469_v54  ;;  %5515 = vst [vmem:[%s8885_s4 + $0x2f] sm:$0x1] %v5507_v20  ;;  %v5528_v19 = vcombine.low %v5506_v47, %v5507_v20  ;;  %v5543_v41 = vrot.slane %v5527_v40, %v9012_v24 }
 0x8c8   :  { %5516 = vst [vmem:[%s8885_s4 + $0x37] sm:$0x1] %v5508_v9 }
 0x8c9   :  { %5517 = vst [vmem:[%s8885_s4 + $0x3f] sm:$0x1] %v5509_v21  ;;  %v5529_v56 = vcombine.low %v5508_v9, %v5509_v21  ;;  %v5558_v52 = vcombine.low %v5536_v35, %v5543_v41  ;;  %v5550_v27 = vrot.slane %v5528_v19, %v9012_v24 }
 0x8cb   :  { %v5557_v2 = vrot.slane %v5529_v56, %v9012_v24  ;;  %v5566_v63 = vrot.slane %v5558_v52, %v9012_v24 }
 0x8cd   :  { %v5559_v12 = vcombine.low %v5550_v27, %v5557_v2 }
 0x8cf   :  { %v5573_v7 = vrot.slane %v5559_v12, %v9012_v24 }
 0x8d1   :  { %v5574_v36 = vcombine.low %v5566_v63, %v5573_v7 }
 0x8d3   :  { %5639 = vst [vmem:[%s8887_s5] sm:$0xff] %v5574_v36 }

</bundles_post_ra>
